<compile_context>
chip_gen: v5e
topology: v5e:2x2
jax: 0.10.0
libtpu: 0.0.40
codegen_flags: <defaults>
</compile_context>

<pallas_src>
import jax
import jax.numpy as jnp
from jax import lax
from jax.experimental import pallas as pl
from jax.experimental.pallas import tpu as pltpu


# ---------------------------------------------------------------------------
# Kernels
# ---------------------------------------------------------------------------
def _vq_kernel(x_ref, dict_ref, hdn_ref, emb_ref, idx_ref):
    """Single-pass kernel: full codebook resident per M-tile.

    x_ref:    [TM, C]    flattened channels-last inputs (native dtype)
    dict_ref: [D,  C]    codebook (grid-invariant, single-buffered)
    hdn_ref:  [1,  D]    0.5 * ||d||^2 (f32, precomputed in the wrapper)
    emb_ref:  [TM, C]    quantized embeddings (output)
    idx_ref:  [1, 1, TM] argmin codebook indices (output, int32, lane-dense)
    """
    x = x_ref[...]
    d = dict_ref[...]

    # <x, d> contracting on C with the RHS in its native [D, C] layout
    # (no d.T -> no per-tile transpose of the codebook).
    dots = lax.dot_general(x, d, (((1,), (1,)), ((), ())),
                           preferred_element_type=jnp.float32)      # [TM, D]

    # argmin_d ||x - d||^2 == argmin_d (0.5*||d||^2 - <x, d>)
    scores = hdn_ref[...] - dots                                     # [TM, D]

    idxs = jnp.argmin(scores, axis=-1).astype(jnp.int32)             # [TM]
    idx_ref[...] = idxs.reshape(idx_ref.shape)                       # lane-dense

    # Embedding gather as one-hot @ dictionary (exact: one 1.0 per row).
    # TODO(synk): on v5e (MXU-bound at large D) benchmark an index-only kernel
    # plus wrapper-side dictionary[idx] gather; the fused gather doubles MXU work.
    tm, dsz = scores.shape
    lane_ids = lax.broadcasted_iota(jnp.int32, (tm, dsz), 1)
    onehot = (lane_ids == idxs[:, None]).astype(d.dtype)             # [TM, D]
    emb_ref[...] = jnp.dot(onehot, d,
                           preferred_element_type=jnp.float32
                           ).astype(emb_ref.dtype)


def _vq_kernel_dtiled(x_ref, dict_ref, hdn_ref, emb_ref, idx_ref,
                      min_sc, arg_sc, emb_sc):
    """D-tiled kernel: running (min, argmin, emb) across codebook tiles.

    Grid = (M-tiles [parallel], D-tiles [arbitrary, innermost]).
    x_ref:    [TM, C]   dict_ref: [DT, C]   hdn_ref: [1, DT]
    emb_ref:  [TM, C]   idx_ref:  [TM, 1]
    Scratch:  min_sc [TM,1] f32, arg_sc [TM,1] i32, emb_sc [TM,C] f32.
    """
    j = pl.program_id(1)
    nd = pl.num_programs(1)

    @pl.when(j == 0)
    def _():
        min_sc[...] = jnp.full_like(min_sc, jnp.inf)
        arg_sc[...] = jnp.zeros_like(arg_sc)
        emb_sc[...] = jnp.zeros_like(emb_sc)

    x = x_ref[...]
    d = dict_ref[...]
    dt = d.shape[0]

    dots = lax.dot_general(x, d, (((1,), (1,)), ((), ())),
                           preferred_element_type=jnp.float32)       # [TM, DT]
    scores = hdn_ref[...] - dots

    local_min = jnp.min(scores, axis=-1, keepdims=True)              # [TM, 1]
    local_arg = jnp.argmin(scores, axis=-1).astype(jnp.int32)        # [TM]
    improved = local_min < min_sc[...]                               # strict: earlier tile wins ties

    tm = scores.shape[0]
    lane_ids = lax.broadcasted_iota(jnp.int32, (tm, dt), 1)
    onehot = (lane_ids == local_arg[:, None]).astype(d.dtype)        # [TM, DT]
    local_emb = jnp.dot(onehot, d, preferred_element_type=jnp.float32)

    min_sc[...] = jnp.where(improved, local_min, min_sc[...])
    arg_sc[...] = jnp.where(improved, local_arg[:, None] + j * dt, arg_sc[...])
    emb_sc[...] = jnp.where(improved, local_emb, emb_sc[...])

    @pl.when(j == nd - 1)
    def _():
        emb_ref[...] = emb_sc[...].astype(emb_ref.dtype)
        # Column store (tm x 1 int32, ~2 KiB) once per M-tile: negligible next
        # to the D/DT matmul steps, and avoids a sublane->lane relayout of the
        # running-argmin scratch.
        idx_ref[...] = arg_sc[...]


# ---------------------------------------------------------------------------
# Sizing helpers
# ---------------------------------------------------------------------------
def _round_up(n, m):
    return ((n + m - 1) // m) * m


def _lane(n):
    return max(_round_up(n, 128), 128)


def _tpu_generation():
    """Return (vmem_capacity_bytes, tensorcores_per_chip) with safe fallbacks."""
    vmem = 128 << 20
    try:
        info = pltpu.get_tpu_info()
        vmem = int(getattr(info, "vmem_capacity_bytes", vmem))
    except Exception:
        pass
    kind = ""
    try:
        kind = jax.devices()[0].device_kind.lower()
    except Exception:
        pass
    is_v7ish = vmem <= (80 << 20) or "v7" in kind or "7x" in kind
    if is_v7ish:
        return min(vmem, 64 << 20), 2
    return vmem, 1


def _vmem_bytes_single(tm, C, D, itemsize, dict_buffers):
    """Working-set estimate for the single-pass kernel (incl. intermediates)."""
    lc, ld = _lane(C), _lane(D)
    x_t = tm * lc * itemsize
    emb_t = tm * lc * itemsize
    idx_t = 8 * _lane(tm) * 4
    dict_b = D * lc * itemsize
    hdn_b = 8 * ld * 4
    scores = tm * ld * 4            # f32 dists slab
    onehot = tm * ld * itemsize     # one-hot intermediate (dict dtype)
    gathered = tm * lc * 4          # f32 gather result before cast
    est = (2 * (x_t + emb_t + idx_t) + dict_buffers * (dict_b + hdn_b)
           + scores + onehot + gathered)
    return est + (4 << 20)


def _vmem_bytes_dtiled(tm, C, dt, itemsize):
    """Working-set estimate for the D-tiled kernel."""
    lc = _lane(C)
    x_t = tm * lc * itemsize
    emb_t = tm * lc * itemsize
    idx_t = tm * 128 * 4
    dict_b = dt * lc * itemsize
    hdn_b = 8 * dt * 4
    scores = tm * dt * 4
    onehot = tm * dt * itemsize
    local_emb = tm * lc * 4
    scratch = 2 * tm * 128 * 4 + tm * lc * 4
    est = (2 * (x_t + emb_t + idx_t + dict_b + hdn_b)
           + scores + onehot + local_emb + scratch)
    return est + (4 << 20)


# ---------------------------------------------------------------------------
# Wrappers
# ---------------------------------------------------------------------------
def vq_quantize_flat(x_flat, dictionary, *, tm=None, dt=None):
    """x_flat: [M, C]; dictionary: [D, C].

    Returns (embedded_flat [M, C], idxs_flat [M] int32).
    `dt` forces the D-tiled (running-argmin) path with that codebook tile.
    """
    M, C = x_flat.shape
    D, _ = dictionary.shape
    itemsize = jnp.dtype(x_flat.dtype).itemsize

    vmem_cap, n_cores = _tpu_generation()
    # ~60-65% of physical leaves headroom for compiler scratch / misc buffers.
    vmem_budget = (40 << 20) if vmem_cap <= (80 << 20) else (96 << 20)

    # --- M-tile selection (generation aware, no input padding) --------------
    if tm is None:
        tm = 512 if vmem_cap <= (80 << 20) else 1024
    tm = min(tm, _round_up(M, 8))             # never larger than needed
    if n_cores >= 2 and M > 256:
        # Guarantee >= 2 grid steps so the "parallel" axis shards over both TCs.
        tm = min(tm, max(128, _round_up(pl.cdiv(M, 2), 128)))
    tm = max(tm, 8)
    grid_m = pl.cdiv(M, tm)

    # Hoisted out of the grid loop: 0.5 * ||d||^2, shape [1, D], f32.
    half_dnorm = (0.5 * jnp.sum(dictionary.astype(jnp.float32) ** 2,
                                axis=-1)).reshape(1, D)

    use_dtile = dt is not None
    if not use_dtile and _vmem_bytes_single(tm, C, D, itemsize, 1) > vmem_budget:
        use_dtile = True

    # ----------------------------- single-pass path -------------------------
    if not use_dtile:
        def _single_pass(single_buffer_invariants):
            dict_buffers = 1 if single_buffer_invariants else 2

            def _invariant_spec(shape):
                if single_buffer_invariants:
                    return pl.BlockSpec(shape, lambda i: (0, 0),
                                        pipeline_mode=pl.Buffered(1))
                return pl.BlockSpec(shape, lambda i: (0, 0))

            vmem_limit = int(min(max(_vmem_bytes_single(tm, C, D, itemsize,
                                                        dict_buffers),
                                     16 << 20), vmem_budget))
            return pl.pallas_call(
                _vq_kernel,
                out_shape=(
                    jax.ShapeDtypeStruct((M, C), x_flat.dtype),
                    jax.ShapeDtypeStruct((grid_m, 1, tm), jnp.int32),
                ),
                grid_spec=pltpu.PrefetchScalarGridSpec(
                    num_scalar_prefetch=0,
                    grid=(grid_m,),
                    in_specs=[
                        pl.BlockSpec((tm, C), lambda i: (i, 0)),
                        _invariant_spec((D, C)),
                        _invariant_spec((1, D)),
                    ],
                    out_specs=[
                        pl.BlockSpec((tm, C), lambda i: (i, 0)),
                        pl.BlockSpec((1, 1, tm), lambda i: (i, 0, 0)),
                    ],
                ),
                compiler_params=pltpu.CompilerParams(
                    dimension_semantics=("parallel",),
                    vmem_limit_bytes=vmem_limit,
                ),
            )(x_flat, dictionary, half_dnorm)

        try:
            emb, idx = _single_pass(True)
        except Exception:
            # pl.Buffered(1) not supported on this jax/libtpu: default buffering.
            emb, idx = _single_pass(False)
        return emb, idx.reshape(-1)[:M]

    # ------------------------------ D-tiled path ----------------------------
    if dt is None:
        dt = 1024
        while dt > 128 and _vmem_bytes_dtiled(tm, C, dt, itemsize) > vmem_budget:
            dt //= 2
    dt = max(128, _round_up(min(dt, _round_up(D, 128)), 128))
    D_pad = _round_up(D, dt)
    if D_pad != D:
        # Padded codebook rows get a huge "norm" so they can never win argmin.
        dictionary = jnp.pad(dictionary, ((0, D_pad - D), (0, 0)))
        half_dnorm = jnp.pad(half_dnorm, ((0, 0), (0, D_pad - D)),
                             constant_values=1e30)
    grid_d = D_pad // dt

    vmem_limit = int(min(max(_vmem_bytes_dtiled(tm, C, dt, itemsize), 16 << 20),
                         vmem_budget))
    emb, idx = pl.pallas_call(
        _vq_kernel_dtiled,
        out_shape=(
            jax.ShapeDtypeStruct((M, C), x_flat.dtype),
            jax.ShapeDtypeStruct((grid_m * tm, 1), jnp.int32),
        ),
        grid_spec=pltpu.PrefetchScalarGridSpec(
            num_scalar_prefetch=0,
            grid=(grid_m, grid_d),
            in_specs=[
                pl.BlockSpec((tm, C), lambda i, j: (i, 0)),
                pl.BlockSpec((dt, C), lambda i, j: (j, 0)),
                pl.BlockSpec((1, dt), lambda i, j: (0, j)),
            ],
            out_specs=[
                pl.BlockSpec((tm, C), lambda i, j: (i, 0)),
                pl.BlockSpec((tm, 1), lambda i, j: (i, 0)),
            ],
            scratch_shapes=[
                pltpu.VMEM((tm, 1), jnp.float32),   # running min score
                pltpu.VMEM((tm, 1), jnp.int32),     # running argmin
                pltpu.VMEM((tm, C), jnp.float32),   # running embedding
            ],
        ),
        compiler_params=pltpu.CompilerParams(
            dimension_semantics=("parallel", "arbitrary"),
            vmem_limit_bytes=vmem_limit,
        ),
    )(x_flat, dictionary, half_dnorm)
    return emb, idx.reshape(-1)[:M]


def vq_forward(inputs, dictionary):
    """Mirror of VQ.forward (eval mode).

    inputs:     [N, C, H, W] (NCHW, like the PyTorch module) or [N, C]
    dictionary: [D, C]

    Returns (embedded, embedded_pt, idxs).
      # TODO(synk): PyTorch returns int64 (Long) idxs; int32 used here.
      # Usage tracker / revive_dead_entries are training-only host-side
      # bookkeeping and not part of the forward kernel.
    """
    if inputs.ndim == 4:
        # NCHW parity with the PyTorch module. NHWC callers should call
        # vq_quantize_flat directly to avoid these two full-tensor transposes.
        N, C, H, W = inputs.shape
        channels_last = jnp.transpose(inputs, (0, 2, 3, 1))   # NHWC
        x_flat = channels_last.reshape(-1, C)
        emb_flat, idx_flat = vq_quantize_flat(x_flat, dictionary)
        embedded = jnp.transpose(emb_flat.reshape(N, H, W, C), (0, 3, 1, 2))
        idxs = idx_flat.reshape(N, H, W)
    else:
        emb_flat, idx_flat = vq_quantize_flat(inputs, dictionary)
        embedded = emb_flat
        idxs = idx_flat

    embedded_pt = jax.lax.stop_gradient(embedded) + (
        inputs - jax.lax.stop_gradient(inputs))
    return embedded, embedded_pt, idxs


def _reference_forward(inputs, dictionary):
    """Pure-JAX reference identical in semantics to the PyTorch module."""
    channels_last = (jnp.transpose(inputs, (0, 2, 3, 1))
                     if inputs.ndim == 4 else inputs)
    dict_norms = jnp.sum(dictionary ** 2, axis=-1)
    t_norms = jnp.sum(channels_last ** 2, axis=-1)
    dots = jnp.einsum("...c,dc->...d", channels_last, dictionary)
    diffs = -2.0 * dots + dict_norms + t_norms[..., None]
    idxs = jnp.argmin(diffs, axis=-1)
    embedded = dictionary[idxs]
    if inputs.ndim == 4:
        embedded = jnp.transpose(embedded, (0, 3, 1, 2))
    return embedded, idxs


if __name__ == "__main__":
    key = jax.random.PRNGKey(0)
    k_dict, k_x, k_x2, k_d3, k_x3 = jax.random.split(key, 5)

    num_channels = 4
    num_latents = 8
    N, H, W = 2, 16, 16

    # Module defaults: dictionary = randn(D, C); NCHW inputs.
    dictionary = jax.random.normal(k_dict, (num_latents, num_channels),
                                   dtype=jnp.float32)
    x = jax.random.normal(k_x, (N, num_channels, H, W), dtype=jnp.float32)

    embedded, embedded_pt, idxs = vq_forward(x, dictionary)
    jax.block_until_ready((embedded, embedded_pt, idxs))

    ref_emb, ref_idx = _reference_forward(x, dictionary)
    assert jnp.array_equal(idxs, ref_idx.astype(jnp.int32)), "idx mismatch"
    assert jnp.allclose(embedded, ref_emb, atol=1e-5), "embedding mismatch"
    assert jnp.allclose(embedded_pt, embedded, atol=1e-5), "pt mismatch"
    assert embedded.shape == x.shape and idxs.shape == (N, H, W)

    # [N, C] path: tiny M, single partial block (no padding, masked stores).
    x2 = jax.random.normal(k_x2, (8, num_channels), dtype=jnp.float32)
    emb2, emb2_pt, idx2 = vq_forward(x2, dictionary)
    jax.block_until_ready((emb2, emb2_pt, idx2))
    ref_emb2, ref_idx2 = _reference_forward(x2, dictionary)
    assert jnp.array_equal(idx2, ref_idx2.astype(jnp.int32)), "2d idx mismatch"
    assert jnp.allclose(emb2, ref_emb2, atol=1e-5), "2d embedding mismatch"
    assert emb2.shape == x2.shape and idx2.shape == (8,)

    # Exercise the D-tiled (running-argmin) path at small shapes.
    dict3 = jax.random.normal(k_d3, (256, 128), dtype=jnp.float32)
    x3 = jax.random.normal(k_x3, (384, 128), dtype=jnp.float32)
    emb3, idx3 = vq_quantize_flat(x3, dict3, dt=128)
    jax.block_until_ready((emb3, idx3))
    ref_emb3, ref_idx3 = _reference_forward(x3, dict3)
    assert jnp.array_equal(idx3, ref_idx3.astype(jnp.int32)), "dtile idx mismatch"
    assert jnp.allclose(emb3, ref_emb3, atol=1e-5), "dtile embedding mismatch"
    assert emb3.shape == x3.shape and idx3.shape == (384,)

    print("KERNEL_OK")
</pallas_src>

<mosaic_0001>
module attributes {stable_mosaic.version = 11 : i64} {
  func.func @_vq_kernel(%arg0: i32, %arg1: memref<512x4xf32, #tpu.memory_space<vmem>>, %arg2: memref<8x4xf32, #tpu.memory_space<vmem>>, %arg3: memref<1x8xf32, #tpu.memory_space<vmem>>, %arg4: memref<512x4xf32, #tpu.memory_space<vmem>>, %arg5: memref<1x1x512xi32, #tpu.memory_space<vmem>>) attributes {dimension_semantics = [#tpu.dimension_semantics<parallel>], iteration_bounds = array<i64: 1>, scalar_prefetch = 0 : i64, scratch_operands = 0 : i64, tpu.core_type = #tpu.core_type<tc>, window_params = [{transform_indices = @transform_0, window_bounds = array<i64: 512, 4>}, {pipeline_mode = #tpu.pipeline_mode<synchronous>, transform_indices = @transform_1, window_bounds = array<i64: 8, 4>}, {pipeline_mode = #tpu.pipeline_mode<synchronous>, transform_indices = @transform_2, window_bounds = array<i64: 1, 8>}, {transform_indices = @transform_3, window_bounds = array<i64: 512, 4>}, {transform_indices = @transform_4, window_bounds = array<i64: 1, 1, 512>}]} {
    %c0 = arith.constant 0 : index
    %c0_0 = arith.constant 0 : index
    %0 = vector.load %arg1[%c0, %c0_0] : memref<512x4xf32, #tpu.memory_space<vmem>>, vector<512x4xf32>
    %c0_1 = arith.constant 0 : index
    %c0_2 = arith.constant 0 : index
    %1 = vector.load %arg2[%c0_1, %c0_2] : memref<8x4xf32, #tpu.memory_space<vmem>>, vector<8x4xf32>
    %cst = arith.constant dense<0.000000e+00> : vector<512x8xf32>
    %2 = tpu.matmul %0, %1, %cst {dimension_numbers = #tpu.dot_dimension_numbers<[1], [1], [0], [0], [0, 0, 1, 0], [], []>} : vector<512x4xf32>, vector<8x4xf32>, vector<512x8xf32> -> vector<512x8xf32>
    %c0_3 = arith.constant 0 : index
    %c0_4 = arith.constant 0 : index
    %3 = vector.load %arg3[%c0_3, %c0_4] : memref<1x8xf32, #tpu.memory_space<vmem>>, vector<1x8xf32>
    %4 = vector.broadcast %3 : vector<1x8xf32> to vector<512x8xf32>
    %5 = arith.subf %4, %2 : vector<512x8xf32>
    %6 = tpu.reduce_index %5 {axis = 1 : i32, kind = #tpu.reduction_kind<arg_min>} : vector<512x8xf32> -> vector<512xi32>
    %7 = vector.shape_cast %6 : vector<512xi32> to vector<1x1x512xi32>
    %c0_5 = arith.constant 0 : index
    %c0_6 = arith.constant 0 : index
    %c0_7 = arith.constant 0 : index
    %8 = vector.load %arg5[%c0_5, %c0_6, %c0_7] : memref<1x1x512xi32, #tpu.memory_space<vmem>>, vector<1x1x512xi32>
    tpu.vector_store %arg5[%c0_5, %c0_6, %c0_7], %7 {strides = array<i32>} : memref<1x1x512xi32, #tpu.memory_space<vmem>>, vector<1x1x512xi32>,
    %9 = tpu.iota {dimensions = array<i32: 1>} : vector<512x8xi32>
    %10 = vector.shape_cast %6 : vector<512xi32> to vector<512x1xi32>
    %11 = vector.broadcast %10 : vector<512x1xi32> to vector<512x8xi32>
    %12 = arith.cmpi eq, %9, %11 : vector<512x8xi32>
    %13 = arith.extui %12 : vector<512x8xi1> to vector<512x8xi32>
    %14 = arith.sitofp %13 : vector<512x8xi32> to vector<512x8xf32>
    %cst_8 = arith.constant dense<0.000000e+00> : vector<512x4xf32>
    %15 = tpu.matmul %14, %1, %cst_8 {dimension_numbers = #tpu.dot_dimension_numbers<[1], [0], [0], [1], [0, 0, 1, 1], [], []>} : vector<512x8xf32>, vector<8x4xf32>, vector<512x4xf32> -> vector<512x4xf32>
    %c0_9 = arith.constant 0 : index
    %c0_10 = arith.constant 0 : index
    %16 = vector.load %arg4[%c0_9, %c0_10] : memref<512x4xf32, #tpu.memory_space<vmem>>, vector<512x4xf32>
    tpu.vector_store %arg4[%c0_9, %c0_10], %15 {strides = array<i32>} : memref<512x4xf32, #tpu.memory_space<vmem>>, vector<512x4xf32>,
    return
  }
  func.func @transform_0(%arg0: i32) -> (i32, i32) {
    %c0_i32 = arith.constant 0 : i32
    %c0_i32_0 = arith.constant 0 : i32
    return %arg0, %c0_i32 : i32, i32
  }
  func.func @transform_1(%arg0: i32) -> (i32, i32) {
    %c0_i32 = arith.constant 0 : i32
    %c0_i32_0 = arith.constant 0 : i32
    %c0_i32_1 = arith.constant 0 : i32
    return %c0_i32, %c0_i32_0 : i32, i32
  }
  func.func @transform_2(%arg0: i32) -> (i32, i32) {
    %c0_i32 = arith.constant 0 : i32
    %c0_i32_0 = arith.constant 0 : i32
    %c0_i32_1 = arith.constant 0 : i32
    return %c0_i32, %c0_i32_0 : i32, i32
  }
  func.func @transform_3(%arg0: i32) -> (i32, i32) {
    %c0_i32 = arith.constant 0 : i32
    %c0_i32_0 = arith.constant 0 : i32
    return %arg0, %c0_i32 : i32, i32
  }
  func.func @transform_4(%arg0: i32) -> (i32, i32, i32) {
    %c0_i32 = arith.constant 0 : i32
    %c0_i32_0 = arith.constant 0 : i32
    %c0_i32_1 = arith.constant 0 : i32
    return %arg0, %c0_i32, %c0_i32_0 : i32, i32, i32
  }
}

module attributes {stable_mosaic.version = 11 : i64} {
  func.func @_vq_kernel(%arg0: i32, %arg1: memref<512x4xf32, #tpu.memory_space<vmem>>, %arg2: memref<8x4xf32, #tpu.memory_space<vmem>>, %arg3: memref<1x8xf32, #tpu.memory_space<vmem>>, %arg4: memref<512x4xf32, #tpu.memory_space<vmem>>, %arg5: memref<1x1x512xi32, #tpu.memory_space<vmem>>) attributes {dimension_semantics = [#tpu.dimension_semantics<parallel>], iteration_bounds = array<i64: 1>, scalar_prefetch = 0 : i64, scratch_operands = 0 : i64, tpu.core_type = #tpu.core_type<tc>, window_params = [{transform_indices = @transform_0, window_bounds = array<i64: 512, 4>}, {pipeline_mode = #tpu.pipeline_mode<synchronous>, transform_indices = @transform_1, window_bounds = array<i64: 8, 4>}, {pipeline_mode = #tpu.pipeline_mode<synchronous>, transform_indices = @transform_2, window_bounds = array<i64: 1, 8>}, {transform_indices = @transform_3, window_bounds = array<i64: 512, 4>}, {transform_indices = @transform_4, window_bounds = array<i64: 1, 1, 512>}]} {
    %c0 = arith.constant 0 : index
    %c0_0 = arith.constant 0 : index
    %0 = vector.load %arg1[%c0, %c0_0] : memref<512x4xf32, #tpu.memory_space<vmem>>, vector<512x4xf32>
    %c0_1 = arith.constant 0 : index
    %c0_2 = arith.constant 0 : index
    %1 = vector.load %arg2[%c0_1, %c0_2] : memref<8x4xf32, #tpu.memory_space<vmem>>, vector<8x4xf32>
    %cst = arith.constant dense<0.000000e+00> : vector<512x8xf32>
    %2 = tpu.matmul %0, %1, %cst {dimension_numbers = #tpu.dot_dimension_numbers<[1], [1], [0], [0], [0, 0, 1, 0], [], []>} : vector<512x4xf32>, vector<8x4xf32>, vector<512x8xf32> -> vector<512x8xf32>
    %c0_3 = arith.constant 0 : index
    %c0_4 = arith.constant 0 : index
    %3 = vector.load %arg3[%c0_3, %c0_4] : memref<1x8xf32, #tpu.memory_space<vmem>>, vector<1x8xf32>
    %4 = vector.broadcast %3 : vector<1x8xf32> to vector<512x8xf32>
    %5 = arith.subf %4, %2 : vector<512x8xf32>
    %6 = tpu.reduce_index %5 {axis = 1 : i32, kind = #tpu.reduction_kind<arg_min>} : vector<512x8xf32> -> vector<512xi32>
    %7 = vector.shape_cast %6 : vector<512xi32> to vector<1x1x512xi32>
    %c0_5 = arith.constant 0 : index
    %c0_6 = arith.constant 0 : index
    %c0_7 = arith.constant 0 : index
    %8 = vector.load %arg5[%c0_5, %c0_6, %c0_7] : memref<1x1x512xi32, #tpu.memory_space<vmem>>, vector<1x1x512xi32>
    tpu.vector_store %arg5[%c0_5, %c0_6, %c0_7], %7 {strides = array<i32>} : memref<1x1x512xi32, #tpu.memory_space<vmem>>, vector<1x1x512xi32>,
    %9 = tpu.iota {dimensions = array<i32: 1>} : vector<512x8xi32>
    %10 = vector.shape_cast %6 : vector<512xi32> to vector<512x1xi32>
    %11 = vector.broadcast %10 : vector<512x1xi32> to vector<512x8xi32>
    %12 = arith.cmpi eq, %9, %11 : vector<512x8xi32>
    %13 = arith.extui %12 : vector<512x8xi1> to vector<512x8xi32>
    %14 = arith.sitofp %13 : vector<512x8xi32> to vector<512x8xf32>
    %cst_8 = arith.constant dense<0.000000e+00> : vector<512x4xf32>
    %15 = tpu.matmul %14, %1, %cst_8 {dimension_numbers = #tpu.dot_dimension_numbers<[1], [0], [0], [1], [0, 0, 1, 1], [], []>} : vector<512x8xf32>, vector<8x4xf32>, vector<512x4xf32> -> vector<512x4xf32>
    %c0_9 = arith.constant 0 : index
    %c0_10 = arith.constant 0 : index
    %16 = vector.load %arg4[%c0_9, %c0_10] : memref<512x4xf32, #tpu.memory_space<vmem>>, vector<512x4xf32>
    tpu.vector_store %arg4[%c0_9, %c0_10], %15 {strides = array<i32>} : memref<512x4xf32, #tpu.memory_space<vmem>>, vector<512x4xf32>,
    return
  }
  func.func @transform_0(%arg0: i32) -> (i32, i32) {
    %c0_i32 = arith.constant 0 : i32
    %c0_i32_0 = arith.constant 0 : i32
    return %arg0, %c0_i32 : i32, i32
  }
  func.func @transform_1(%arg0: i32) -> (i32, i32) {
    %c0_i32 = arith.constant 0 : i32
    %c0_i32_0 = arith.constant 0 : i32
    %c0_i32_1 = arith.constant 0 : i32
    return %c0_i32, %c0_i32_0 : i32, i32
  }
  func.func @transform_2(%arg0: i32) -> (i32, i32) {
    %c0_i32 = arith.constant 0 : i32
    %c0_i32_0 = arith.constant 0 : i32
    %c0_i32_1 = arith.constant 0 : i32
    return %c0_i32, %c0_i32_0 : i32, i32
  }
  func.func @transform_3(%arg0: i32) -> (i32, i32) {
    %c0_i32 = arith.constant 0 : i32
    %c0_i32_0 = arith.constant 0 : i32
    return %arg0, %c0_i32 : i32, i32
  }
  func.func @transform_4(%arg0: i32) -> (i32, i32, i32) {
    %c0_i32 = arith.constant 0 : i32
    %c0_i32_0 = arith.constant 0 : i32
    %c0_i32_1 = arith.constant 0 : i32
    return %arg0, %c0_i32, %c0_i32_0 : i32, i32, i32
  }
}

</mosaic_0001>

<bundles_post_ra>
// kernel: tpu_custom_call.1
= control target key start
LH: loop header
LB: loop body
LE: loop exit
PB: predicated region body
PF: predicated region fallthrough
CT: control target
= control target key end

     0   :  { %vm82_vm0 = vcmask 31744   ;;  %s5015_s0 = inlined_call_operand.vmem [shape: f32[512,4], index: 0, kind: input, shape index: {}]   ;;  %s5016_s1 = inlined_call_operand.vmem [shape: f32[8,4], index: 1, kind: input, shape index: {}]   ;;  %s5017_s2 = inlined_call_operand.vmem [shape: f32[1,8], index: 2, kind: input, shape index: {}]   ;;  %s5018_s3 = inlined_call_operand.vmem [shape: f32[512,4], index: 3, kind: output, shape index: {0}]   ;;  %s5019_s4 = inlined_call_operand.hbm [shape: s32[1,1,512], index: 4, kind: output, shape index: {1}]  }
   0x1   :  { %v81_v0 = vld [vmem:[%s5016_s1] sm:$0xff] }
   0x2   :  { %2882 = vmatpush.xpose.msk.msra.mxu0 %vm82_vm0, %v81_v0  ;;  %v17_v1 = vld [vmem:[%s5015_s0] sm:$0xff]  ;;  %3075 = vmatpush.xpose.msk.msra.mxu2 %vm82_vm0, %v81_v0 }
   0x3   :  { %2604 = vmatpush.msra.mxu1 %v81_v0  ;;  %3076 = vmatpush.msra.mxu3 %v81_v0 }
   0x4   :  { %10 = vsyncpa [#allocation3], 0  ;;  %v18_v2 = vld [vmem:[%s5015_s0 + $0x8] sm:$0xff]  ;;  %v19_v3 = vld [vmem:[%s5015_s0 + $0x10] sm:$0xff]  ;;  %vm555_vm1 = vcmask 64512   ;;  %s2871_s29 = sshll.u32 %s5019_s4, 4  ;;  %s2872_s29 = int_to_ptr.hbm [resolvable:$true] %s2871_s29 }
   0x5   :  { %2883 = vmatmul.msk.f32.vlgmr.msra.gmra.mxu0 %vm82_vm0, %v17_v1  ;;  %v20_v4 = vld [vmem:[%s5015_s0 + $0x18] sm:$0xff]  ;;  %v49_v5 = vld [vmem:[%s5015_s0 + $0x100] sm:$0xff]  ;;  %v50_v7 = vld [vmem:[%s5015_s0 + $0x108] sm:$0xff] }
   0x6   :  { %2915 = vmatmul.msk.f32.vlgmr.msra.gmra.mxu2 %vm82_vm0, %v49_v5  ;;  %v21_v6 = vld [vmem:[%s5015_s0 + $0x20] sm:$0xff]  ;;  %v22_v8 = vld [vmem:[%s5015_s0 + $0x28] sm:$0xff]  ;;  %v51_v9 = vld [vmem:[%s5015_s0 + $0x110] sm:$0xff] }
   0x7   :  { %v23_v10 = vld [vmem:[%s5015_s0 + $0x30] sm:$0xff]  ;;  %v52_v11 = vld [vmem:[%s5015_s0 + $0x118] sm:$0xff]  ;;  %v53_v13 = vld [vmem:[%s5015_s0 + $0x120] sm:$0xff] }
   0x8   :  { %v24_v12 = vld [vmem:[%s5015_s0 + $0x38] sm:$0xff]  ;;  %v25_v14 = vld [vmem:[%s5015_s0 + $0x40] sm:$0xff]  ;;  %v54_v15 = vld [vmem:[%s5015_s0 + $0x128] sm:$0xff] }
   0x9   :  { %v26_v16 = vld [vmem:[%s5015_s0 + $0x48] sm:$0xff]  ;;  %v55_v17 = vld [vmem:[%s5015_s0 + $0x130] sm:$0xff]  ;;  %v56_v19 = vld [vmem:[%s5015_s0 + $0x138] sm:$0xff] }
   0xa   :  { %v27_v18 = vld [vmem:[%s5015_s0 + $0x50] sm:$0xff]  ;;  %v28_v20 = vld [vmem:[%s5015_s0 + $0x58] sm:$0xff]  ;;  %v57_v21 = vld [vmem:[%s5015_s0 + $0x140] sm:$0xff] }
   0xb   :  { %v29_v22 = vld [vmem:[%s5015_s0 + $0x60] sm:$0xff]  ;;  %v58_v23 = vld [vmem:[%s5015_s0 + $0x148] sm:$0xff]  ;;  %v59_v25 = vld [vmem:[%s5015_s0 + $0x150] sm:$0xff] }
   0xc   :  { %v30_v24 = vld [vmem:[%s5015_s0 + $0x68] sm:$0xff]  ;;  %v31_v26 = vld [vmem:[%s5015_s0 + $0x70] sm:$0xff]  ;;  %v60_v27 = vld [vmem:[%s5015_s0 + $0x158] sm:$0xff] }
   0xd   :  { %2884 = vmatmul.msk.f32.gmra.mxu0 %vm82_vm0, %v18_v2  ;;  %v32_v28 = vld [vmem:[%s5015_s0 + $0x78] sm:$0xff]  ;;  %v61_v29 = vld [vmem:[%s5015_s0 + $0x160] sm:$0xff]  ;;  %v62_v35 = vld [vmem:[%s5015_s0 + $0x168] sm:$0xff] }
   0xe   :  { %2916 = vmatmul.msk.f32.gmra.mxu2 %vm82_vm0, %v50_v7  ;;  %v3263_v30 = vld [vmem:[%s5017_s2] ss:$0 sm:$0xff]  ;;  %v34_v37 = vld [vmem:[%s5015_s0 + $0x88] sm:$0xff]  ;;  %v63_v40 = vld [vmem:[%s5015_s0 + $0x170] sm:$0xff] }
   0xf   :  { %v33_v32 = vld [vmem:[%s5015_s0 + $0x80] sm:$0xff]  ;;  %v35_v42 = vld [vmem:[%s5015_s0 + $0x90] sm:$0xff]  ;;  %v64_v45 = vld [vmem:[%s5015_s0 + $0x178] sm:$0xff] }
  0x10   :  { %v36_v47 = vld [vmem:[%s5015_s0 + $0x98] sm:$0xff]  ;;  %v65_v50 = vld [vmem:[%s5015_s0 + $0x180] sm:$0xff]  ;;  %v66_v55 = vld [vmem:[%s5015_s0 + $0x188] sm:$0xff] }
  0x11   :  { %v37_v52 = vld [vmem:[%s5015_s0 + $0xa0] sm:$0xff]  ;;  %v38_v57 = vld [vmem:[%s5015_s0 + $0xa8] sm:$0xff]  ;;  %v67_v60 = vld [vmem:[%s5015_s0 + $0x190] sm:$0xff] }
  0x12   :  { %v39_v62 = vld [vmem:[%s5015_s0 + $0xb0] sm:$0xff]  ;;  %v68_v1 = vld [vmem:[%s5015_s0 + $0x198] sm:$0xff] }
  0x15   :  { %2885 = vmatmul.msk.f32.gmra.mxu0 %vm82_vm0, %v19_v3  ;;  %v40_v3 = vld [vmem:[%s5015_s0 + $0xb8] sm:$0xff] }
  0x16   :  { %2917 = vmatmul.msk.f32.gmra.mxu2 %vm82_vm0, %v51_v9 }
  0x1d   :  { %2886 = vmatmul.msk.f32.gmra.mxu0 %vm82_vm0, %v20_v4 }
  0x1e   :  { %2918 = vmatmul.msk.f32.gmra.mxu2 %vm82_vm0, %v52_v11  ;;  %v70_v11 = vld [vmem:[%s5015_s0 + $0x1a8] sm:$0xff] }
  0x25   :  { %2887 = vmatmul.msk.f32.gmra.mxu0 %vm82_vm0, %v21_v6  ;;  %v69_v6 = vld [vmem:[%s5015_s0 + $0x1a0] sm:$0xff] }
  0x26   :  { %2919 = vmatmul.msk.f32.gmra.mxu2 %vm82_vm0, %v53_v13  ;;  %v42_v13 = vld [vmem:[%s5015_s0 + $0xc8] sm:$0xff] }
  0x2d   :  { %2888 = vmatmul.msk.f32.gmra.mxu0 %vm82_vm0, %v22_v8  ;;  %v41_v8 = vld [vmem:[%s5015_s0 + $0xc0] sm:$0xff] }
  0x2e   :  { %2920 = vmatmul.msk.f32.gmra.mxu2 %vm82_vm0, %v54_v15 }
  0x35   :  { %2889 = vmatmul.msk.f32.gmra.mxu0 %vm82_vm0, %v23_v10 }
  0x36   :  { %2921 = vmatmul.msk.f32.gmra.mxu2 %vm82_vm0, %v55_v17 }
  0x3d   :  { %2890 = vmatmul.msk.f32.gmra.mxu0 %vm82_vm0, %v24_v12 }
  0x3e   :  { %2922 = vmatmul.msk.f32.gmra.mxu2 %vm82_vm0, %v56_v19 }
  0x45   :  { %2891 = vmatmul.msk.f32.gmra.mxu0 %vm82_vm0, %v25_v14 }
  0x46   :  { %2923 = vmatmul.msk.f32.gmra.mxu2 %vm82_vm0, %v57_v21  ;;  %v72_v21 = vld [vmem:[%s5015_s0 + $0x1b8] sm:$0xff] }
  0x4d   :  { %2892 = vmatmul.msk.f32.gmra.mxu0 %vm82_vm0, %v26_v16  ;;  %v71_v16 = vld [vmem:[%s5015_s0 + $0x1b0] sm:$0xff] }
  0x4e   :  { %2924 = vmatmul.msk.f32.gmra.mxu2 %vm82_vm0, %v58_v23  ;;  %v44_v23 = vld [vmem:[%s5015_s0 + $0xd8] sm:$0xff] }
  0x55   :  { %2893 = vmatmul.msk.f32.gmra.mxu0 %vm82_vm0, %v27_v18  ;;  %v43_v18 = vld [vmem:[%s5015_s0 + $0xd0] sm:$0xff] }
  0x56   :  { %2925 = vmatmul.msk.f32.gmra.mxu2 %vm82_vm0, %v59_v25 }
  0x5d   :  { %2894 = vmatmul.msk.f32.gmra.mxu0 %vm82_vm0, %v28_v20 }
  0x5e   :  { %2926 = vmatmul.msk.f32.gmra.mxu2 %vm82_vm0, %v60_v27  ;;  %v45_v27 = vld [vmem:[%s5015_s0 + $0xe0] sm:$0xff] }
  0x65   :  { %2895 = vmatmul.msk.f32.gmra.mxu0 %vm82_vm0, %v29_v22 }
  0x66   :  { %2927 = vmatmul.msk.f32.gmra.mxu2 %vm82_vm0, %v61_v29 }
  0x6d   :  { %2896 = vmatmul.msk.f32.gmra.mxu0 %vm82_vm0, %v30_v24 }
  0x6e   :  { %2928 = vmatmul.msk.f32.gmra.mxu2 %vm82_vm0, %v62_v35 }
  0x75   :  { %2897 = vmatmul.msk.f32.gmra.mxu0 %vm82_vm0, %v31_v26 }
  0x76   :  { %2929 = vmatmul.msk.f32.gmra.mxu2 %vm82_vm0, %v63_v40  ;;  %v2035_v40 = vlaneseq }
  0x7d   :  { %2898 = vmatmul.msk.f32.gmra.mxu0 %vm82_vm0, %v32_v28 }
  0x7e   :  { %2930 = vmatmul.msk.f32.gmra.mxu2 %vm82_vm0, %v64_v45 }
  0x82   :  { %v295_v31 = vpop.f32.mrf.mxu0 }
  0x83   :  { %v491_v33 = vsub.f32 %v3263_v30, %v295_v31  ;;  %v73_v31 = vld [vmem:[%s5015_s0 + $0x1c0] sm:$0xff] }
  0x85   :  { %2899 = vmatmul.msk.f32.gmra.mxu0 %vm82_vm0, %v33_v32  ;;  %v556_v34 = vsel %vm555_vm1, %v491_v33, inf }
  0x86   :  { %557 = vmin.index.xlane.f32.xlu0 %v556_v34  ;;  %2931 = vmatmul.msk.f32.gmra.mxu2 %vm82_vm0, %v65_v50  ;;  %v46_v34 = vld [vmem:[%s5015_s0 + $0xe8] sm:$0xff]  ;;  %v48_v50 = vld [vmem:[%s5015_s0 + $0xf8] sm:$0xff] }
  0x89   :  { %v3391_v32 = vpop.f32.mrf.mxu2 }
  0x8a   :  { %v298_v36 = vpop.f32.mrf.mxu0 }
  0x8b   :  { %v492_v38 = vsub.f32 %v3263_v30, %v298_v36 }
  0x8d   :  { %2900 = vmatmul.msk.f32.gmra.mxu0 %vm82_vm0, %v34_v37  ;;  %v559_v39 = vsel %vm555_vm1, %v492_v38, inf  ;;  %v47_v38 = vld [vmem:[%s5015_s0 + $0xf0] sm:$0xff] }
  0x8e   :  { %560 = vmin.index.xlane.f32.xlu0 %v559_v39  ;;  %2932 = vmatmul.msk.f32.gmra.mxu2 %vm82_vm0, %v66_v55  ;;  %v3112_v55 = vmov 0.0  }
  0x92   :  { %v301_v41 = vpop.f32.mrf.mxu0 }
  0x93   :  { %v493_v43 = vsub.f32 %v3263_v30, %v301_v41  ;;  %v74_v41 = vld [vmem:[%s5015_s0 + $0x1c8] sm:$0xff] }
  0x95   :  { %2901 = vmatmul.msk.f32.gmra.mxu0 %vm82_vm0, %v35_v42  ;;  %v562_v44 = vsel %vm555_vm1, %v493_v43, inf  ;;  %v3407_v42 = vpop.f32.mrf.mxu2 }
  0x96   :  { %563 = vmin.index.xlane.f32.xlu1 %v562_v44  ;;  %2933 = vmatmul.msk.f32.gmra.mxu2 %vm82_vm0, %v67_v60  ;;  %v3413_v44 = vand.u32 127, %v2035_v40 }
  0x9a   :  { %v304_v46 = vpop.f32.mrf.mxu0 }
  0x9b   :  { %v494_v48 = vsub.f32 %v3263_v30, %v304_v46 }
  0x9d   :  { %2902 = vmatmul.msk.f32.gmra.mxu0 %vm82_vm0, %v36_v47  ;;  %v565_v49 = vsel %vm555_vm1, %v494_v48, inf }
  0x9e   :  { %566 = vmin.index.xlane.f32.xlu1 %v565_v49  ;;  %2934 = vmatmul.msk.f32.gmra.mxu2 %vm82_vm0, %v68_v1 }
  0xa2   :  { %v307_v51 = vpop.f32.mrf.mxu0 }
  0xa3   :  { %v495_v53 = vsub.f32 %v3263_v30, %v307_v51 }
  0xa5   :  { %2903 = vmatmul.msk.f32.gmra.mxu0 %vm82_vm0, %v37_v52  ;;  %v568_v54 = vsel %vm555_vm1, %v495_v53, inf }
  0xa6   :  { %569 = vmin.index.xlane.f32.xlu2 %v568_v54  ;;  %2935 = vmatmul.msk.f32.gmra.mxu2 %vm82_vm0, %v69_v6 }
  0xaa   :  { %v310_v56 = vpop.f32.mrf.mxu0 }
  0xab   :  { %v496_v58 = vsub.f32 %v3263_v30, %v310_v56 }
  0xad   :  { %2904 = vmatmul.msk.f32.gmra.mxu0 %vm82_vm0, %v38_v57  ;;  %v571_v59 = vsel %vm555_vm1, %v496_v58, inf }
  0xae   :  { %572 = vmin.index.xlane.f32.xlu2 %v571_v59  ;;  %2936 = vmatmul.msk.f32.gmra.mxu2 %vm82_vm0, %v70_v11 }
  0xb2   :  { %v313_v61 = vpop.f32.mrf.mxu0 }
  0xb3   :  { %v497_v63 = vsub.f32 %v3263_v30, %v313_v61 }
  0xb5   :  { %2905 = vmatmul.msk.f32.gmra.mxu0 %vm82_vm0, %v39_v62  ;;  %v574_v0 = vsel %vm555_vm1, %v497_v63, inf  ;;  %v75_v63 = vld [vmem:[%s5015_s0 + $0x1d0] sm:$0xff] }
  0xb6   :  { %575 = vmin.index.xlane.f32.xlu0 %v574_v0  ;;  %2937 = vmatmul.msk.f32.gmra.mxu2 %vm82_vm0, %v71_v16  ;;  %v3429_v0 = vpop.f32.mrf.mxu2 }
  0xba   :  { %v316_v2 = vpop.f32.mrf.mxu0 }
  0xbb   :  { %v498_v4 = vsub.f32 %v3263_v30, %v316_v2 }
  0xbd   :  { %2906 = vmatmul.msk.f32.gmra.mxu0 %vm82_vm0, %v40_v3  ;;  %v577_v5 = vsel %vm555_vm1, %v498_v4, inf }
  0xbe   :  { %578 = vmin.index.xlane.f32.xlu1 %v577_v5  ;;  %2938 = vmatmul.msk.f32.gmra.mxu2 %vm82_vm0, %v72_v21 }
  0xc2   :  { %v319_v7 = vpop.f32.mrf.mxu0 }
  0xc3   :  { %v499_v9 = vsub.f32 %v3263_v30, %v319_v7 }
  0xc5   :  { %2907 = vmatmul.msk.f32.gmra.mxu0 %vm82_vm0, %v41_v8  ;;  %v580_v10 = vsel %vm555_vm1, %v499_v9, inf }
  0xc6   :  { %581 = vmin.index.xlane.f32.xlu2 %v580_v10  ;;  %2939 = vmatmul.msk.f32.gmra.mxu2 %vm82_vm0, %v73_v31 }
  0xca   :  { %v322_v12 = vpop.f32.mrf.mxu0 }
  0xcb   :  { %v500_v14 = vsub.f32 %v3263_v30, %v322_v12 }
  0xcd   :  { %2908 = vmatmul.msk.f32.gmra.mxu0 %vm82_vm0, %v42_v13  ;;  %v583_v15 = vsel %vm555_vm1, %v500_v14, inf }
  0xce   :  { %584 = vmin.index.xlane.f32.xlu0 %v583_v15  ;;  %2940 = vmatmul.msk.f32.gmra.mxu2 %vm82_vm0, %v74_v41  ;;  %v77_v41 = vld [vmem:[%s5015_s0 + $0x1e0] sm:$0xff] }
  0xd2   :  { %v325_v17 = vpop.f32.mrf.mxu0 }
  0xd3   :  { %v501_v19 = vsub.f32 %v3263_v30, %v325_v17 }
  0xd5   :  { %2909 = vmatmul.msk.f32.gmra.mxu0 %vm82_vm0, %v43_v18  ;;  %v586_v20 = vsel %vm555_vm1, %v501_v19, inf  ;;  %v76_v19 = vld [vmem:[%s5015_s0 + $0x1d8] sm:$0xff] }
  0xd6   :  { %587 = vmin.index.xlane.f32.xlu1 %v586_v20  ;;  %2941 = vmatmul.msk.f32.gmra.mxu2 %vm82_vm0, %v75_v63  ;;  %v3447_v20 = vpop.f32.mrf.mxu2 }
  0xda   :  { %v328_v22 = vpop.f32.mrf.mxu0 }
  0xdb   :  { %v502_v24 = vsub.f32 %v3263_v30, %v328_v22 }
  0xdd   :  { %2910 = vmatmul.msk.f32.gmra.mxu0 %vm82_vm0, %v44_v23  ;;  %v589_v25 = vsel %vm555_vm1, %v502_v24, inf }
  0xde   :  { %590 = vmin.index.xlane.f32.xlu2 %v589_v25  ;;  %2942 = vmatmul.msk.f32.gmra.mxu2 %vm82_vm0, %v76_v19 }
  0xe2   :  { %v331_v26 = vpop.f32.mrf.mxu0 }
  0xe3   :  { %v503_v28 = vsub.f32 %v3263_v30, %v331_v26 }
  0xe5   :  { %2911 = vmatmul.msk.f32.gmra.mxu0 %vm82_vm0, %v45_v27  ;;  %v592_v29 = vsel %vm555_vm1, %v503_v28, inf }
  0xe6   :  { %593 = vmin.index.xlane.f32.xlu0 %v592_v29 }
  0xea   :  { %v334_v33 = vpop.f32.mrf.mxu0 }
  0xeb   :  { %v504_v35 = vsub.f32 %v3263_v30, %v334_v33 }
  0xed   :  { %2912 = vmatmul.msk.f32.gmra.mxu0 %vm82_vm0, %v46_v34  ;;  %v595_v36 = vsel %vm555_vm1, %v504_v35, inf }
  0xee   :  { %596 = vmin.index.xlane.f32.xlu1 %v595_v36 }
  0xf2   :  { %v337_v37 = vpop.f32.mrf.mxu0 }
  0xf3   :  { %v505_v39 = vsub.f32 %v3263_v30, %v337_v37 }
  0xf5   :  { %2913 = vmatmul.msk.f32.gmra.mxu0 %vm82_vm0, %v47_v38  ;;  %v598_v43 = vsel %vm555_vm1, %v505_v39, inf }
  0xf6   :  { %599 = vmin.index.xlane.f32.xlu2 %v598_v43  ;;  %v3469_v43 = vpop.f32.mrf.mxu2  ;;  %2943 = vmatmul.msk.f32.gmra.mxu2 %vm82_vm0, %v77_v41 }
  0xf9   :  { %v558_v45 = vpop.xlane.xlu0 %557 }
  0xfa   :  { %v748_v46 = vperm.slane %v558_v45, 0  ;;  %v749_v47 = vperm.slane %v558_v45, 1  ;;  %v750_v48 = vperm.slane %v558_v45, 2  ;;  %v340_v49 = vpop.f32.mrf.mxu0  ;;  %v751_v51 = vperm.slane %v558_v45, 3 }
  0xfb   :  { %v752_v52 = vperm.slane %v558_v45, 4  ;;  %v506_v53 = vsub.f32 %v3263_v30, %v340_v49  ;;  %vm2205_vm2 = vcmp.eq.s32.totalorder %v3413_v44, %v558_v45  ;;  %v753_v54 = vperm.slane %v558_v45, 5 }
  0xfc   :  { %1260 = vst [vmem:[#allocation1] ss:$9 sm:$0xff] %v748_v46  ;;  %v2947_v56 = vsel %vm2205_vm2, 1.0, %v3112_v55  ;;  %v754_v57 = vperm.slane %v558_v45, 6  ;;  %v755_v59 = vperm.slane %v558_v45, 7 }
  0xfd   :  { %1262 = vst [vmem:[#allocation1 + $0x1] ss:$9 sm:$0xff] %v749_v47  ;;  %2914 = vmatmul.msk.f32.gmra.mxu0 %vm82_vm0, %v48_v50  ;;  %3011 = vmatmul.msk.f32.vlgmr.msra.gmra.mxu1 %vm555_vm1, %v2947_v56  ;;  %v601_v58 = vsel %vm555_vm1, %v506_v53, inf }
  0xfe   :  { %1264 = vst [vmem:[#allocation1 + $0x2] ss:$9 sm:$0xff] %v750_v48  ;;  %602 = vmin.index.xlane.f32.xlu0 %v601_v58 }
  0xff   :  { %1266 = vst [vmem:[#allocation1 + $0x3] ss:$9 sm:$0xff] %v751_v51 }
 0x100   :  { %1268 = vst [vmem:[#allocation1 + $0x4] ss:$9 sm:$0xff] %v752_v52 }
 0x101   :  { %1270 = vst [vmem:[#allocation1 + $0x5] ss:$9 sm:$0xff] %v753_v54  ;;  %v561_v60 = vpop.xlane.xlu0 %560 }
 0x102   :  { %1272 = vst [vmem:[#allocation1 + $0x6] ss:$9 sm:$0xff] %v754_v57  ;;  %v343_v61 = vpop.f32.mrf.mxu0  ;;  %vm2206_vm3 = vcmp.eq.s32.totalorder %v3413_v44, %v561_v60  ;;  %v756_v3 = vperm.slane %v561_v60, 0  ;;  %v757_v4 = vperm.slane %v561_v60, 1  ;;  %v758_v5 = vperm.slane %v561_v60, 2 }
 0x103   :  { %1274 = vst [vmem:[#allocation1 + $0x7] ss:$9 sm:$0xff] %v755_v59  ;;  %v507_v62 = vsub.f32 %v3263_v30, %v343_v61  ;;  %v2948_v1 = vsel %vm2206_vm3, 1.0, %v3112_v55  ;;  %v759_v8 = vperm.slane %v561_v60, 3  ;;  %v760_v10 = vperm.slane %v561_v60, 4  ;;  %v3493_v61 = vpop.f32.mrf.mxu2 }
 0x104   :  { %v761_v11 = vperm.slane %v561_v60, 5  ;;  %v762_v13 = vperm.slane %v561_v60, 6  ;;  %v763_v15 = vperm.slane %v561_v60, 7  ;;  %v78_v60 = vld [vmem:[%s5015_s0 + $0x1e8] sm:$0xff] }
 0x105   :  { %3012 = vmatmul.msk.f32.gmra.mxu1 %vm555_vm1, %v2948_v1  ;;  %v604_v2 = vsel %vm555_vm1, %v507_v62, inf  ;;  %2944 = vmatmul.msk.f32.gmra.mxu2 %vm82_vm0, %v78_v60 }
 0x106   :  { %605 = vmin.index.xlane.f32.xlu1 %v604_v2 }
 0x109   :  { %v564_v6 = vpop.xlane.xlu1 %563 }
 0x10a   :  { %v3435_v7 = vld [vmem:[#allocation1] sm:$0xff]  ;;  %v346_v9 = vpop.f32.mrf.mxu0  ;;  %vm2207_vm4 = vcmp.eq.s32.totalorder %v3413_v44, %v564_v6  ;;  %v764_v23 = vperm.slane %v564_v6, 0  ;;  %v765_v25 = vperm.slane %v564_v6, 1  ;;  %v766_v26 = vperm.slane %v564_v6, 2 }
 0x10b   :  { %1276 = vst [vmem:[#allocation1] ss:$9 sm:$0xff] %v756_v3  ;;  %v508_v12 = vsub.f32 %v3263_v30, %v346_v9  ;;  %v2949_v14 = vsel %vm2207_vm4, 1.0, %v3112_v55  ;;  %v767_v28 = vperm.slane %v564_v6, 3  ;;  %v768_v29 = vperm.slane %v564_v6, 4 }
 0x10c   :  { %1277 = vst [vmem:[#allocation1 + $0x1] ss:$9 sm:$0xff] %v757_v4  ;;  %v769_v33 = vperm.slane %v564_v6, 5  ;;  %v770_v34 = vperm.slane %v564_v6, 6  ;;  %v771_v35 = vperm.slane %v564_v6, 7 }
 0x10d   :  { %1278 = vst [vmem:[#allocation1 + $0x2] ss:$9 sm:$0xff] %v758_v5  ;;  %3013 = vmatmul.msk.f32.gmra.mxu1 %vm555_vm1, %v2949_v14  ;;  %v607_v16 = vsel %vm555_vm1, %v508_v12, inf  ;;  %v79_v14 = vld [vmem:[%s5015_s0 + $0x1f0] sm:$0xff] }
 0x10e   :  { %1279 = vst [vmem:[#allocation1 + $0x3] ss:$9 sm:$0xff] %v759_v8  ;;  %608 = vmin.index.xlane.f32.xlu2 %v607_v16 }
 0x10f   :  { %1280 = vst [vmem:[#allocation1 + $0x4] ss:$9 sm:$0xff] %v760_v10 }
 0x110   :  { %1281 = vst [vmem:[#allocation1 + $0x5] ss:$9 sm:$0xff] %v761_v11 }
 0x111   :  { %1282 = vst [vmem:[#allocation1 + $0x6] ss:$9 sm:$0xff] %v762_v13  ;;  %v3442_v17 = vpop.xlane.xlu1 %566 }
 0x112   :  { %1283 = vst [vmem:[#allocation1 + $0x7] ss:$9 sm:$0xff] %v763_v15  ;;  %v349_v18 = vpop.f32.mrf.mxu0  ;;  %vm2208_vm5 = vcmp.eq.s32.totalorder %v3413_v44, %v3442_v17  ;;  %v772_v45 = vperm.slane %v3442_v17, 0  ;;  %v773_v46 = vperm.slane %v3442_v17, 1  ;;  %v774_v47 = vperm.slane %v3442_v17, 2  ;;  %v3517_v15 = vpop.f32.mrf.mxu2  ;;  %2945 = vmatmul.msk.f32.gmra.mxu2 %vm82_vm0, %v79_v14 }
 0x113   :  { %v509_v21 = vsub.f32 %v3263_v30, %v349_v18  ;;  %v2950_v22 = vsel %vm2208_vm5, 1.0, %v3112_v55  ;;  %v775_v49 = vperm.slane %v3442_v17, 3  ;;  %v776_v50 = vperm.slane %v3442_v17, 4 }
 0x114   :  { %v777_v52 = vperm.slane %v3442_v17, 5  ;;  %v778_v53 = vperm.slane %v3442_v17, 6  ;;  %v779_v54 = vperm.slane %v3442_v17, 7 }
 0x115   :  { %3014 = vmatmul.msk.f32.gmra.mxu1 %vm555_vm1, %v2950_v22  ;;  %v610_v24 = vsel %vm555_vm1, %v509_v21, inf }
 0x116   :  { %611 = vmin.index.xlane.f32.xlu0 %v610_v24 }
 0x119   :  { %v3456_v27 = vld [vmem:[#allocation1] sm:$0xff]  ;;  %v3458_v31 = vpop.xlane.xlu2 %569 }
 0x11a   :  { %1285 = vst [vmem:[#allocation1] ss:$9 sm:$0xff] %v764_v23  ;;  %v352_v36 = vpop.f32.mrf.mxu0  ;;  %vm2209_vm6 = vcmp.eq.s32.totalorder %v3413_v44, %v3458_v31  ;;  %v780_v62 = vperm.slane %v3458_v31, 0  ;;  %v781_v63 = vperm.slane %v3458_v31, 1  ;;  %v782_v1 = vperm.slane %v3458_v31, 2 }
 0x11b   :  { %1286 = vst [vmem:[#allocation1 + $0x1] ss:$9 sm:$0xff] %v765_v25  ;;  %v510_v37 = vsub.f32 %v3263_v30, %v352_v36  ;;  %v2951_v38 = vsel %vm2209_vm6, 1.0, %v3112_v55  ;;  %v783_v3 = vperm.slane %v3458_v31, 3  ;;  %v784_v4 = vperm.slane %v3458_v31, 4  ;;  %v3540_v36 = vpop.f32.mrf.mxu2 }
 0x11c   :  { %1287 = vst [vmem:[#allocation1 + $0x2] ss:$9 sm:$0xff] %v766_v26  ;;  %v785_v6 = vperm.slane %v3458_v31, 5  ;;  %v786_v8 = vperm.slane %v3458_v31, 6  ;;  %v787_v9 = vperm.slane %v3458_v31, 7 }
 0x11d   :  { %1288 = vst [vmem:[#allocation1 + $0x3] ss:$9 sm:$0xff] %v767_v28  ;;  %3015 = vmatmul.msk.f32.gmra.mxu1 %vm555_vm1, %v2951_v38  ;;  %v613_v39 = vsel %vm555_vm1, %v510_v37, inf }
 0x11e   :  { %1289 = vst [vmem:[#allocation1 + $0x4] ss:$9 sm:$0xff] %v768_v29  ;;  %614 = vmin.index.xlane.f32.xlu1 %v613_v39 }
 0x11f   :  { %1290 = vst [vmem:[#allocation1 + $0x5] ss:$9 sm:$0xff] %v769_v33 }
 0x120   :  { %1291 = vst [vmem:[#allocation1 + $0x6] ss:$9 sm:$0xff] %v770_v34 }
 0x121   :  { %1292 = vst [vmem:[#allocation1 + $0x7] ss:$9 sm:$0xff] %v771_v35  ;;  %v3479_v51 = vpop.xlane.xlu2 %572 }
 0x122   :  { %v355_v56 = vpop.f32.mrf.mxu0  ;;  %vm2210_vm7 = vcmp.eq.s32.totalorder %v3413_v44, %v3479_v51  ;;  %v788_v16 = vperm.slane %v3479_v51, 0  ;;  %v789_v17 = vperm.slane %v3479_v51, 1  ;;  %v790_v18 = vperm.slane %v3479_v51, 2 }
 0x123   :  { %v511_v57 = vsub.f32 %v3263_v30, %v355_v56  ;;  %v2952_v58 = vsel %vm2210_vm7, 1.0, %v3112_v55  ;;  %v791_v21 = vperm.slane %v3479_v51, 3  ;;  %v792_v22 = vperm.slane %v3479_v51, 4 }
 0x124   :  { %v793_v24 = vperm.slane %v3479_v51, 5  ;;  %v794_v25 = vperm.slane %v3479_v51, 6  ;;  %v795_v26 = vperm.slane %v3479_v51, 7  ;;  %v523_v56 = vsub.f32 %v3263_v30, %v3391_v32 }
 0x125   :  { %3016 = vmatmul.msk.f32.gmra.mxu1 %vm555_vm1, %v2952_v58  ;;  %v616_v59 = vsel %vm555_vm1, %v511_v57, inf }
 0x126   :  { %617 = vmin.index.xlane.f32.xlu2 %v616_v59 }
 0x128   :  { %v3475_v48 = vld [vmem:[#allocation1] sm:$0xff] }
 0x129   :  { %1294 = vst [vmem:[#allocation1] ss:$9 sm:$0xff] %v772_v45  ;;  %v3503_v5 = vpop.xlane.xlu0 %575 }
 0x12a   :  { %1295 = vst [vmem:[#allocation1 + $0x1] ss:$9 sm:$0xff] %v773_v46  ;;  %v358_v10 = vpop.f32.mrf.mxu0  ;;  %vm2211_vm8 = vcmp.eq.s32.totalorder %v3413_v44, %v3503_v5  ;;  %v796_v34 = vperm.slane %v3503_v5, 0  ;;  %v797_v35 = vperm.slane %v3503_v5, 1  ;;  %v798_v37 = vperm.slane %v3503_v5, 2 }
 0x12b   :  { %1296 = vst [vmem:[#allocation1 + $0x2] ss:$9 sm:$0xff] %v774_v47  ;;  %v512_v11 = vsub.f32 %v3263_v30, %v358_v10  ;;  %v2953_v12 = vsel %vm2211_vm8, 1.0, %v3112_v55  ;;  %v799_v39 = vperm.slane %v3503_v5, 3  ;;  %v800_v41 = vperm.slane %v3503_v5, 4 }
 0x12c   :  { %1297 = vst [vmem:[#allocation1 + $0x3] ss:$9 sm:$0xff] %v775_v49  ;;  %v801_v46 = vperm.slane %v3503_v5, 5  ;;  %v802_v47 = vperm.slane %v3503_v5, 6  ;;  %v803_v49 = vperm.slane %v3503_v5, 7 }
 0x12d   :  { %1298 = vst [vmem:[#allocation1 + $0x4] ss:$9 sm:$0xff] %v776_v50  ;;  %3017 = vmatmul.msk.f32.gmra.mxu1 %vm555_vm1, %v2953_v12  ;;  %v619_v13 = vsel %vm555_vm1, %v512_v11, inf  ;;  %v524_v12 = vsub.f32 %v3263_v30, %v3407_v42 }
 0x12e   :  { %1299 = vst [vmem:[#allocation1 + $0x5] ss:$9 sm:$0xff] %v777_v52  ;;  %620 = vmin.index.xlane.f32.xlu0 %v619_v13 }
 0x12f   :  { %1300 = vst [vmem:[#allocation1 + $0x6] ss:$9 sm:$0xff] %v778_v53 }
 0x130   :  { %1301 = vst [vmem:[#allocation1 + $0x7] ss:$9 sm:$0xff] %v779_v54  ;;  %v3558_v54 = vpop.f32.mrf.mxu2 }
 0x131   :  { %v3527_v23 = vpop.xlane.xlu1 %578 }
 0x132   :  { %v361_v28 = vpop.f32.mrf.mxu0  ;;  %vm2212_vm9 = vcmp.eq.s32.totalorder %v3413_v44, %v3527_v23  ;;  %v804_v57 = vperm.slane %v3527_v23, 0  ;;  %v805_v58 = vperm.slane %v3527_v23, 1  ;;  %v806_v59 = vperm.slane %v3527_v23, 2 }
 0x133   :  { %v513_v29 = vsub.f32 %v3263_v30, %v361_v28  ;;  %v2954_v31 = vsel %vm2212_vm9, 1.0, %v3112_v55  ;;  %v809_v32 = vperm.slane %v3527_v23, 5 }
 0x135   :  { %3018 = vmatmul.msk.f32.gmra.mxu1 %vm555_vm1, %v2954_v31  ;;  %v622_v33 = vsel %vm555_vm1, %v513_v29, inf }
 0x136   :  { %623 = vmin.index.xlane.f32.xlu1 %v622_v33 }
 0x137   :  { %v3499_v2 = vld [vmem:[#allocation1] sm:$0xff] }
 0x138   :  { %1303 = vst [vmem:[#allocation1] ss:$9 sm:$0xff] %v780_v62  ;;  %v807_v62 = vperm.slane %v3527_v23, 3  ;;  %v3574_v5 = vpop.f32.mrf.mxu2 }
 0x139   :  { %1304 = vst [vmem:[#allocation1 + $0x1] ss:$9 sm:$0xff] %v781_v63  ;;  %v3547_v45 = vpop.xlane.xlu2 %581  ;;  %v652_v63 = vsel %vm555_vm1, %v523_v56, inf }
 0x13a   :  { %1305 = vst [vmem:[#allocation1 + $0x2] ss:$9 sm:$0xff] %v782_v1  ;;  %v364_v50 = vpop.f32.mrf.mxu0  ;;  %vm2213_vm10 = vcmp.eq.s32.totalorder %v3413_v44, %v3547_v45  ;;  %v808_v1 = vperm.slane %v3527_v23, 4  ;;  %v812_v13 = vperm.slane %v3547_v45, 0  ;;  %v813_v14 = vperm.slane %v3547_v45, 1 }
 0x13b   :  { %1306 = vst [vmem:[#allocation1 + $0x3] ss:$9 sm:$0xff] %v783_v3  ;;  %v514_v51 = vsub.f32 %v3263_v30, %v364_v50  ;;  %v2955_v52 = vsel %vm2213_vm10, 1.0, %v3112_v55  ;;  %v817_v42 = vperm.slane %v3547_v45, 5 }
 0x13c   :  { %1307 = vst [vmem:[#allocation1 + $0x4] ss:$9 sm:$0xff] %v784_v4  ;;  %v810_v4 = vperm.slane %v3527_v23, 6 }
 0x13d   :  { %1308 = vst [vmem:[#allocation1 + $0x5] ss:$9 sm:$0xff] %v785_v6  ;;  %3019 = vmatmul.msk.f32.gmra.mxu1 %vm555_vm1, %v2955_v52  ;;  %v625_v53 = vsel %vm555_vm1, %v514_v51, inf  ;;  %v811_v6 = vperm.slane %v3527_v23, 7  ;;  %v816_v23 = vperm.slane %v3547_v45, 4 }
 0x13e   :  { %1309 = vst [vmem:[#allocation1 + $0x6] ss:$9 sm:$0xff] %v786_v8  ;;  %626 = vmin.index.xlane.f32.xlu2 %v625_v53 }
 0x13f   :  { %1310 = vst [vmem:[#allocation1 + $0x7] ss:$9 sm:$0xff] %v787_v9 }
 0x141   :  { %v3570_v3 = vpop.xlane.xlu0 %584 }
 0x142   :  { %v367_v8 = vpop.f32.mrf.mxu0  ;;  %vm2214_vm11 = vcmp.eq.s32.totalorder %v3413_v44, %v3570_v3  ;;  %v826_v51 = vperm.slane %v3570_v3, 6  ;;  %v827_v53 = vperm.slane %v3570_v3, 7 }
 0x143   :  { %v515_v9 = vsub.f32 %v3263_v30, %v367_v8  ;;  %v2956_v10 = vsel %vm2214_vm11, 1.0, %v3112_v55 }
 0x145   :  { %3020 = vmatmul.msk.f32.gmra.mxu1 %vm555_vm1, %v2956_v10  ;;  %v628_v11 = vsel %vm555_vm1, %v515_v9, inf }
 0x146   :  { %v3523_v19 = vld [vmem:[#allocation1] sm:$0xff]  ;;  %653 = vmin.index.xlane.f32.xlu2 %v652_v63  ;;  %629 = vmin.index.xlane.f32.xlu0 %v628_v11 }
 0x147   :  { %1312 = vst [vmem:[#allocation1] ss:$9 sm:$0xff] %v788_v16  ;;  %v3587_v16 = vpop.f32.mrf.mxu2 }
 0x148   :  { %1313 = vst [vmem:[#allocation1 + $0x1] ss:$9 sm:$0xff] %v789_v17  ;;  %v814_v17 = vperm.slane %v3547_v45, 2 }
 0x149   :  { %1314 = vst [vmem:[#allocation1 + $0x2] ss:$9 sm:$0xff] %v790_v18 }
 0x14a   :  { %1315 = vst [vmem:[#allocation1 + $0x3] ss:$9 sm:$0xff] %v791_v21  ;;  %v815_v21 = vperm.slane %v3547_v45, 3  ;;  %v370_v28 = vpop.f32.mrf.mxu0 }
 0x14b   :  { %1316 = vst [vmem:[#allocation1 + $0x4] ss:$9 sm:$0xff] %v792_v22  ;;  %v655_v22 = vsel %vm555_vm1, %v524_v12, inf  ;;  %v516_v29 = vsub.f32 %v3263_v30, %v370_v28 }
 0x14c   :  { %1317 = vst [vmem:[#allocation1 + $0x5] ss:$9 sm:$0xff] %v793_v24  ;;  %v3595_v24 = vpop.xlane.xlu1 %587 }
 0x14d   :  { %1318 = vst [vmem:[#allocation1 + $0x6] ss:$9 sm:$0xff] %v794_v25  ;;  %v818_v25 = vperm.slane %v3547_v45, 6  ;;  %vm2215_vm12 = vcmp.eq.s32.totalorder %v3413_v44, %v3595_v24  ;;  %v631_v33 = vsel %vm555_vm1, %v516_v29, inf  ;;  %v828_v63 = vperm.slane %v3595_v24, 0 }
 0x14e   :  { %1319 = vst [vmem:[#allocation1 + $0x7] ss:$9 sm:$0xff] %v795_v26  ;;  %656 = vmin.index.xlane.f32.xlu0 %v655_v22  ;;  %v819_v26 = vperm.slane %v3547_v45, 7  ;;  %v2957_v31 = vsel %vm2215_vm12, 1.0, %v3112_v55  ;;  %632 = vmin.index.xlane.f32.xlu1 %v631_v33  ;;  %v832_v9 = vperm.slane %v3595_v24, 4  ;;  %v834_v11 = vperm.slane %v3595_v24, 6 }
 0x14f   :  { %3021 = vmatmul.msk.f32.gmra.mxu1 %vm555_vm1, %v2957_v31  ;;  %v835_v12 = vperm.slane %v3595_v24, 7 }
 0x151   :  { %v3618_v50 = vpop.xlane.xlu2 %590 }
 0x152   :  { %v373_v56 = vpop.f32.mrf.mxu0  ;;  %vm2216_vm13 = vcmp.eq.s32.totalorder %v3413_v44, %v3618_v50  ;;  %v839_v28 = vperm.slane %v3618_v50, 3  ;;  %v840_v31 = vperm.slane %v3618_v50, 4 }
 0x155   :  { %v3543_v38 = vld [vmem:[#allocation1] sm:$0xff] }
 0x156   :  { %1321 = vst [vmem:[#allocation1] ss:$9 sm:$0xff] %v796_v34  ;;  %v3606_v34 = vpop.f32.mrf.mxu2 }
 0x157   :  { %1322 = vst [vmem:[#allocation1 + $0x1] ss:$9 sm:$0xff] %v797_v35  ;;  %v525_v35 = vsub.f32 %v3263_v30, %v3429_v0  ;;  %v825_v0 = vperm.slane %v3570_v3, 5 }
 0x158   :  { %1323 = vst [vmem:[#allocation1 + $0x2] ss:$9 sm:$0xff] %v798_v37  ;;  %v820_v37 = vperm.slane %v3570_v3, 0 }
 0x159   :  { %1324 = vst [vmem:[#allocation1 + $0x3] ss:$9 sm:$0xff] %v799_v39  ;;  %v821_v39 = vperm.slane %v3570_v3, 1  ;;  %v3643_v10 = vpop.xlane.xlu0 %593 }
 0x15a   :  { %1325 = vst [vmem:[#allocation1 + $0x4] ss:$9 sm:$0xff] %v800_v41  ;;  %v822_v41 = vperm.slane %v3570_v3, 2  ;;  %vm2217_vm14 = vcmp.eq.s32.totalorder %v3413_v44, %v3643_v10 }
 0x15b   :  { %1326 = vst [vmem:[#allocation1 + $0x5] ss:$9 sm:$0xff] %v801_v46  ;;  %v823_v46 = vperm.slane %v3570_v3, 3 }
 0x15c   :  { %1327 = vst [vmem:[#allocation1 + $0x6] ss:$9 sm:$0xff] %v802_v47  ;;  %v658_v47 = vsel %vm555_vm1, %v525_v35, inf  ;;  %v842_v35 = vperm.slane %v3618_v50, 6 }
 0x15d   :  { %1328 = vst [vmem:[#allocation1 + $0x7] ss:$9 sm:$0xff] %v803_v49  ;;  %v824_v49 = vperm.slane %v3570_v3, 4  ;;  %659 = vmin.index.xlane.f32.xlu1 %v658_v47 }
 0x15e   :  { %v3622_v52 = vpop.f32.mrf.mxu2 }
 0x161   :  { %v3666_v33 = vpop.xlane.xlu1 %596 }
 0x162   :  { %vm2218_vm15 = vcmp.eq.s32.totalorder %v3413_v44, %v3666_v33 }
 0x163   :  { %v2960_v47 = vsel %vm2218_vm15, 1.0, %v3112_v55 }
 0x164   :  { %v3565_v60 = vld [vmem:[#allocation1] sm:$0xff] }
 0x165   :  { %1330 = vst [vmem:[#allocation1] ss:$9 sm:$0xff] %v804_v57  ;;  %v517_v57 = vsub.f32 %v3263_v30, %v373_v56  ;;  %v846_v56 = vperm.slane %v3643_v10, 2 }
 0x166   :  { %1331 = vst [vmem:[#allocation1 + $0x1] ss:$9 sm:$0xff] %v805_v58  ;;  %v2958_v58 = vsel %vm2216_vm13, 1.0, %v3112_v55  ;;  %v3635_v3 = vpop.f32.mrf.mxu2 }
 0x167   :  { %1332 = vst [vmem:[#allocation1 + $0x2] ss:$9 sm:$0xff] %v806_v59  ;;  %3022 = vmatmul.msk.f32.gmra.mxu1 %vm555_vm1, %v2958_v58  ;;  %v634_v59 = vsel %vm555_vm1, %v517_v57, inf  ;;  %v847_v58 = vperm.slane %v3643_v10, 3 }
 0x168   :  { %1333 = vst [vmem:[#allocation1 + $0x3] ss:$9 sm:$0xff] %v807_v62  ;;  %635 = vmin.index.xlane.f32.xlu2 %v634_v59  ;;  %v526_v62 = vsub.f32 %v3263_v30, %v3447_v20  ;;  %v833_v20 = vperm.slane %v3595_v24, 5 }
 0x169   :  { %1334 = vst [vmem:[#allocation1 + $0x4] ss:$9 sm:$0xff] %v808_v1  ;;  %v829_v1 = vperm.slane %v3595_v24, 1 }
 0x16a   :  { %1335 = vst [vmem:[#allocation1 + $0x5] ss:$9 sm:$0xff] %v809_v32  ;;  %v830_v32 = vperm.slane %v3595_v24, 2  ;;  %v661_v8 = vsel %vm555_vm1, %v526_v62, inf  ;;  %v848_v62 = vperm.slane %v3643_v10, 4 }
 0x16b   :  { %1336 = vst [vmem:[#allocation1 + $0x6] ss:$9 sm:$0xff] %v810_v4 }
 0x16c   :  { %1337 = vst [vmem:[#allocation1 + $0x7] ss:$9 sm:$0xff] %v811_v6  ;;  %v831_v6 = vperm.slane %v3595_v24, 3  ;;  %v836_v24 = vperm.slane %v3618_v50, 0 }
 0x16e   :  { %v3654_v22 = vpop.f32.mrf.mxu2 }
 0x170   :  { %662 = vmin.index.xlane.f32.xlu2 %v661_v8 }
 0x173   :  { %v3590_v18 = vld [vmem:[#allocation1] sm:$0xff] }
 0x174   :  { %1339 = vst [vmem:[#allocation1] ss:$9 sm:$0xff] %v812_v13  ;;  %v376_v13 = vpop.f32.mrf.mxu0 }
 0x175   :  { %1340 = vst [vmem:[#allocation1 + $0x1] ss:$9 sm:$0xff] %v813_v14  ;;  %v518_v14 = vsub.f32 %v3263_v30, %v376_v13  ;;  %v853_v13 = vperm.slane %v3666_v33, 1 }
 0x176   :  { %1341 = vst [vmem:[#allocation1 + $0x2] ss:$9 sm:$0xff] %v814_v17  ;;  %v2959_v17 = vsel %vm2217_vm14, 1.0, %v3112_v55 }
 0x177   :  { %1342 = vst [vmem:[#allocation1 + $0x3] ss:$9 sm:$0xff] %v815_v21  ;;  %3023 = vmatmul.msk.f32.gmra.mxu1 %vm555_vm1, %v2959_v17  ;;  %v637_v21 = vsel %vm555_vm1, %v518_v14, inf  ;;  %v854_v14 = vperm.slane %v3666_v33, 2 }
 0x178   :  { %1343 = vst [vmem:[#allocation1 + $0x4] ss:$9 sm:$0xff] %v816_v23  ;;  %638 = vmin.index.xlane.f32.xlu0 %v637_v21  ;;  %v527_v23 = vsub.f32 %v3263_v30, %v3469_v43  ;;  %v841_v43 = vperm.slane %v3618_v50, 5  ;;  %v855_v21 = vperm.slane %v3666_v33, 3 }
 0x179   :  { %1344 = vst [vmem:[#allocation1 + $0x5] ss:$9 sm:$0xff] %v817_v42  ;;  %v837_v42 = vperm.slane %v3618_v50, 1 }
 0x17a   :  { %1345 = vst [vmem:[#allocation1 + $0x6] ss:$9 sm:$0xff] %v818_v25  ;;  %v838_v25 = vperm.slane %v3618_v50, 2  ;;  %v664_v29 = vsel %vm555_vm1, %v527_v23, inf }
 0x17b   :  { %1346 = vst [vmem:[#allocation1 + $0x7] ss:$9 sm:$0xff] %v819_v26 }
 0x17f   :  { %3024 = vmatmul.msk.f32.gmra.mxu1 %vm555_vm1, %v2960_v47 }
 0x180   :  { %665 = vmin.index.xlane.f32.xlu0 %v664_v29 }
 0x182   :  { %v3613_v45 = vld [vmem:[#allocation1] sm:$0xff] }
 0x183   :  { %1348 = vst [vmem:[#allocation1] ss:$9 sm:$0xff] %v820_v37  ;;  %v3670_v37 = vpop.f32.mrf.mxu2 }
 0x184   :  { %1349 = vst [vmem:[#allocation1 + $0x1] ss:$9 sm:$0xff] %v821_v39  ;;  %v843_v39 = vperm.slane %v3618_v50, 7  ;;  %v528_v50 = vsub.f32 %v3263_v30, %v3493_v61  ;;  %v849_v61 = vperm.slane %v3643_v10, 5 }
 0x185   :  { %1350 = vst [vmem:[#allocation1 + $0x2] ss:$9 sm:$0xff] %v822_v41  ;;  %v379_v41 = vpop.f32.mrf.mxu0 }
 0x186   :  { %1351 = vst [vmem:[#allocation1 + $0x3] ss:$9 sm:$0xff] %v823_v46  ;;  %v519_v46 = vsub.f32 %v3263_v30, %v379_v41  ;;  %v667_v59 = vsel %vm555_vm1, %v528_v50, inf  ;;  %v2606_v41 = vpop.f32.mrf.mxu1 }
 0x187   :  { %1352 = vst [vmem:[#allocation1 + $0x4] ss:$9 sm:$0xff] %v824_v49 }
 0x188   :  { %1353 = vst [vmem:[#allocation1 + $0x5] ss:$9 sm:$0xff] %v825_v0  ;;  %v640_v49 = vsel %vm555_vm1, %v519_v46, inf  ;;  %v844_v0 = vperm.slane %v3643_v10, 0 }
 0x189   :  { %1354 = vst [vmem:[#allocation1 + $0x6] ss:$9 sm:$0xff] %v826_v51  ;;  %641 = vmin.index.xlane.f32.xlu1 %v640_v49  ;;  %v845_v51 = vperm.slane %v3643_v10, 1 }
 0x18a   :  { %1355 = vst [vmem:[#allocation1 + $0x7] ss:$9 sm:$0xff] %v827_v53 }
 0x18b   :  { %v3683_v53 = vpop.f32.mrf.mxu2  ;;  %2798 = vst.msk [vmem:[%s5018_s3] sm:$0xff] %vm82_vm0, %v2606_v41 }
 0x191   :  { %v3638_v4 = vld [vmem:[#allocation1] sm:$0xff]  ;;  %668 = vmin.index.xlane.f32.xlu1 %v667_v59 }
 0x192   :  { %1357 = vst [vmem:[#allocation1] ss:$9 sm:$0xff] %v828_v63  ;;  %v3691_v63 = vpop.xlane.xlu2 %599 }
 0x193   :  { %1358 = vst [vmem:[#allocation1 + $0x1] ss:$9 sm:$0xff] %v829_v1  ;;  %v850_v1 = vperm.slane %v3643_v10, 6  ;;  %vm2219_vm2 = vcmp.eq.s32.totalorder %v3413_v44, %v3691_v63  ;;  %v860_v46 = vperm.slane %v3691_v63, 0  ;;  %v861_v47 = vperm.slane %v3691_v63, 1 }
 0x194   :  { %1359 = vst [vmem:[#allocation1 + $0x2] ss:$9 sm:$0xff] %v830_v32  ;;  %v851_v32 = vperm.slane %v3643_v10, 7  ;;  %v529_v10 = vsub.f32 %v3263_v30, %v3517_v15  ;;  %v858_v15 = vperm.slane %v3666_v33, 6  ;;  %v862_v50 = vperm.slane %v3691_v63, 2 }
 0x195   :  { %1360 = vst [vmem:[#allocation1 + $0x3] ss:$9 sm:$0xff] %v831_v6  ;;  %v382_v6 = vpop.f32.mrf.mxu0  ;;  %v865_v59 = vperm.slane %v3691_v63, 5 }
 0x196   :  { %1361 = vst [vmem:[#allocation1 + $0x4] ss:$9 sm:$0xff] %v832_v9  ;;  %v520_v8 = vsub.f32 %v3263_v30, %v382_v6  ;;  %v2961_v9 = vsel %vm2219_vm2, 1.0, %v3112_v55  ;;  %v670_v23 = vsel %vm555_vm1, %v529_v10, inf  ;;  %v857_v30 = vperm.slane %v3666_v33, 5  ;;  %v2609_v10 = vpop.f32.mrf.mxu1 }
 0x197   :  { %1362 = vst [vmem:[#allocation1 + $0x5] ss:$9 sm:$0xff] %v833_v20  ;;  %3025 = vmatmul.msk.f32.gmra.mxu1 %vm555_vm1, %v2961_v9 }
 0x198   :  { %1363 = vst [vmem:[#allocation1 + $0x6] ss:$9 sm:$0xff] %v834_v11  ;;  %v643_v20 = vsel %vm555_vm1, %v520_v8, inf  ;;  %v3702_v11 = vpop.f32.mrf.mxu2 }
 0x199   :  { %1364 = vst [vmem:[#allocation1 + $0x7] ss:$9 sm:$0xff] %v835_v12  ;;  %644 = vmin.index.xlane.f32.xlu2 %v643_v20  ;;  %v852_v12 = vperm.slane %v3666_v33, 0 }
 0x19a   :  { %2799 = vst.msk [vmem:[%s5018_s3 + $0x8] sm:$0xff] %vm82_vm0, %v2609_v10 }
 0x19d   :  { %v385_v29 = vpop.f32.mrf.mxu0 }
 0x19e   :  { %v2612_v41 = vpop.f32.mrf.mxu1 }
 0x19f   :  { %2800 = vst.msk [vmem:[%s5018_s3 + $0x10] sm:$0xff] %vm82_vm0, %v2612_v41 }
 0x1a0   :  { %v3661_v26 = vld [vmem:[#allocation1] sm:$0xff] }
 0x1a1   :  { %1366 = vst [vmem:[#allocation1] ss:$9 sm:$0xff] %v836_v24  ;;  %v856_v24 = vperm.slane %v3666_v33, 4  ;;  %671 = vmin.index.xlane.f32.xlu2 %v670_v23 }
 0x1a2   :  { %1367 = vst [vmem:[#allocation1 + $0x1] ss:$9 sm:$0xff] %v837_v42  ;;  %v3714_v42 = vpop.xlane.xlu0 %602 }
 0x1a3   :  { %1368 = vst [vmem:[#allocation1 + $0x2] ss:$9 sm:$0xff] %v838_v25  ;;  %v3718_v25 = vpop.f32.mrf.mxu2  ;;  %vm2220_vm3 = vcmp.eq.s32.totalorder %v3413_v44, %v3714_v42  ;;  %v871_v23 = vperm.slane %v3714_v42, 3 }
 0x1a4   :  { %1369 = vst [vmem:[#allocation1 + $0x3] ss:$9 sm:$0xff] %v839_v28  ;;  %v859_v28 = vperm.slane %v3666_v33, 7 }
 0x1a5   :  { %1370 = vst [vmem:[#allocation1 + $0x4] ss:$9 sm:$0xff] %v840_v31  ;;  %v3726_v31 = vld [vmem:[%s5017_s2] ss:$0 sm:$0xff] }
 0x1a6   :  { %1371 = vst [vmem:[#allocation1 + $0x5] ss:$9 sm:$0xff] %v841_v43  ;;  %v521_v43 = vsub.f32 %v3726_v31, %v385_v29  ;;  %v531_v20 = vsub.f32 %v3726_v31, %v3558_v54  ;;  %v872_v54 = vperm.slane %v3714_v42, 4  ;;  %v535_v29 = vsub.f32 %v3726_v31, %v3622_v52 }
 0x1a7   :  { %1372 = vst [vmem:[#allocation1 + $0x6] ss:$9 sm:$0xff] %v842_v35  ;;  %v2962_v35 = vsel %vm2220_vm3, 1.0, %v3112_v55 }
 0x1a8   :  { %1373 = vst [vmem:[#allocation1 + $0x7] ss:$9 sm:$0xff] %v843_v39  ;;  %3026 = vmatmul.msk.f32.gmra.mxu1 %vm555_vm1, %v2962_v35  ;;  %v646_v33 = vsel %vm555_vm1, %v521_v43, inf  ;;  %v530_v39 = vsub.f32 %v3726_v31, %v3540_v36  ;;  %v874_v43 = vperm.slane %v3714_v42, 6  ;;  %v688_v52 = vsel %vm555_vm1, %v535_v29, inf }
 0x1a9   :  { %647 = vmin.index.xlane.f32.xlu0 %v646_v33  ;;  %v875_v33 = vperm.slane %v3714_v42, 7  ;;  %v539_v29 = vsub.f32 %v3726_v31, %v3683_v53 }
 0x1aa   :  { %v673_v36 = vsel %vm555_vm1, %v530_v39, inf }
 0x1ab   :  { %v3740_v49 = vpop.f32.mrf.mxu2 }
 0x1af   :  { %v3686_v57 = vld [vmem:[#allocation1] sm:$0xff] }
 0x1b0   :  { %1375 = vst [vmem:[#allocation1] ss:$9 sm:$0xff] %v844_v0 }
 0x1b1   :  { %1376 = vst [vmem:[#allocation1 + $0x1] ss:$9 sm:$0xff] %v845_v51  ;;  %v863_v51 = vperm.slane %v3691_v63, 3  ;;  %674 = vmin.index.xlane.f32.xlu0 %v673_v36 }
 0x1b2   :  { %1377 = vst [vmem:[#allocation1 + $0x2] ss:$9 sm:$0xff] %v846_v56  ;;  %v864_v56 = vperm.slane %v3691_v63, 4 }
 0x1b3   :  { %1378 = vst [vmem:[#allocation1 + $0x3] ss:$9 sm:$0xff] %v847_v58  ;;  %v3748_v58 = vpop.xlane.xlu1 %605 }
 0x1b4   :  { %1379 = vst [vmem:[#allocation1 + $0x4] ss:$9 sm:$0xff] %v848_v62  ;;  %v532_v62 = vsub.f32 %v3726_v31, %v3574_v5  ;;  %vm2221_vm4 = vcmp.eq.s32.totalorder %v3413_v44, %v3748_v58 }
 0x1b5   :  { %1380 = vst [vmem:[#allocation1 + $0x5] ss:$9 sm:$0xff] %v849_v61  ;;  %v866_v61 = vperm.slane %v3691_v63, 6  ;;  %v2963_v8 = vsel %vm2221_vm4, 1.0, %v3112_v55 }
 0x1b6   :  { %1381 = vst [vmem:[#allocation1 + $0x6] ss:$9 sm:$0xff] %v850_v1  ;;  %v867_v1 = vperm.slane %v3691_v63, 7  ;;  %3027 = vmatmul.msk.f32.gmra.mxu1 %vm555_vm1, %v2963_v8  ;;  %v679_v5 = vsel %vm555_vm1, %v532_v62, inf  ;;  %v3762_v63 = vpop.f32.mrf.mxu2  ;;  %v3812_v62 = vpop.xlane.xlu0 %611  ;;  %v882_v8 = vperm.slane %v3748_v58, 6 }
 0x1b7   :  { %1382 = vst [vmem:[#allocation1 + $0x7] ss:$9 sm:$0xff] %v851_v32  ;;  %v388_v32 = vpop.f32.mrf.mxu0  ;;  %680 = vmin.index.xlane.f32.xlu2 %v679_v5  ;;  %v883_v5 = vperm.slane %v3748_v58, 7  ;;  %vm2223_vm6 = vcmp.eq.s32.totalorder %v3413_v44, %v3812_v62  ;;  %v893_v41 = vperm.slane %v3812_v62, 1 }
 0x1b8   :  { %v522_v6 = vsub.f32 %v3726_v31, %v388_v32  ;;  %v536_v32 = vsub.f32 %v3726_v31, %v3635_v3 }
 0x1ba   :  { %v649_v9 = vsel %vm555_vm1, %v522_v6, inf  ;;  %v538_v6 = vsub.f32 %v3726_v31, %v3670_v37  ;;  %v691_v3 = vsel %vm555_vm1, %v536_v32, inf  ;;  %v540_v32 = vsub.f32 %v3726_v31, %v3702_v11 }
 0x1bb   :  { %650 = vmin.index.xlane.f32.xlu1 %v649_v9  ;;  %v2965_v9 = vsel %vm2223_vm6, 1.0, %v3112_v55 }
 0x1be   :  { %v3709_v17 = vld [vmem:[#allocation1] sm:$0xff]  ;;  %v3786_v35 = vpop.f32.mrf.mxu2 }
 0x1bf   :  { %1384 = vst [vmem:[#allocation1] ss:$9 sm:$0xff] %v852_v12  ;;  %v868_v12 = vperm.slane %v3714_v42, 0  ;;  %689 = vmin.index.xlane.f32.xlu2 %v688_v52 }
 0x1c0   :  { %1385 = vst [vmem:[#allocation1 + $0x1] ss:$9 sm:$0xff] %v853_v13  ;;  %v869_v13 = vperm.slane %v3714_v42, 1 }
 0x1c1   :  { %1386 = vst [vmem:[#allocation1 + $0x2] ss:$9 sm:$0xff] %v854_v14  ;;  %v870_v14 = vperm.slane %v3714_v42, 2 }
 0x1c2   :  { %1387 = vst [vmem:[#allocation1 + $0x3] ss:$9 sm:$0xff] %v855_v21 }
 0x1c3   :  { %1388 = vst [vmem:[#allocation1 + $0x4] ss:$9 sm:$0xff] %v856_v24  ;;  %v676_v24 = vsel %vm555_vm1, %v531_v20, inf  ;;  %v2615_v20 = vpop.f32.mrf.mxu1 }
 0x1c4   :  { %1389 = vst [vmem:[#allocation1 + $0x5] ss:$9 sm:$0xff] %v857_v30  ;;  %v3778_v30 = vpop.xlane.xlu2 %608  ;;  %677 = vmin.index.xlane.f32.xlu1 %v676_v24 }
 0x1c5   :  { %1390 = vst [vmem:[#allocation1 + $0x6] ss:$9 sm:$0xff] %v858_v15  ;;  %v873_v15 = vperm.slane %v3714_v42, 5  ;;  %vm2222_vm5 = vcmp.eq.s32.totalorder %v3413_v44, %v3778_v30  ;;  %v884_v10 = vperm.slane %v3778_v30, 0  ;;  %v888_v24 = vperm.slane %v3778_v30, 4 }
 0x1c6   :  { %1391 = vst [vmem:[#allocation1 + $0x7] ss:$9 sm:$0xff] %v859_v28  ;;  %v533_v28 = vsub.f32 %v3726_v31, %v3587_v16  ;;  %v2964_v39 = vsel %vm2222_vm5, 1.0, %v3112_v55  ;;  %v80_v16 = vld [vmem:[%s5015_s0 + $0x1f8] sm:$0xff] }
 0x1c7   :  { %3028 = vmatmul.msk.f32.gmra.mxu1 %vm555_vm1, %v2964_v39  ;;  %2946 = vmatmul.msk.f32.gmra.mxu2 %vm82_vm0, %v80_v16  ;;  %2801 = vst.msk [vmem:[%s5018_s3 + $0x18] sm:$0xff] %vm82_vm0, %v2615_v20  ;;  %v891_v39 = vperm.slane %v3778_v30, 7 }
 0x1c8   :  { %v682_v42 = vsel %vm555_vm1, %v533_v28, inf  ;;  %v537_v28 = vsub.f32 %v3726_v31, %v3654_v22 }
 0x1c9   :  { %683 = vmin.index.xlane.f32.xlu0 %v682_v42  ;;  %v892_v42 = vperm.slane %v3812_v62, 0 }
 0x1ca   :  { %v694_v52 = vsel %vm555_vm1, %v537_v28, inf  ;;  %v543_v28 = vsub.f32 %v3726_v31, %v3762_v63 }
 0x1cd   :  { %v3743_v0 = vld [vmem:[#allocation1] sm:$0xff] }
 0x1ce   :  { %1393 = vst [vmem:[#allocation1] ss:$9 sm:$0xff] %v860_v46  ;;  %v876_v46 = vperm.slane %v3748_v58, 0 }
 0x1cf   :  { %1394 = vst [vmem:[#allocation1 + $0x1] ss:$9 sm:$0xff] %v861_v47  ;;  %v877_v47 = vperm.slane %v3748_v58, 1  ;;  %3029 = vmatmul.msk.f32.gmra.mxu1 %vm555_vm1, %v2965_v9  ;;  %v899_v9 = vperm.slane %v3812_v62, 7 }
 0x1d0   :  { %1395 = vst [vmem:[#allocation1 + $0x2] ss:$9 sm:$0xff] %v862_v50  ;;  %v3805_v50 = vpop.f32.mrf.mxu2 }
 0x1d1   :  { %1396 = vst [vmem:[#allocation1 + $0x3] ss:$9 sm:$0xff] %v863_v51  ;;  %v878_v51 = vperm.slane %v3748_v58, 2  ;;  %692 = vmin.index.xlane.f32.xlu0 %v691_v3 }
 0x1d2   :  { %1397 = vst [vmem:[#allocation1 + $0x4] ss:$9 sm:$0xff] %v864_v56  ;;  %v879_v56 = vperm.slane %v3748_v58, 3 }
 0x1d3   :  { %1398 = vst [vmem:[#allocation1 + $0x5] ss:$9 sm:$0xff] %v865_v59  ;;  %v880_v59 = vperm.slane %v3748_v58, 4 }
 0x1d4   :  { %1399 = vst [vmem:[#allocation1 + $0x6] ss:$9 sm:$0xff] %v866_v61  ;;  %v881_v61 = vperm.slane %v3748_v58, 5 }
 0x1d5   :  { %1400 = vst [vmem:[#allocation1 + $0x7] ss:$9 sm:$0xff] %v867_v1  ;;  %v534_v1 = vsub.f32 %v3726_v31, %v3606_v34  ;;  %v697_v34 = vsel %vm555_vm1, %v538_v6, inf  ;;  %v542_v6 = vsub.f32 %v3726_v31, %v3740_v49 }
 0x1d6   :  { %698 = vmin.index.xlane.f32.xlu2 %v697_v34 }
 0x1d7   :  { %v685_v37 = vsel %vm555_vm1, %v534_v1, inf  ;;  %v897_v1 = vperm.slane %v3812_v62, 5  ;;  %v709_v49 = vsel %vm555_vm1, %v542_v6, inf }
 0x1d8   :  { %v3830_v58 = vpop.f32.mrf.mxu2  ;;  %686 = vmin.index.xlane.f32.xlu1 %v685_v37 }
 0x1dc   :  { %v3773_v21 = vld [vmem:[#allocation1] sm:$0xff] }
 0x1dd   :  { %1402 = vst [vmem:[#allocation1] ss:$9 sm:$0xff] %v868_v12  ;;  %v885_v12 = vperm.slane %v3778_v30, 1 }
 0x1de   :  { %1403 = vst [vmem:[#allocation1 + $0x1] ss:$9 sm:$0xff] %v869_v13  ;;  %v886_v13 = vperm.slane %v3778_v30, 2 }
 0x1df   :  { %1404 = vst [vmem:[#allocation1 + $0x2] ss:$9 sm:$0xff] %v870_v14 }
 0x1e0   :  { %1405 = vst [vmem:[#allocation1 + $0x3] ss:$9 sm:$0xff] %v871_v23  ;;  %v887_v23 = vperm.slane %v3778_v30, 3  ;;  %v3854_v16 = vpop.f32.mrf.mxu2  ;;  %695 = vmin.index.xlane.f32.xlu1 %v694_v52 }
 0x1e1   :  { %1406 = vst [vmem:[#allocation1 + $0x4] ss:$9 sm:$0xff] %v872_v54  ;;  %v3843_v54 = vpop.xlane.xlu1 %614 }
 0x1e2   :  { %1407 = vst [vmem:[#allocation1 + $0x5] ss:$9 sm:$0xff] %v873_v15  ;;  %v889_v15 = vperm.slane %v3778_v30, 5  ;;  %vm2224_vm7 = vcmp.eq.s32.totalorder %v3413_v44, %v3843_v54  ;;  %v900_v37 = vperm.slane %v3843_v54, 0  ;;  %v901_v20 = vperm.slane %v3843_v54, 1 }
 0x1e3   :  { %1408 = vst [vmem:[#allocation1 + $0x6] ss:$9 sm:$0xff] %v874_v43  ;;  %v541_v43 = vsub.f32 %v3726_v31, %v3718_v25  ;;  %v2966_v22 = vsel %vm2224_vm7, 1.0, %v3112_v55  ;;  %v700_v25 = vsel %vm555_vm1, %v539_v29, inf  ;;  %v545_v29 = vsub.f32 %v3726_v31, %v3805_v50 }
 0x1e4   :  { %1409 = vst [vmem:[#allocation1 + $0x7] ss:$9 sm:$0xff] %v875_v33  ;;  %v890_v33 = vperm.slane %v3778_v30, 6  ;;  %3030 = vmatmul.msk.f32.gmra.mxu1 %vm555_vm1, %v2966_v22  ;;  %701 = vmin.index.xlane.f32.xlu0 %v700_v25  ;;  %v2618_v30 = vpop.f32.mrf.mxu1 }
 0x1e5   :  { %v706_v53 = vsel %vm555_vm1, %v541_v43, inf  ;;  %2802 = vst.msk [vmem:[%s5018_s3 + $0x20] sm:$0xff] %vm82_vm0, %v2618_v30  ;;  %v547_v43 = vsub.f32 %v3726_v31, %v3854_v16  ;;  %v718_v50 = vsel %vm555_vm1, %v545_v29, inf  ;;  %v712_v16 = vsel %vm555_vm1, %v543_v28, inf }
 0x1e6   :  { %707 = vmin.index.xlane.f32.xlu2 %v706_v53 }
 0x1e7   :  { %v724_v63 = vsel %vm555_vm1, %v547_v43, inf }
 0x1eb   :  { %v3808_v36 = vld [vmem:[#allocation1] sm:$0xff] }
 0x1ec   :  { %1411 = vst [vmem:[#allocation1] ss:$9 sm:$0xff] %v876_v46  ;;  %v894_v46 = vperm.slane %v3812_v62, 2  ;;  %710 = vmin.index.xlane.f32.xlu0 %v709_v49  ;;  %v2621_v3 = vpop.f32.mrf.mxu1 }
 0x1ed   :  { %1412 = vst [vmem:[#allocation1 + $0x1] ss:$9 sm:$0xff] %v877_v47  ;;  %v3870_v47 = vpop.f32.mrf.mxu2 }
 0x1ee   :  { %1413 = vst [vmem:[#allocation1 + $0x2] ss:$9 sm:$0xff] %v878_v51  ;;  %v548_v6 = vsub.f32 %v3726_v31, %v3870_v47 }
 0x1ef   :  { %1414 = vst [vmem:[#allocation1 + $0x3] ss:$9 sm:$0xff] %v879_v56  ;;  %v895_v56 = vperm.slane %v3812_v62, 3 }
 0x1f0   :  { %1415 = vst [vmem:[#allocation1 + $0x4] ss:$9 sm:$0xff] %v880_v59  ;;  %v896_v59 = vperm.slane %v3812_v62, 4  ;;  %v727_v47 = vsel %vm555_vm1, %v548_v6, inf }
 0x1f1   :  { %1416 = vst [vmem:[#allocation1 + $0x5] ss:$9 sm:$0xff] %v881_v61  ;;  %v3876_v61 = vpop.xlane.xlu2 %617 }
 0x1f2   :  { %1417 = vst [vmem:[#allocation1 + $0x6] ss:$9 sm:$0xff] %v882_v8  ;;  %v544_v8 = vsub.f32 %v3726_v31, %v3786_v35  ;;  %vm2225_vm8 = vcmp.eq.s32.totalorder %v3413_v44, %v3876_v61  ;;  %v703_v35 = vsel %vm555_vm1, %v540_v32, inf  ;;  %v908_v25 = vperm.slane %v3876_v61, 0 }
 0x1f3   :  { %1418 = vst [vmem:[#allocation1 + $0x7] ss:$9 sm:$0xff] %v883_v5  ;;  %v898_v5 = vperm.slane %v3812_v62, 6  ;;  %v2967_v34 = vsel %vm2225_vm8, 1.0, %v3112_v55  ;;  %704 = vmin.index.xlane.f32.xlu1 %v703_v35  ;;  %v909_v52 = vperm.slane %v3876_v61, 1  ;;  %v910_v30 = vperm.slane %v3876_v61, 2 }
 0x1f4   :  { %3031 = vmatmul.msk.f32.gmra.mxu1 %vm555_vm1, %v2967_v34  ;;  %v715_v11 = vsel %vm555_vm1, %v544_v8, inf  ;;  %2803 = vst.msk [vmem:[%s5018_s3 + $0x28] sm:$0xff] %vm82_vm0, %v2621_v3  ;;  %719 = vmin.index.xlane.f32.xlu0 %v718_v50  ;;  %v546_v32 = vsub.f32 %v3726_v31, %v3830_v58  ;;  %v914_v8 = vperm.slane %v3876_v61, 6 }
 0x1f5   :  { %716 = vmin.index.xlane.f32.xlu2 %v715_v11  ;;  %v3894_v62 = vpop.f32.mrf.mxu2 }
 0x1f6   :  { %v721_v11 = vsel %vm555_vm1, %v546_v32, inf  ;;  %v549_v28 = vsub.f32 %v3726_v31, %v3894_v62 }
 0x1fa   :  { %v3839_v14 = vld [vmem:[#allocation1] sm:$0xff] }
 0x1fb   :  { %1420 = vst [vmem:[#allocation1] ss:$9 sm:$0xff] %v884_v10  ;;  %v902_v10 = vperm.slane %v3843_v54, 2  ;;  %713 = vmin.index.xlane.f32.xlu1 %v712_v16 }
 0x1fc   :  { %1421 = vst [vmem:[#allocation1 + $0x1] ss:$9 sm:$0xff] %v885_v12  ;;  %728 = vmin.index.xlane.f32.xlu0 %v727_v47 }
 0x1fd   :  { %1422 = vst [vmem:[#allocation1 + $0x2] ss:$9 sm:$0xff] %v886_v13  ;;  %v903_v13 = vperm.slane %v3843_v54, 3  ;;  %v472_v22 = vpop.f32.mrf.mxu2  ;;  %725 = vmin.index.xlane.f32.xlu2 %v724_v63 }
 0x1fe   :  { %1423 = vst [vmem:[#allocation1 + $0x3] ss:$9 sm:$0xff] %v887_v23  ;;  %v904_v23 = vperm.slane %v3843_v54, 4 }
 0x1ff   :  { %1424 = vst [vmem:[#allocation1 + $0x4] ss:$9 sm:$0xff] %v888_v24  ;;  %v3907_v24 = vpop.xlane.xlu0 %620 }
 0x200   :  { %1425 = vst [vmem:[#allocation1 + $0x5] ss:$9 sm:$0xff] %v889_v15  ;;  %v905_v15 = vperm.slane %v3843_v54, 5  ;;  %vm2226_vm9 = vcmp.eq.s32.totalorder %v3413_v44, %v3907_v24  ;;  %v916_v35 = vperm.slane %v3907_v24, 0  ;;  %v917_v3 = vperm.slane %v3907_v24, 1 }
 0x201   :  { %1426 = vst [vmem:[#allocation1 + $0x6] ss:$9 sm:$0xff] %v890_v33  ;;  %v906_v33 = vperm.slane %v3843_v54, 6  ;;  %v2968_v53 = vsel %vm2226_vm9, 1.0, %v3112_v55  ;;  %v922_v29 = vperm.slane %v3907_v24, 6 }
 0x202   :  { %1427 = vst [vmem:[#allocation1 + $0x7] ss:$9 sm:$0xff] %v891_v39  ;;  %v907_v39 = vperm.slane %v3843_v54, 7  ;;  %3032 = vmatmul.msk.f32.gmra.mxu1 %vm555_vm1, %v2968_v53  ;;  %v2624_v54 = vpop.f32.mrf.mxu1 }
 0x203   :  { %2804 = vst.msk [vmem:[%s5018_s3 + $0x30] sm:$0xff] %vm82_vm0, %v2624_v54  ;;  %722 = vmin.index.xlane.f32.xlu1 %v721_v11 }
 0x209   :  { %v3872_v51 = vld [vmem:[#allocation1] sm:$0xff] }
 0x20a   :  { %1429 = vst [vmem:[#allocation1] ss:$9 sm:$0xff] %v892_v42  ;;  %v475_v42 = vpop.f32.mrf.mxu2  ;;  %v2627_v49 = vpop.f32.mrf.mxu1 }
 0x20b   :  { %1430 = vst [vmem:[#allocation1 + $0x1] ss:$9 sm:$0xff] %v893_v41  ;;  %v551_v43 = vsub.f32 %v3726_v31, %v475_v42 }
 0x20c   :  { %1431 = vst [vmem:[#allocation1 + $0x2] ss:$9 sm:$0xff] %v894_v46  ;;  %v911_v46 = vperm.slane %v3876_v61, 3 }
 0x20d   :  { %1432 = vst [vmem:[#allocation1 + $0x3] ss:$9 sm:$0xff] %v895_v56  ;;  %v912_v56 = vperm.slane %v3876_v61, 4  ;;  %v736_v63 = vsel %vm555_vm1, %v551_v43, inf }
 0x20e   :  { %1433 = vst [vmem:[#allocation1 + $0x4] ss:$9 sm:$0xff] %v896_v59  ;;  %v3936_v59 = vpop.xlane.xlu1 %623  ;;  %737 = vmin.index.xlane.f32.xlu0 %v736_v63 }
 0x20f   :  { %1434 = vst [vmem:[#allocation1 + $0x5] ss:$9 sm:$0xff] %v897_v1  ;;  %v913_v1 = vperm.slane %v3876_v61, 5  ;;  %vm2227_vm10 = vcmp.eq.s32.totalorder %v3413_v44, %v3936_v59  ;;  %v924_v16 = vperm.slane %v3936_v59, 0  ;;  %v925_v54 = vperm.slane %v3936_v59, 1 }
 0x210   :  { %1435 = vst [vmem:[#allocation1 + $0x6] ss:$9 sm:$0xff] %v898_v5  ;;  %v550_v5 = vsub.f32 %v3726_v31, %v472_v22  ;;  %v2969_v34 = vsel %vm2227_vm10, 1.0, %v3112_v55  ;;  %v928_v42 = vperm.slane %v3936_v59, 4  ;;  %v931_v6 = vperm.slane %v3936_v59, 7 }
 0x211   :  { %1436 = vst [vmem:[#allocation1 + $0x7] ss:$9 sm:$0xff] %v899_v9  ;;  %v915_v9 = vperm.slane %v3876_v61, 7  ;;  %3033 = vmatmul.msk.f32.gmra.mxu1 %vm555_vm1, %v2969_v34 }
 0x212   :  { %v733_v58 = vsel %vm555_vm1, %v550_v5, inf  ;;  %v478_v61 = vpop.f32.mrf.mxu2  ;;  %2805 = vst.msk [vmem:[%s5018_s3 + $0x38] sm:$0xff] %vm82_vm0, %v2627_v49  ;;  %v2630_v50 = vpop.f32.mrf.mxu1 }
 0x213   :  { %734 = vmin.index.xlane.f32.xlu2 %v733_v58  ;;  %2806 = vst.msk [vmem:[%s5018_s3 + $0x40] sm:$0xff] %vm82_vm0, %v2630_v50  ;;  %v552_v32 = vsub.f32 %v3726_v31, %v478_v61 }
 0x215   :  { %v739_v5 = vsel %vm555_vm1, %v552_v32, inf }
 0x216   :  { %v4015_v49 = vpop.xlane.xlu1 %632 }
 0x217   :  { %vm2230_vm13 = vcmp.eq.s32.totalorder %v3413_v44, %v4015_v49 }
 0x218   :  { %v3903_v12 = vld [vmem:[#allocation1] sm:$0xff] }
 0x219   :  { %1438 = vst [vmem:[#allocation1] ss:$9 sm:$0xff] %v900_v37  ;;  %v918_v37 = vperm.slane %v3907_v24, 2 }
 0x21a   :  { %1439 = vst [vmem:[#allocation1 + $0x1] ss:$9 sm:$0xff] %v901_v20 }
 0x21b   :  { %1440 = vst [vmem:[#allocation1 + $0x2] ss:$9 sm:$0xff] %v902_v10  ;;  %v919_v10 = vperm.slane %v3907_v24, 3 }
 0x21c   :  { %1441 = vst [vmem:[#allocation1 + $0x3] ss:$9 sm:$0xff] %v903_v13  ;;  %v920_v13 = vperm.slane %v3907_v24, 4 }
 0x21d   :  { %1442 = vst [vmem:[#allocation1 + $0x4] ss:$9 sm:$0xff] %v904_v23  ;;  %v3964_v23 = vpop.xlane.xlu2 %626 }
 0x21e   :  { %1443 = vst [vmem:[#allocation1 + $0x5] ss:$9 sm:$0xff] %v905_v15  ;;  %v921_v15 = vperm.slane %v3907_v24, 5  ;;  %vm2228_vm11 = vcmp.eq.s32.totalorder %v3413_v44, %v3964_v23  ;;  %v934_v34 = vperm.slane %v3964_v23, 2  ;;  %v935_v47 = vperm.slane %v3964_v23, 3 }
 0x21f   :  { %1444 = vst [vmem:[#allocation1 + $0x6] ss:$9 sm:$0xff] %v906_v33  ;;  %v923_v33 = vperm.slane %v3907_v24, 7  ;;  %v2970_v53 = vsel %vm2228_vm11, 1.0, %v3112_v55  ;;  %v730_v24 = vsel %vm555_vm1, %v549_v28, inf  ;;  %v936_v11 = vperm.slane %v3964_v23, 4 }
 0x220   :  { %1445 = vst [vmem:[#allocation1 + $0x7] ss:$9 sm:$0xff] %v907_v39  ;;  %v481_v39 = vpop.f32.mrf.mxu2  ;;  %3034 = vmatmul.msk.f32.gmra.mxu1 %vm555_vm1, %v2970_v53  ;;  %731 = vmin.index.xlane.f32.xlu1 %v730_v24 }
 0x221   :  { %v553_v22 = vsub.f32 %v3726_v31, %v481_v39  ;;  %v932_v31 = vperm.slane %v3964_v23, 0 }
 0x223   :  { %v742_v62 = vsel %vm555_vm1, %v553_v22, inf }
 0x224   :  { %743 = vmin.index.xlane.f32.xlu2 %v742_v62  ;;  %v4043_v62 = vpop.xlane.xlu1 %659 }
 0x225   :  { %vm2239_vm2 = vcmp.eq.s32.totalorder %v3413_v44, %v4043_v62 }
 0x227   :  { %v3932_v41 = vld [vmem:[#allocation1] sm:$0xff] }
 0x228   :  { %1447 = vst [vmem:[#allocation1] ss:$9 sm:$0xff] %v908_v25  ;;  %v926_v25 = vperm.slane %v3936_v59, 2  ;;  %740 = vmin.index.xlane.f32.xlu1 %v739_v5 }
 0x229   :  { %1448 = vst [vmem:[#allocation1 + $0x1] ss:$9 sm:$0xff] %v909_v52 }
 0x22a   :  { %1449 = vst [vmem:[#allocation1 + $0x2] ss:$9 sm:$0xff] %v910_v30  ;;  %v927_v30 = vperm.slane %v3936_v59, 3 }
 0x22b   :  { %1450 = vst [vmem:[#allocation1 + $0x3] ss:$9 sm:$0xff] %v911_v46  ;;  %v3991_v46 = vpop.xlane.xlu0 %629 }
 0x22c   :  { %1451 = vst [vmem:[#allocation1 + $0x4] ss:$9 sm:$0xff] %v912_v56  ;;  %v929_v56 = vperm.slane %v3936_v59, 5  ;;  %vm2229_vm12 = vcmp.eq.s32.totalorder %v3413_v44, %v3991_v46  ;;  %v941_v43 = vperm.slane %v3991_v46, 1  ;;  %v943_v22 = vperm.slane %v3991_v46, 3 }
 0x22d   :  { %1452 = vst [vmem:[#allocation1 + $0x5] ss:$9 sm:$0xff] %v913_v1  ;;  %v930_v1 = vperm.slane %v3936_v59, 6  ;;  %v933_v59 = vperm.slane %v3964_v23, 1  ;;  %v944_v53 = vperm.slane %v3991_v46, 4  ;;  %v947_v24 = vperm.slane %v3991_v46, 7 }
 0x22e   :  { %1453 = vst [vmem:[#allocation1 + $0x6] ss:$9 sm:$0xff] %v914_v8  ;;  %v2971_v8 = vsel %vm2229_vm12, 1.0, %v3112_v55 }
 0x22f   :  { %1454 = vst [vmem:[#allocation1 + $0x7] ss:$9 sm:$0xff] %v915_v9  ;;  %3035 = vmatmul.msk.f32.gmra.mxu1 %vm555_vm1, %v2971_v8  ;;  %v2633_v9 = vpop.f32.mrf.mxu1 }
 0x230   :  { %2807 = vst.msk [vmem:[%s5018_s3 + $0x48] sm:$0xff] %vm82_vm0, %v2633_v9 }
 0x233   :  { %v4013_v61 = vpop.xlane.xlu0 %656 }
 0x234   :  { %vm2238_vm14 = vcmp.eq.s32.totalorder %v3413_v44, %v4013_v61 }
 0x236   :  { %v3960_v20 = vld [vmem:[#allocation1] sm:$0xff] }
 0x237   :  { %1456 = vst [vmem:[#allocation1] ss:$9 sm:$0xff] %v916_v35  ;;  %v937_v35 = vperm.slane %v3964_v23, 5  ;;  %v2636_v28 = vpop.f32.mrf.mxu1 }
 0x238   :  { %1457 = vst [vmem:[#allocation1 + $0x1] ss:$9 sm:$0xff] %v917_v3  ;;  %v938_v3 = vperm.slane %v3964_v23, 6 }
 0x239   :  { %1458 = vst [vmem:[#allocation1 + $0x2] ss:$9 sm:$0xff] %v918_v37  ;;  %v939_v37 = vperm.slane %v3964_v23, 7  ;;  %v4028_v23 = vpop.xlane.xlu2 %653 }
 0x23a   :  { %1459 = vst [vmem:[#allocation1 + $0x3] ss:$9 sm:$0xff] %v919_v10  ;;  %v2972_v10 = vsel %vm2230_vm13, 1.0, %v3112_v55  ;;  %vm2237_vm13 = vcmp.eq.s32.totalorder %v3413_v44, %v4028_v23 }
 0x23b   :  { %1460 = vst [vmem:[#allocation1 + $0x4] ss:$9 sm:$0xff] %v920_v13  ;;  %v2980_v13 = vsel %vm2238_vm14, 1.0, %v3112_v55  ;;  %3036 = vmatmul.msk.f32.gmra.mxu1 %vm555_vm1, %v2972_v10 }
 0x23c   :  { %1461 = vst [vmem:[#allocation1 + $0x5] ss:$9 sm:$0xff] %v921_v15  ;;  %3044 = vmatmul.msk.f32.vlgmr.msra.gmra.mxu3 %vm555_vm1, %v2980_v13  ;;  %v3113_v15 = vmov 0  }
 0x23d   :  { %1462 = vst [vmem:[#allocation1 + $0x6] ss:$9 sm:$0xff] %v922_v29  ;;  %3082 = vset.pattern.permute.xlu0 %v3113_v15  ;;  %3081 = vset.pattern.permute.xlu2 %v3113_v15  ;;  %v940_v29 = vperm.slane %v3991_v46, 0 }
 0x23e   :  { %1463 = vst [vmem:[#allocation1 + $0x7] ss:$9 sm:$0xff] %v923_v33  ;;  %1850 = vperm.xlu0 %3082, %v3475_v48   ;;  %1847 = vperm.xlu2 %3081, %v3456_v27   ;;  %v942_v33 = vperm.slane %v3991_v46, 2  ;;  %v945_v48 = vperm.slane %v3991_v46, 5  ;;  %v946_v27 = vperm.slane %v3991_v46, 6  ;;  %v4077_v46 = vpop.xlane.xlu0 %638 }
 0x23f   :  { %2808 = vst.msk [vmem:[%s5018_s3 + $0x50] sm:$0xff] %vm82_vm0, %v2636_v28  ;;  %3080 = vset.pattern.permute.xlu1 %v3113_v15  ;;  %vm2232_vm3 = vcmp.eq.s32.totalorder %v3413_v44, %v4077_v46  ;;  %v967_v10 = vperm.slane %v4077_v46, 3  ;;  %v969_v28 = vperm.slane %v4077_v46, 5 }
 0x241   :  { %v4045_v63 = vpop.xlane.xlu2 %635  ;;  %1844 = vperm.xlu1 %3080, %v3435_v7   ;;  %v2639_v7 = vpop.f32.mrf.mxu1 }
 0x242   :  { %vm2231_vm15 = vcmp.eq.s32.totalorder %v3413_v44, %v4045_v63  ;;  %2809 = vst.msk [vmem:[%s5018_s3 + $0x58] sm:$0xff] %vm82_vm0, %v2639_v7  ;;  %v956_v8 = vperm.slane %v4045_v63, 0  ;;  %v958_v5 = vperm.slane %v4045_v63, 2 }
 0x243   :  { %v2973_v50 = vsel %vm2231_vm15, 1.0, %v3112_v55 }
 0x244   :  { %3037 = vmatmul.msk.f32.gmra.mxu1 %vm555_vm1, %v2973_v50 }
 0x245   :  { %v3987_v52 = vld [vmem:[#allocation1] sm:$0xff] }
 0x246   :  { %1465 = vst [vmem:[#allocation1] ss:$9 sm:$0xff] %v924_v16  ;;  %v2981_v16 = vsel %vm2239_vm2, 1.0, %v3112_v55  ;;  %1871 = vperm.xlu0 %3082, %v3638_v4   ;;  %1853 = vperm.xlu2 %3081, %v3499_v2   ;;  %v949_v4 = vperm.slane %v4015_v49, 1  ;;  %v950_v2 = vperm.slane %v4015_v49, 2 }
 0x247   :  { %1466 = vst [vmem:[#allocation1 + $0x1] ss:$9 sm:$0xff] %v925_v54  ;;  %3045 = vmatmul.msk.f32.gmra.mxu3 %vm555_vm1, %v2981_v16  ;;  %v948_v54 = vperm.slane %v4015_v49, 0 }
 0x248   :  { %1467 = vst [vmem:[#allocation1 + $0x2] ss:$9 sm:$0xff] %v926_v25 }
 0x249   :  { %1468 = vst [vmem:[#allocation1 + $0x3] ss:$9 sm:$0xff] %v927_v30  ;;  %1856 = vperm.xlu1 %3080, %v3523_v19   ;;  %v951_v30 = vperm.slane %v4015_v49, 3  ;;  %v952_v19 = vperm.slane %v4015_v49, 4 }
 0x24a   :  { %1469 = vst [vmem:[#allocation1 + $0x4] ss:$9 sm:$0xff] %v928_v42  ;;  %v4075_v42 = vpop.xlane.xlu2 %662 }
 0x24b   :  { %1470 = vst [vmem:[#allocation1 + $0x5] ss:$9 sm:$0xff] %v929_v56  ;;  %v953_v56 = vperm.slane %v4015_v49, 5  ;;  %vm2240_vm4 = vcmp.eq.s32.totalorder %v3413_v44, %v4075_v42 }
 0x24c   :  { %1471 = vst [vmem:[#allocation1 + $0x6] ss:$9 sm:$0xff] %v930_v1  ;;  %v2974_v1 = vsel %vm2232_vm3, 1.0, %v3112_v55  ;;  %v2982_v32 = vsel %vm2240_vm4, 1.0, %v3112_v55 }
 0x24d   :  { %1472 = vst [vmem:[#allocation1 + $0x7] ss:$9 sm:$0xff] %v931_v6  ;;  %3038 = vmatmul.msk.f32.gmra.mxu1 %vm555_vm1, %v2974_v1  ;;  %v2642_v6 = vpop.f32.mrf.mxu1 }
 0x24e   :  { %1880 = vperm.xlu0 %3082, %v3709_v17   ;;  %1859 = vperm.xlu2 %3081, %v3543_v38   ;;  %v954_v17 = vperm.slane %v4015_v49, 6  ;;  %v955_v38 = vperm.slane %v4015_v49, 7  ;;  %2810 = vst.msk [vmem:[%s5018_s3 + $0x60] sm:$0xff] %vm82_vm0, %v2642_v6 }
 0x24f   :  { %3046 = vmatmul.msk.f32.gmra.mxu3 %vm555_vm1, %v2982_v32 }
 0x251   :  { %1862 = vperm.xlu1 %3080, %v3565_v60   ;;  %v957_v60 = vperm.slane %v4045_v63, 1 }
 0x252   :  { %v4137_v15 = vpop.xlane.xlu2 %644 }
 0x253   :  { %vm2234_vm7 = vcmp.eq.s32.totalorder %v3413_v44, %v4137_v15 }
 0x254   :  { %v4009_v58 = vld [vmem:[#allocation1] sm:$0xff] }
 0x255   :  { %1474 = vst [vmem:[#allocation1] ss:$9 sm:$0xff] %v932_v31  ;;  %v4106_v31 = vpop.xlane.xlu0 %665  ;;  %v2645_v49 = vpop.f32.mrf.mxu1 }
 0x256   :  { %1475 = vst [vmem:[#allocation1 + $0x1] ss:$9 sm:$0xff] %v933_v59  ;;  %1889 = vperm.xlu0 %3082, %v3808_v36   ;;  %1865 = vperm.xlu2 %3081, %v3590_v18   ;;  %v959_v36 = vperm.slane %v4045_v63, 3  ;;  %v960_v18 = vperm.slane %v4045_v63, 4  ;;  %v4108_v59 = vpop.xlane.xlu1 %641  ;;  %vm2241_vm6 = vcmp.eq.s32.totalorder %v3413_v44, %v4106_v31 }
 0x257   :  { %1476 = vst [vmem:[#allocation1 + $0x2] ss:$9 sm:$0xff] %v934_v34  ;;  %v961_v34 = vperm.slane %v4045_v63, 5  ;;  %vm2233_vm5 = vcmp.eq.s32.totalorder %v3413_v44, %v4108_v59  ;;  %v977_v50 = vperm.slane %v4108_v59, 5  ;;  %v978_v16 = vperm.slane %v4108_v59, 6 }
 0x258   :  { %1477 = vst [vmem:[#allocation1 + $0x3] ss:$9 sm:$0xff] %v935_v47  ;;  %v963_v47 = vperm.slane %v4045_v63, 7  ;;  %v979_v7 = vperm.slane %v4108_v59, 7 }
 0x259   :  { %1478 = vst [vmem:[#allocation1 + $0x4] ss:$9 sm:$0xff] %v936_v11  ;;  %1868 = vperm.xlu1 %3080, %v3613_v45   ;;  %v962_v45 = vperm.slane %v4045_v63, 6  ;;  %v2983_v11 = vsel %vm2241_vm6, 1.0, %v3112_v55  ;;  %v974_v63 = vperm.slane %v4108_v59, 2 }
 0x25a   :  { %1479 = vst [vmem:[#allocation1 + $0x5] ss:$9 sm:$0xff] %v937_v35  ;;  %3047 = vmatmul.msk.f32.gmra.mxu3 %vm555_vm1, %v2983_v11  ;;  %v964_v35 = vperm.slane %v4077_v46, 0 }
 0x25b   :  { %1480 = vst [vmem:[#allocation1 + $0x6] ss:$9 sm:$0xff] %v938_v3  ;;  %v965_v3 = vperm.slane %v4077_v46, 1 }
 0x25c   :  { %1481 = vst [vmem:[#allocation1 + $0x7] ss:$9 sm:$0xff] %v939_v37 }
 0x25d   :  { %2811 = vst.msk [vmem:[%s5018_s3 + $0x68] sm:$0xff] %vm82_vm0, %v2645_v49 }
 0x25e   :  { %1874 = vperm.xlu2 %3081, %v3661_v26   ;;  %v2975_v26 = vsel %vm2233_vm5, 1.0, %v3112_v55  ;;  %v4135_v13 = vpop.xlane.xlu1 %668 }
 0x25f   :  { %3039 = vmatmul.msk.f32.gmra.mxu1 %vm555_vm1, %v2975_v26  ;;  %vm2242_vm8 = vcmp.eq.s32.totalorder %v3413_v44, %v4135_v13 }
 0x261   :  { %1877 = vperm.xlu1 %3080, %v3686_v57   ;;  %v966_v57 = vperm.slane %v4077_v46, 2 }
 0x263   :  { %v4039_v39 = vld [vmem:[#allocation1] sm:$0xff] }
 0x264   :  { %1483 = vst [vmem:[#allocation1] ss:$9 sm:$0xff] %v940_v29  ;;  %v971_v29 = vperm.slane %v4077_v46, 7 }
 0x265   :  { %1484 = vst [vmem:[#allocation1 + $0x1] ss:$9 sm:$0xff] %v941_v43  ;;  %v2976_v43 = vsel %vm2234_vm7, 1.0, %v3112_v55 }
 0x266   :  { %1485 = vst [vmem:[#allocation1 + $0x2] ss:$9 sm:$0xff] %v942_v33  ;;  %1883 = vperm.xlu2 %3081, %v3743_v0   ;;  %v968_v0 = vperm.slane %v4077_v46, 4  ;;  %v2648_v33 = vpop.f32.mrf.mxu1 }
 0x267   :  { %1486 = vst [vmem:[#allocation1 + $0x3] ss:$9 sm:$0xff] %v943_v22  ;;  %3040 = vmatmul.msk.f32.gmra.mxu1 %vm555_vm1, %v2976_v43  ;;  %v972_v22 = vperm.slane %v4108_v59, 0 }
 0x268   :  { %1487 = vst [vmem:[#allocation1 + $0x4] ss:$9 sm:$0xff] %v944_v53  ;;  %v973_v53 = vperm.slane %v4108_v59, 1 }
 0x269   :  { %1488 = vst [vmem:[#allocation1 + $0x5] ss:$9 sm:$0xff] %v945_v48  ;;  %1886 = vperm.xlu1 %3080, %v3773_v21   ;;  %v970_v21 = vperm.slane %v4077_v46, 6  ;;  %v983_v46 = vperm.slane %v4137_v15, 3 }
 0x26a   :  { %1489 = vst [vmem:[#allocation1 + $0x6] ss:$9 sm:$0xff] %v946_v27  ;;  %v975_v27 = vperm.slane %v4108_v59, 3 }
 0x26b   :  { %1490 = vst [vmem:[#allocation1 + $0x7] ss:$9 sm:$0xff] %v947_v24  ;;  %v648_v24 = vpop.xlane.xlu0 %647 }
 0x26c   :  { %2812 = vst.msk [vmem:[%s5018_s3 + $0x70] sm:$0xff] %vm82_vm0, %v2648_v33  ;;  %vm2235_vm9 = vcmp.eq.s32.totalorder %v3413_v44, %v648_v24  ;;  %v988_v1 = vperm.slane %v648_v24, 0  ;;  %v989_v32 = vperm.slane %v648_v24, 1  ;;  %v990_v6 = vperm.slane %v648_v24, 2 }
 0x26d   :  { %v1009_v33 = vperm.slane %v4028_v23, 5 }
 0x26e   :  { %1892 = vperm.xlu2 %3081, %v3839_v14   ;;  %v2984_v14 = vsel %vm2242_vm8, 1.0, %v3112_v55 }
 0x26f   :  { %3048 = vmatmul.msk.f32.gmra.mxu3 %vm555_vm1, %v2984_v14  ;;  %v1008_v14 = vperm.slane %v4028_v23, 4 }
 0x271   :  { %1895 = vperm.xlu1 %3080, %v3872_v51   ;;  %v976_v51 = vperm.slane %v4108_v59, 4  ;;  %v651_v59 = vpop.xlane.xlu1 %650 }
 0x272   :  { %v4071_v25 = vld [vmem:[#allocation1] sm:$0xff]  ;;  %v999_v11 = vperm.slane %v651_v59, 3  ;;  %v1000_v49 = vperm.slane %v651_v59, 4  ;;  %vm2236_vm11 = vcmp.eq.s32.totalorder %v3413_v44, %v651_v59 }
 0x273   :  { %1492 = vst [vmem:[#allocation1] ss:$9 sm:$0xff] %v948_v54 }
 0x274   :  { %1493 = vst [vmem:[#allocation1 + $0x1] ss:$9 sm:$0xff] %v949_v4  ;;  %v980_v4 = vperm.slane %v4137_v15, 0 }
 0x275   :  { %1494 = vst [vmem:[#allocation1 + $0x2] ss:$9 sm:$0xff] %v950_v2  ;;  %v981_v2 = vperm.slane %v4137_v15, 1 }
 0x276   :  { %1495 = vst [vmem:[#allocation1 + $0x3] ss:$9 sm:$0xff] %v951_v30  ;;  %1901 = vperm.xlu2 %3081, %v3932_v41   ;;  %v4165_v41 = vpop.xlane.xlu2 %671  ;;  %v982_v30 = vperm.slane %v4137_v15, 2 }
 0x277   :  { %1496 = vst [vmem:[#allocation1 + $0x4] ss:$9 sm:$0xff] %v952_v19  ;;  %vm2243_vm10 = vcmp.eq.s32.totalorder %v3413_v44, %v4165_v41 }
 0x278   :  { %1497 = vst [vmem:[#allocation1 + $0x5] ss:$9 sm:$0xff] %v953_v56  ;;  %v2985_v54 = vsel %vm2243_vm10, 1.0, %v3112_v55  ;;  %v984_v56 = vperm.slane %v4137_v15, 4 }
 0x279   :  { %1498 = vst [vmem:[#allocation1 + $0x6] ss:$9 sm:$0xff] %v954_v17  ;;  %1904 = vperm.xlu1 %3080, %v3960_v20   ;;  %v2977_v20 = vsel %vm2235_vm9, 1.0, %v3112_v55  ;;  %3049 = vmatmul.msk.f32.gmra.mxu3 %vm555_vm1, %v2985_v54  ;;  %v986_v17 = vperm.slane %v4137_v15, 6  ;;  %v1018_v54 = vperm.slane %v4013_v61, 6 }
 0x27a   :  { %1499 = vst [vmem:[#allocation1 + $0x7] ss:$9 sm:$0xff] %v955_v38  ;;  %3041 = vmatmul.msk.f32.gmra.mxu1 %vm555_vm1, %v2977_v20  ;;  %v987_v38 = vperm.slane %v4137_v15, 7  ;;  %v1017_v20 = vperm.slane %v4013_v61, 5 }
 0x27e   :  { %1910 = vperm.xlu2 %3081, %v4009_v58   ;;  %v2651_v58 = vpop.f32.mrf.mxu1 }
 0x27f   :  { %2813 = vst.msk [vmem:[%s5018_s3 + $0x78] sm:$0xff] %vm82_vm0, %v2651_v58  ;;  %v1019_v58 = vperm.slane %v4013_v61, 7 }
 0x281   :  { %v4101_v9 = vld [vmem:[#allocation1] sm:$0xff]  ;;  %1913 = vperm.xlu1 %3080, %v4039_v39   ;;  %v985_v39 = vperm.slane %v4137_v15, 5 }
 0x282   :  { %1501 = vst [vmem:[#allocation1] ss:$9 sm:$0xff] %v956_v8 }
 0x283   :  { %1502 = vst [vmem:[#allocation1 + $0x1] ss:$9 sm:$0xff] %v957_v60  ;;  %v991_v60 = vperm.slane %v648_v24, 3 }
 0x284   :  { %1503 = vst [vmem:[#allocation1 + $0x2] ss:$9 sm:$0xff] %v958_v5  ;;  %v992_v5 = vperm.slane %v648_v24, 4 }
 0x285   :  { %1504 = vst [vmem:[#allocation1 + $0x3] ss:$9 sm:$0xff] %v959_v36  ;;  %v994_v36 = vperm.slane %v648_v24, 6 }
 0x286   :  { %1505 = vst [vmem:[#allocation1 + $0x4] ss:$9 sm:$0xff] %v960_v18  ;;  %1919 = vperm.xlu2 %3081, %v4101_v9   ;;  %v993_v9 = vperm.slane %v648_v24, 5  ;;  %v995_v18 = vperm.slane %v648_v24, 7  ;;  %v1013_v24 = vperm.slane %v4013_v61, 1 }
 0x287   :  { %1506 = vst [vmem:[#allocation1 + $0x5] ss:$9 sm:$0xff] %v961_v34  ;;  %v996_v34 = vperm.slane %v651_v59, 0 }
 0x288   :  { %1507 = vst [vmem:[#allocation1 + $0x6] ss:$9 sm:$0xff] %v962_v45  ;;  %v997_v45 = vperm.slane %v651_v59, 1 }
 0x289   :  { %1508 = vst [vmem:[#allocation1 + $0x7] ss:$9 sm:$0xff] %v963_v47  ;;  %v998_v47 = vperm.slane %v651_v59, 2 }
 0x290   :  { %v4131_v37 = vld [vmem:[#allocation1] sm:$0xff] }
 0x291   :  { %1510 = vst [vmem:[#allocation1] ss:$9 sm:$0xff] %v964_v35  ;;  %1922 = vperm.xlu1 %3080, %v4131_v37   ;;  %v1001_v35 = vperm.slane %v651_v59, 5  ;;  %v4195_v37 = vpop.xlane.xlu0 %674 }
 0x292   :  { %1511 = vst [vmem:[#allocation1 + $0x1] ss:$9 sm:$0xff] %v965_v3  ;;  %v1002_v3 = vperm.slane %v651_v59, 6  ;;  %vm2244_vm12 = vcmp.eq.s32.totalorder %v3413_v44, %v4195_v37 }
 0x293   :  { %1512 = vst [vmem:[#allocation1 + $0x2] ss:$9 sm:$0xff] %v966_v57  ;;  %v1003_v57 = vperm.slane %v651_v59, 7  ;;  %v2986_v43 = vsel %vm2244_vm12, 1.0, %v3112_v55  ;;  %v1034_v59 = vperm.slane %v4075_v42, 6  ;;  %vm5022_vm12 = vcmask 130112  }
 0x294   :  { %1513 = vst [vmem:[#allocation1 + $0x3] ss:$9 sm:$0xff] %v967_v10  ;;  %v1004_v10 = vperm.slane %v4028_v23, 0  ;;  %3050 = vmatmul.msk.f32.gmra.mxu3 %vm555_vm1, %v2986_v43 }
 0x295   :  { %1514 = vst [vmem:[#allocation1 + $0x4] ss:$9 sm:$0xff] %v968_v0  ;;  %v1005_v0 = vperm.slane %v4028_v23, 1 }
 0x296   :  { %1515 = vst [vmem:[#allocation1 + $0x5] ss:$9 sm:$0xff] %v969_v28  ;;  %v1006_v28 = vperm.slane %v4028_v23, 2 }
 0x297   :  { %1516 = vst [vmem:[#allocation1 + $0x6] ss:$9 sm:$0xff] %v970_v21  ;;  %v1007_v21 = vperm.slane %v4028_v23, 3 }
 0x298   :  { %1517 = vst [vmem:[#allocation1 + $0x7] ss:$9 sm:$0xff] %v971_v29  ;;  %v2978_v29 = vsel %vm2236_vm11, 1.0, %v3112_v55 }
 0x299   :  { %3042 = vmatmul.msk.f32.gmra.mxu1 %vm555_vm1, %v2978_v29  ;;  %v3085_v29 = vld [vmem:[%s5017_s2] ss:$0 sm:$0xff] }
 0x29f   :  { %v4160_v48 = vld [vmem:[#allocation1] sm:$0xff] }
 0x2a0   :  { %1519 = vst [vmem:[#allocation1] ss:$9 sm:$0xff] %v972_v22  ;;  %v1010_v22 = vperm.slane %v4028_v23, 6 }
 0x2a1   :  { %1520 = vst [vmem:[#allocation1 + $0x1] ss:$9 sm:$0xff] %v973_v53  ;;  %v1011_v53 = vperm.slane %v4028_v23, 7  ;;  %v1015_v23 = vperm.slane %v4013_v61, 3 }
 0x2a2   :  { %1521 = vst [vmem:[#allocation1 + $0x2] ss:$9 sm:$0xff] %v974_v63  ;;  %v2654_v63 = vpop.f32.mrf.mxu1 }
 0x2a3   :  { %1522 = vst [vmem:[#allocation1 + $0x3] ss:$9 sm:$0xff] %v975_v27  ;;  %v2979_v27 = vsel %vm2237_vm13, 1.0, %v3112_v55  ;;  %vm2044_vm13 = vcmask 195712  }
 0x2a4   :  { %1523 = vst [vmem:[#allocation1 + $0x4] ss:$9 sm:$0xff] %v976_v51  ;;  %3043 = vmatmul.msk.f32.gmra.mxu1 %vm555_vm1, %v2979_v27  ;;  %v1012_v51 = vperm.slane %v4013_v61, 0  ;;  %v1046_v27 = vperm.slane %v4135_v13, 2 }
 0x2a5   :  { %1524 = vst [vmem:[#allocation1 + $0x5] ss:$9 sm:$0xff] %v977_v50 }
 0x2a6   :  { %1525 = vst [vmem:[#allocation1 + $0x6] ss:$9 sm:$0xff] %v978_v16  ;;  %v1014_v16 = vperm.slane %v4013_v61, 2 }
 0x2a7   :  { %1526 = vst [vmem:[#allocation1 + $0x7] ss:$9 sm:$0xff] %v979_v7  ;;  %v1016_v7 = vperm.slane %v4013_v61, 4  ;;  %v1025_v61 = vperm.slane %v4043_v62, 5 }
 0x2a8   :  { %2814 = vst.msk [vmem:[%s5018_s3 + $0x80] sm:$0xff] %vm82_vm0, %v2654_v63 }
 0x2ae   :  { %v1527_v19 = vld [vmem:[#allocation1] sm:$0xff] }
 0x2af   :  { %1528 = vst [vmem:[#allocation1] ss:$9 sm:$0xff] %v980_v4  ;;  %1928 = vperm.xlu2 %3081, %v1527_v19   ;;  %v1020_v4 = vperm.slane %v4043_v62, 0  ;;  %v1022_v19 = vperm.slane %v4043_v62, 2 }
 0x2b0   :  { %1529 = vst [vmem:[#allocation1 + $0x1] ss:$9 sm:$0xff] %v981_v2  ;;  %v1021_v2 = vperm.slane %v4043_v62, 1 }
 0x2b1   :  { %1530 = vst [vmem:[#allocation1 + $0x2] ss:$9 sm:$0xff] %v982_v30 }
 0x2b2   :  { %1531 = vst [vmem:[#allocation1 + $0x3] ss:$9 sm:$0xff] %v983_v46  ;;  %v1023_v46 = vperm.slane %v4043_v62, 3 }
 0x2b3   :  { %1532 = vst [vmem:[#allocation1 + $0x4] ss:$9 sm:$0xff] %v984_v56  ;;  %v1024_v56 = vperm.slane %v4043_v62, 4 }
 0x2b4   :  { %1533 = vst [vmem:[#allocation1 + $0x5] ss:$9 sm:$0xff] %v985_v39  ;;  %v4236_v39 = vpop.xlane.xlu1 %677 }
 0x2b5   :  { %1534 = vst [vmem:[#allocation1 + $0x6] ss:$9 sm:$0xff] %v986_v17  ;;  %v1026_v17 = vperm.slane %v4043_v62, 6  ;;  %vm2245_vm14 = vcmp.eq.s32.totalorder %v3413_v44, %v4236_v39 }
 0x2b6   :  { %1535 = vst [vmem:[#allocation1 + $0x7] ss:$9 sm:$0xff] %v987_v38  ;;  %v1027_v38 = vperm.slane %v4043_v62, 7 }
 0x2bd   :  { %v1536_v8 = vld [vmem:[#allocation1] sm:$0xff] }
 0x2be   :  { %1537 = vst [vmem:[#allocation1] ss:$9 sm:$0xff] %v988_v1  ;;  %1931 = vperm.xlu1 %3080, %v1536_v8   ;;  %v2987_v1 = vsel %vm2245_vm14, 1.0, %v3112_v55  ;;  %v1029_v8 = vperm.slane %v4075_v42, 1  ;;  %vm2048_vm14 = vcmask 261312  }
 0x2bf   :  { %1538 = vst [vmem:[#allocation1 + $0x1] ss:$9 sm:$0xff] %v989_v32  ;;  %3051 = vmatmul.msk.f32.gmra.mxu3 %vm555_vm1, %v2987_v1  ;;  %v4244_v32 = vpop.xlane.xlu2 %680  ;;  %v1061_v1 = vperm.slane %v4195_v37, 1 }
 0x2c0   :  { %1539 = vst [vmem:[#allocation1 + $0x2] ss:$9 sm:$0xff] %v990_v6  ;;  %vm2246_vm15 = vcmp.eq.s32.totalorder %v3413_v44, %v4244_v32  ;;  %v1028_v6 = vperm.slane %v4075_v42, 0 }
 0x2c1   :  { %1540 = vst [vmem:[#allocation1 + $0x3] ss:$9 sm:$0xff] %v991_v60  ;;  %v1030_v60 = vperm.slane %v4075_v42, 2 }
 0x2c2   :  { %1541 = vst [vmem:[#allocation1 + $0x4] ss:$9 sm:$0xff] %v992_v5  ;;  %v2988_v5 = vsel %vm2246_vm15, 1.0, %v3112_v55 }
 0x2c3   :  { %1542 = vst [vmem:[#allocation1 + $0x5] ss:$9 sm:$0xff] %v993_v9  ;;  %v1031_v9 = vperm.slane %v4075_v42, 3 }
 0x2c4   :  { %1543 = vst [vmem:[#allocation1 + $0x6] ss:$9 sm:$0xff] %v994_v36  ;;  %v1032_v36 = vperm.slane %v4075_v42, 4 }
 0x2c5   :  { %1544 = vst [vmem:[#allocation1 + $0x7] ss:$9 sm:$0xff] %v995_v18  ;;  %v1033_v18 = vperm.slane %v4075_v42, 5 }
 0x2c7   :  { %3052 = vmatmul.msk.f32.gmra.mxu3 %vm555_vm1, %v2988_v5  ;;  %v1066_v5 = vperm.slane %v4195_v37, 6 }
 0x2cc   :  { %v4193_v26 = vld [vmem:[#allocation1] sm:$0xff] }
 0x2cd   :  { %1546 = vst [vmem:[#allocation1] ss:$9 sm:$0xff] %v996_v34  ;;  %v1035_v34 = vperm.slane %v4075_v42, 7  ;;  %v1039_v42 = vperm.slane %v4106_v31, 3 }
 0x2ce   :  { %1547 = vst [vmem:[#allocation1 + $0x1] ss:$9 sm:$0xff] %v997_v45  ;;  %v2657_v45 = vpop.f32.mrf.mxu1 }
 0x2cf   :  { %1548 = vst [vmem:[#allocation1 + $0x2] ss:$9 sm:$0xff] %v998_v47  ;;  %v1036_v47 = vperm.slane %v4106_v31, 0 }
 0x2d0   :  { %1549 = vst [vmem:[#allocation1 + $0x3] ss:$9 sm:$0xff] %v999_v11  ;;  %v1037_v11 = vperm.slane %v4106_v31, 1 }
 0x2d1   :  { %1550 = vst [vmem:[#allocation1 + $0x4] ss:$9 sm:$0xff] %v1000_v49 }
 0x2d2   :  { %1551 = vst [vmem:[#allocation1 + $0x5] ss:$9 sm:$0xff] %v1001_v35  ;;  %v1038_v35 = vperm.slane %v4106_v31, 2 }
 0x2d3   :  { %1552 = vst [vmem:[#allocation1 + $0x6] ss:$9 sm:$0xff] %v1002_v3  ;;  %v1040_v3 = vperm.slane %v4106_v31, 4 }
 0x2d4   :  { %1553 = vst [vmem:[#allocation1 + $0x7] ss:$9 sm:$0xff] %v1003_v57  ;;  %v1041_v57 = vperm.slane %v4106_v31, 5 }
 0x2d5   :  { %2815 = vst.msk [vmem:[%s5018_s3 + $0x88] sm:$0xff] %vm82_vm0, %v2657_v45  ;;  %v1071_v45 = vperm.slane %v4236_v39, 3 }
 0x2db   :  { %v1554_v15 = vld [vmem:[#allocation1] sm:$0xff] }
 0x2dc   :  { %1555 = vst [vmem:[#allocation1] ss:$9 sm:$0xff] %v1004_v10  ;;  %1937 = vperm.xlu2 %3081, %v1554_v15   ;;  %v1042_v10 = vperm.slane %v4106_v31, 6  ;;  %v4270_v15 = vpop.xlane.xlu0 %683 }
 0x2dd   :  { %1556 = vst [vmem:[#allocation1 + $0x1] ss:$9 sm:$0xff] %v1005_v0  ;;  %v1043_v0 = vperm.slane %v4106_v31, 7  ;;  %vm2247_vm2 = vcmp.eq.s32.totalorder %v3413_v44, %v4270_v15  ;;  %v1044_v31 = vperm.slane %v4135_v13, 0 }
 0x2de   :  { %1557 = vst [vmem:[#allocation1 + $0x2] ss:$9 sm:$0xff] %v1006_v28  ;;  %v2989_v28 = vsel %vm2247_vm2, 1.0, %v3112_v55  ;;  %vm2052_vm2 = vcmask 326912  }
 0x2df   :  { %1558 = vst [vmem:[#allocation1 + $0x3] ss:$9 sm:$0xff] %v1007_v21  ;;  %3053 = vmatmul.msk.f32.gmra.mxu3 %vm555_vm1, %v2989_v28  ;;  %v484_v21 = vpop.f32.mrf.mxu2  ;;  %v1080_v28 = vperm.slane %v4244_v32, 4 }
 0x2e0   :  { %1559 = vst [vmem:[#allocation1 + $0x4] ss:$9 sm:$0xff] %v1008_v14  ;;  %v554_v43 = vsub.f32 %v3085_v29, %v484_v21  ;;  %v2660_v14 = vpop.f32.mrf.mxu1  ;;  %v1081_v21 = vperm.slane %v4244_v32, 5  ;;  %v1082_v29 = vperm.slane %v4244_v32, 6 }
 0x2e1   :  { %1560 = vst [vmem:[#allocation1 + $0x5] ss:$9 sm:$0xff] %v1009_v33  ;;  %v4280_v33 = vpop.xlane.xlu1 %686 }
 0x2e2   :  { %1561 = vst [vmem:[#allocation1 + $0x6] ss:$9 sm:$0xff] %v1010_v22  ;;  %v1045_v22 = vperm.slane %v4135_v13, 1  ;;  %v745_v63 = vsel %vm555_vm1, %v554_v43, inf  ;;  %vm2248_vm3 = vcmp.eq.s32.totalorder %v3413_v44, %v4280_v33  ;;  %v1083_v43 = vperm.slane %v4244_v32, 7 }
 0x2e3   :  { %1562 = vst [vmem:[#allocation1 + $0x7] ss:$9 sm:$0xff] %v1011_v53  ;;  %746 = vmin.index.xlane.f32.xlu0 %v745_v63  ;;  %v1085_v63 = vperm.slane %v4270_v15, 1 }
 0x2e4   :  { %2816 = vst.msk [vmem:[%s5018_s3 + $0x90] sm:$0xff] %vm82_vm0, %v2660_v14 }
 0x2e9   :  { %v4369_v14 = vpop.xlane.xlu1 %695 }
 0x2ea   :  { %v1563_v50 = vld [vmem:[#allocation1] sm:$0xff]  ;;  %vm2251_vm6 = vcmp.eq.s32.totalorder %v3413_v44, %v4369_v14 }
 0x2eb   :  { %1564 = vst [vmem:[#allocation1] ss:$9 sm:$0xff] %v1012_v51  ;;  %1940 = vperm.xlu1 %3080, %v1563_v50   ;;  %v1047_v51 = vperm.slane %v4135_v13, 3  ;;  %v2990_v50 = vsel %vm2248_vm3, 1.0, %v3112_v55  ;;  %vm2056_vm3 = vcmask 392512  }
 0x2ec   :  { %1565 = vst [vmem:[#allocation1 + $0x1] ss:$9 sm:$0xff] %v1013_v24  ;;  %v1048_v24 = vperm.slane %v4135_v13, 4  ;;  %3054 = vmatmul.msk.f32.gmra.mxu3 %vm555_vm1, %v2990_v50  ;;  %v1089_v50 = vperm.slane %v4270_v15, 5 }
 0x2ed   :  { %1566 = vst [vmem:[#allocation1 + $0x2] ss:$9 sm:$0xff] %v1014_v16  ;;  %v1049_v16 = vperm.slane %v4135_v13, 5 }
 0x2ee   :  { %1567 = vst [vmem:[#allocation1 + $0x3] ss:$9 sm:$0xff] %v1015_v23  ;;  %v1050_v23 = vperm.slane %v4135_v13, 6 }
 0x2ef   :  { %1568 = vst [vmem:[#allocation1 + $0x4] ss:$9 sm:$0xff] %v1016_v7  ;;  %v1051_v7 = vperm.slane %v4135_v13, 7  ;;  %v1055_v13 = vperm.slane %v4165_v41, 3 }
 0x2f0   :  { %1569 = vst [vmem:[#allocation1 + $0x5] ss:$9 sm:$0xff] %v1017_v20  ;;  %v2663_v20 = vpop.f32.mrf.mxu1 }
 0x2f1   :  { %1570 = vst [vmem:[#allocation1 + $0x6] ss:$9 sm:$0xff] %v1018_v54  ;;  %v1052_v54 = vperm.slane %v4165_v41, 0 }
 0x2f2   :  { %1571 = vst [vmem:[#allocation1 + $0x7] ss:$9 sm:$0xff] %v1019_v58  ;;  %v1053_v58 = vperm.slane %v4165_v41, 1 }
 0x2f3   :  { %2817 = vst.msk [vmem:[%s5018_s3 + $0x98] sm:$0xff] %vm82_vm0, %v2663_v20  ;;  %v4383_v20 = vpop.xlane.xlu1 %704 }
 0x2f4   :  { %vm2254_vm9 = vcmp.eq.s32.totalorder %v3413_v44, %v4383_v20 }
 0x2f7   :  { %1898 = vperm.xlu0 %3082, %v3903_v12   ;;  %v1063_v12 = vperm.slane %v4195_v37, 3 }
 0x2f9   :  { %v4230_v30 = vld [vmem:[#allocation1] sm:$0xff] }
 0x2fa   :  { %1573 = vst [vmem:[#allocation1] ss:$9 sm:$0xff] %v1020_v4 }
 0x2fb   :  { %1574 = vst [vmem:[#allocation1 + $0x1] ss:$9 sm:$0xff] %v1021_v2  ;;  %v1054_v2 = vperm.slane %v4165_v41, 2 }
 0x2fc   :  { %1575 = vst [vmem:[#allocation1 + $0x2] ss:$9 sm:$0xff] %v1022_v19  ;;  %v1056_v19 = vperm.slane %v4165_v41, 4 }
 0x2fd   :  { %1576 = vst [vmem:[#allocation1 + $0x3] ss:$9 sm:$0xff] %v1023_v46  ;;  %v1057_v46 = vperm.slane %v4165_v41, 5 }
 0x2fe   :  { %1577 = vst [vmem:[#allocation1 + $0x4] ss:$9 sm:$0xff] %v1024_v56  ;;  %v1058_v56 = vperm.slane %v4165_v41, 6 }
 0x2ff   :  { %1578 = vst [vmem:[#allocation1 + $0x5] ss:$9 sm:$0xff] %v1025_v61  ;;  %v1059_v61 = vperm.slane %v4165_v41, 7  ;;  %1907 = vperm.xlu0 %3082, %v3987_v52   ;;  %v1065_v52 = vperm.slane %v4195_v37, 5 }
 0x300   :  { %1579 = vst [vmem:[#allocation1 + $0x6] ss:$9 sm:$0xff] %v1026_v17  ;;  %v2666_v17 = vpop.f32.mrf.mxu1 }
 0x301   :  { %1580 = vst [vmem:[#allocation1 + $0x7] ss:$9 sm:$0xff] %v1027_v38  ;;  %v1060_v38 = vperm.slane %v4195_v37, 0 }
 0x302   :  { %2818 = vst.msk [vmem:[%s5018_s3 + $0xa0] sm:$0xff] %vm82_vm0, %v2666_v17 }
 0x307   :  { %1916 = vperm.xlu0 %3082, %v4071_v25   ;;  %v1073_v25 = vperm.slane %v4236_v39, 5 }
 0x308   :  { %v1581_v62 = vld [vmem:[#allocation1] sm:$0xff] }
 0x309   :  { %1582 = vst [vmem:[#allocation1] ss:$9 sm:$0xff] %v1028_v6  ;;  %1946 = vperm.xlu2 %3081, %v1581_v62   ;;  %v4320_v6 = vpop.xlane.xlu2 %689 }
 0x30a   :  { %1583 = vst [vmem:[#allocation1 + $0x1] ss:$9 sm:$0xff] %v1029_v8  ;;  %v1062_v8 = vperm.slane %v4195_v37, 2  ;;  %vm2249_vm4 = vcmp.eq.s32.totalorder %v3413_v44, %v4320_v6 }
 0x30b   :  { %1584 = vst [vmem:[#allocation1 + $0x2] ss:$9 sm:$0xff] %v1030_v60  ;;  %v2991_v62 = vsel %vm2249_vm4, 1.0, %v3112_v55  ;;  %v1064_v60 = vperm.slane %v4195_v37, 4 }
 0x30c   :  { %1585 = vst [vmem:[#allocation1 + $0x3] ss:$9 sm:$0xff] %v1031_v9  ;;  %3055 = vmatmul.msk.f32.gmra.mxu3 %vm555_vm1, %v2991_v62  ;;  %v1067_v9 = vperm.slane %v4195_v37, 7  ;;  %v1072_v37 = vperm.slane %v4236_v39, 4 }
 0x30d   :  { %1586 = vst [vmem:[#allocation1 + $0x4] ss:$9 sm:$0xff] %v1032_v36  ;;  %v1068_v36 = vperm.slane %v4236_v39, 0 }
 0x30e   :  { %1587 = vst [vmem:[#allocation1 + $0x5] ss:$9 sm:$0xff] %v1033_v18 }
 0x30f   :  { %1588 = vst [vmem:[#allocation1 + $0x6] ss:$9 sm:$0xff] %v1034_v59  ;;  %v1069_v59 = vperm.slane %v4236_v39, 1  ;;  %1925 = vperm.xlu0 %3082, %v4160_v48   ;;  %v2669_v48 = vpop.f32.mrf.mxu1 }
 0x310   :  { %1589 = vst [vmem:[#allocation1 + $0x7] ss:$9 sm:$0xff] %v1035_v34  ;;  %v1070_v34 = vperm.slane %v4236_v39, 2 }
 0x311   :  { %2819 = vst.msk [vmem:[%s5018_s3 + $0xa8] sm:$0xff] %vm82_vm0, %v2669_v48 }
 0x317   :  { %v1590_v49 = vld [vmem:[#allocation1] sm:$0xff]  ;;  %1934 = vperm.xlu0 %3082, %v4193_v26  }
 0x318   :  { %1591 = vst [vmem:[#allocation1] ss:$9 sm:$0xff] %v1036_v47  ;;  %1949 = vperm.xlu1 %3080, %v1590_v49   ;;  %v4339_v47 = vpop.xlane.xlu2 %698  ;;  %v1075_v49 = vperm.slane %v4236_v39, 7 }
 0x319   :  { %1592 = vst [vmem:[#allocation1 + $0x1] ss:$9 sm:$0xff] %v1037_v11  ;;  %v1074_v11 = vperm.slane %v4236_v39, 6  ;;  %vm2252_vm7 = vcmp.eq.s32.totalorder %v3413_v44, %v4339_v47 }
 0x31a   :  { %1593 = vst [vmem:[#allocation1 + $0x2] ss:$9 sm:$0xff] %v1038_v35  ;;  %v2994_v17 = vsel %vm2252_vm7, 1.0, %v3112_v55 }
 0x31b   :  { %1594 = vst [vmem:[#allocation1 + $0x3] ss:$9 sm:$0xff] %v1039_v42  ;;  %v1076_v42 = vperm.slane %v4244_v32, 0 }
 0x31c   :  { %1595 = vst [vmem:[#allocation1 + $0x4] ss:$9 sm:$0xff] %v1040_v3  ;;  %v4352_v3 = vpop.xlane.xlu0 %692 }
 0x31d   :  { %1596 = vst [vmem:[#allocation1 + $0x5] ss:$9 sm:$0xff] %v1041_v57  ;;  %v1077_v57 = vperm.slane %v4244_v32, 1  ;;  %vm2250_vm5 = vcmp.eq.s32.totalorder %v3413_v44, %v4352_v3 }
 0x31e   :  { %1597 = vst [vmem:[#allocation1 + $0x6] ss:$9 sm:$0xff] %v1042_v10  ;;  %v1078_v10 = vperm.slane %v4244_v32, 2  ;;  %v2992_v26 = vsel %vm2250_vm5, 1.0, %v3112_v55  ;;  %vm2060_vm5 = vcmask 458112  }
 0x31f   :  { %1598 = vst [vmem:[#allocation1 + $0x7] ss:$9 sm:$0xff] %v1043_v0  ;;  %1943 = vperm.xlu0 %3082, %v4230_v30   ;;  %v1079_v0 = vperm.slane %v4244_v32, 3  ;;  %3056 = vmatmul.msk.f32.gmra.mxu3 %vm555_vm1, %v2992_v26  ;;  %v1087_v32 = vperm.slane %v4270_v15, 3 }
 0x320   :  { %v4349_v35 = vpop.xlane.xlu2 %707 }
 0x321   :  { %vm2255_vm10 = vcmp.eq.s32.totalorder %v3413_v44, %v4349_v35 }
 0x326   :  { %v4287_v53 = vld [vmem:[#allocation1] sm:$0xff] }
 0x327   :  { %1600 = vst [vmem:[#allocation1] ss:$9 sm:$0xff] %v1044_v31  ;;  %1952 = vperm.xlu0 %3082, %v4287_v53   ;;  %v1084_v31 = vperm.slane %v4270_v15, 0 }
 0x328   :  { %1601 = vst [vmem:[#allocation1 + $0x1] ss:$9 sm:$0xff] %v1045_v22  ;;  %v4366_v30 = vpop.xlane.xlu2 %716 }
 0x329   :  { %1602 = vst [vmem:[#allocation1 + $0x2] ss:$9 sm:$0xff] %v1046_v27  ;;  %v4373_v27 = vpop.xlane.xlu0 %701  ;;  %vm2258_vm4 = vcmp.eq.s32.totalorder %v3413_v44, %v4366_v30 }
 0x32a   :  { %1603 = vst [vmem:[#allocation1 + $0x3] ss:$9 sm:$0xff] %v1047_v51  ;;  %v1086_v51 = vperm.slane %v4270_v15, 2  ;;  %vm2253_vm8 = vcmp.eq.s32.totalorder %v3413_v44, %v4373_v27 }
 0x32b   :  { %1604 = vst [vmem:[#allocation1 + $0x4] ss:$9 sm:$0xff] %v1048_v24  ;;  %v1088_v24 = vperm.slane %v4270_v15, 4 }
 0x32c   :  { %1605 = vst [vmem:[#allocation1 + $0x5] ss:$9 sm:$0xff] %v1049_v16  ;;  %v1090_v16 = vperm.slane %v4270_v15, 6 }
 0x32d   :  { %1606 = vst [vmem:[#allocation1 + $0x6] ss:$9 sm:$0xff] %v1050_v23  ;;  %v1091_v23 = vperm.slane %v4270_v15, 7 }
 0x32e   :  { %1607 = vst [vmem:[#allocation1 + $0x7] ss:$9 sm:$0xff] %v1051_v7  ;;  %v2672_v7 = vpop.f32.mrf.mxu1 }
 0x32f   :  { %2820 = vst.msk [vmem:[%s5018_s3 + $0xb0] sm:$0xff] %vm82_vm0, %v2672_v7 }
 0x330   :  { %v4378_v53 = vpop.xlane.xlu2 %725 }
 0x335   :  { %v1608_v4 = vld [vmem:[#allocation1] sm:$0xff] }
 0x336   :  { %1609 = vst [vmem:[#allocation1] ss:$9 sm:$0xff] %v1052_v54  ;;  %1955 = vperm.xlu2 %3081, %v1608_v4   ;;  %v4391_v54 = vpop.xlane.xlu0 %710  ;;  %v1092_v4 = vperm.slane %v4280_v33, 0  ;;  %v2675_v62 = vpop.f32.mrf.mxu1 }
 0x337   :  { %1610 = vst [vmem:[#allocation1 + $0x1] ss:$9 sm:$0xff] %v1053_v58  ;;  %v2993_v58 = vsel %vm2251_vm6, 1.0, %v3112_v55  ;;  %vm2256_vm11 = vcmp.eq.s32.totalorder %v3413_v44, %v4391_v54  ;;  %vm2064_vm6 = vcmask 523712  }
 0x338   :  { %1611 = vst [vmem:[#allocation1 + $0x2] ss:$9 sm:$0xff] %v1054_v2  ;;  %3057 = vmatmul.msk.f32.gmra.mxu3 %vm555_vm1, %v2993_v58  ;;  %v4395_v15 = vpop.xlane.xlu2 %734  ;;  %v2998_v7 = vsel %vm2256_vm11, 1.0, %v3112_v55  ;;  %v1115_v58 = vperm.slane %v4352_v3, 7 }
 0x339   :  { %1612 = vst [vmem:[#allocation1 + $0x3] ss:$9 sm:$0xff] %v1055_v13  ;;  %v1093_v13 = vperm.slane %v4280_v33, 1 }
 0x33a   :  { %1613 = vst [vmem:[#allocation1 + $0x4] ss:$9 sm:$0xff] %v1056_v19  ;;  %v1094_v19 = vperm.slane %v4280_v33, 2 }
 0x33b   :  { %1614 = vst [vmem:[#allocation1 + $0x5] ss:$9 sm:$0xff] %v1057_v46  ;;  %v1095_v46 = vperm.slane %v4280_v33, 3 }
 0x33c   :  { %1615 = vst [vmem:[#allocation1 + $0x6] ss:$9 sm:$0xff] %v1058_v56  ;;  %v4403_v56 = vpop.xlane.xlu1 %713 }
 0x33d   :  { %1616 = vst [vmem:[#allocation1 + $0x7] ss:$9 sm:$0xff] %v1059_v61  ;;  %v1096_v61 = vperm.slane %v4280_v33, 4  ;;  %vm2257_vm15 = vcmp.eq.s32.totalorder %v3413_v44, %v4403_v56 }
 0x33e   :  { %2821 = vst.msk [vmem:[%s5018_s3 + $0xb8] sm:$0xff] %vm82_vm0, %v2675_v62 }
 0x340   :  { %3058 = vmatmul.msk.f32.gmra.mxu3 %vm555_vm1, %v2994_v17 }
 0x344   :  { %v1617_v41 = vld [vmem:[#allocation1] sm:$0xff] }
 0x345   :  { %1618 = vst [vmem:[#allocation1] ss:$9 sm:$0xff] %v1060_v38  ;;  %1958 = vperm.xlu1 %3080, %v1617_v41   ;;  %v1097_v38 = vperm.slane %v4280_v33, 5  ;;  %v4410_v41 = vpop.xlane.xlu0 %719 }
 0x346   :  { %1619 = vst [vmem:[#allocation1 + $0x1] ss:$9 sm:$0xff] %v1061_v1  ;;  %v1098_v1 = vperm.slane %v4280_v33, 6  ;;  %vm2259_vm7 = vcmp.eq.s32.totalorder %v3413_v44, %v4410_v41 }
 0x347   :  { %1620 = vst [vmem:[#allocation1 + $0x2] ss:$9 sm:$0xff] %v1062_v8  ;;  %v1099_v8 = vperm.slane %v4280_v33, 7  ;;  %v1100_v33 = vperm.slane %v4320_v6, 0 }
 0x348   :  { %1621 = vst [vmem:[#allocation1 + $0x3] ss:$9 sm:$0xff] %v1063_v12  ;;  %v4413_v12 = vpop.xlane.xlu2 %743 }
 0x349   :  { %1622 = vst [vmem:[#allocation1 + $0x4] ss:$9 sm:$0xff] %v1064_v60  ;;  %v2995_v60 = vsel %vm2253_vm8, 1.0, %v3112_v55  ;;  %vm2068_vm8 = vcmask 589312  }
 0x34a   :  { %1623 = vst [vmem:[#allocation1 + $0x5] ss:$9 sm:$0xff] %v1065_v52  ;;  %v4422_v52 = vpop.xlane.xlu1 %722  ;;  %3059 = vmatmul.msk.f32.gmra.mxu3 %vm555_vm1, %v2995_v60  ;;  %v2999_v60 = vsel %vm2257_vm15, 1.0, %v3112_v55  ;;  %vm2080_vm15 = vcmask 786112  }
 0x34b   :  { %1624 = vst [vmem:[#allocation1 + $0x6] ss:$9 sm:$0xff] %v1066_v5  ;;  %v1101_v5 = vperm.slane %v4320_v6, 1  ;;  %vm2260_vm11 = vcmp.eq.s32.totalorder %v3413_v44, %v4422_v52 }
 0x34c   :  { %1625 = vst [vmem:[#allocation1 + $0x7] ss:$9 sm:$0xff] %v1067_v9 }
 0x352   :  { %v4437_v48 = vpop.xlane.xlu1 %731 }
 0x353   :  { %v1626_v18 = vld [vmem:[#allocation1] sm:$0xff] }
 0x354   :  { %1627 = vst [vmem:[#allocation1] ss:$9 sm:$0xff] %v1068_v36  ;;  %1961 = vperm.xlu0 %3082, %v1626_v18   ;;  %v4427_v36 = vpop.xlane.xlu0 %728  ;;  %v1102_v18 = vperm.slane %v4320_v6, 2 }
 0x355   :  { %1628 = vst [vmem:[#allocation1 + $0x1] ss:$9 sm:$0xff] %v1069_v59  ;;  %v1103_v59 = vperm.slane %v4320_v6, 3 }
 0x356   :  { %1629 = vst [vmem:[#allocation1 + $0x2] ss:$9 sm:$0xff] %v1070_v34  ;;  %v1104_v34 = vperm.slane %v4320_v6, 4 }
 0x357   :  { %1630 = vst [vmem:[#allocation1 + $0x3] ss:$9 sm:$0xff] %v1071_v45  ;;  %v1848_v45 = vpop.permute.xlu2 %1847 }
 0x358   :  { %1631 = vst [vmem:[#allocation1 + $0x4] ss:$9 sm:$0xff] %v1072_v37  ;;  %v1105_v37 = vperm.slane %v4320_v6, 5 }
 0x359   :  { %1632 = vst [vmem:[#allocation1 + $0x5] ss:$9 sm:$0xff] %v1073_v25  ;;  %v2678_v25 = vpop.f32.mrf.mxu1 }
 0x35a   :  { %1633 = vst [vmem:[#allocation1 + $0x6] ss:$9 sm:$0xff] %v1074_v11  ;;  %v2996_v11 = vsel %vm2254_vm9, 1.0, %v3112_v55  ;;  %vm2072_vm9 = vcmask 654912  }
 0x35b   :  { %1634 = vst [vmem:[#allocation1 + $0x7] ss:$9 sm:$0xff] %v1075_v49  ;;  %v1106_v49 = vperm.slane %v4320_v6, 6  ;;  %3060 = vmatmul.msk.f32.gmra.mxu3 %vm555_vm1, %v2996_v11  ;;  %v1120_v11 = vperm.slane %v4369_v14, 4 }
 0x35c   :  { %2822 = vst.msk [vmem:[%s5018_s3 + $0xc0] sm:$0xff] %vm82_vm0, %v2678_v25 }
 0x35f   :  { %v1854_v26 = vpop.permute.xlu2 %1853 }
 0x362   :  { %v1635_v39 = vld [vmem:[#allocation1] sm:$0xff] }
 0x363   :  { %1636 = vst [vmem:[#allocation1] ss:$9 sm:$0xff] %v1076_v42  ;;  %1964 = vperm.xlu2 %3081, %v1635_v39   ;;  %v1107_v42 = vperm.slane %v4320_v6, 7  ;;  %v2681_v39 = vpop.f32.mrf.mxu1  ;;  %v4454_v6 = vpop.xlane.xlu1 %740 }
 0x364   :  { %1637 = vst [vmem:[#allocation1 + $0x1] ss:$9 sm:$0xff] %v1077_v57  ;;  %v4447_v57 = vpop.xlane.xlu0 %737 }
 0x365   :  { %1638 = vst [vmem:[#allocation1 + $0x2] ss:$9 sm:$0xff] %v1078_v10  ;;  %v2997_v10 = vsel %vm2255_vm10, 1.0, %v3112_v55  ;;  %vm2076_vm10 = vcmask 720512  }
 0x366   :  { %1639 = vst [vmem:[#allocation1 + $0x3] ss:$9 sm:$0xff] %v1079_v0  ;;  %3061 = vmatmul.msk.f32.gmra.mxu3 %vm555_vm1, %v2997_v10  ;;  %v1108_v0 = vperm.slane %v4352_v3, 0 }
 0x367   :  { %1640 = vst [vmem:[#allocation1 + $0x4] ss:$9 sm:$0xff] %v1080_v28 }
 0x368   :  { %1641 = vst [vmem:[#allocation1 + $0x5] ss:$9 sm:$0xff] %v1081_v21  ;;  %v1109_v21 = vperm.slane %v4352_v3, 1 }
 0x369   :  { %1642 = vst [vmem:[#allocation1 + $0x6] ss:$9 sm:$0xff] %v1082_v29  ;;  %v1110_v29 = vperm.slane %v4352_v3, 2 }
 0x36a   :  { %1643 = vst [vmem:[#allocation1 + $0x7] ss:$9 sm:$0xff] %v1083_v43  ;;  %v1111_v43 = vperm.slane %v4352_v3, 3 }
 0x36b   :  { %2823 = vst.msk [vmem:[%s5018_s3 + $0xc8] sm:$0xff] %vm82_vm0, %v2681_v39  ;;  %v1121_v39 = vperm.slane %v4369_v14, 5 }
 0x36e   :  { %3062 = vmatmul.msk.f32.gmra.mxu3 %vm555_vm1, %v2998_v7 }
 0x371   :  { %v1644_v22 = vld [vmem:[#allocation1] sm:$0xff] }
 0x372   :  { %1645 = vst [vmem:[#allocation1] ss:$9 sm:$0xff] %v1084_v31  ;;  %1967 = vperm.xlu1 %3080, %v1644_v22   ;;  %v1112_v31 = vperm.slane %v4352_v3, 4  ;;  %v4465_v22 = vadd.s32 4294967288, %v3413_v44 }
 0x373   :  { %1646 = vst [vmem:[#allocation1 + $0x1] ss:$9 sm:$0xff] %v1085_v63  ;;  %v2705_v63 = vpop.f32.mrf.mxu3 }
 0x374   :  { %1647 = vst [vmem:[#allocation1 + $0x2] ss:$9 sm:$0xff] %v1086_v51  ;;  %v1113_v51 = vperm.slane %v4352_v3, 5 }
 0x375   :  { %1648 = vst [vmem:[#allocation1 + $0x3] ss:$9 sm:$0xff] %v1087_v32  ;;  %v4469_v32 = vadd.s32 4294967280, %v3413_v44 }
 0x376   :  { %1649 = vst [vmem:[#allocation1 + $0x4] ss:$9 sm:$0xff] %v1088_v24  ;;  %v1114_v24 = vperm.slane %v4352_v3, 6  ;;  %3063 = vmatmul.msk.f32.gmra.mxu3 %vm555_vm1, %v2999_v60  ;;  %v1127_v60 = vperm.slane %v4339_v47, 3 }
 0x377   :  { %1650 = vst [vmem:[#allocation1 + $0x5] ss:$9 sm:$0xff] %v1089_v50  ;;  %v4473_v50 = vadd.s32 4294967272, %v3413_v44 }
 0x378   :  { %1651 = vst [vmem:[#allocation1 + $0x6] ss:$9 sm:$0xff] %v1090_v16  ;;  %v1851_v16 = vpop.permute.xlu0 %1850 }
 0x379   :  { %1652 = vst [vmem:[#allocation1 + $0x7] ss:$9 sm:$0xff] %v1091_v23  ;;  %v2684_v23 = vpop.f32.mrf.mxu1 }
 0x37a   :  { %2831 = vst.msk [vmem:[%s5018_s3 + $0x108] sm:$0xff] %vm82_vm0, %v2705_v63 }
 0x37b   :  { %2824 = vst.msk [vmem:[%s5018_s3 + $0xd0] sm:$0xff] %vm82_vm0, %v2684_v23 }
 0x380   :  { %v1653_v2 = vld [vmem:[#allocation1] sm:$0xff]  ;;  %v1872_v23 = vpop.permute.xlu0 %1871 }
 0x381   :  { %1654 = vst [vmem:[#allocation1] ss:$9 sm:$0xff] %v1092_v4  ;;  %1970 = vperm.xlu0 %3082, %v1653_v2   ;;  %v1845_v4 = vpop.permute.xlu1 %1844  ;;  %v2039_v2 = vperm.slane %v1848_v45, %v4465_v22  ;;  %v2687_v62 = vpop.f32.mrf.mxu1 }
 0x382   :  { %1655 = vst [vmem:[#allocation1 + $0x1] ss:$9 sm:$0xff] %v1093_v13  ;;  %v2037_v13 = vperm.slane %v1845_v4, %v3413_v44  ;;  %v4552_v4 = vadd.s32 4294967232, %v3413_v44 }
 0x383   :  { %1656 = vst [vmem:[#allocation1 + $0x2] ss:$9 sm:$0xff] %v1094_v19  ;;  %v2043_v19 = vperm.slane %v1851_v16, %v4469_v32 }
 0x384   :  { %1657 = vst [vmem:[#allocation1 + $0x3] ss:$9 sm:$0xff] %v1095_v46  ;;  %v1860_v46 = vpop.permute.xlu2 %1859  ;;  %v2041_v3 = vsel %vm5022_vm12, %v2039_v2, %v2037_v13  ;;  %v1124_v2 = vperm.slane %v4339_v47, 0 }
 0x385   :  { %1658 = vst [vmem:[#allocation1 + $0x4] ss:$9 sm:$0xff] %v1096_v61  ;;  %v2047_v61 = vperm.slane %v1854_v26, %v4473_v50  ;;  %v2045_v17 = vsel %vm2044_vm13, %v2043_v19, %v2041_v3  ;;  %v3001_v19 = vsel %vm2259_vm7, 1.0, %v3112_v55  ;;  %v4558_v3 = vadd.s32 4294967224, %v3413_v44 }
 0x386   :  { %1659 = vst [vmem:[#allocation1 + $0x5] ss:$9 sm:$0xff] %v1097_v38  ;;  %v2708_v38 = vpop.f32.mrf.mxu3  ;;  %vm5020_vm7 = vcmask 917312  }
 0x387   :  { %1660 = vst [vmem:[#allocation1 + $0x6] ss:$9 sm:$0xff] %v1098_v1  ;;  %v2049_v1 = vsel %vm2048_vm14, %v2047_v61, %v2045_v17 }
 0x388   :  { %1661 = vst [vmem:[#allocation1 + $0x7] ss:$9 sm:$0xff] %v1099_v8  ;;  %v4500_v8 = vadd.s32 4294967256, %v3413_v44 }
 0x389   :  { %2832 = vst.msk [vmem:[%s5018_s3 + $0x110] sm:$0xff] %vm82_vm0, %v2708_v38  ;;  %v1126_v38 = vperm.slane %v4339_v47, 2 }
 0x38a   :  { %2825 = vst.msk [vmem:[%s5018_s3 + $0xd8] sm:$0xff] %vm82_vm0, %v2687_v62  ;;  %v2055_v25 = vperm.slane %v1860_v46, %v4500_v8  ;;  %v1125_v46 = vperm.slane %v4339_v47, 1 }
 0x38e   :  { %v2711_v10 = vpop.f32.mrf.mxu3 }
 0x38f   :  { %v1662_v9 = vld [vmem:[#allocation1] sm:$0xff]  ;;  %2833 = vst.msk [vmem:[%s5018_s3 + $0x118] sm:$0xff] %vm82_vm0, %v2711_v10 }
 0x390   :  { %1663 = vst [vmem:[#allocation1] ss:$9 sm:$0xff] %v1100_v33  ;;  %1973 = vperm.xlu2 %3081, %v1662_v9   ;;  %v1116_v33 = vperm.slane %v4369_v14, 0  ;;  %v1857_v9 = vpop.permute.xlu1 %1856 }
 0x391   :  { %1664 = vst [vmem:[#allocation1 + $0x1] ss:$9 sm:$0xff] %v1101_v5  ;;  %v4509_v5 = vadd.s32 4294967264, %v3413_v44 }
 0x392   :  { %1665 = vst [vmem:[#allocation1 + $0x2] ss:$9 sm:$0xff] %v1102_v18 }
 0x393   :  { %1666 = vst [vmem:[#allocation1 + $0x3] ss:$9 sm:$0xff] %v1103_v59  ;;  %v1117_v59 = vperm.slane %v4369_v14, 1  ;;  %v2051_v45 = vperm.slane %v1857_v9, %v4509_v5 }
 0x394   :  { %1667 = vst [vmem:[#allocation1 + $0x4] ss:$9 sm:$0xff] %v1104_v34  ;;  %v1118_v34 = vperm.slane %v4369_v14, 2 }
 0x395   :  { %1668 = vst [vmem:[#allocation1 + $0x5] ss:$9 sm:$0xff] %v1105_v37  ;;  %v1119_v37 = vperm.slane %v4369_v14, 3 }
 0x396   :  { %1669 = vst [vmem:[#allocation1 + $0x6] ss:$9 sm:$0xff] %v1106_v49  ;;  %v1866_v49 = vpop.permute.xlu2 %1865  ;;  %v2714_v7 = vpop.f32.mrf.mxu3 }
 0x397   :  { %1670 = vst [vmem:[#allocation1 + $0x7] ss:$9 sm:$0xff] %v1107_v42  ;;  %v2053_v42 = vsel %vm2052_vm2, %v2051_v45, %v2049_v1  ;;  %v4567_v1 = vadd.s32 4294967216, %v3413_v44  ;;  %v1131_v45 = vperm.slane %v4339_v47, 7 }
 0x398   :  { %v2057_v26 = vsel %vm2056_vm3, %v2055_v25, %v2053_v42  ;;  %v1863_v63 = vpop.permute.xlu1 %1862  ;;  %2834 = vst.msk [vmem:[%s5018_s3 + $0x120] sm:$0xff] %vm82_vm0, %v2714_v7  ;;  %v4583_v42 = vadd.s32 4294967208, %v3413_v44  ;;  %v1132_v7 = vperm.slane %v4373_v27, 0 }
 0x39e   :  { %v1671_v28 = vld [vmem:[#allocation1] sm:$0xff]  ;;  %v2717_v25 = vpop.f32.mrf.mxu3 }
 0x39f   :  { %1672 = vst [vmem:[#allocation1] ss:$9 sm:$0xff] %v1108_v0  ;;  %1976 = vperm.xlu1 %3080, %v1671_v28   ;;  %v1122_v0 = vperm.slane %v4369_v14, 6  ;;  %v4525_v28 = vadd.s32 4294967240, %v3413_v44 }
 0x3a0   :  { %1673 = vst [vmem:[#allocation1 + $0x1] ss:$9 sm:$0xff] %v1109_v21  ;;  %v4528_v21 = vadd.s32 4294967248, %v3413_v44  ;;  %v1869_v17 = vpop.permute.xlu1 %1868 }
 0x3a1   :  { %1674 = vst [vmem:[#allocation1 + $0x2] ss:$9 sm:$0xff] %v1110_v29  ;;  %v1123_v29 = vperm.slane %v4369_v14, 7  ;;  %v2067_v62 = vperm.slane %v1869_v17, %v4552_v4  ;;  %v4621_v17 = vadd.s32 4294967176, %v3413_v44 }
 0x3a2   :  { %1675 = vst [vmem:[#allocation1 + $0x3] ss:$9 sm:$0xff] %v1111_v43  ;;  %v2690_v43 = vpop.f32.mrf.mxu1 }
 0x3a3   :  { %1676 = vst [vmem:[#allocation1 + $0x4] ss:$9 sm:$0xff] %v1112_v31  ;;  %v3000_v31 = vsel %vm2258_vm4, 1.0, %v3112_v55  ;;  %vm5021_vm4 = vcmask 851712  }
 0x3a4   :  { %1677 = vst [vmem:[#allocation1 + $0x5] ss:$9 sm:$0xff] %v1113_v51  ;;  %3064 = vmatmul.msk.f32.gmra.mxu3 %vm555_vm1, %v3000_v31  ;;  %v2059_v51 = vperm.slane %v1863_v63, %v4528_v21 }
 0x3a5   :  { %1678 = vst [vmem:[#allocation1 + $0x6] ss:$9 sm:$0xff] %v1114_v24  ;;  %v2063_v24 = vperm.slane %v1866_v49, %v4525_v28 }
 0x3a6   :  { %1679 = vst [vmem:[#allocation1 + $0x7] ss:$9 sm:$0xff] %v1115_v58  ;;  %v2061_v14 = vsel %vm2060_vm5, %v2059_v51, %v2057_v26  ;;  %v1875_v58 = vpop.permute.xlu2 %1874 }
 0x3a7   :  { %2826 = vst.msk [vmem:[%s5018_s3 + $0xe0] sm:$0xff] %vm82_vm0, %v2690_v43  ;;  %v2065_v16 = vsel %vm2064_vm6, %v2063_v24, %v2061_v14 }
 0x3a8   :  { %v2069_v9 = vsel %vm2068_vm8, %v2067_v62, %v2065_v16  ;;  %v1878_v43 = vpop.permute.xlu1 %1877  ;;  %2835 = vst.msk [vmem:[%s5018_s3 + $0x128] sm:$0xff] %vm82_vm0, %v2717_v25  ;;  %v2720_v16 = vpop.f32.mrf.mxu3  ;;  %v1135_v62 = vperm.slane %v4373_v27, 3 }
 0x3a9   :  { %v2079_v31 = vperm.slane %v1878_v43, %v4583_v42  ;;  %2836 = vst.msk [vmem:[%s5018_s3 + $0x130] sm:$0xff] %vm82_vm0, %v2720_v16 }
 0x3aa   :  { %v2693_v13 = vpop.f32.mrf.mxu1 }
 0x3ab   :  { %2827 = vst.msk [vmem:[%s5018_s3 + $0xe8] sm:$0xff] %vm82_vm0, %v2693_v13 }
 0x3ac   :  { %3065 = vmatmul.msk.f32.gmra.mxu3 %vm555_vm1, %v3001_v19 }
 0x3ad   :  { %v1680_v18 = vld [vmem:[#allocation1] sm:$0xff] }
 0x3ae   :  { %1681 = vst [vmem:[#allocation1] ss:$9 sm:$0xff] %v1116_v33  ;;  %1979 = vperm.xlu0 %3082, %v1680_v18   ;;  %v1128_v33 = vperm.slane %v4339_v47, 4  ;;  %v1129_v18 = vperm.slane %v4339_v47, 5 }
 0x3af   :  { %1682 = vst [vmem:[#allocation1 + $0x1] ss:$9 sm:$0xff] %v1117_v59  ;;  %v2071_v59 = vperm.slane %v1872_v23, %v4558_v3 }
 0x3b0   :  { %1683 = vst [vmem:[#allocation1 + $0x2] ss:$9 sm:$0xff] %v1118_v34  ;;  %v1130_v34 = vperm.slane %v4339_v47, 6  ;;  %v4588_v47 = vadd.s32 4294967192, %v3413_v44  ;;  %v2723_v25 = vpop.f32.mrf.mxu3 }
 0x3b1   :  { %1684 = vst [vmem:[#allocation1 + $0x3] ss:$9 sm:$0xff] %v1119_v37  ;;  %v2075_v37 = vperm.slane %v1875_v58, %v4567_v1  ;;  %v2073_v49 = vsel %vm2072_vm9, %v2071_v59, %v2069_v9  ;;  %v4615_v58 = vadd.s32 4294967184, %v3413_v44  ;;  %v1136_v9 = vperm.slane %v4373_v27, 4 }
 0x3b2   :  { %1685 = vst [vmem:[#allocation1 + $0x4] ss:$9 sm:$0xff] %v1120_v11  ;;  %v4579_v11 = vadd.s32 4294967200, %v3413_v44  ;;  %v2696_v10 = vpop.f32.mrf.mxu1 }
 0x3b3   :  { %1686 = vst [vmem:[#allocation1 + $0x5] ss:$9 sm:$0xff] %v1121_v39  ;;  %v1881_v39 = vpop.permute.xlu0 %1880  ;;  %v2077_v26 = vsel %vm2076_vm10, %v2075_v37, %v2073_v49  ;;  %v1139_v37 = vperm.slane %v4373_v27, 7 }
 0x3b4   :  { %1687 = vst [vmem:[#allocation1 + $0x6] ss:$9 sm:$0xff] %v1122_v0  ;;  %v3002_v0 = vsel %vm2260_vm11, 1.0, %v3112_v55  ;;  %v2083_v63 = vperm.slane %v1881_v39, %v4579_v11  ;;  %v2081_v24 = vsel %vm2080_vm15, %v2079_v31, %v2077_v26  ;;  %vm2261_vm11 = vcmp.eq.s32.totalorder %v3413_v44, %v4378_v53 }
 0x3b5   :  { %1688 = vst [vmem:[#allocation1 + $0x7] ss:$9 sm:$0xff] %v1123_v29  ;;  %v1884_v29 = vpop.permute.xlu2 %1883  ;;  %3066 = vmatmul.msk.f32.gmra.mxu3 %vm555_vm1, %v3002_v0  ;;  %v1140_v31 = vperm.slane %v4383_v20, 0 }
 0x3b6   :  { %2828 = vst.msk [vmem:[%s5018_s3 + $0xf0] sm:$0xff] %vm82_vm0, %v2696_v10  ;;  %v2087_v51 = vperm.slane %v1884_v29, %v4588_v47  ;;  %v2085_v14 = vsel %vm5021_vm4, %v2083_v63, %v2081_v24  ;;  %vm2262_vm4 = vcmp.eq.s32.totalorder %v3413_v44, %v4427_v36  ;;  %v1141_v24 = vperm.slane %v4383_v20, 1 }
 0x3b7   :  { %v3004_v26 = vsel %vm2262_vm4, 1.0, %v3112_v55  ;;  %2837 = vst.msk [vmem:[%s5018_s3 + $0x138] sm:$0xff] %vm82_vm0, %v2723_v25  ;;  %vm2263_vm4 = vcmp.eq.s32.totalorder %v3413_v44, %v4437_v48 }
 0x3b8   :  { %v2089_v23 = vsel %vm5020_vm7, %v2087_v51, %v2085_v14  ;;  %vm2092_vm7 = vcmask 982912   ;;  %v2726_v63 = vpop.f32.mrf.mxu3  ;;  %v1142_v14 = vperm.slane %v4383_v20, 2  ;;  %v3005_v16 = vsel %vm2263_vm4, 1.0, %v3112_v55 }
 0x3b9   :  { %2838 = vst.msk [vmem:[%s5018_s3 + $0x140] sm:$0xff] %vm82_vm0, %v2726_v63  ;;  %vm2264_vm4 = vcmp.eq.s32.totalorder %v3413_v44, %v4395_v15 }
 0x3ba   :  { %v2699_v19 = vpop.f32.mrf.mxu1 }
 0x3bb   :  { %2829 = vst.msk [vmem:[%s5018_s3 + $0xf8] sm:$0xff] %vm82_vm0, %v2699_v19  ;;  %v1147_v19 = vperm.slane %v4383_v20, 7 }
 0x3bc   :  { %v1689_v61 = vld [vmem:[#allocation1] sm:$0xff] }
 0x3bd   :  { %1690 = vst [vmem:[#allocation1] ss:$9 sm:$0xff] %v1124_v2  ;;  %1982 = vperm.xlu2 %3081, %v1689_v61   ;;  %v1133_v2 = vperm.slane %v4373_v27, 1  ;;  %v1134_v61 = vperm.slane %v4373_v27, 2  ;;  %v1893_v49 = vpop.permute.xlu2 %1892 }
 0x3be   :  { %1691 = vst [vmem:[#allocation1 + $0x1] ss:$9 sm:$0xff] %v1125_v46  ;;  %v3003_v46 = vsel %vm2261_vm11, 1.0, %v3112_v55  ;;  %vm2096_vm11 = vcmask 1048512   ;;  %v2098_v0 = vperm.slane %v1893_v49, %v3413_v44  ;;  %v1153_v49 = vperm.slane %v4349_v35, 5 }
 0x3bf   :  { %1692 = vst [vmem:[#allocation1 + $0x2] ss:$9 sm:$0xff] %v1126_v38  ;;  %v1887_v38 = vpop.permute.xlu1 %1886  ;;  %3067 = vmatmul.msk.f32.gmra.mxu3 %vm555_vm1, %v3003_v46 }
 0x3c0   :  { %1693 = vst [vmem:[#allocation1 + $0x3] ss:$9 sm:$0xff] %v1127_v60  ;;  %v1890_v60 = vpop.permute.xlu0 %1889  ;;  %v2729_v46 = vpop.f32.mrf.mxu3 }
 0x3c1   :  { %1694 = vst [vmem:[#allocation1 + $0x4] ss:$9 sm:$0xff] %v1128_v33  ;;  %v2091_v33 = vperm.slane %v1887_v38, %v4615_v58 }
 0x3c2   :  { %1695 = vst [vmem:[#allocation1 + $0x5] ss:$9 sm:$0xff] %v1129_v18  ;;  %v1137_v18 = vperm.slane %v4373_v27, 5  ;;  %v2702_v10 = vpop.f32.mrf.mxu1 }
 0x3c3   :  { %1696 = vst [vmem:[#allocation1 + $0x6] ss:$9 sm:$0xff] %v1130_v34  ;;  %v2093_v59 = vsel %vm2092_vm7, %v2091_v33, %v2089_v23  ;;  %v1138_v34 = vperm.slane %v4373_v27, 6  ;;  %v1143_v23 = vperm.slane %v4383_v20, 3 }
 0x3c4   :  { %1697 = vst [vmem:[#allocation1 + $0x7] ss:$9 sm:$0xff] %v1131_v45  ;;  %v2095_v45 = vperm.slane %v1890_v60, %v4621_v17  ;;  %v1149_v60 = vperm.slane %v4349_v35, 1 }
 0x3c5   :  { %2830 = vst.msk [vmem:[%s5018_s3 + $0x100] sm:$0xff] %vm82_vm0, %v2702_v10 }
 0x3c6   :  { %v4633_v39 = vsel %vm2096_vm11, %v2095_v45, %v2093_v59  ;;  %2839 = vst.msk [vmem:[%s5018_s3 + $0x148] sm:$0xff] %vm82_vm0, %v2729_v46 }
 0x3c7   :  { %v1896_v27 = vpop.permute.xlu1 %1895  ;;  %3068 = vmatmul.msk.f32.gmra.mxu3 %vm555_vm1, %v3004_v26  ;;  %v1154_v26 = vperm.slane %v4349_v35, 6 }
 0x3c8   :  { %v2099_v29 = vperm.slane %v1896_v27, %v4465_v22  ;;  %v4677_v38 = vpop.xlane.xlu0 %746 }
 0x3ca   :  { %v2100_v43 = vsel %vm5022_vm12, %v2099_v29, %v2098_v0  ;;  %vm2265_vm12 = vcmp.eq.s32.totalorder %v3413_v44, %v4447_v57  ;;  %v1155_v0 = vperm.slane %v4349_v35, 7 }
 0x3cb   :  { %v1698_v13 = vld [vmem:[#allocation1] sm:$0xff]  ;;  %v3007_v45 = vsel %vm2265_vm12, 1.0, %v3112_v55  ;;  %vm5023_vm12 = vcmask 851712  }
 0x3cc   :  { %1699 = vst [vmem:[#allocation1] ss:$9 sm:$0xff] %v1132_v7  ;;  %1985 = vperm.xlu1 %3080, %v1698_v13   ;;  %v1144_v7 = vperm.slane %v4383_v20, 4  ;;  %v1146_v13 = vperm.slane %v4383_v20, 6 }
 0x3cd   :  { %1700 = vst [vmem:[#allocation1 + $0x1] ss:$9 sm:$0xff] %v1133_v2  ;;  %v1145_v2 = vperm.slane %v4383_v20, 5  ;;  %v1148_v20 = vperm.slane %v4349_v35, 0 }
 0x3ce   :  { %1701 = vst [vmem:[#allocation1 + $0x2] ss:$9 sm:$0xff] %v1134_v61  ;;  %v3006_v61 = vsel %vm2264_vm4, 1.0, %v3112_v55  ;;  %vm2266_vm4 = vcmp.eq.s32.totalorder %v3413_v44, %v4454_v6 }
 0x3cf   :  { %1702 = vst [vmem:[#allocation1 + $0x3] ss:$9 sm:$0xff] %v1135_v62  ;;  %3069 = vmatmul.msk.f32.gmra.mxu3 %vm555_vm1, %v3005_v16  ;;  %v1902_v62 = vpop.permute.xlu2 %1901  ;;  %v1905_v59 = vpop.permute.xlu1 %1904 }
 0x3d0   :  { %1703 = vst [vmem:[#allocation1 + $0x4] ss:$9 sm:$0xff] %v1136_v9  ;;  %v2732_v9 = vpop.f32.mrf.mxu3  ;;  %v1899_v25 = vpop.permute.xlu0 %1898  ;;  %v2103_v27 = vperm.slane %v1902_v62, %v4473_v50  ;;  %v1158_v62 = vperm.slane %v4391_v54, 2 }
 0x3d1   :  { %1704 = vst [vmem:[#allocation1 + $0x5] ss:$9 sm:$0xff] %v1137_v18  ;;  %v1150_v18 = vperm.slane %v4349_v35, 2  ;;  %v2101_v10 = vperm.slane %v1899_v25, %v4469_v32 }
 0x3d2   :  { %1705 = vst [vmem:[#allocation1 + $0x6] ss:$9 sm:$0xff] %v1138_v34  ;;  %v1151_v34 = vperm.slane %v4349_v35, 3 }
 0x3d3   :  { %1706 = vst [vmem:[#allocation1 + $0x7] ss:$9 sm:$0xff] %v1139_v37  ;;  %v1152_v37 = vperm.slane %v4349_v35, 4  ;;  %v2102_v63 = vsel %vm2044_vm13, %v2101_v10, %v2100_v43 }
 0x3d4   :  { %2840 = vst.msk [vmem:[%s5018_s3 + $0x150] sm:$0xff] %vm82_vm0, %v2732_v9  ;;  %v1159_v9 = vperm.slane %v4391_v54, 3 }
 0x3d7   :  { %3070 = vmatmul.msk.f32.gmra.mxu3 %vm555_vm1, %v3006_v61  ;;  %v1911_v29 = vpop.permute.xlu2 %1910  ;;  %v1914_v35 = vpop.permute.xlu1 %1913 }
 0x3d8   :  { %v1908_v16 = vpop.permute.xlu0 %1907 }
 0x3d9   :  { %v2107_v43 = vperm.slane %v1908_v16, %v4500_v8  ;;  %v1165_v16 = vperm.slane %v4403_v56, 1 }
 0x3da   :  { %v1707_v51 = vld [vmem:[#allocation1] sm:$0xff] }
 0x3db   :  { %1708 = vst [vmem:[#allocation1] ss:$9 sm:$0xff] %v1140_v31  ;;  %1988 = vperm.xlu0 %3082, %v1707_v51   ;;  %v2105_v31 = vperm.slane %v1905_v59, %v4509_v5  ;;  %v2104_v51 = vsel %vm2048_vm14, %v2103_v27, %v2102_v63  ;;  %v1161_v59 = vperm.slane %v4391_v54, 5 }
 0x3dc   :  { %1709 = vst [vmem:[#allocation1 + $0x1] ss:$9 sm:$0xff] %v1141_v24  ;;  %v2735_v24 = vpop.f32.mrf.mxu3 }
 0x3dd   :  { %1710 = vst [vmem:[#allocation1 + $0x2] ss:$9 sm:$0xff] %v1142_v14  ;;  %v2106_v14 = vsel %vm2052_vm2, %v2105_v31, %v2104_v51 }
 0x3de   :  { %1711 = vst [vmem:[#allocation1 + $0x3] ss:$9 sm:$0xff] %v1143_v23  ;;  %v2109_v23 = vperm.slane %v1911_v29, %v4528_v21 }
 0x3df   :  { %1712 = vst [vmem:[#allocation1 + $0x4] ss:$9 sm:$0xff] %v1144_v7  ;;  %3071 = vmatmul.msk.f32.gmra.mxu3 %vm555_vm1, %v3007_v45  ;;  %v1156_v7 = vperm.slane %v4391_v54, 0  ;;  %v1162_v45 = vperm.slane %v4391_v54, 6  ;;  %v1923_v25 = vpop.permute.xlu1 %1922 }
 0x3e0   :  { %1713 = vst [vmem:[#allocation1 + $0x5] ss:$9 sm:$0xff] %v1145_v2  ;;  %v2111_v2 = vperm.slane %v1914_v35, %v4525_v28  ;;  %v2117_v27 = vperm.slane %v1923_v25, %v4567_v1  ;;  %v1172_v25 = vperm.slane %v4366_v30, 0 }
 0x3e1   :  { %1714 = vst [vmem:[#allocation1 + $0x6] ss:$9 sm:$0xff] %v1146_v13  ;;  %v2108_v13 = vsel %vm2056_vm3, %v2107_v43, %v2106_v14 }
 0x3e2   :  { %1715 = vst [vmem:[#allocation1 + $0x7] ss:$9 sm:$0xff] %v1147_v19  ;;  %v1157_v19 = vperm.slane %v4391_v54, 1  ;;  %v2110_v61 = vsel %vm2060_vm5, %v2109_v23, %v2108_v13  ;;  %v1166_v23 = vperm.slane %v4403_v56, 2  ;;  %v1167_v13 = vperm.slane %v4403_v56, 3 }
 0x3e3   :  { %2841 = vst.msk [vmem:[%s5018_s3 + $0x158] sm:$0xff] %vm82_vm0, %v2735_v24  ;;  %v1164_v24 = vperm.slane %v4403_v56, 0 }
 0x3e9   :  { %v1716_v33 = vld [vmem:[#allocation1] sm:$0xff] }
 0x3ea   :  { %1717 = vst [vmem:[#allocation1] ss:$9 sm:$0xff] %v1148_v20  ;;  %1991 = vperm.xlu2 %3081, %v1716_v33   ;;  %v1920_v20 = vpop.permute.xlu2 %1919  ;;  %v2112_v33 = vsel %vm2064_vm6, %v2111_v2, %v2110_v61 }
 0x3eb   :  { %1718 = vst [vmem:[#allocation1 + $0x1] ss:$9 sm:$0xff] %v1149_v60  ;;  %v2738_v60 = vpop.f32.mrf.mxu3  ;;  %v2115_v10 = vperm.slane %v1920_v20, %v4558_v3  ;;  %v1171_v20 = vperm.slane %v4403_v56, 7 }
 0x3ec   :  { %1719 = vst [vmem:[#allocation1 + $0x2] ss:$9 sm:$0xff] %v1150_v18  ;;  %v1160_v18 = vperm.slane %v4391_v54, 4 }
 0x3ed   :  { %1720 = vst [vmem:[#allocation1 + $0x3] ss:$9 sm:$0xff] %v1151_v34  ;;  %v1917_v34 = vpop.permute.xlu0 %1916 }
 0x3ee   :  { %1721 = vst [vmem:[#allocation1 + $0x4] ss:$9 sm:$0xff] %v1152_v37  ;;  %v1163_v37 = vperm.slane %v4391_v54, 7 }
 0x3ef   :  { %1722 = vst [vmem:[#allocation1 + $0x5] ss:$9 sm:$0xff] %v1153_v49  ;;  %v2113_v49 = vperm.slane %v1917_v34, %v4552_v4 }
 0x3f0   :  { %1723 = vst [vmem:[#allocation1 + $0x6] ss:$9 sm:$0xff] %v1154_v26 }
 0x3f1   :  { %1724 = vst [vmem:[#allocation1 + $0x7] ss:$9 sm:$0xff] %v1155_v0  ;;  %v2114_v0 = vsel %vm2068_vm8, %v2113_v49, %v2112_v33  ;;  %v1173_v49 = vperm.slane %v4366_v30, 1 }
 0x3f2   :  { %2842 = vst.msk [vmem:[%s5018_s3 + $0x160] sm:$0xff] %vm82_vm0, %v2738_v60  ;;  %v1929_v54 = vpop.permute.xlu2 %1928  ;;  %v2116_v29 = vsel %vm2072_vm9, %v2115_v10, %v2114_v0  ;;  %v1176_v0 = vperm.slane %v4366_v30, 4 }
 0x3f3   :  { %v2741_v26 = vpop.f32.mrf.mxu3  ;;  %v2118_v63 = vsel %vm2076_vm10, %v2117_v27, %v2116_v29  ;;  %v2121_v14 = vperm.slane %v1929_v54, %v4579_v11  ;;  %v1175_v27 = vperm.slane %v4366_v30, 3  ;;  %v1177_v54 = vperm.slane %v4366_v30, 5 }
 0x3f4   :  { %2843 = vst.msk [vmem:[%s5018_s3 + $0x168] sm:$0xff] %vm82_vm0, %v2741_v26  ;;  %v1174_v26 = vperm.slane %v4366_v30, 2  ;;  %v1178_v29 = vperm.slane %v4366_v30, 6 }
 0x3f5   :  { %v1926_v31 = vpop.permute.xlu0 %1925 }
 0x3f6   :  { %v2119_v51 = vperm.slane %v1926_v31, %v4583_v42 }
 0x3f8   :  { %v1725_v46 = vld [vmem:[#allocation1] sm:$0xff]  ;;  %v2120_v43 = vsel %vm2080_vm15, %v2119_v51, %v2118_v63  ;;  %v1179_v63 = vperm.slane %v4366_v30, 7  ;;  %v1181_v30 = vperm.slane %v4410_v41, 1 }
 0x3f9   :  { %1726 = vst [vmem:[#allocation1] ss:$9 sm:$0xff] %v1156_v7  ;;  %1994 = vperm.xlu1 %3080, %v1725_v46   ;;  %v1932_v7 = vpop.permute.xlu1 %1931  ;;  %v2122_v2 = vsel %vm5023_vm12, %v2121_v14, %v2120_v43  ;;  %v1169_v46 = vperm.slane %v4403_v56, 5  ;;  %vm5024_vm12 = vcmask 917312   ;;  %v1180_v43 = vperm.slane %v4410_v41, 0 }
 0x3fa   :  { %1727 = vst [vmem:[#allocation1 + $0x1] ss:$9 sm:$0xff] %v1157_v19  ;;  %v1168_v19 = vperm.slane %v4403_v56, 4  ;;  %v2123_v61 = vperm.slane %v1932_v7, %v4588_v47  ;;  %v1938_v60 = vpop.permute.xlu2 %1937  ;;  %v1182_v7 = vperm.slane %v4410_v41, 2 }
 0x3fb   :  { %1728 = vst [vmem:[#allocation1 + $0x2] ss:$9 sm:$0xff] %v1158_v62  ;;  %v1170_v62 = vperm.slane %v4403_v56, 6  ;;  %v2744_v33 = vpop.f32.mrf.mxu3 }
 0x3fc   :  { %1729 = vst [vmem:[#allocation1 + $0x3] ss:$9 sm:$0xff] %v1159_v9  ;;  %v2124_v9 = vsel %vm5024_vm12, %v2123_v61, %v2122_v2  ;;  %v1183_v2 = vperm.slane %v4410_v41, 3  ;;  %v1187_v61 = vperm.slane %v4410_v41, 7  ;;  %vm2267_vm12 = vcmp.eq.s32.totalorder %v3413_v44, %v4413_v12 }
 0x3fd   :  { %1730 = vst [vmem:[#allocation1 + $0x4] ss:$9 sm:$0xff] %v1160_v18  ;;  %v3008_v18 = vsel %vm2266_vm4, 1.0, %v3112_v55  ;;  %vm5025_vm4 = vcmask 130112  }
 0x3fe   :  { %1731 = vst [vmem:[#allocation1 + $0x5] ss:$9 sm:$0xff] %v1161_v59  ;;  %v1935_v59 = vpop.permute.xlu0 %1934  ;;  %3072 = vmatmul.msk.f32.gmra.mxu3 %vm555_vm1, %v3008_v18  ;;  %v1191_v18 = vperm.slane %v4422_v52, 3 }
 0x3ff   :  { %1732 = vst [vmem:[#allocation1 + $0x6] ss:$9 sm:$0xff] %v1162_v45  ;;  %v2125_v34 = vperm.slane %v1935_v59, %v4615_v58  ;;  %v2127_v45 = vperm.slane %v1938_v60, %v4621_v17  ;;  %v1188_v60 = vperm.slane %v4422_v52, 0  ;;  %v1192_v59 = vperm.slane %v4422_v52, 4 }
 0x400   :  { %1733 = vst [vmem:[#allocation1 + $0x7] ss:$9 sm:$0xff] %v1163_v37 }
 0x401   :  { %2844 = vst.msk [vmem:[%s5018_s3 + $0x170] sm:$0xff] %vm82_vm0, %v2744_v33  ;;  %v2126_v56 = vsel %vm2092_vm7, %v2125_v34, %v2124_v9  ;;  %v1941_v31 = vpop.permute.xlu1 %1940  ;;  %v1190_v9 = vperm.slane %v4422_v52, 2  ;;  %v1193_v34 = vperm.slane %v4422_v52, 5 }
 0x402   :  { %v4760_v37 = vsel %vm2096_vm11, %v2127_v45, %v2126_v56  ;;  %v2129_v14 = vperm.slane %v1941_v31, %v3413_v44  ;;  %v1194_v45 = vperm.slane %v4422_v52, 6  ;;  %v1195_v56 = vperm.slane %v4422_v52, 7 }
 0x403   :  { %v2747_v51 = vpop.f32.mrf.mxu3  ;;  %v1203_v31 = vperm.slane %v4378_v53, 7 }
 0x404   :  { %2845 = vst.msk [vmem:[%s5018_s3 + $0x178] sm:$0xff] %vm82_vm0, %v2747_v51  ;;  %v1204_v51 = vperm.slane %v4427_v36, 0 }
 0x407   :  { %v1734_v35 = vld [vmem:[#allocation1] sm:$0xff] }
 0x408   :  { %1735 = vst [vmem:[#allocation1] ss:$9 sm:$0xff] %v1164_v24  ;;  %1997 = vperm.xlu0 %3082, %v1734_v35   ;;  %v1944_v24 = vpop.permute.xlu0 %1943 }
 0x409   :  { %1736 = vst [vmem:[#allocation1 + $0x1] ss:$9 sm:$0xff] %v1165_v16  ;;  %v2130_v35 = vperm.slane %v1944_v24, %v4465_v22  ;;  %v1205_v24 = vperm.slane %v4427_v36, 1 }
 0x40a   :  { %1737 = vst [vmem:[#allocation1 + $0x2] ss:$9 sm:$0xff] %v1166_v23 }
 0x40b   :  { %1738 = vst [vmem:[#allocation1 + $0x3] ss:$9 sm:$0xff] %v1167_v13  ;;  %v4777_v16 = vsel %vm5025_vm4, %v2130_v35, %v2129_v14  ;;  %v1184_v13 = vperm.slane %v4410_v41, 4  ;;  %v1206_v35 = vperm.slane %v4427_v36, 2  ;;  %vm2194_vm4 = vcmask 1040384  }
 0x40c   :  { %1739 = vst [vmem:[#allocation1 + $0x4] ss:$9 sm:$0xff] %v1168_v19  ;;  %v1185_v19 = vperm.slane %v4410_v41, 5 }
 0x40d   :  { %1740 = vst [vmem:[#allocation1 + $0x5] ss:$9 sm:$0xff] %v1169_v46  ;;  %v1186_v46 = vperm.slane %v4410_v41, 6  ;;  %v1189_v41 = vperm.slane %v4422_v52, 1  ;;  %v1199_v52 = vperm.slane %v4378_v53, 3 }
 0x40e   :  { %1741 = vst [vmem:[#allocation1 + $0x6] ss:$9 sm:$0xff] %v1170_v62  ;;  %v2750_v62 = vpop.f32.mrf.mxu3 }
 0x40f   :  { %1742 = vst [vmem:[#allocation1 + $0x7] ss:$9 sm:$0xff] %v1171_v20  ;;  %v3009_v20 = vsel %vm2267_vm12, 1.0, %v3112_v55  ;;  %vm2268_vm12 = vcmp.eq.s32.totalorder %v3413_v44, %v4677_v38 }
 0x410   :  { %3073 = vmatmul.msk.f32.gmra.mxu3 %vm555_vm1, %v3009_v20  ;;  %2846 = vst.msk [vmem:[%s5018_s3 + $0x180] sm:$0xff] %vm82_vm0, %v2750_v62  ;;  %v1215_v62 = vperm.slane %v4437_v48, 3  ;;  %v1217_v20 = vperm.slane %v4437_v48, 5 }
 0x416   :  { %v1743_v10 = vld [vmem:[#allocation1] sm:$0xff] }
 0x417   :  { %1744 = vst [vmem:[#allocation1] ss:$9 sm:$0xff] %v1172_v25  ;;  %2000 = vperm.xlu2 %3081, %v1743_v10   ;;  %v2753_v25 = vpop.f32.mrf.mxu3  ;;  %v1197_v10 = vperm.slane %v4378_v53, 1 }
 0x418   :  { %1745 = vst [vmem:[#allocation1 + $0x1] ss:$9 sm:$0xff] %v1173_v49  ;;  %v1196_v49 = vperm.slane %v4378_v53, 0 }
 0x419   :  { %1746 = vst [vmem:[#allocation1 + $0x2] ss:$9 sm:$0xff] %v1174_v26 }
 0x41a   :  { %1747 = vst [vmem:[#allocation1 + $0x3] ss:$9 sm:$0xff] %v1175_v27  ;;  %v1198_v27 = vperm.slane %v4378_v53, 2 }
 0x41b   :  { %1748 = vst [vmem:[#allocation1 + $0x4] ss:$9 sm:$0xff] %v1176_v0  ;;  %v1200_v0 = vperm.slane %v4378_v53, 4 }
 0x41c   :  { %1749 = vst [vmem:[#allocation1 + $0x5] ss:$9 sm:$0xff] %v1177_v54  ;;  %v1201_v54 = vperm.slane %v4378_v53, 5 }
 0x41d   :  { %1750 = vst [vmem:[#allocation1 + $0x6] ss:$9 sm:$0xff] %v1178_v29  ;;  %v1202_v29 = vperm.slane %v4378_v53, 6  ;;  %v1207_v53 = vperm.slane %v4427_v36, 3 }
 0x41e   :  { %1751 = vst [vmem:[#allocation1 + $0x7] ss:$9 sm:$0xff] %v1179_v63 }
 0x41f   :  { %2847 = vst.msk [vmem:[%s5018_s3 + $0x188] sm:$0xff] %vm82_vm0, %v2753_v25  ;;  %v2756_v63 = vpop.f32.mrf.mxu3  ;;  %v1226_v25 = vperm.slane %v4395_v15, 6 }
 0x420   :  { %2848 = vst.msk [vmem:[%s5018_s3 + $0x190] sm:$0xff] %vm82_vm0, %v2756_v63  ;;  %v1235_v63 = vperm.slane %v4447_v57, 7 }
 0x425   :  { %v1752_v23 = vld [vmem:[#allocation1] sm:$0xff] }
 0x426   :  { %2003 = vperm.xlu1 %3080, %v1752_v23   ;;  %1753 = vst [vmem:[#allocation1] ss:$9 sm:$0xff] %v1180_v43  ;;  %v1208_v43 = vperm.slane %v4427_v36, 4  ;;  %v1209_v23 = vperm.slane %v4427_v36, 5 }
 0x427   :  { %1754 = vst [vmem:[#allocation1 + $0x1] ss:$9 sm:$0xff] %v1181_v30  ;;  %v2191_v30 = vrot.slane %v4760_v37, 7  ;;  %v1212_v37 = vperm.slane %v4437_v48, 0 }
 0x428   :  { %1755 = vst [vmem:[#allocation1 + $0x2] ss:$9 sm:$0xff] %v1182_v7  ;;  %v1210_v7 = vperm.slane %v4427_v36, 6 }
 0x429   :  { %1756 = vst [vmem:[#allocation1 + $0x3] ss:$9 sm:$0xff] %v1183_v2  ;;  %v1211_v2 = vperm.slane %v4427_v36, 7  ;;  %v1214_v36 = vperm.slane %v4437_v48, 2 }
 0x42a   :  { %1757 = vst [vmem:[#allocation1 + $0x4] ss:$9 sm:$0xff] %v1184_v13  ;;  %v2759_v13 = vpop.f32.mrf.mxu3 }
 0x42b   :  { %1758 = vst [vmem:[#allocation1 + $0x5] ss:$9 sm:$0xff] %v1185_v19  ;;  %v4829_v19 = vsel %vm2194_vm4, %v4633_v39, %v2191_v30  ;;  %v1216_v39 = vperm.slane %v4437_v48, 4  ;;  %v1241_v30 = vperm.slane %v4454_v6, 5 }
 0x42c   :  { %1759 = vst [vmem:[#allocation1 + $0x6] ss:$9 sm:$0xff] %v1186_v46  ;;  %v1213_v46 = vperm.slane %v4437_v48, 1 }
 0x42d   :  { %1760 = vst [vmem:[#allocation1 + $0x7] ss:$9 sm:$0xff] %v1187_v61 }
 0x42e   :  { %2849 = vst.msk [vmem:[%s5018_s3 + $0x198] sm:$0xff] %vm82_vm0, %v2759_v13  ;;  %v1244_v13 = vperm.slane %v4413_v12, 0 }
 0x434   :  { %v1761_v33 = vld [vmem:[#allocation1] sm:$0xff] }
 0x435   :  { %2006 = vperm.xlu0 %3082, %v1761_v33   ;;  %1762 = vst [vmem:[#allocation1] ss:$9 sm:$0xff] %v1188_v60  ;;  %v1218_v60 = vperm.slane %v4437_v48, 6  ;;  %v2762_v33 = vpop.f32.mrf.mxu3 }
 0x436   :  { %1763 = vst [vmem:[#allocation1 + $0x1] ss:$9 sm:$0xff] %v1189_v41  ;;  %v1219_v41 = vperm.slane %v4437_v48, 7  ;;  %v1223_v48 = vperm.slane %v4395_v15, 3 }
 0x437   :  { %1764 = vst [vmem:[#allocation1 + $0x2] ss:$9 sm:$0xff] %v1190_v9  ;;  %v1220_v9 = vperm.slane %v4395_v15, 0 }
 0x438   :  { %1765 = vst [vmem:[#allocation1 + $0x3] ss:$9 sm:$0xff] %v1191_v18  ;;  %v1221_v18 = vperm.slane %v4395_v15, 1 }
 0x439   :  { %1766 = vst [vmem:[#allocation1 + $0x4] ss:$9 sm:$0xff] %v1192_v59 }
 0x43a   :  { %1767 = vst [vmem:[#allocation1 + $0x5] ss:$9 sm:$0xff] %v1193_v34  ;;  %v1222_v34 = vperm.slane %v4395_v15, 2 }
 0x43b   :  { %1768 = vst [vmem:[#allocation1 + $0x6] ss:$9 sm:$0xff] %v1194_v45  ;;  %v1224_v45 = vperm.slane %v4395_v15, 4 }
 0x43c   :  { %1769 = vst [vmem:[#allocation1 + $0x7] ss:$9 sm:$0xff] %v1195_v56  ;;  %v1225_v56 = vperm.slane %v4395_v15, 5 }
 0x43d   :  { %2850 = vst.msk [vmem:[%s5018_s3 + $0x1a0] sm:$0xff] %vm82_vm0, %v2762_v33  ;;  %v1252_v33 = vperm.slane %v4677_v38, 0 }
 0x443   :  { %v1770_v26 = vld [vmem:[#allocation1] sm:$0xff] }
 0x444   :  { %2009 = vperm.xlu2 %3081, %v1770_v26   ;;  %1771 = vst [vmem:[#allocation1] ss:$9 sm:$0xff] %v1196_v49  ;;  %v1227_v49 = vperm.slane %v4395_v15, 7  ;;  %v3010_v26 = vsel %vm2268_vm12, 1.0, %v3112_v55  ;;  %v1229_v15 = vperm.slane %v4447_v57, 1  ;;  %v1232_v55 = vperm.slane %v4447_v57, 4 }
 0x445   :  { %1772 = vst [vmem:[#allocation1 + $0x1] ss:$9 sm:$0xff] %v1197_v10  ;;  %v2765_v10 = vpop.f32.mrf.mxu3  ;;  %3074 = vmatmul.msk.f32.gmra.mxu3 %vm555_vm1, %v3010_v26  ;;  %vm5027_vm1 = vcmask 851712  }
 0x446   :  { %1773 = vst [vmem:[#allocation1 + $0x2] ss:$9 sm:$0xff] %v1198_v27  ;;  %v1228_v27 = vperm.slane %v4447_v57, 0 }
 0x447   :  { %1774 = vst [vmem:[#allocation1 + $0x3] ss:$9 sm:$0xff] %v1199_v52 }
 0x448   :  { %1775 = vst [vmem:[#allocation1 + $0x4] ss:$9 sm:$0xff] %v1200_v0  ;;  %v1230_v0 = vperm.slane %v4447_v57, 2 }
 0x449   :  { %1776 = vst [vmem:[#allocation1 + $0x5] ss:$9 sm:$0xff] %v1201_v54  ;;  %v1231_v54 = vperm.slane %v4447_v57, 3 }
 0x44a   :  { %1777 = vst [vmem:[#allocation1 + $0x6] ss:$9 sm:$0xff] %v1202_v29  ;;  %v1233_v29 = vperm.slane %v4447_v57, 5 }
 0x44b   :  { %1778 = vst [vmem:[#allocation1 + $0x7] ss:$9 sm:$0xff] %v1203_v31  ;;  %v1234_v31 = vperm.slane %v4447_v57, 6  ;;  %v1239_v57 = vperm.slane %v4454_v6, 3 }
 0x44c   :  { %2851 = vst.msk [vmem:[%s5018_s3 + $0x1a8] sm:$0xff] %vm82_vm0, %v2765_v10 }
 0x452   :  { %v1779_v14 = vld [vmem:[#allocation1] sm:$0xff] }
 0x453   :  { %2012 = vperm.xlu1 %3080, %v1779_v14   ;;  %1780 = vst [vmem:[#allocation1] ss:$9 sm:$0xff] %v1204_v51  ;;  %v2768_v51 = vpop.f32.mrf.mxu3  ;;  %v1237_v14 = vperm.slane %v4454_v6, 1 }
 0x454   :  { %1781 = vst [vmem:[#allocation1 + $0x1] ss:$9 sm:$0xff] %v1205_v24  ;;  %v1236_v24 = vperm.slane %v4454_v6, 0 }
 0x455   :  { %1782 = vst [vmem:[#allocation1 + $0x2] ss:$9 sm:$0xff] %v1206_v35 }
 0x456   :  { %1783 = vst [vmem:[#allocation1 + $0x3] ss:$9 sm:$0xff] %v1207_v53  ;;  %v1238_v53 = vperm.slane %v4454_v6, 2 }
 0x457   :  { %1784 = vst [vmem:[#allocation1 + $0x4] ss:$9 sm:$0xff] %v1208_v43  ;;  %v1240_v43 = vperm.slane %v4454_v6, 4 }
 0x458   :  { %1785 = vst [vmem:[#allocation1 + $0x5] ss:$9 sm:$0xff] %v1209_v23  ;;  %v1242_v23 = vperm.slane %v4454_v6, 6 }
 0x459   :  { %1786 = vst [vmem:[#allocation1 + $0x6] ss:$9 sm:$0xff] %v1210_v7  ;;  %v1243_v7 = vperm.slane %v4454_v6, 7  ;;  %v1246_v6 = vperm.slane %v4413_v12, 2 }
 0x45a   :  { %1787 = vst [vmem:[#allocation1 + $0x7] ss:$9 sm:$0xff] %v1211_v2 }
 0x45b   :  { %2852 = vst.msk [vmem:[%s5018_s3 + $0x1b0] sm:$0xff] %vm82_vm0, %v2768_v51  ;;  %v2771_v2 = vpop.f32.mrf.mxu3 }
 0x45c   :  { %2853 = vst.msk [vmem:[%s5018_s3 + $0x1b8] sm:$0xff] %vm82_vm0, %v2771_v2 }
 0x461   :  { %v1788_v61 = vld [vmem:[#allocation1] sm:$0xff] }
 0x462   :  { %2015 = vperm.xlu0 %3082, %v1788_v61   ;;  %1789 = vst [vmem:[#allocation1] ss:$9 sm:$0xff] %v1212_v37 }
 0x463   :  { %1790 = vst [vmem:[#allocation1 + $0x1] ss:$9 sm:$0xff] %v1213_v46  ;;  %v2774_v37 = vpop.f32.mrf.mxu3  ;;  %v1245_v46 = vperm.slane %v4413_v12, 1 }
 0x464   :  { %1791 = vst [vmem:[#allocation1 + $0x2] ss:$9 sm:$0xff] %v1214_v36  ;;  %v1247_v36 = vperm.slane %v4413_v12, 3 }
 0x465   :  { %1792 = vst [vmem:[#allocation1 + $0x3] ss:$9 sm:$0xff] %v1215_v62  ;;  %v1248_v62 = vperm.slane %v4413_v12, 4 }
 0x466   :  { %1793 = vst [vmem:[#allocation1 + $0x4] ss:$9 sm:$0xff] %v1216_v39  ;;  %v1249_v39 = vperm.slane %v4413_v12, 5 }
 0x467   :  { %1794 = vst [vmem:[#allocation1 + $0x5] ss:$9 sm:$0xff] %v1217_v20  ;;  %v1250_v20 = vperm.slane %v4413_v12, 6 }
 0x468   :  { %1795 = vst [vmem:[#allocation1 + $0x6] ss:$9 sm:$0xff] %v1218_v60  ;;  %v1251_v60 = vperm.slane %v4413_v12, 7  ;;  %v1255_v12 = vperm.slane %v4677_v38, 3 }
 0x469   :  { %1796 = vst [vmem:[#allocation1 + $0x7] ss:$9 sm:$0xff] %v1219_v41 }
 0x46a   :  { %2854 = vst.msk [vmem:[%s5018_s3 + $0x1c0] sm:$0xff] %vm82_vm0, %v2774_v37 }
 0x46b   :  { %v2777_v41 = vpop.f32.mrf.mxu3 }
 0x46c   :  { %2855 = vst.msk [vmem:[%s5018_s3 + $0x1c8] sm:$0xff] %vm82_vm0, %v2777_v41 }
 0x470   :  { %v1797_v59 = vld [vmem:[#allocation1] sm:$0xff] }
 0x471   :  { %2018 = vperm.xlu2 %3081, %v1797_v59   ;;  %1798 = vst [vmem:[#allocation1] ss:$9 sm:$0xff] %v1220_v9  ;;  %v1253_v9 = vperm.slane %v4677_v38, 1 }
 0x472   :  { %1799 = vst [vmem:[#allocation1 + $0x1] ss:$9 sm:$0xff] %v1221_v18 }
 0x473   :  { %1800 = vst [vmem:[#allocation1 + $0x2] ss:$9 sm:$0xff] %v1222_v34  ;;  %v2780_v59 = vpop.f32.mrf.mxu3  ;;  %v1254_v34 = vperm.slane %v4677_v38, 2 }
 0x474   :  { %1801 = vst [vmem:[#allocation1 + $0x3] ss:$9 sm:$0xff] %v1223_v48  ;;  %v1256_v48 = vperm.slane %v4677_v38, 4 }
 0x475   :  { %1802 = vst [vmem:[#allocation1 + $0x4] ss:$9 sm:$0xff] %v1224_v45  ;;  %v1257_v45 = vperm.slane %v4677_v38, 5 }
 0x476   :  { %1803 = vst [vmem:[#allocation1 + $0x5] ss:$9 sm:$0xff] %v1225_v56  ;;  %v1258_v56 = vperm.slane %v4677_v38, 6 }
 0x477   :  { %1804 = vst [vmem:[#allocation1 + $0x6] ss:$9 sm:$0xff] %v1226_v25  ;;  %v1259_v25 = vperm.slane %v4677_v38, 7 }
 0x478   :  { %1805 = vst [vmem:[#allocation1 + $0x7] ss:$9 sm:$0xff] %v1227_v49 }
 0x479   :  { %2856 = vst.msk [vmem:[%s5018_s3 + $0x1d0] sm:$0xff] %vm82_vm0, %v2780_v59 }
 0x47b   :  { %v2783_v49 = vpop.f32.mrf.mxu3 }
 0x47c   :  { %2857 = vst.msk [vmem:[%s5018_s3 + $0x1d8] sm:$0xff] %vm82_vm0, %v2783_v49 }
 0x47f   :  { %v1806_v52 = vld [vmem:[#allocation1] sm:$0xff] }
 0x480   :  { %2021 = vperm.xlu1 %3080, %v1806_v52   ;;  %1807 = vst [vmem:[#allocation1] ss:$9 sm:$0xff] %v1228_v27  ;;  %v1950_v52 = vpop.permute.xlu1 %1949 }
 0x481   :  { %1808 = vst [vmem:[#allocation1 + $0x1] ss:$9 sm:$0xff] %v1229_v15  ;;  %v1947_v15 = vpop.permute.xlu2 %1946 }
 0x482   :  { %1809 = vst [vmem:[#allocation1 + $0x2] ss:$9 sm:$0xff] %v1230_v0  ;;  %v1953_v0 = vpop.permute.xlu0 %1952  ;;  %v2132_v37 = vperm.slane %v1947_v15, %v4469_v32 }
 0x483   :  { %1810 = vst [vmem:[#allocation1 + $0x3] ss:$9 sm:$0xff] %v1231_v54  ;;  %v2786_v26 = vpop.f32.mrf.mxu3 }
 0x484   :  { %1811 = vst [vmem:[#allocation1 + $0x4] ss:$9 sm:$0xff] %v1232_v55 }
 0x485   :  { %1812 = vst [vmem:[#allocation1 + $0x5] ss:$9 sm:$0xff] %v1233_v29 }
 0x486   :  { %1813 = vst [vmem:[#allocation1 + $0x6] ss:$9 sm:$0xff] %v1234_v31 }
 0x487   :  { %1814 = vst [vmem:[#allocation1 + $0x7] ss:$9 sm:$0xff] %v1235_v63 }
 0x488   :  { %2858 = vst.msk [vmem:[%s5018_s3 + $0x1e0] sm:$0xff] %vm82_vm0, %v2786_v26  ;;  %v1959_v55 = vpop.permute.xlu1 %1958 }
 0x489   :  { %v1956_v54 = vpop.permute.xlu2 %1955 }
 0x48a   :  { %v1962_v29 = vpop.permute.xlu0 %1961 }
 0x48b   :  { %v2789_v38 = vpop.f32.mrf.mxu3 }
 0x48c   :  { %2859 = vst.msk [vmem:[%s5018_s3 + $0x1e8] sm:$0xff] %vm82_vm0, %v2789_v38 }
 0x48e   :  { %v1815_v35 = vld [vmem:[#allocation1] sm:$0xff] }
 0x48f   :  { %2024 = vperm.xlu0 %3082, %v1815_v35   ;;  %1816 = vst [vmem:[#allocation1] ss:$9 sm:$0xff] %v1236_v24 }
 0x490   :  { %1817 = vst [vmem:[#allocation1 + $0x1] ss:$9 sm:$0xff] %v1237_v14  ;;  %v1968_v31 = vpop.permute.xlu1 %1967 }
 0x491   :  { %1818 = vst [vmem:[#allocation1 + $0x2] ss:$9 sm:$0xff] %v1238_v53  ;;  %v1965_v63 = vpop.permute.xlu2 %1964 }
 0x492   :  { %1819 = vst [vmem:[#allocation1 + $0x3] ss:$9 sm:$0xff] %v1239_v57  ;;  %v1971_v51 = vpop.permute.xlu0 %1970  ;;  %v2144_v26 = vperm.slane %v1965_v63, %v4552_v4 }
 0x493   :  { %1820 = vst [vmem:[#allocation1 + $0x4] ss:$9 sm:$0xff] %v1240_v43  ;;  %v2792_v27 = vpop.f32.mrf.mxu3 }
 0x494   :  { %1821 = vst [vmem:[#allocation1 + $0x5] ss:$9 sm:$0xff] %v1241_v30 }
 0x495   :  { %1822 = vst [vmem:[#allocation1 + $0x6] ss:$9 sm:$0xff] %v1242_v23 }
 0x496   :  { %1823 = vst [vmem:[#allocation1 + $0x7] ss:$9 sm:$0xff] %v1243_v7 }
 0x497   :  { %2860 = vst.msk [vmem:[%s5018_s3 + $0x1f0] sm:$0xff] %vm82_vm0, %v2792_v27 }
 0x498   :  { %v4931_v24 = vpop.permute.xlu1 %1976 }
 0x499   :  { %v4933_v14 = vpop.permute.xlu2 %1973 }
 0x49a   :  { %v4935_v35 = vpop.permute.xlu0 %1979 }
 0x49d   :  { %v1824_v61 = vld [vmem:[#allocation1] sm:$0xff] }
 0x49e   :  { %2027 = vperm.xlu2 %3081, %v1824_v61   ;;  %1825 = vst [vmem:[#allocation1] ss:$9 sm:$0xff] %v1244_v13  ;;  %v2133_v61 = vsel %vm2044_vm13, %v2132_v37, %v4777_v16 }
 0x49f   :  { %1826 = vst [vmem:[#allocation1 + $0x1] ss:$9 sm:$0xff] %v1245_v46 }
 0x4a0   :  { %1827 = vst [vmem:[#allocation1 + $0x2] ss:$9 sm:$0xff] %v1246_v6  ;;  %v4937_v53 = vpop.permute.xlu1 %1985  ;;  %v2136_v6 = vperm.slane %v1953_v0, %v4509_v5 }
 0x4a1   :  { %1828 = vst [vmem:[#allocation1 + $0x3] ss:$9 sm:$0xff] %v1247_v36  ;;  %v4939_v57 = vpop.permute.xlu2 %1982  ;;  %v2134_v36 = vperm.slane %v1950_v52, %v4473_v50 }
 0x4a2   :  { %1829 = vst [vmem:[#allocation1 + $0x4] ss:$9 sm:$0xff] %v1248_v62  ;;  %v1989_v30 = vpop.permute.xlu0 %1988 }
 0x4a3   :  { %1830 = vst [vmem:[#allocation1 + $0x5] ss:$9 sm:$0xff] %v1249_v39  ;;  %v2135_v39 = vsel %vm2048_vm14, %v2134_v36, %v2133_v61 }
 0x4a4   :  { %1831 = vst [vmem:[#allocation1 + $0x6] ss:$9 sm:$0xff] %v1250_v20  ;;  %v2160_v20 = vperm.slane %v1989_v30, %v3413_v44  ;;  %v2140_v44 = vperm.slane %v1959_v55, %v4528_v21 }
 0x4a5   :  { %1832 = vst [vmem:[#allocation1 + $0x7] ss:$9 sm:$0xff] %v1251_v60  ;;  %v2137_v60 = vsel %vm2052_vm2, %v2136_v6, %v2135_v39 }
 0x4a8   :  { %v1995_v23 = vpop.permute.xlu1 %1994 }
 0x4a9   :  { %v1992_v7 = vpop.permute.xlu2 %1991  ;;  %v2163_v41 = vperm.slane %v1995_v23, %v4469_v32 }
 0x4aa   :  { %v1998_v2 = vpop.permute.xlu0 %1997 }
 0x4ac   :  { %v1833_v18 = vld [vmem:[#allocation1] sm:$0xff] }
 0x4ad   :  { %2030 = vperm.xlu1 %3080, %v1833_v18   ;;  %1834 = vst [vmem:[#allocation1] ss:$9 sm:$0xff] %v1252_v33  ;;  %v2138_v33 = vperm.slane %v1956_v54, %v4500_v8  ;;  %v2165_v18 = vperm.slane %v1998_v2, %v4473_v50 }
 0x4ae   :  { %1835 = vst [vmem:[#allocation1 + $0x1] ss:$9 sm:$0xff] %v1253_v9  ;;  %v2161_v9 = vperm.slane %v1992_v7, %v4465_v22 }
 0x4af   :  { %1836 = vst [vmem:[#allocation1 + $0x2] ss:$9 sm:$0xff] %v1254_v34  ;;  %v2139_v34 = vsel %vm2056_vm3, %v2138_v33, %v2137_v60 }
 0x4b0   :  { %1837 = vst [vmem:[#allocation1 + $0x3] ss:$9 sm:$0xff] %v1255_v12  ;;  %v2004_v13 = vpop.permute.xlu1 %2003  ;;  %v2142_v12 = vperm.slane %v1962_v29, %v4525_v28  ;;  %v2141_v22 = vsel %vm2060_vm5, %v2140_v44, %v2139_v34 }
 0x4b1   :  { %1838 = vst [vmem:[#allocation1 + $0x4] ss:$9 sm:$0xff] %v1256_v48  ;;  %v2001_v46 = vpop.permute.xlu2 %2000 }
 0x4b2   :  { %1839 = vst [vmem:[#allocation1 + $0x5] ss:$9 sm:$0xff] %v1257_v45  ;;  %v2007_v62 = vpop.permute.xlu0 %2006  ;;  %v2167_v50 = vperm.slane %v2001_v46, %v4509_v5 }
 0x4b3   :  { %1840 = vst [vmem:[#allocation1 + $0x6] ss:$9 sm:$0xff] %v1258_v56  ;;  %v2169_v56 = vperm.slane %v2004_v13, %v4500_v8  ;;  %v2171_v49 = vperm.slane %v2007_v62, %v4528_v21  ;;  %v2148_v8 = vperm.slane %v1971_v51, %v4567_v1  ;;  %v2146_v21 = vperm.slane %v1968_v31, %v4558_v3 }
 0x4b4   :  { %1841 = vst [vmem:[#allocation1 + $0x7] ss:$9 sm:$0xff] %v1259_v25  ;;  %v2152_v51 = vperm.slane %v4931_v24, %v4579_v11 }
 0x4b9   :  { %v2010_v59 = vpop.permute.xlu2 %2009 }
 0x4ba   :  { %v2173_v55 = vperm.slane %v2010_v59, %v4525_v28  ;;  %v2154_v28 = vperm.slane %v4935_v35, %v4588_v47  ;;  %v2158_v35 = vperm.slane %v4937_v53, %v4621_v17 }
 0x4bb   :  { %v1842_v10 = vld [vmem:[#allocation1] sm:$0xff] }
 0x4bc   :  { %2033 = vperm.xlu0 %3082, %v1842_v10   ;;  %v2143_v10 = vsel %vm2064_vm6, %v2142_v12, %v2141_v22 }
 0x4bd   :  { %v2145_v52 = vsel %vm2068_vm8, %v2144_v26, %v2143_v10 }
 0x4be   :  { %v2147_v63 = vsel %vm2072_vm9, %v2146_v21, %v2145_v52 }
 0x4bf   :  { %v2149_v23 = vsel %vm2076_vm10, %v2148_v8, %v2147_v63 }
 0x4c5   :  { %v2013_v16 = vpop.permute.xlu1 %2012 }
 0x4c6   :  { %v2175_v5 = vperm.slane %v2013_v16, %v4552_v4  ;;  %v2150_v4 = vperm.slane %v4933_v14, %v4583_v42 }
 0x4c8   :  { %v2795_v43 = vpop.f32.mrf.mxu3  ;;  %v2151_v37 = vsel %vm2080_vm15, %v2150_v4, %v2149_v23 }
 0x4c9   :  { %2861 = vst.msk [vmem:[%s5018_s3 + $0x1f8] sm:$0xff] %vm82_vm0, %v2795_v43  ;;  %vm5026_vm0 = vcmask 130112   ;;  %v2153_v24 = vsel %vm5027_vm1, %v2152_v51, %v2151_v37  ;;  %s3114_s3 = smov [#allocation2]  }
 0x4ca   :  { %v2162_v48 = vsel %vm5026_vm0, %v2161_v9, %v2160_v20  ;;  %s2869_s26 = sshll.u32 %s3114_s3, 4  ;;  %s2870_s26 = int_to_ptr.vmem [resolvable:$true] %s2869_s26 }
 0x4cb   :  { %v2164_v45 = vsel %vm2044_vm13, %v2163_v41, %v2162_v48  ;;  %v2019_v54 = vpop.permute.xlu2 %2018  ;;  %vm5028_vm13 = vcmask 917312  }
 0x4cc   :  { %v2166_v32 = vsel %vm2048_vm14, %v2165_v18, %v2164_v45  ;;  %v2179_v2 = vperm.slane %v2019_v54, %v4567_v1  ;;  %v2155_v14 = vsel %vm5028_vm13, %v2154_v28, %v2153_v24  ;;  %v2156_v1 = vperm.slane %v4939_v57, %v4615_v58  ;;  %vm5029_vm14 = vmmov %vm5027_vm1 }
 0x4cd   :  { %v2168_v38 = vsel %vm2052_vm2, %v2167_v50, %v2166_v32  ;;  %vm5030_vm2 = vmmov %vm5028_vm13 }
 0x4ce   :  { %v2170_v27 = vsel %vm2056_vm3, %v2169_v56, %v2168_v38  ;;  %v2157_v39 = vsel %vm2092_vm7, %v2156_v1, %v2155_v14  ;;  %vm2196_vm3 = vcmask 1042434  }
 0x4cf   :  { %v2172_v0 = vsel %vm2060_vm5, %v2171_v49, %v2170_v27  ;;  %v2159_v60 = vsel %vm2096_vm11, %v2158_v35, %v2157_v39  ;;  %vm2198_vm5 = vcmask 1041408  }
 0x4d0   :  { %v2174_v43 = vsel %vm2064_vm6, %v2173_v55, %v2172_v0  ;;  %vm2202_vm6 = vcmp.lt.s32.totalorder %v2035_v40, 512 }
 0x4d1   :  { %v2176_v7 = vsel %vm2068_vm8, %v2175_v5, %v2174_v43 }
 0x4d4   :  { %v2016_v25 = vpop.permute.xlu0 %2015 }
 0x4d5   :  { %v2177_v29 = vperm.slane %v2016_v25, %v4558_v3 }
 0x4d7   :  { %v2178_v3 = vsel %vm2072_vm9, %v2177_v29, %v2176_v7 }
 0x4d8   :  { %v2180_v6 = vsel %vm2076_vm10, %v2179_v2, %v2178_v3 }
 0x4f2   :  { %v2022_v15 = vpop.permute.xlu1 %2021 }
 0x4f3   :  { %v2181_v31 = vperm.slane %v2022_v15, %v4583_v42 }
 0x4f5   :  { %v2182_v36 = vsel %vm2080_vm15, %v2181_v31, %v2180_v6 }
 0x4f8   :  { %v2028_v61 = vpop.permute.xlu2 %2027 }
 0x4f9   :  { %v2185_v62 = vperm.slane %v2028_v61, %v4588_v47  ;;  %v2192_v47 = vrot.slane %v2159_v60, 6 }
 0x501   :  { %v2025_v30 = vpop.permute.xlu0 %2024 }
 0x502   :  { %v2183_v13 = vperm.slane %v2025_v30, %v4579_v11 }
 0x504   :  { %v2184_v11 = vsel %vm5029_vm14, %v2183_v13, %v2182_v36 }
 0x505   :  { %v2186_v41 = vsel %vm5030_vm2, %v2185_v62, %v2184_v11 }
 0x51f   :  { %v2031_v46 = vpop.permute.xlu1 %2030 }
 0x520   :  { %v2187_v42 = vperm.slane %v2031_v46, %v4615_v58 }
 0x522   :  { %v2188_v33 = vsel %vm2092_vm7, %v2187_v42, %v2186_v41 }
 0x52e   :  { %v2034_v20 = vpop.permute.xlu0 %2033 }
 0x52f   :  { %v2189_v53 = vperm.slane %v2034_v20, %v4621_v17 }
 0x531   :  { %v2190_v9 = vsel %vm2096_vm11, %v2189_v53, %v2188_v33 }
 0x532   :  { %v2193_v58 = vrot.slane %v2190_v9, 5 }
 0x534   :  { %v2197_v57 = vsel %vm2196_vm3, %v2192_v47, %v2193_v58 }
 0x535   :  { %v2199_v17 = vsel %vm2198_vm5, %v4829_v19, %v2197_v57 }
 0x536   :  { %2204 = vst.msk [vmem:[#allocation2] sm:$0xf] %vm2202_vm6, %v2199_v17 }
 0x537   :  { %2874 = dma.vmem_to_hbm [thread:$0]  %s2870_s26, 64, %s2872_s29, [#allocation3]  }
 0x538   :  { %3110 = dma.done.wait [#allocation3], 64  }
 0x539   :  { %3111 = vsyncadd [#allocation3], 4294967232 }
 0x53a   :  { %2881 = vsyncpa [#allocation3], 1 }

// kernel: tpu_custom_call.1
= control target key start
LH: loop header
LB: loop body
LE: loop exit
PB: predicated region body
PF: predicated region fallthrough
CT: control target
= control target key end

     0   :  { %vm82_vm0 = vcmask 31744   ;;  %s5015_s0 = inlined_call_operand.vmem [shape: f32[512,4], index: 0, kind: input, shape index: {}]   ;;  %s5016_s1 = inlined_call_operand.vmem [shape: f32[8,4], index: 1, kind: input, shape index: {}]   ;;  %s5017_s2 = inlined_call_operand.vmem [shape: f32[1,8], index: 2, kind: input, shape index: {}]   ;;  %s5018_s3 = inlined_call_operand.vmem [shape: f32[512,4], index: 3, kind: output, shape index: {0}]   ;;  %s5019_s4 = inlined_call_operand.hbm [shape: s32[1,1,512], index: 4, kind: output, shape index: {1}]  }
   0x1   :  { %v81_v0 = vld [vmem:[%s5016_s1] sm:$0xff] }
   0x2   :  { %2882 = vmatpush.xpose.msk.msra.mxu0 %vm82_vm0, %v81_v0  ;;  %v17_v1 = vld [vmem:[%s5015_s0] sm:$0xff]  ;;  %3075 = vmatpush.xpose.msk.msra.mxu2 %vm82_vm0, %v81_v0 }
   0x3   :  { %2604 = vmatpush.msra.mxu1 %v81_v0  ;;  %3076 = vmatpush.msra.mxu3 %v81_v0 }
   0x4   :  { %10 = vsyncpa [#allocation3], 0  ;;  %v18_v2 = vld [vmem:[%s5015_s0 + $0x8] sm:$0xff]  ;;  %v19_v3 = vld [vmem:[%s5015_s0 + $0x10] sm:$0xff]  ;;  %vm555_vm1 = vcmask 64512   ;;  %s2871_s29 = sshll.u32 %s5019_s4, 4  ;;  %s2872_s29 = int_to_ptr.hbm [resolvable:$true] %s2871_s29 }
   0x5   :  { %2883 = vmatmul.msk.f32.vlgmr.msra.gmra.mxu0 %vm82_vm0, %v17_v1  ;;  %v20_v4 = vld [vmem:[%s5015_s0 + $0x18] sm:$0xff]  ;;  %v49_v5 = vld [vmem:[%s5015_s0 + $0x100] sm:$0xff]  ;;  %v50_v7 = vld [vmem:[%s5015_s0 + $0x108] sm:$0xff] }
   0x6   :  { %2915 = vmatmul.msk.f32.vlgmr.msra.gmra.mxu2 %vm82_vm0, %v49_v5  ;;  %v21_v6 = vld [vmem:[%s5015_s0 + $0x20] sm:$0xff]  ;;  %v22_v8 = vld [vmem:[%s5015_s0 + $0x28] sm:$0xff]  ;;  %v51_v9 = vld [vmem:[%s5015_s0 + $0x110] sm:$0xff] }
   0x7   :  { %v23_v10 = vld [vmem:[%s5015_s0 + $0x30] sm:$0xff]  ;;  %v52_v11 = vld [vmem:[%s5015_s0 + $0x118] sm:$0xff]  ;;  %v53_v13 = vld [vmem:[%s5015_s0 + $0x120] sm:$0xff] }
   0x8   :  { %v24_v12 = vld [vmem:[%s5015_s0 + $0x38] sm:$0xff]  ;;  %v25_v14 = vld [vmem:[%s5015_s0 + $0x40] sm:$0xff]  ;;  %v54_v15 = vld [vmem:[%s5015_s0 + $0x128] sm:$0xff] }
   0x9   :  { %v26_v16 = vld [vmem:[%s5015_s0 + $0x48] sm:$0xff]  ;;  %v55_v17 = vld [vmem:[%s5015_s0 + $0x130] sm:$0xff]  ;;  %v56_v19 = vld [vmem:[%s5015_s0 + $0x138] sm:$0xff] }
   0xa   :  { %v27_v18 = vld [vmem:[%s5015_s0 + $0x50] sm:$0xff]  ;;  %v28_v20 = vld [vmem:[%s5015_s0 + $0x58] sm:$0xff]  ;;  %v57_v21 = vld [vmem:[%s5015_s0 + $0x140] sm:$0xff] }
   0xb   :  { %v29_v22 = vld [vmem:[%s5015_s0 + $0x60] sm:$0xff]  ;;  %v58_v23 = vld [vmem:[%s5015_s0 + $0x148] sm:$0xff]  ;;  %v59_v25 = vld [vmem:[%s5015_s0 + $0x150] sm:$0xff] }
   0xc   :  { %v30_v24 = vld [vmem:[%s5015_s0 + $0x68] sm:$0xff]  ;;  %v31_v26 = vld [vmem:[%s5015_s0 + $0x70] sm:$0xff]  ;;  %v60_v27 = vld [vmem:[%s5015_s0 + $0x158] sm:$0xff] }
   0xd   :  { %2884 = vmatmul.msk.f32.gmra.mxu0 %vm82_vm0, %v18_v2  ;;  %v32_v28 = vld [vmem:[%s5015_s0 + $0x78] sm:$0xff]  ;;  %v61_v29 = vld [vmem:[%s5015_s0 + $0x160] sm:$0xff]  ;;  %v62_v35 = vld [vmem:[%s5015_s0 + $0x168] sm:$0xff] }
   0xe   :  { %2916 = vmatmul.msk.f32.gmra.mxu2 %vm82_vm0, %v50_v7  ;;  %v3263_v30 = vld [vmem:[%s5017_s2] ss:$0 sm:$0xff]  ;;  %v34_v37 = vld [vmem:[%s5015_s0 + $0x88] sm:$0xff]  ;;  %v63_v40 = vld [vmem:[%s5015_s0 + $0x170] sm:$0xff] }
   0xf   :  { %v33_v32 = vld [vmem:[%s5015_s0 + $0x80] sm:$0xff]  ;;  %v35_v42 = vld [vmem:[%s5015_s0 + $0x90] sm:$0xff]  ;;  %v64_v45 = vld [vmem:[%s5015_s0 + $0x178] sm:$0xff] }
  0x10   :  { %v36_v47 = vld [vmem:[%s5015_s0 + $0x98] sm:$0xff]  ;;  %v65_v50 = vld [vmem:[%s5015_s0 + $0x180] sm:$0xff]  ;;  %v66_v55 = vld [vmem:[%s5015_s0 + $0x188] sm:$0xff] }
  0x11   :  { %v37_v52 = vld [vmem:[%s5015_s0 + $0xa0] sm:$0xff]  ;;  %v38_v57 = vld [vmem:[%s5015_s0 + $0xa8] sm:$0xff]  ;;  %v67_v60 = vld [vmem:[%s5015_s0 + $0x190] sm:$0xff] }
  0x12   :  { %v39_v62 = vld [vmem:[%s5015_s0 + $0xb0] sm:$0xff]  ;;  %v68_v1 = vld [vmem:[%s5015_s0 + $0x198] sm:$0xff] }
  0x15   :  { %2885 = vmatmul.msk.f32.gmra.mxu0 %vm82_vm0, %v19_v3  ;;  %v40_v3 = vld [vmem:[%s5015_s0 + $0xb8] sm:$0xff] }
  0x16   :  { %2917 = vmatmul.msk.f32.gmra.mxu2 %vm82_vm0, %v51_v9 }
  0x1d   :  { %2886 = vmatmul.msk.f32.gmra.mxu0 %vm82_vm0, %v20_v4 }
  0x1e   :  { %2918 = vmatmul.msk.f32.gmra.mxu2 %vm82_vm0, %v52_v11  ;;  %v70_v11 = vld [vmem:[%s5015_s0 + $0x1a8] sm:$0xff] }
  0x25   :  { %2887 = vmatmul.msk.f32.gmra.mxu0 %vm82_vm0, %v21_v6  ;;  %v69_v6 = vld [vmem:[%s5015_s0 + $0x1a0] sm:$0xff] }
  0x26   :  { %2919 = vmatmul.msk.f32.gmra.mxu2 %vm82_vm0, %v53_v13  ;;  %v42_v13 = vld [vmem:[%s5015_s0 + $0xc8] sm:$0xff] }
  0x2d   :  { %2888 = vmatmul.msk.f32.gmra.mxu0 %vm82_vm0, %v22_v8  ;;  %v41_v8 = vld [vmem:[%s5015_s0 + $0xc0] sm:$0xff] }
  0x2e   :  { %2920 = vmatmul.msk.f32.gmra.mxu2 %vm82_vm0, %v54_v15 }
  0x35   :  { %2889 = vmatmul.msk.f32.gmra.mxu0 %vm82_vm0, %v23_v10 }
  0x36   :  { %2921 = vmatmul.msk.f32.gmra.mxu2 %vm82_vm0, %v55_v17 }
  0x3d   :  { %2890 = vmatmul.msk.f32.gmra.mxu0 %vm82_vm0, %v24_v12 }
  0x3e   :  { %2922 = vmatmul.msk.f32.gmra.mxu2 %vm82_vm0, %v56_v19 }
  0x45   :  { %2891 = vmatmul.msk.f32.gmra.mxu0 %vm82_vm0, %v25_v14 }
  0x46   :  { %2923 = vmatmul.msk.f32.gmra.mxu2 %vm82_vm0, %v57_v21  ;;  %v72_v21 = vld [vmem:[%s5015_s0 + $0x1b8] sm:$0xff] }
  0x4d   :  { %2892 = vmatmul.msk.f32.gmra.mxu0 %vm82_vm0, %v26_v16  ;;  %v71_v16 = vld [vmem:[%s5015_s0 + $0x1b0] sm:$0xff] }
  0x4e   :  { %2924 = vmatmul.msk.f32.gmra.mxu2 %vm82_vm0, %v58_v23  ;;  %v44_v23 = vld [vmem:[%s5015_s0 + $0xd8] sm:$0xff] }
  0x55   :  { %2893 = vmatmul.msk.f32.gmra.mxu0 %vm82_vm0, %v27_v18  ;;  %v43_v18 = vld [vmem:[%s5015_s0 + $0xd0] sm:$0xff] }
  0x56   :  { %2925 = vmatmul.msk.f32.gmra.mxu2 %vm82_vm0, %v59_v25 }
  0x5d   :  { %2894 = vmatmul.msk.f32.gmra.mxu0 %vm82_vm0, %v28_v20 }
  0x5e   :  { %2926 = vmatmul.msk.f32.gmra.mxu2 %vm82_vm0, %v60_v27  ;;  %v45_v27 = vld [vmem:[%s5015_s0 + $0xe0] sm:$0xff] }
  0x65   :  { %2895 = vmatmul.msk.f32.gmra.mxu0 %vm82_vm0, %v29_v22 }
  0x66   :  { %2927 = vmatmul.msk.f32.gmra.mxu2 %vm82_vm0, %v61_v29 }
  0x6d   :  { %2896 = vmatmul.msk.f32.gmra.mxu0 %vm82_vm0, %v30_v24 }
  0x6e   :  { %2928 = vmatmul.msk.f32.gmra.mxu2 %vm82_vm0, %v62_v35 }
  0x75   :  { %2897 = vmatmul.msk.f32.gmra.mxu0 %vm82_vm0, %v31_v26 }
  0x76   :  { %2929 = vmatmul.msk.f32.gmra.mxu2 %vm82_vm0, %v63_v40  ;;  %v2035_v40 = vlaneseq }
  0x7d   :  { %2898 = vmatmul.msk.f32.gmra.mxu0 %vm82_vm0, %v32_v28 }
  0x7e   :  { %2930 = vmatmul.msk.f32.gmra.mxu2 %vm82_vm0, %v64_v45 }
  0x82   :  { %v295_v31 = vpop.f32.mrf.mxu0 }
  0x83   :  { %v491_v33 = vsub.f32 %v3263_v30, %v295_v31  ;;  %v73_v31 = vld [vmem:[%s5015_s0 + $0x1c0] sm:$0xff] }
  0x85   :  { %2899 = vmatmul.msk.f32.gmra.mxu0 %vm82_vm0, %v33_v32  ;;  %v556_v34 = vsel %vm555_vm1, %v491_v33, inf }
  0x86   :  { %557 = vmin.index.xlane.f32.xlu0 %v556_v34  ;;  %2931 = vmatmul.msk.f32.gmra.mxu2 %vm82_vm0, %v65_v50  ;;  %v46_v34 = vld [vmem:[%s5015_s0 + $0xe8] sm:$0xff]  ;;  %v48_v50 = vld [vmem:[%s5015_s0 + $0xf8] sm:$0xff] }
  0x89   :  { %v3391_v32 = vpop.f32.mrf.mxu2 }
  0x8a   :  { %v298_v36 = vpop.f32.mrf.mxu0 }
  0x8b   :  { %v492_v38 = vsub.f32 %v3263_v30, %v298_v36 }
  0x8d   :  { %2900 = vmatmul.msk.f32.gmra.mxu0 %vm82_vm0, %v34_v37  ;;  %v559_v39 = vsel %vm555_vm1, %v492_v38, inf  ;;  %v47_v38 = vld [vmem:[%s5015_s0 + $0xf0] sm:$0xff] }
  0x8e   :  { %560 = vmin.index.xlane.f32.xlu0 %v559_v39  ;;  %2932 = vmatmul.msk.f32.gmra.mxu2 %vm82_vm0, %v66_v55  ;;  %v3112_v55 = vmov 0.0  }
  0x92   :  { %v301_v41 = vpop.f32.mrf.mxu0 }
  0x93   :  { %v493_v43 = vsub.f32 %v3263_v30, %v301_v41  ;;  %v74_v41 = vld [vmem:[%s5015_s0 + $0x1c8] sm:$0xff] }
  0x95   :  { %2901 = vmatmul.msk.f32.gmra.mxu0 %vm82_vm0, %v35_v42  ;;  %v562_v44 = vsel %vm555_vm1, %v493_v43, inf  ;;  %v3407_v42 = vpop.f32.mrf.mxu2 }
  0x96   :  { %563 = vmin.index.xlane.f32.xlu1 %v562_v44  ;;  %2933 = vmatmul.msk.f32.gmra.mxu2 %vm82_vm0, %v67_v60  ;;  %v3413_v44 = vand.u32 127, %v2035_v40 }
  0x9a   :  { %v304_v46 = vpop.f32.mrf.mxu0 }
  0x9b   :  { %v494_v48 = vsub.f32 %v3263_v30, %v304_v46 }
  0x9d   :  { %2902 = vmatmul.msk.f32.gmra.mxu0 %vm82_vm0, %v36_v47  ;;  %v565_v49 = vsel %vm555_vm1, %v494_v48, inf }
  0x9e   :  { %566 = vmin.index.xlane.f32.xlu1 %v565_v49  ;;  %2934 = vmatmul.msk.f32.gmra.mxu2 %vm82_vm0, %v68_v1 }
  0xa2   :  { %v307_v51 = vpop.f32.mrf.mxu0 }
  0xa3   :  { %v495_v53 = vsub.f32 %v3263_v30, %v307_v51 }
  0xa5   :  { %2903 = vmatmul.msk.f32.gmra.mxu0 %vm82_vm0, %v37_v52  ;;  %v568_v54 = vsel %vm555_vm1, %v495_v53, inf }
  0xa6   :  { %569 = vmin.index.xlane.f32.xlu2 %v568_v54  ;;  %2935 = vmatmul.msk.f32.gmra.mxu2 %vm82_vm0, %v69_v6 }
  0xaa   :  { %v310_v56 = vpop.f32.mrf.mxu0 }
  0xab   :  { %v496_v58 = vsub.f32 %v3263_v30, %v310_v56 }
  0xad   :  { %2904 = vmatmul.msk.f32.gmra.mxu0 %vm82_vm0, %v38_v57  ;;  %v571_v59 = vsel %vm555_vm1, %v496_v58, inf }
  0xae   :  { %572 = vmin.index.xlane.f32.xlu2 %v571_v59  ;;  %2936 = vmatmul.msk.f32.gmra.mxu2 %vm82_vm0, %v70_v11 }
  0xb2   :  { %v313_v61 = vpop.f32.mrf.mxu0 }
  0xb3   :  { %v497_v63 = vsub.f32 %v3263_v30, %v313_v61 }
  0xb5   :  { %2905 = vmatmul.msk.f32.gmra.mxu0 %vm82_vm0, %v39_v62  ;;  %v574_v0 = vsel %vm555_vm1, %v497_v63, inf  ;;  %v75_v63 = vld [vmem:[%s5015_s0 + $0x1d0] sm:$0xff] }
  0xb6   :  { %575 = vmin.index.xlane.f32.xlu0 %v574_v0  ;;  %2937 = vmatmul.msk.f32.gmra.mxu2 %vm82_vm0, %v71_v16  ;;  %v3429_v0 = vpop.f32.mrf.mxu2 }
  0xba   :  { %v316_v2 = vpop.f32.mrf.mxu0 }
  0xbb   :  { %v498_v4 = vsub.f32 %v3263_v30, %v316_v2 }
  0xbd   :  { %2906 = vmatmul.msk.f32.gmra.mxu0 %vm82_vm0, %v40_v3  ;;  %v577_v5 = vsel %vm555_vm1, %v498_v4, inf }
  0xbe   :  { %578 = vmin.index.xlane.f32.xlu1 %v577_v5  ;;  %2938 = vmatmul.msk.f32.gmra.mxu2 %vm82_vm0, %v72_v21 }
  0xc2   :  { %v319_v7 = vpop.f32.mrf.mxu0 }
  0xc3   :  { %v499_v9 = vsub.f32 %v3263_v30, %v319_v7 }
  0xc5   :  { %2907 = vmatmul.msk.f32.gmra.mxu0 %vm82_vm0, %v41_v8  ;;  %v580_v10 = vsel %vm555_vm1, %v499_v9, inf }
  0xc6   :  { %581 = vmin.index.xlane.f32.xlu2 %v580_v10  ;;  %2939 = vmatmul.msk.f32.gmra.mxu2 %vm82_vm0, %v73_v31 }
  0xca   :  { %v322_v12 = vpop.f32.mrf.mxu0 }
  0xcb   :  { %v500_v14 = vsub.f32 %v3263_v30, %v322_v12 }
  0xcd   :  { %2908 = vmatmul.msk.f32.gmra.mxu0 %vm82_vm0, %v42_v13  ;;  %v583_v15 = vsel %vm555_vm1, %v500_v14, inf }
  0xce   :  { %584 = vmin.index.xlane.f32.xlu0 %v583_v15  ;;  %2940 = vmatmul.msk.f32.gmra.mxu2 %vm82_vm0, %v74_v41  ;;  %v77_v41 = vld [vmem:[%s5015_s0 + $0x1e0] sm:$0xff] }
  0xd2   :  { %v325_v17 = vpop.f32.mrf.mxu0 }
  0xd3   :  { %v501_v19 = vsub.f32 %v3263_v30, %v325_v17 }
  0xd5   :  { %2909 = vmatmul.msk.f32.gmra.mxu0 %vm82_vm0, %v43_v18  ;;  %v586_v20 = vsel %vm555_vm1, %v501_v19, inf  ;;  %v76_v19 = vld [vmem:[%s5015_s0 + $0x1d8] sm:$0xff] }
  0xd6   :  { %587 = vmin.index.xlane.f32.xlu1 %v586_v20  ;;  %2941 = vmatmul.msk.f32.gmra.mxu2 %vm82_vm0, %v75_v63  ;;  %v3447_v20 = vpop.f32.mrf.mxu2 }
  0xda   :  { %v328_v22 = vpop.f32.mrf.mxu0 }
  0xdb   :  { %v502_v24 = vsub.f32 %v3263_v30, %v328_v22 }
  0xdd   :  { %2910 = vmatmul.msk.f32.gmra.mxu0 %vm82_vm0, %v44_v23  ;;  %v589_v25 = vsel %vm555_vm1, %v502_v24, inf }
  0xde   :  { %590 = vmin.index.xlane.f32.xlu2 %v589_v25  ;;  %2942 = vmatmul.msk.f32.gmra.mxu2 %vm82_vm0, %v76_v19 }
  0xe2   :  { %v331_v26 = vpop.f32.mrf.mxu0 }
  0xe3   :  { %v503_v28 = vsub.f32 %v3263_v30, %v331_v26 }
  0xe5   :  { %2911 = vmatmul.msk.f32.gmra.mxu0 %vm82_vm0, %v45_v27  ;;  %v592_v29 = vsel %vm555_vm1, %v503_v28, inf }
  0xe6   :  { %593 = vmin.index.xlane.f32.xlu0 %v592_v29 }
  0xea   :  { %v334_v33 = vpop.f32.mrf.mxu0 }
  0xeb   :  { %v504_v35 = vsub.f32 %v3263_v30, %v334_v33 }
  0xed   :  { %2912 = vmatmul.msk.f32.gmra.mxu0 %vm82_vm0, %v46_v34  ;;  %v595_v36 = vsel %vm555_vm1, %v504_v35, inf }
  0xee   :  { %596 = vmin.index.xlane.f32.xlu1 %v595_v36 }
  0xf2   :  { %v337_v37 = vpop.f32.mrf.mxu0 }
  0xf3   :  { %v505_v39 = vsub.f32 %v3263_v30, %v337_v37 }
  0xf5   :  { %2913 = vmatmul.msk.f32.gmra.mxu0 %vm82_vm0, %v47_v38  ;;  %v598_v43 = vsel %vm555_vm1, %v505_v39, inf }
  0xf6   :  { %599 = vmin.index.xlane.f32.xlu2 %v598_v43  ;;  %v3469_v43 = vpop.f32.mrf.mxu2  ;;  %2943 = vmatmul.msk.f32.gmra.mxu2 %vm82_vm0, %v77_v41 }
  0xf9   :  { %v558_v45 = vpop.xlane.xlu0 %557 }
  0xfa   :  { %v748_v46 = vperm.slane %v558_v45, 0  ;;  %v749_v47 = vperm.slane %v558_v45, 1  ;;  %v750_v48 = vperm.slane %v558_v45, 2  ;;  %v340_v49 = vpop.f32.mrf.mxu0  ;;  %v751_v51 = vperm.slane %v558_v45, 3 }
  0xfb   :  { %v752_v52 = vperm.slane %v558_v45, 4  ;;  %v506_v53 = vsub.f32 %v3263_v30, %v340_v49  ;;  %vm2205_vm2 = vcmp.eq.s32.totalorder %v3413_v44, %v558_v45  ;;  %v753_v54 = vperm.slane %v558_v45, 5 }
  0xfc   :  { %1260 = vst [vmem:[#allocation1] ss:$9 sm:$0xff] %v748_v46  ;;  %v2947_v56 = vsel %vm2205_vm2, 1.0, %v3112_v55  ;;  %v754_v57 = vperm.slane %v558_v45, 6  ;;  %v755_v59 = vperm.slane %v558_v45, 7 }
  0xfd   :  { %1262 = vst [vmem:[#allocation1 + $0x1] ss:$9 sm:$0xff] %v749_v47  ;;  %2914 = vmatmul.msk.f32.gmra.mxu0 %vm82_vm0, %v48_v50  ;;  %3011 = vmatmul.msk.f32.vlgmr.msra.gmra.mxu1 %vm555_vm1, %v2947_v56  ;;  %v601_v58 = vsel %vm555_vm1, %v506_v53, inf }
  0xfe   :  { %1264 = vst [vmem:[#allocation1 + $0x2] ss:$9 sm:$0xff] %v750_v48  ;;  %602 = vmin.index.xlane.f32.xlu0 %v601_v58 }
  0xff   :  { %1266 = vst [vmem:[#allocation1 + $0x3] ss:$9 sm:$0xff] %v751_v51 }
 0x100   :  { %1268 = vst [vmem:[#allocation1 + $0x4] ss:$9 sm:$0xff] %v752_v52 }
 0x101   :  { %1270 = vst [vmem:[#allocation1 + $0x5] ss:$9 sm:$0xff] %v753_v54  ;;  %v561_v60 = vpop.xlane.xlu0 %560 }
 0x102   :  { %1272 = vst [vmem:[#allocation1 + $0x6] ss:$9 sm:$0xff] %v754_v57  ;;  %v343_v61 = vpop.f32.mrf.mxu0  ;;  %vm2206_vm3 = vcmp.eq.s32.totalorder %v3413_v44, %v561_v60  ;;  %v756_v3 = vperm.slane %v561_v60, 0  ;;  %v757_v4 = vperm.slane %v561_v60, 1  ;;  %v758_v5 = vperm.slane %v561_v60, 2 }
 0x103   :  { %1274 = vst [vmem:[#allocation1 + $0x7] ss:$9 sm:$0xff] %v755_v59  ;;  %v507_v62 = vsub.f32 %v3263_v30, %v343_v61  ;;  %v2948_v1 = vsel %vm2206_vm3, 1.0, %v3112_v55  ;;  %v759_v8 = vperm.slane %v561_v60, 3  ;;  %v760_v10 = vperm.slane %v561_v60, 4  ;;  %v3493_v61 = vpop.f32.mrf.mxu2 }
 0x104   :  { %v761_v11 = vperm.slane %v561_v60, 5  ;;  %v762_v13 = vperm.slane %v561_v60, 6  ;;  %v763_v15 = vperm.slane %v561_v60, 7  ;;  %v78_v60 = vld [vmem:[%s5015_s0 + $0x1e8] sm:$0xff] }
 0x105   :  { %3012 = vmatmul.msk.f32.gmra.mxu1 %vm555_vm1, %v2948_v1  ;;  %v604_v2 = vsel %vm555_vm1, %v507_v62, inf  ;;  %2944 = vmatmul.msk.f32.gmra.mxu2 %vm82_vm0, %v78_v60 }
 0x106   :  { %605 = vmin.index.xlane.f32.xlu1 %v604_v2 }
 0x109   :  { %v564_v6 = vpop.xlane.xlu1 %563 }
 0x10a   :  { %v3435_v7 = vld [vmem:[#allocation1] sm:$0xff]  ;;  %v346_v9 = vpop.f32.mrf.mxu0  ;;  %vm2207_vm4 = vcmp.eq.s32.totalorder %v3413_v44, %v564_v6  ;;  %v764_v23 = vperm.slane %v564_v6, 0  ;;  %v765_v25 = vperm.slane %v564_v6, 1  ;;  %v766_v26 = vperm.slane %v564_v6, 2 }
 0x10b   :  { %1276 = vst [vmem:[#allocation1] ss:$9 sm:$0xff] %v756_v3  ;;  %v508_v12 = vsub.f32 %v3263_v30, %v346_v9  ;;  %v2949_v14 = vsel %vm2207_vm4, 1.0, %v3112_v55  ;;  %v767_v28 = vperm.slane %v564_v6, 3  ;;  %v768_v29 = vperm.slane %v564_v6, 4 }
 0x10c   :  { %1277 = vst [vmem:[#allocation1 + $0x1] ss:$9 sm:$0xff] %v757_v4  ;;  %v769_v33 = vperm.slane %v564_v6, 5  ;;  %v770_v34 = vperm.slane %v564_v6, 6  ;;  %v771_v35 = vperm.slane %v564_v6, 7 }
 0x10d   :  { %1278 = vst [vmem:[#allocation1 + $0x2] ss:$9 sm:$0xff] %v758_v5  ;;  %3013 = vmatmul.msk.f32.gmra.mxu1 %vm555_vm1, %v2949_v14  ;;  %v607_v16 = vsel %vm555_vm1, %v508_v12, inf  ;;  %v79_v14 = vld [vmem:[%s5015_s0 + $0x1f0] sm:$0xff] }
 0x10e   :  { %1279 = vst [vmem:[#allocation1 + $0x3] ss:$9 sm:$0xff] %v759_v8  ;;  %608 = vmin.index.xlane.f32.xlu2 %v607_v16 }
 0x10f   :  { %1280 = vst [vmem:[#allocation1 + $0x4] ss:$9 sm:$0xff] %v760_v10 }
 0x110   :  { %1281 = vst [vmem:[#allocation1 + $0x5] ss:$9 sm:$0xff] %v761_v11 }
 0x111   :  { %1282 = vst [vmem:[#allocation1 + $0x6] ss:$9 sm:$0xff] %v762_v13  ;;  %v3442_v17 = vpop.xlane.xlu1 %566 }
 0x112   :  { %1283 = vst [vmem:[#allocation1 + $0x7] ss:$9 sm:$0xff] %v763_v15  ;;  %v349_v18 = vpop.f32.mrf.mxu0  ;;  %vm2208_vm5 = vcmp.eq.s32.totalorder %v3413_v44, %v3442_v17  ;;  %v772_v45 = vperm.slane %v3442_v17, 0  ;;  %v773_v46 = vperm.slane %v3442_v17, 1  ;;  %v774_v47 = vperm.slane %v3442_v17, 2  ;;  %v3517_v15 = vpop.f32.mrf.mxu2  ;;  %2945 = vmatmul.msk.f32.gmra.mxu2 %vm82_vm0, %v79_v14 }
 0x113   :  { %v509_v21 = vsub.f32 %v3263_v30, %v349_v18  ;;  %v2950_v22 = vsel %vm2208_vm5, 1.0, %v3112_v55  ;;  %v775_v49 = vperm.slane %v3442_v17, 3  ;;  %v776_v50 = vperm.slane %v3442_v17, 4 }
 0x114   :  { %v777_v52 = vperm.slane %v3442_v17, 5  ;;  %v778_v53 = vperm.slane %v3442_v17, 6  ;;  %v779_v54 = vperm.slane %v3442_v17, 7 }
 0x115   :  { %3014 = vmatmul.msk.f32.gmra.mxu1 %vm555_vm1, %v2950_v22  ;;  %v610_v24 = vsel %vm555_vm1, %v509_v21, inf }
 0x116   :  { %611 = vmin.index.xlane.f32.xlu0 %v610_v24 }
 0x119   :  { %v3456_v27 = vld [vmem:[#allocation1] sm:$0xff]  ;;  %v3458_v31 = vpop.xlane.xlu2 %569 }
 0x11a   :  { %1285 = vst [vmem:[#allocation1] ss:$9 sm:$0xff] %v764_v23  ;;  %v352_v36 = vpop.f32.mrf.mxu0  ;;  %vm2209_vm6 = vcmp.eq.s32.totalorder %v3413_v44, %v3458_v31  ;;  %v780_v62 = vperm.slane %v3458_v31, 0  ;;  %v781_v63 = vperm.slane %v3458_v31, 1  ;;  %v782_v1 = vperm.slane %v3458_v31, 2 }
 0x11b   :  { %1286 = vst [vmem:[#allocation1 + $0x1] ss:$9 sm:$0xff] %v765_v25  ;;  %v510_v37 = vsub.f32 %v3263_v30, %v352_v36  ;;  %v2951_v38 = vsel %vm2209_vm6, 1.0, %v3112_v55  ;;  %v783_v3 = vperm.slane %v3458_v31, 3  ;;  %v784_v4 = vperm.slane %v3458_v31, 4  ;;  %v3540_v36 = vpop.f32.mrf.mxu2 }
 0x11c   :  { %1287 = vst [vmem:[#allocation1 + $0x2] ss:$9 sm:$0xff] %v766_v26  ;;  %v785_v6 = vperm.slane %v3458_v31, 5  ;;  %v786_v8 = vperm.slane %v3458_v31, 6  ;;  %v787_v9 = vperm.slane %v3458_v31, 7 }
 0x11d   :  { %1288 = vst [vmem:[#allocation1 + $0x3] ss:$9 sm:$0xff] %v767_v28  ;;  %3015 = vmatmul.msk.f32.gmra.mxu1 %vm555_vm1, %v2951_v38  ;;  %v613_v39 = vsel %vm555_vm1, %v510_v37, inf }
 0x11e   :  { %1289 = vst [vmem:[#allocation1 + $0x4] ss:$9 sm:$0xff] %v768_v29  ;;  %614 = vmin.index.xlane.f32.xlu1 %v613_v39 }
 0x11f   :  { %1290 = vst [vmem:[#allocation1 + $0x5] ss:$9 sm:$0xff] %v769_v33 }
 0x120   :  { %1291 = vst [vmem:[#allocation1 + $0x6] ss:$9 sm:$0xff] %v770_v34 }
 0x121   :  { %1292 = vst [vmem:[#allocation1 + $0x7] ss:$9 sm:$0xff] %v771_v35  ;;  %v3479_v51 = vpop.xlane.xlu2 %572 }
 0x122   :  { %v355_v56 = vpop.f32.mrf.mxu0  ;;  %vm2210_vm7 = vcmp.eq.s32.totalorder %v3413_v44, %v3479_v51  ;;  %v788_v16 = vperm.slane %v3479_v51, 0  ;;  %v789_v17 = vperm.slane %v3479_v51, 1  ;;  %v790_v18 = vperm.slane %v3479_v51, 2 }
 0x123   :  { %v511_v57 = vsub.f32 %v3263_v30, %v355_v56  ;;  %v2952_v58 = vsel %vm2210_vm7, 1.0, %v3112_v55  ;;  %v791_v21 = vperm.slane %v3479_v51, 3  ;;  %v792_v22 = vperm.slane %v3479_v51, 4 }
 0x124   :  { %v793_v24 = vperm.slane %v3479_v51, 5  ;;  %v794_v25 = vperm.slane %v3479_v51, 6  ;;  %v795_v26 = vperm.slane %v3479_v51, 7  ;;  %v523_v56 = vsub.f32 %v3263_v30, %v3391_v32 }
 0x125   :  { %3016 = vmatmul.msk.f32.gmra.mxu1 %vm555_vm1, %v2952_v58  ;;  %v616_v59 = vsel %vm555_vm1, %v511_v57, inf }
 0x126   :  { %617 = vmin.index.xlane.f32.xlu2 %v616_v59 }
 0x128   :  { %v3475_v48 = vld [vmem:[#allocation1] sm:$0xff] }
 0x129   :  { %1294 = vst [vmem:[#allocation1] ss:$9 sm:$0xff] %v772_v45  ;;  %v3503_v5 = vpop.xlane.xlu0 %575 }
 0x12a   :  { %1295 = vst [vmem:[#allocation1 + $0x1] ss:$9 sm:$0xff] %v773_v46  ;;  %v358_v10 = vpop.f32.mrf.mxu0  ;;  %vm2211_vm8 = vcmp.eq.s32.totalorder %v3413_v44, %v3503_v5  ;;  %v796_v34 = vperm.slane %v3503_v5, 0  ;;  %v797_v35 = vperm.slane %v3503_v5, 1  ;;  %v798_v37 = vperm.slane %v3503_v5, 2 }
 0x12b   :  { %1296 = vst [vmem:[#allocation1 + $0x2] ss:$9 sm:$0xff] %v774_v47  ;;  %v512_v11 = vsub.f32 %v3263_v30, %v358_v10  ;;  %v2953_v12 = vsel %vm2211_vm8, 1.0, %v3112_v55  ;;  %v799_v39 = vperm.slane %v3503_v5, 3  ;;  %v800_v41 = vperm.slane %v3503_v5, 4 }
 0x12c   :  { %1297 = vst [vmem:[#allocation1 + $0x3] ss:$9 sm:$0xff] %v775_v49  ;;  %v801_v46 = vperm.slane %v3503_v5, 5  ;;  %v802_v47 = vperm.slane %v3503_v5, 6  ;;  %v803_v49 = vperm.slane %v3503_v5, 7 }
 0x12d   :  { %1298 = vst [vmem:[#allocation1 + $0x4] ss:$9 sm:$0xff] %v776_v50  ;;  %3017 = vmatmul.msk.f32.gmra.mxu1 %vm555_vm1, %v2953_v12  ;;  %v619_v13 = vsel %vm555_vm1, %v512_v11, inf  ;;  %v524_v12 = vsub.f32 %v3263_v30, %v3407_v42 }
 0x12e   :  { %1299 = vst [vmem:[#allocation1 + $0x5] ss:$9 sm:$0xff] %v777_v52  ;;  %620 = vmin.index.xlane.f32.xlu0 %v619_v13 }
 0x12f   :  { %1300 = vst [vmem:[#allocation1 + $0x6] ss:$9 sm:$0xff] %v778_v53 }
 0x130   :  { %1301 = vst [vmem:[#allocation1 + $0x7] ss:$9 sm:$0xff] %v779_v54  ;;  %v3558_v54 = vpop.f32.mrf.mxu2 }
 0x131   :  { %v3527_v23 = vpop.xlane.xlu1 %578 }
 0x132   :  { %v361_v28 = vpop.f32.mrf.mxu0  ;;  %vm2212_vm9 = vcmp.eq.s32.totalorder %v3413_v44, %v3527_v23  ;;  %v804_v57 = vperm.slane %v3527_v23, 0  ;;  %v805_v58 = vperm.slane %v3527_v23, 1  ;;  %v806_v59 = vperm.slane %v3527_v23, 2 }
 0x133   :  { %v513_v29 = vsub.f32 %v3263_v30, %v361_v28  ;;  %v2954_v31 = vsel %vm2212_vm9, 1.0, %v3112_v55  ;;  %v809_v32 = vperm.slane %v3527_v23, 5 }
 0x135   :  { %3018 = vmatmul.msk.f32.gmra.mxu1 %vm555_vm1, %v2954_v31  ;;  %v622_v33 = vsel %vm555_vm1, %v513_v29, inf }
 0x136   :  { %623 = vmin.index.xlane.f32.xlu1 %v622_v33 }
 0x137   :  { %v3499_v2 = vld [vmem:[#allocation1] sm:$0xff] }
 0x138   :  { %1303 = vst [vmem:[#allocation1] ss:$9 sm:$0xff] %v780_v62  ;;  %v807_v62 = vperm.slane %v3527_v23, 3  ;;  %v3574_v5 = vpop.f32.mrf.mxu2 }
 0x139   :  { %1304 = vst [vmem:[#allocation1 + $0x1] ss:$9 sm:$0xff] %v781_v63  ;;  %v3547_v45 = vpop.xlane.xlu2 %581  ;;  %v652_v63 = vsel %vm555_vm1, %v523_v56, inf }
 0x13a   :  { %1305 = vst [vmem:[#allocation1 + $0x2] ss:$9 sm:$0xff] %v782_v1  ;;  %v364_v50 = vpop.f32.mrf.mxu0  ;;  %vm2213_vm10 = vcmp.eq.s32.totalorder %v3413_v44, %v3547_v45  ;;  %v808_v1 = vperm.slane %v3527_v23, 4  ;;  %v812_v13 = vperm.slane %v3547_v45, 0  ;;  %v813_v14 = vperm.slane %v3547_v45, 1 }
 0x13b   :  { %1306 = vst [vmem:[#allocation1 + $0x3] ss:$9 sm:$0xff] %v783_v3  ;;  %v514_v51 = vsub.f32 %v3263_v30, %v364_v50  ;;  %v2955_v52 = vsel %vm2213_vm10, 1.0, %v3112_v55  ;;  %v817_v42 = vperm.slane %v3547_v45, 5 }
 0x13c   :  { %1307 = vst [vmem:[#allocation1 + $0x4] ss:$9 sm:$0xff] %v784_v4  ;;  %v810_v4 = vperm.slane %v3527_v23, 6 }
 0x13d   :  { %1308 = vst [vmem:[#allocation1 + $0x5] ss:$9 sm:$0xff] %v785_v6  ;;  %3019 = vmatmul.msk.f32.gmra.mxu1 %vm555_vm1, %v2955_v52  ;;  %v625_v53 = vsel %vm555_vm1, %v514_v51, inf  ;;  %v811_v6 = vperm.slane %v3527_v23, 7  ;;  %v816_v23 = vperm.slane %v3547_v45, 4 }
 0x13e   :  { %1309 = vst [vmem:[#allocation1 + $0x6] ss:$9 sm:$0xff] %v786_v8  ;;  %626 = vmin.index.xlane.f32.xlu2 %v625_v53 }
 0x13f   :  { %1310 = vst [vmem:[#allocation1 + $0x7] ss:$9 sm:$0xff] %v787_v9 }
 0x141   :  { %v3570_v3 = vpop.xlane.xlu0 %584 }
 0x142   :  { %v367_v8 = vpop.f32.mrf.mxu0  ;;  %vm2214_vm11 = vcmp.eq.s32.totalorder %v3413_v44, %v3570_v3  ;;  %v826_v51 = vperm.slane %v3570_v3, 6  ;;  %v827_v53 = vperm.slane %v3570_v3, 7 }
 0x143   :  { %v515_v9 = vsub.f32 %v3263_v30, %v367_v8  ;;  %v2956_v10 = vsel %vm2214_vm11, 1.0, %v3112_v55 }
 0x145   :  { %3020 = vmatmul.msk.f32.gmra.mxu1 %vm555_vm1, %v2956_v10  ;;  %v628_v11 = vsel %vm555_vm1, %v515_v9, inf }
 0x146   :  { %v3523_v19 = vld [vmem:[#allocation1] sm:$0xff]  ;;  %653 = vmin.index.xlane.f32.xlu2 %v652_v63  ;;  %629 = vmin.index.xlane.f32.xlu0 %v628_v11 }
 0x147   :  { %1312 = vst [vmem:[#allocation1] ss:$9 sm:$0xff] %v788_v16  ;;  %v3587_v16 = vpop.f32.mrf.mxu2 }
 0x148   :  { %1313 = vst [vmem:[#allocation1 + $0x1] ss:$9 sm:$0xff] %v789_v17  ;;  %v814_v17 = vperm.slane %v3547_v45, 2 }
 0x149   :  { %1314 = vst [vmem:[#allocation1 + $0x2] ss:$9 sm:$0xff] %v790_v18 }
 0x14a   :  { %1315 = vst [vmem:[#allocation1 + $0x3] ss:$9 sm:$0xff] %v791_v21  ;;  %v815_v21 = vperm.slane %v3547_v45, 3  ;;  %v370_v28 = vpop.f32.mrf.mxu0 }
 0x14b   :  { %1316 = vst [vmem:[#allocation1 + $0x4] ss:$9 sm:$0xff] %v792_v22  ;;  %v655_v22 = vsel %vm555_vm1, %v524_v12, inf  ;;  %v516_v29 = vsub.f32 %v3263_v30, %v370_v28 }
 0x14c   :  { %1317 = vst [vmem:[#allocation1 + $0x5] ss:$9 sm:$0xff] %v793_v24  ;;  %v3595_v24 = vpop.xlane.xlu1 %587 }
 0x14d   :  { %1318 = vst [vmem:[#allocation1 + $0x6] ss:$9 sm:$0xff] %v794_v25  ;;  %v818_v25 = vperm.slane %v3547_v45, 6  ;;  %vm2215_vm12 = vcmp.eq.s32.totalorder %v3413_v44, %v3595_v24  ;;  %v631_v33 = vsel %vm555_vm1, %v516_v29, inf  ;;  %v828_v63 = vperm.slane %v3595_v24, 0 }
 0x14e   :  { %1319 = vst [vmem:[#allocation1 + $0x7] ss:$9 sm:$0xff] %v795_v26  ;;  %656 = vmin.index.xlane.f32.xlu0 %v655_v22  ;;  %v819_v26 = vperm.slane %v3547_v45, 7  ;;  %v2957_v31 = vsel %vm2215_vm12, 1.0, %v3112_v55  ;;  %632 = vmin.index.xlane.f32.xlu1 %v631_v33  ;;  %v832_v9 = vperm.slane %v3595_v24, 4  ;;  %v834_v11 = vperm.slane %v3595_v24, 6 }
 0x14f   :  { %3021 = vmatmul.msk.f32.gmra.mxu1 %vm555_vm1, %v2957_v31  ;;  %v835_v12 = vperm.slane %v3595_v24, 7 }
 0x151   :  { %v3618_v50 = vpop.xlane.xlu2 %590 }
 0x152   :  { %v373_v56 = vpop.f32.mrf.mxu0  ;;  %vm2216_vm13 = vcmp.eq.s32.totalorder %v3413_v44, %v3618_v50  ;;  %v839_v28 = vperm.slane %v3618_v50, 3  ;;  %v840_v31 = vperm.slane %v3618_v50, 4 }
 0x155   :  { %v3543_v38 = vld [vmem:[#allocation1] sm:$0xff] }
 0x156   :  { %1321 = vst [vmem:[#allocation1] ss:$9 sm:$0xff] %v796_v34  ;;  %v3606_v34 = vpop.f32.mrf.mxu2 }
 0x157   :  { %1322 = vst [vmem:[#allocation1 + $0x1] ss:$9 sm:$0xff] %v797_v35  ;;  %v525_v35 = vsub.f32 %v3263_v30, %v3429_v0  ;;  %v825_v0 = vperm.slane %v3570_v3, 5 }
 0x158   :  { %1323 = vst [vmem:[#allocation1 + $0x2] ss:$9 sm:$0xff] %v798_v37  ;;  %v820_v37 = vperm.slane %v3570_v3, 0 }
 0x159   :  { %1324 = vst [vmem:[#allocation1 + $0x3] ss:$9 sm:$0xff] %v799_v39  ;;  %v821_v39 = vperm.slane %v3570_v3, 1  ;;  %v3643_v10 = vpop.xlane.xlu0 %593 }
 0x15a   :  { %1325 = vst [vmem:[#allocation1 + $0x4] ss:$9 sm:$0xff] %v800_v41  ;;  %v822_v41 = vperm.slane %v3570_v3, 2  ;;  %vm2217_vm14 = vcmp.eq.s32.totalorder %v3413_v44, %v3643_v10 }
 0x15b   :  { %1326 = vst [vmem:[#allocation1 + $0x5] ss:$9 sm:$0xff] %v801_v46  ;;  %v823_v46 = vperm.slane %v3570_v3, 3 }
 0x15c   :  { %1327 = vst [vmem:[#allocation1 + $0x6] ss:$9 sm:$0xff] %v802_v47  ;;  %v658_v47 = vsel %vm555_vm1, %v525_v35, inf  ;;  %v842_v35 = vperm.slane %v3618_v50, 6 }
 0x15d   :  { %1328 = vst [vmem:[#allocation1 + $0x7] ss:$9 sm:$0xff] %v803_v49  ;;  %v824_v49 = vperm.slane %v3570_v3, 4  ;;  %659 = vmin.index.xlane.f32.xlu1 %v658_v47 }
 0x15e   :  { %v3622_v52 = vpop.f32.mrf.mxu2 }
 0x161   :  { %v3666_v33 = vpop.xlane.xlu1 %596 }
 0x162   :  { %vm2218_vm15 = vcmp.eq.s32.totalorder %v3413_v44, %v3666_v33 }
 0x163   :  { %v2960_v47 = vsel %vm2218_vm15, 1.0, %v3112_v55 }
 0x164   :  { %v3565_v60 = vld [vmem:[#allocation1] sm:$0xff] }
 0x165   :  { %1330 = vst [vmem:[#allocation1] ss:$9 sm:$0xff] %v804_v57  ;;  %v517_v57 = vsub.f32 %v3263_v30, %v373_v56  ;;  %v846_v56 = vperm.slane %v3643_v10, 2 }
 0x166   :  { %1331 = vst [vmem:[#allocation1 + $0x1] ss:$9 sm:$0xff] %v805_v58  ;;  %v2958_v58 = vsel %vm2216_vm13, 1.0, %v3112_v55  ;;  %v3635_v3 = vpop.f32.mrf.mxu2 }
 0x167   :  { %1332 = vst [vmem:[#allocation1 + $0x2] ss:$9 sm:$0xff] %v806_v59  ;;  %3022 = vmatmul.msk.f32.gmra.mxu1 %vm555_vm1, %v2958_v58  ;;  %v634_v59 = vsel %vm555_vm1, %v517_v57, inf  ;;  %v847_v58 = vperm.slane %v3643_v10, 3 }
 0x168   :  { %1333 = vst [vmem:[#allocation1 + $0x3] ss:$9 sm:$0xff] %v807_v62  ;;  %635 = vmin.index.xlane.f32.xlu2 %v634_v59  ;;  %v526_v62 = vsub.f32 %v3263_v30, %v3447_v20  ;;  %v833_v20 = vperm.slane %v3595_v24, 5 }
 0x169   :  { %1334 = vst [vmem:[#allocation1 + $0x4] ss:$9 sm:$0xff] %v808_v1  ;;  %v829_v1 = vperm.slane %v3595_v24, 1 }
 0x16a   :  { %1335 = vst [vmem:[#allocation1 + $0x5] ss:$9 sm:$0xff] %v809_v32  ;;  %v830_v32 = vperm.slane %v3595_v24, 2  ;;  %v661_v8 = vsel %vm555_vm1, %v526_v62, inf  ;;  %v848_v62 = vperm.slane %v3643_v10, 4 }
 0x16b   :  { %1336 = vst [vmem:[#allocation1 + $0x6] ss:$9 sm:$0xff] %v810_v4 }
 0x16c   :  { %1337 = vst [vmem:[#allocation1 + $0x7] ss:$9 sm:$0xff] %v811_v6  ;;  %v831_v6 = vperm.slane %v3595_v24, 3  ;;  %v836_v24 = vperm.slane %v3618_v50, 0 }
 0x16e   :  { %v3654_v22 = vpop.f32.mrf.mxu2 }
 0x170   :  { %662 = vmin.index.xlane.f32.xlu2 %v661_v8 }
 0x173   :  { %v3590_v18 = vld [vmem:[#allocation1] sm:$0xff] }
 0x174   :  { %1339 = vst [vmem:[#allocation1] ss:$9 sm:$0xff] %v812_v13  ;;  %v376_v13 = vpop.f32.mrf.mxu0 }
 0x175   :  { %1340 = vst [vmem:[#allocation1 + $0x1] ss:$9 sm:$0xff] %v813_v14  ;;  %v518_v14 = vsub.f32 %v3263_v30, %v376_v13  ;;  %v853_v13 = vperm.slane %v3666_v33, 1 }
 0x176   :  { %1341 = vst [vmem:[#allocation1 + $0x2] ss:$9 sm:$0xff] %v814_v17  ;;  %v2959_v17 = vsel %vm2217_vm14, 1.0, %v3112_v55 }
 0x177   :  { %1342 = vst [vmem:[#allocation1 + $0x3] ss:$9 sm:$0xff] %v815_v21  ;;  %3023 = vmatmul.msk.f32.gmra.mxu1 %vm555_vm1, %v2959_v17  ;;  %v637_v21 = vsel %vm555_vm1, %v518_v14, inf  ;;  %v854_v14 = vperm.slane %v3666_v33, 2 }
 0x178   :  { %1343 = vst [vmem:[#allocation1 + $0x4] ss:$9 sm:$0xff] %v816_v23  ;;  %638 = vmin.index.xlane.f32.xlu0 %v637_v21  ;;  %v527_v23 = vsub.f32 %v3263_v30, %v3469_v43  ;;  %v841_v43 = vperm.slane %v3618_v50, 5  ;;  %v855_v21 = vperm.slane %v3666_v33, 3 }
 0x179   :  { %1344 = vst [vmem:[#allocation1 + $0x5] ss:$9 sm:$0xff] %v817_v42  ;;  %v837_v42 = vperm.slane %v3618_v50, 1 }
 0x17a   :  { %1345 = vst [vmem:[#allocation1 + $0x6] ss:$9 sm:$0xff] %v818_v25  ;;  %v838_v25 = vperm.slane %v3618_v50, 2  ;;  %v664_v29 = vsel %vm555_vm1, %v527_v23, inf }
 0x17b   :  { %1346 = vst [vmem:[#allocation1 + $0x7] ss:$9 sm:$0xff] %v819_v26 }
 0x17f   :  { %3024 = vmatmul.msk.f32.gmra.mxu1 %vm555_vm1, %v2960_v47 }
 0x180   :  { %665 = vmin.index.xlane.f32.xlu0 %v664_v29 }
 0x182   :  { %v3613_v45 = vld [vmem:[#allocation1] sm:$0xff] }
 0x183   :  { %1348 = vst [vmem:[#allocation1] ss:$9 sm:$0xff] %v820_v37  ;;  %v3670_v37 = vpop.f32.mrf.mxu2 }
 0x184   :  { %1349 = vst [vmem:[#allocation1 + $0x1] ss:$9 sm:$0xff] %v821_v39  ;;  %v843_v39 = vperm.slane %v3618_v50, 7  ;;  %v528_v50 = vsub.f32 %v3263_v30, %v3493_v61  ;;  %v849_v61 = vperm.slane %v3643_v10, 5 }
 0x185   :  { %1350 = vst [vmem:[#allocation1 + $0x2] ss:$9 sm:$0xff] %v822_v41  ;;  %v379_v41 = vpop.f32.mrf.mxu0 }
 0x186   :  { %1351 = vst [vmem:[#allocation1 + $0x3] ss:$9 sm:$0xff] %v823_v46  ;;  %v519_v46 = vsub.f32 %v3263_v30, %v379_v41  ;;  %v667_v59 = vsel %vm555_vm1, %v528_v50, inf  ;;  %v2606_v41 = vpop.f32.mrf.mxu1 }
 0x187   :  { %1352 = vst [vmem:[#allocation1 + $0x4] ss:$9 sm:$0xff] %v824_v49 }
 0x188   :  { %1353 = vst [vmem:[#allocation1 + $0x5] ss:$9 sm:$0xff] %v825_v0  ;;  %v640_v49 = vsel %vm555_vm1, %v519_v46, inf  ;;  %v844_v0 = vperm.slane %v3643_v10, 0 }
 0x189   :  { %1354 = vst [vmem:[#allocation1 + $0x6] ss:$9 sm:$0xff] %v826_v51  ;;  %641 = vmin.index.xlane.f32.xlu1 %v640_v49  ;;  %v845_v51 = vperm.slane %v3643_v10, 1 }
 0x18a   :  { %1355 = vst [vmem:[#allocation1 + $0x7] ss:$9 sm:$0xff] %v827_v53 }
 0x18b   :  { %v3683_v53 = vpop.f32.mrf.mxu2  ;;  %2798 = vst.msk [vmem:[%s5018_s3] sm:$0xff] %vm82_vm0, %v2606_v41 }
 0x191   :  { %v3638_v4 = vld [vmem:[#allocation1] sm:$0xff]  ;;  %668 = vmin.index.xlane.f32.xlu1 %v667_v59 }
 0x192   :  { %1357 = vst [vmem:[#allocation1] ss:$9 sm:$0xff] %v828_v63  ;;  %v3691_v63 = vpop.xlane.xlu2 %599 }
 0x193   :  { %1358 = vst [vmem:[#allocation1 + $0x1] ss:$9 sm:$0xff] %v829_v1  ;;  %v850_v1 = vperm.slane %v3643_v10, 6  ;;  %vm2219_vm2 = vcmp.eq.s32.totalorder %v3413_v44, %v3691_v63  ;;  %v860_v46 = vperm.slane %v3691_v63, 0  ;;  %v861_v47 = vperm.slane %v3691_v63, 1 }
 0x194   :  { %1359 = vst [vmem:[#allocation1 + $0x2] ss:$9 sm:$0xff] %v830_v32  ;;  %v851_v32 = vperm.slane %v3643_v10, 7  ;;  %v529_v10 = vsub.f32 %v3263_v30, %v3517_v15  ;;  %v858_v15 = vperm.slane %v3666_v33, 6  ;;  %v862_v50 = vperm.slane %v3691_v63, 2 }
 0x195   :  { %1360 = vst [vmem:[#allocation1 + $0x3] ss:$9 sm:$0xff] %v831_v6  ;;  %v382_v6 = vpop.f32.mrf.mxu0  ;;  %v865_v59 = vperm.slane %v3691_v63, 5 }
 0x196   :  { %1361 = vst [vmem:[#allocation1 + $0x4] ss:$9 sm:$0xff] %v832_v9  ;;  %v520_v8 = vsub.f32 %v3263_v30, %v382_v6  ;;  %v2961_v9 = vsel %vm2219_vm2, 1.0, %v3112_v55  ;;  %v670_v23 = vsel %vm555_vm1, %v529_v10, inf  ;;  %v857_v30 = vperm.slane %v3666_v33, 5  ;;  %v2609_v10 = vpop.f32.mrf.mxu1 }
 0x197   :  { %1362 = vst [vmem:[#allocation1 + $0x5] ss:$9 sm:$0xff] %v833_v20  ;;  %3025 = vmatmul.msk.f32.gmra.mxu1 %vm555_vm1, %v2961_v9 }
 0x198   :  { %1363 = vst [vmem:[#allocation1 + $0x6] ss:$9 sm:$0xff] %v834_v11  ;;  %v643_v20 = vsel %vm555_vm1, %v520_v8, inf  ;;  %v3702_v11 = vpop.f32.mrf.mxu2 }
 0x199   :  { %1364 = vst [vmem:[#allocation1 + $0x7] ss:$9 sm:$0xff] %v835_v12  ;;  %644 = vmin.index.xlane.f32.xlu2 %v643_v20  ;;  %v852_v12 = vperm.slane %v3666_v33, 0 }
 0x19a   :  { %2799 = vst.msk [vmem:[%s5018_s3 + $0x8] sm:$0xff] %vm82_vm0, %v2609_v10 }
 0x19d   :  { %v385_v29 = vpop.f32.mrf.mxu0 }
 0x19e   :  { %v2612_v41 = vpop.f32.mrf.mxu1 }
 0x19f   :  { %2800 = vst.msk [vmem:[%s5018_s3 + $0x10] sm:$0xff] %vm82_vm0, %v2612_v41 }
 0x1a0   :  { %v3661_v26 = vld [vmem:[#allocation1] sm:$0xff] }
 0x1a1   :  { %1366 = vst [vmem:[#allocation1] ss:$9 sm:$0xff] %v836_v24  ;;  %v856_v24 = vperm.slane %v3666_v33, 4  ;;  %671 = vmin.index.xlane.f32.xlu2 %v670_v23 }
 0x1a2   :  { %1367 = vst [vmem:[#allocation1 + $0x1] ss:$9 sm:$0xff] %v837_v42  ;;  %v3714_v42 = vpop.xlane.xlu0 %602 }
 0x1a3   :  { %1368 = vst [vmem:[#allocation1 + $0x2] ss:$9 sm:$0xff] %v838_v25  ;;  %v3718_v25 = vpop.f32.mrf.mxu2  ;;  %vm2220_vm3 = vcmp.eq.s32.totalorder %v3413_v44, %v3714_v42  ;;  %v871_v23 = vperm.slane %v3714_v42, 3 }
 0x1a4   :  { %1369 = vst [vmem:[#allocation1 + $0x3] ss:$9 sm:$0xff] %v839_v28  ;;  %v859_v28 = vperm.slane %v3666_v33, 7 }
 0x1a5   :  { %1370 = vst [vmem:[#allocation1 + $0x4] ss:$9 sm:$0xff] %v840_v31  ;;  %v3726_v31 = vld [vmem:[%s5017_s2] ss:$0 sm:$0xff] }
 0x1a6   :  { %1371 = vst [vmem:[#allocation1 + $0x5] ss:$9 sm:$0xff] %v841_v43  ;;  %v521_v43 = vsub.f32 %v3726_v31, %v385_v29  ;;  %v531_v20 = vsub.f32 %v3726_v31, %v3558_v54  ;;  %v872_v54 = vperm.slane %v3714_v42, 4  ;;  %v535_v29 = vsub.f32 %v3726_v31, %v3622_v52 }
 0x1a7   :  { %1372 = vst [vmem:[#allocation1 + $0x6] ss:$9 sm:$0xff] %v842_v35  ;;  %v2962_v35 = vsel %vm2220_vm3, 1.0, %v3112_v55 }
 0x1a8   :  { %1373 = vst [vmem:[#allocation1 + $0x7] ss:$9 sm:$0xff] %v843_v39  ;;  %3026 = vmatmul.msk.f32.gmra.mxu1 %vm555_vm1, %v2962_v35  ;;  %v646_v33 = vsel %vm555_vm1, %v521_v43, inf  ;;  %v530_v39 = vsub.f32 %v3726_v31, %v3540_v36  ;;  %v874_v43 = vperm.slane %v3714_v42, 6  ;;  %v688_v52 = vsel %vm555_vm1, %v535_v29, inf }
 0x1a9   :  { %647 = vmin.index.xlane.f32.xlu0 %v646_v33  ;;  %v875_v33 = vperm.slane %v3714_v42, 7  ;;  %v539_v29 = vsub.f32 %v3726_v31, %v3683_v53 }
 0x1aa   :  { %v673_v36 = vsel %vm555_vm1, %v530_v39, inf }
 0x1ab   :  { %v3740_v49 = vpop.f32.mrf.mxu2 }
 0x1af   :  { %v3686_v57 = vld [vmem:[#allocation1] sm:$0xff] }
 0x1b0   :  { %1375 = vst [vmem:[#allocation1] ss:$9 sm:$0xff] %v844_v0 }
 0x1b1   :  { %1376 = vst [vmem:[#allocation1 + $0x1] ss:$9 sm:$0xff] %v845_v51  ;;  %v863_v51 = vperm.slane %v3691_v63, 3  ;;  %674 = vmin.index.xlane.f32.xlu0 %v673_v36 }
 0x1b2   :  { %1377 = vst [vmem:[#allocation1 + $0x2] ss:$9 sm:$0xff] %v846_v56  ;;  %v864_v56 = vperm.slane %v3691_v63, 4 }
 0x1b3   :  { %1378 = vst [vmem:[#allocation1 + $0x3] ss:$9 sm:$0xff] %v847_v58  ;;  %v3748_v58 = vpop.xlane.xlu1 %605 }
 0x1b4   :  { %1379 = vst [vmem:[#allocation1 + $0x4] ss:$9 sm:$0xff] %v848_v62  ;;  %v532_v62 = vsub.f32 %v3726_v31, %v3574_v5  ;;  %vm2221_vm4 = vcmp.eq.s32.totalorder %v3413_v44, %v3748_v58 }
 0x1b5   :  { %1380 = vst [vmem:[#allocation1 + $0x5] ss:$9 sm:$0xff] %v849_v61  ;;  %v866_v61 = vperm.slane %v3691_v63, 6  ;;  %v2963_v8 = vsel %vm2221_vm4, 1.0, %v3112_v55 }
 0x1b6   :  { %1381 = vst [vmem:[#allocation1 + $0x6] ss:$9 sm:$0xff] %v850_v1  ;;  %v867_v1 = vperm.slane %v3691_v63, 7  ;;  %3027 = vmatmul.msk.f32.gmra.mxu1 %vm555_vm1, %v2963_v8  ;;  %v679_v5 = vsel %vm555_vm1, %v532_v62, inf  ;;  %v3762_v63 = vpop.f32.mrf.mxu2  ;;  %v3812_v62 = vpop.xlane.xlu0 %611  ;;  %v882_v8 = vperm.slane %v3748_v58, 6 }
 0x1b7   :  { %1382 = vst [vmem:[#allocation1 + $0x7] ss:$9 sm:$0xff] %v851_v32  ;;  %v388_v32 = vpop.f32.mrf.mxu0  ;;  %680 = vmin.index.xlane.f32.xlu2 %v679_v5  ;;  %v883_v5 = vperm.slane %v3748_v58, 7  ;;  %vm2223_vm6 = vcmp.eq.s32.totalorder %v3413_v44, %v3812_v62  ;;  %v893_v41 = vperm.slane %v3812_v62, 1 }
 0x1b8   :  { %v522_v6 = vsub.f32 %v3726_v31, %v388_v32  ;;  %v536_v32 = vsub.f32 %v3726_v31, %v3635_v3 }
 0x1ba   :  { %v649_v9 = vsel %vm555_vm1, %v522_v6, inf  ;;  %v538_v6 = vsub.f32 %v3726_v31, %v3670_v37  ;;  %v691_v3 = vsel %vm555_vm1, %v536_v32, inf  ;;  %v540_v32 = vsub.f32 %v3726_v31, %v3702_v11 }
 0x1bb   :  { %650 = vmin.index.xlane.f32.xlu1 %v649_v9  ;;  %v2965_v9 = vsel %vm2223_vm6, 1.0, %v3112_v55 }
 0x1be   :  { %v3709_v17 = vld [vmem:[#allocation1] sm:$0xff]  ;;  %v3786_v35 = vpop.f32.mrf.mxu2 }
 0x1bf   :  { %1384 = vst [vmem:[#allocation1] ss:$9 sm:$0xff] %v852_v12  ;;  %v868_v12 = vperm.slane %v3714_v42, 0  ;;  %689 = vmin.index.xlane.f32.xlu2 %v688_v52 }
 0x1c0   :  { %1385 = vst [vmem:[#allocation1 + $0x1] ss:$9 sm:$0xff] %v853_v13  ;;  %v869_v13 = vperm.slane %v3714_v42, 1 }
 0x1c1   :  { %1386 = vst [vmem:[#allocation1 + $0x2] ss:$9 sm:$0xff] %v854_v14  ;;  %v870_v14 = vperm.slane %v3714_v42, 2 }
 0x1c2   :  { %1387 = vst [vmem:[#allocation1 + $0x3] ss:$9 sm:$0xff] %v855_v21 }
 0x1c3   :  { %1388 = vst [vmem:[#allocation1 + $0x4] ss:$9 sm:$0xff] %v856_v24  ;;  %v676_v24 = vsel %vm555_vm1, %v531_v20, inf  ;;  %v2615_v20 = vpop.f32.mrf.mxu1 }
 0x1c4   :  { %1389 = vst [vmem:[#allocation1 + $0x5] ss:$9 sm:$0xff] %v857_v30  ;;  %v3778_v30 = vpop.xlane.xlu2 %608  ;;  %677 = vmin.index.xlane.f32.xlu1 %v676_v24 }
 0x1c5   :  { %1390 = vst [vmem:[#allocation1 + $0x6] ss:$9 sm:$0xff] %v858_v15  ;;  %v873_v15 = vperm.slane %v3714_v42, 5  ;;  %vm2222_vm5 = vcmp.eq.s32.totalorder %v3413_v44, %v3778_v30  ;;  %v884_v10 = vperm.slane %v3778_v30, 0  ;;  %v888_v24 = vperm.slane %v3778_v30, 4 }
 0x1c6   :  { %1391 = vst [vmem:[#allocation1 + $0x7] ss:$9 sm:$0xff] %v859_v28  ;;  %v533_v28 = vsub.f32 %v3726_v31, %v3587_v16  ;;  %v2964_v39 = vsel %vm2222_vm5, 1.0, %v3112_v55  ;;  %v80_v16 = vld [vmem:[%s5015_s0 + $0x1f8] sm:$0xff] }
 0x1c7   :  { %3028 = vmatmul.msk.f32.gmra.mxu1 %vm555_vm1, %v2964_v39  ;;  %2946 = vmatmul.msk.f32.gmra.mxu2 %vm82_vm0, %v80_v16  ;;  %2801 = vst.msk [vmem:[%s5018_s3 + $0x18] sm:$0xff] %vm82_vm0, %v2615_v20  ;;  %v891_v39 = vperm.slane %v3778_v30, 7 }
 0x1c8   :  { %v682_v42 = vsel %vm555_vm1, %v533_v28, inf  ;;  %v537_v28 = vsub.f32 %v3726_v31, %v3654_v22 }
 0x1c9   :  { %683 = vmin.index.xlane.f32.xlu0 %v682_v42  ;;  %v892_v42 = vperm.slane %v3812_v62, 0 }
 0x1ca   :  { %v694_v52 = vsel %vm555_vm1, %v537_v28, inf  ;;  %v543_v28 = vsub.f32 %v3726_v31, %v3762_v63 }
 0x1cd   :  { %v3743_v0 = vld [vmem:[#allocation1] sm:$0xff] }
 0x1ce   :  { %1393 = vst [vmem:[#allocation1] ss:$9 sm:$0xff] %v860_v46  ;;  %v876_v46 = vperm.slane %v3748_v58, 0 }
 0x1cf   :  { %1394 = vst [vmem:[#allocation1 + $0x1] ss:$9 sm:$0xff] %v861_v47  ;;  %v877_v47 = vperm.slane %v3748_v58, 1  ;;  %3029 = vmatmul.msk.f32.gmra.mxu1 %vm555_vm1, %v2965_v9  ;;  %v899_v9 = vperm.slane %v3812_v62, 7 }
 0x1d0   :  { %1395 = vst [vmem:[#allocation1 + $0x2] ss:$9 sm:$0xff] %v862_v50  ;;  %v3805_v50 = vpop.f32.mrf.mxu2 }
 0x1d1   :  { %1396 = vst [vmem:[#allocation1 + $0x3] ss:$9 sm:$0xff] %v863_v51  ;;  %v878_v51 = vperm.slane %v3748_v58, 2  ;;  %692 = vmin.index.xlane.f32.xlu0 %v691_v3 }
 0x1d2   :  { %1397 = vst [vmem:[#allocation1 + $0x4] ss:$9 sm:$0xff] %v864_v56  ;;  %v879_v56 = vperm.slane %v3748_v58, 3 }
 0x1d3   :  { %1398 = vst [vmem:[#allocation1 + $0x5] ss:$9 sm:$0xff] %v865_v59  ;;  %v880_v59 = vperm.slane %v3748_v58, 4 }
 0x1d4   :  { %1399 = vst [vmem:[#allocation1 + $0x6] ss:$9 sm:$0xff] %v866_v61  ;;  %v881_v61 = vperm.slane %v3748_v58, 5 }
 0x1d5   :  { %1400 = vst [vmem:[#allocation1 + $0x7] ss:$9 sm:$0xff] %v867_v1  ;;  %v534_v1 = vsub.f32 %v3726_v31, %v3606_v34  ;;  %v697_v34 = vsel %vm555_vm1, %v538_v6, inf  ;;  %v542_v6 = vsub.f32 %v3726_v31, %v3740_v49 }
 0x1d6   :  { %698 = vmin.index.xlane.f32.xlu2 %v697_v34 }
 0x1d7   :  { %v685_v37 = vsel %vm555_vm1, %v534_v1, inf  ;;  %v897_v1 = vperm.slane %v3812_v62, 5  ;;  %v709_v49 = vsel %vm555_vm1, %v542_v6, inf }
 0x1d8   :  { %v3830_v58 = vpop.f32.mrf.mxu2  ;;  %686 = vmin.index.xlane.f32.xlu1 %v685_v37 }
 0x1dc   :  { %v3773_v21 = vld [vmem:[#allocation1] sm:$0xff] }
 0x1dd   :  { %1402 = vst [vmem:[#allocation1] ss:$9 sm:$0xff] %v868_v12  ;;  %v885_v12 = vperm.slane %v3778_v30, 1 }
 0x1de   :  { %1403 = vst [vmem:[#allocation1 + $0x1] ss:$9 sm:$0xff] %v869_v13  ;;  %v886_v13 = vperm.slane %v3778_v30, 2 }
 0x1df   :  { %1404 = vst [vmem:[#allocation1 + $0x2] ss:$9 sm:$0xff] %v870_v14 }
 0x1e0   :  { %1405 = vst [vmem:[#allocation1 + $0x3] ss:$9 sm:$0xff] %v871_v23  ;;  %v887_v23 = vperm.slane %v3778_v30, 3  ;;  %v3854_v16 = vpop.f32.mrf.mxu2  ;;  %695 = vmin.index.xlane.f32.xlu1 %v694_v52 }
 0x1e1   :  { %1406 = vst [vmem:[#allocation1 + $0x4] ss:$9 sm:$0xff] %v872_v54  ;;  %v3843_v54 = vpop.xlane.xlu1 %614 }
 0x1e2   :  { %1407 = vst [vmem:[#allocation1 + $0x5] ss:$9 sm:$0xff] %v873_v15  ;;  %v889_v15 = vperm.slane %v3778_v30, 5  ;;  %vm2224_vm7 = vcmp.eq.s32.totalorder %v3413_v44, %v3843_v54  ;;  %v900_v37 = vperm.slane %v3843_v54, 0  ;;  %v901_v20 = vperm.slane %v3843_v54, 1 }
 0x1e3   :  { %1408 = vst [vmem:[#allocation1 + $0x6] ss:$9 sm:$0xff] %v874_v43  ;;  %v541_v43 = vsub.f32 %v3726_v31, %v3718_v25  ;;  %v2966_v22 = vsel %vm2224_vm7, 1.0, %v3112_v55  ;;  %v700_v25 = vsel %vm555_vm1, %v539_v29, inf  ;;  %v545_v29 = vsub.f32 %v3726_v31, %v3805_v50 }
 0x1e4   :  { %1409 = vst [vmem:[#allocation1 + $0x7] ss:$9 sm:$0xff] %v875_v33  ;;  %v890_v33 = vperm.slane %v3778_v30, 6  ;;  %3030 = vmatmul.msk.f32.gmra.mxu1 %vm555_vm1, %v2966_v22  ;;  %701 = vmin.index.xlane.f32.xlu0 %v700_v25  ;;  %v2618_v30 = vpop.f32.mrf.mxu1 }
 0x1e5   :  { %v706_v53 = vsel %vm555_vm1, %v541_v43, inf  ;;  %2802 = vst.msk [vmem:[%s5018_s3 + $0x20] sm:$0xff] %vm82_vm0, %v2618_v30  ;;  %v547_v43 = vsub.f32 %v3726_v31, %v3854_v16  ;;  %v718_v50 = vsel %vm555_vm1, %v545_v29, inf  ;;  %v712_v16 = vsel %vm555_vm1, %v543_v28, inf }
 0x1e6   :  { %707 = vmin.index.xlane.f32.xlu2 %v706_v53 }
 0x1e7   :  { %v724_v63 = vsel %vm555_vm1, %v547_v43, inf }
 0x1eb   :  { %v3808_v36 = vld [vmem:[#allocation1] sm:$0xff] }
 0x1ec   :  { %1411 = vst [vmem:[#allocation1] ss:$9 sm:$0xff] %v876_v46  ;;  %v894_v46 = vperm.slane %v3812_v62, 2  ;;  %710 = vmin.index.xlane.f32.xlu0 %v709_v49  ;;  %v2621_v3 = vpop.f32.mrf.mxu1 }
 0x1ed   :  { %1412 = vst [vmem:[#allocation1 + $0x1] ss:$9 sm:$0xff] %v877_v47  ;;  %v3870_v47 = vpop.f32.mrf.mxu2 }
 0x1ee   :  { %1413 = vst [vmem:[#allocation1 + $0x2] ss:$9 sm:$0xff] %v878_v51  ;;  %v548_v6 = vsub.f32 %v3726_v31, %v3870_v47 }
 0x1ef   :  { %1414 = vst [vmem:[#allocation1 + $0x3] ss:$9 sm:$0xff] %v879_v56  ;;  %v895_v56 = vperm.slane %v3812_v62, 3 }
 0x1f0   :  { %1415 = vst [vmem:[#allocation1 + $0x4] ss:$9 sm:$0xff] %v880_v59  ;;  %v896_v59 = vperm.slane %v3812_v62, 4  ;;  %v727_v47 = vsel %vm555_vm1, %v548_v6, inf }
 0x1f1   :  { %1416 = vst [vmem:[#allocation1 + $0x5] ss:$9 sm:$0xff] %v881_v61  ;;  %v3876_v61 = vpop.xlane.xlu2 %617 }
 0x1f2   :  { %1417 = vst [vmem:[#allocation1 + $0x6] ss:$9 sm:$0xff] %v882_v8  ;;  %v544_v8 = vsub.f32 %v3726_v31, %v3786_v35  ;;  %vm2225_vm8 = vcmp.eq.s32.totalorder %v3413_v44, %v3876_v61  ;;  %v703_v35 = vsel %vm555_vm1, %v540_v32, inf  ;;  %v908_v25 = vperm.slane %v3876_v61, 0 }
 0x1f3   :  { %1418 = vst [vmem:[#allocation1 + $0x7] ss:$9 sm:$0xff] %v883_v5  ;;  %v898_v5 = vperm.slane %v3812_v62, 6  ;;  %v2967_v34 = vsel %vm2225_vm8, 1.0, %v3112_v55  ;;  %704 = vmin.index.xlane.f32.xlu1 %v703_v35  ;;  %v909_v52 = vperm.slane %v3876_v61, 1  ;;  %v910_v30 = vperm.slane %v3876_v61, 2 }
 0x1f4   :  { %3031 = vmatmul.msk.f32.gmra.mxu1 %vm555_vm1, %v2967_v34  ;;  %v715_v11 = vsel %vm555_vm1, %v544_v8, inf  ;;  %2803 = vst.msk [vmem:[%s5018_s3 + $0x28] sm:$0xff] %vm82_vm0, %v2621_v3  ;;  %719 = vmin.index.xlane.f32.xlu0 %v718_v50  ;;  %v546_v32 = vsub.f32 %v3726_v31, %v3830_v58  ;;  %v914_v8 = vperm.slane %v3876_v61, 6 }
 0x1f5   :  { %716 = vmin.index.xlane.f32.xlu2 %v715_v11  ;;  %v3894_v62 = vpop.f32.mrf.mxu2 }
 0x1f6   :  { %v721_v11 = vsel %vm555_vm1, %v546_v32, inf  ;;  %v549_v28 = vsub.f32 %v3726_v31, %v3894_v62 }
 0x1fa   :  { %v3839_v14 = vld [vmem:[#allocation1] sm:$0xff] }
 0x1fb   :  { %1420 = vst [vmem:[#allocation1] ss:$9 sm:$0xff] %v884_v10  ;;  %v902_v10 = vperm.slane %v3843_v54, 2  ;;  %713 = vmin.index.xlane.f32.xlu1 %v712_v16 }
 0x1fc   :  { %1421 = vst [vmem:[#allocation1 + $0x1] ss:$9 sm:$0xff] %v885_v12  ;;  %728 = vmin.index.xlane.f32.xlu0 %v727_v47 }
 0x1fd   :  { %1422 = vst [vmem:[#allocation1 + $0x2] ss:$9 sm:$0xff] %v886_v13  ;;  %v903_v13 = vperm.slane %v3843_v54, 3  ;;  %v472_v22 = vpop.f32.mrf.mxu2  ;;  %725 = vmin.index.xlane.f32.xlu2 %v724_v63 }
 0x1fe   :  { %1423 = vst [vmem:[#allocation1 + $0x3] ss:$9 sm:$0xff] %v887_v23  ;;  %v904_v23 = vperm.slane %v3843_v54, 4 }
 0x1ff   :  { %1424 = vst [vmem:[#allocation1 + $0x4] ss:$9 sm:$0xff] %v888_v24  ;;  %v3907_v24 = vpop.xlane.xlu0 %620 }
 0x200   :  { %1425 = vst [vmem:[#allocation1 + $0x5] ss:$9 sm:$0xff] %v889_v15  ;;  %v905_v15 = vperm.slane %v3843_v54, 5  ;;  %vm2226_vm9 = vcmp.eq.s32.totalorder %v3413_v44, %v3907_v24  ;;  %v916_v35 = vperm.slane %v3907_v24, 0  ;;  %v917_v3 = vperm.slane %v3907_v24, 1 }
 0x201   :  { %1426 = vst [vmem:[#allocation1 + $0x6] ss:$9 sm:$0xff] %v890_v33  ;;  %v906_v33 = vperm.slane %v3843_v54, 6  ;;  %v2968_v53 = vsel %vm2226_vm9, 1.0, %v3112_v55  ;;  %v922_v29 = vperm.slane %v3907_v24, 6 }
 0x202   :  { %1427 = vst [vmem:[#allocation1 + $0x7] ss:$9 sm:$0xff] %v891_v39  ;;  %v907_v39 = vperm.slane %v3843_v54, 7  ;;  %3032 = vmatmul.msk.f32.gmra.mxu1 %vm555_vm1, %v2968_v53  ;;  %v2624_v54 = vpop.f32.mrf.mxu1 }
 0x203   :  { %2804 = vst.msk [vmem:[%s5018_s3 + $0x30] sm:$0xff] %vm82_vm0, %v2624_v54  ;;  %722 = vmin.index.xlane.f32.xlu1 %v721_v11 }
 0x209   :  { %v3872_v51 = vld [vmem:[#allocation1] sm:$0xff] }
 0x20a   :  { %1429 = vst [vmem:[#allocation1] ss:$9 sm:$0xff] %v892_v42  ;;  %v475_v42 = vpop.f32.mrf.mxu2  ;;  %v2627_v49 = vpop.f32.mrf.mxu1 }
 0x20b   :  { %1430 = vst [vmem:[#allocation1 + $0x1] ss:$9 sm:$0xff] %v893_v41  ;;  %v551_v43 = vsub.f32 %v3726_v31, %v475_v42 }
 0x20c   :  { %1431 = vst [vmem:[#allocation1 + $0x2] ss:$9 sm:$0xff] %v894_v46  ;;  %v911_v46 = vperm.slane %v3876_v61, 3 }
 0x20d   :  { %1432 = vst [vmem:[#allocation1 + $0x3] ss:$9 sm:$0xff] %v895_v56  ;;  %v912_v56 = vperm.slane %v3876_v61, 4  ;;  %v736_v63 = vsel %vm555_vm1, %v551_v43, inf }
 0x20e   :  { %1433 = vst [vmem:[#allocation1 + $0x4] ss:$9 sm:$0xff] %v896_v59  ;;  %v3936_v59 = vpop.xlane.xlu1 %623  ;;  %737 = vmin.index.xlane.f32.xlu0 %v736_v63 }
 0x20f   :  { %1434 = vst [vmem:[#allocation1 + $0x5] ss:$9 sm:$0xff] %v897_v1  ;;  %v913_v1 = vperm.slane %v3876_v61, 5  ;;  %vm2227_vm10 = vcmp.eq.s32.totalorder %v3413_v44, %v3936_v59  ;;  %v924_v16 = vperm.slane %v3936_v59, 0  ;;  %v925_v54 = vperm.slane %v3936_v59, 1 }
 0x210   :  { %1435 = vst [vmem:[#allocation1 + $0x6] ss:$9 sm:$0xff] %v898_v5  ;;  %v550_v5 = vsub.f32 %v3726_v31, %v472_v22  ;;  %v2969_v34 = vsel %vm2227_vm10, 1.0, %v3112_v55  ;;  %v928_v42 = vperm.slane %v3936_v59, 4  ;;  %v931_v6 = vperm.slane %v3936_v59, 7 }
 0x211   :  { %1436 = vst [vmem:[#allocation1 + $0x7] ss:$9 sm:$0xff] %v899_v9  ;;  %v915_v9 = vperm.slane %v3876_v61, 7  ;;  %3033 = vmatmul.msk.f32.gmra.mxu1 %vm555_vm1, %v2969_v34 }
 0x212   :  { %v733_v58 = vsel %vm555_vm1, %v550_v5, inf  ;;  %v478_v61 = vpop.f32.mrf.mxu2  ;;  %2805 = vst.msk [vmem:[%s5018_s3 + $0x38] sm:$0xff] %vm82_vm0, %v2627_v49  ;;  %v2630_v50 = vpop.f32.mrf.mxu1 }
 0x213   :  { %734 = vmin.index.xlane.f32.xlu2 %v733_v58  ;;  %2806 = vst.msk [vmem:[%s5018_s3 + $0x40] sm:$0xff] %vm82_vm0, %v2630_v50  ;;  %v552_v32 = vsub.f32 %v3726_v31, %v478_v61 }
 0x215   :  { %v739_v5 = vsel %vm555_vm1, %v552_v32, inf }
 0x216   :  { %v4015_v49 = vpop.xlane.xlu1 %632 }
 0x217   :  { %vm2230_vm13 = vcmp.eq.s32.totalorder %v3413_v44, %v4015_v49 }
 0x218   :  { %v3903_v12 = vld [vmem:[#allocation1] sm:$0xff] }
 0x219   :  { %1438 = vst [vmem:[#allocation1] ss:$9 sm:$0xff] %v900_v37  ;;  %v918_v37 = vperm.slane %v3907_v24, 2 }
 0x21a   :  { %1439 = vst [vmem:[#allocation1 + $0x1] ss:$9 sm:$0xff] %v901_v20 }
 0x21b   :  { %1440 = vst [vmem:[#allocation1 + $0x2] ss:$9 sm:$0xff] %v902_v10  ;;  %v919_v10 = vperm.slane %v3907_v24, 3 }
 0x21c   :  { %1441 = vst [vmem:[#allocation1 + $0x3] ss:$9 sm:$0xff] %v903_v13  ;;  %v920_v13 = vperm.slane %v3907_v24, 4 }
 0x21d   :  { %1442 = vst [vmem:[#allocation1 + $0x4] ss:$9 sm:$0xff] %v904_v23  ;;  %v3964_v23 = vpop.xlane.xlu2 %626 }
 0x21e   :  { %1443 = vst [vmem:[#allocation1 + $0x5] ss:$9 sm:$0xff] %v905_v15  ;;  %v921_v15 = vperm.slane %v3907_v24, 5  ;;  %vm2228_vm11 = vcmp.eq.s32.totalorder %v3413_v44, %v3964_v23  ;;  %v934_v34 = vperm.slane %v3964_v23, 2  ;;  %v935_v47 = vperm.slane %v3964_v23, 3 }
 0x21f   :  { %1444 = vst [vmem:[#allocation1 + $0x6] ss:$9 sm:$0xff] %v906_v33  ;;  %v923_v33 = vperm.slane %v3907_v24, 7  ;;  %v2970_v53 = vsel %vm2228_vm11, 1.0, %v3112_v55  ;;  %v730_v24 = vsel %vm555_vm1, %v549_v28, inf  ;;  %v936_v11 = vperm.slane %v3964_v23, 4 }
 0x220   :  { %1445 = vst [vmem:[#allocation1 + $0x7] ss:$9 sm:$0xff] %v907_v39  ;;  %v481_v39 = vpop.f32.mrf.mxu2  ;;  %3034 = vmatmul.msk.f32.gmra.mxu1 %vm555_vm1, %v2970_v53  ;;  %731 = vmin.index.xlane.f32.xlu1 %v730_v24 }
 0x221   :  { %v553_v22 = vsub.f32 %v3726_v31, %v481_v39  ;;  %v932_v31 = vperm.slane %v3964_v23, 0 }
 0x223   :  { %v742_v62 = vsel %vm555_vm1, %v553_v22, inf }
 0x224   :  { %743 = vmin.index.xlane.f32.xlu2 %v742_v62  ;;  %v4043_v62 = vpop.xlane.xlu1 %659 }
 0x225   :  { %vm2239_vm2 = vcmp.eq.s32.totalorder %v3413_v44, %v4043_v62 }
 0x227   :  { %v3932_v41 = vld [vmem:[#allocation1] sm:$0xff] }
 0x228   :  { %1447 = vst [vmem:[#allocation1] ss:$9 sm:$0xff] %v908_v25  ;;  %v926_v25 = vperm.slane %v3936_v59, 2  ;;  %740 = vmin.index.xlane.f32.xlu1 %v739_v5 }
 0x229   :  { %1448 = vst [vmem:[#allocation1 + $0x1] ss:$9 sm:$0xff] %v909_v52 }
 0x22a   :  { %1449 = vst [vmem:[#allocation1 + $0x2] ss:$9 sm:$0xff] %v910_v30  ;;  %v927_v30 = vperm.slane %v3936_v59, 3 }
 0x22b   :  { %1450 = vst [vmem:[#allocation1 + $0x3] ss:$9 sm:$0xff] %v911_v46  ;;  %v3991_v46 = vpop.xlane.xlu0 %629 }
 0x22c   :  { %1451 = vst [vmem:[#allocation1 + $0x4] ss:$9 sm:$0xff] %v912_v56  ;;  %v929_v56 = vperm.slane %v3936_v59, 5  ;;  %vm2229_vm12 = vcmp.eq.s32.totalorder %v3413_v44, %v3991_v46  ;;  %v941_v43 = vperm.slane %v3991_v46, 1  ;;  %v943_v22 = vperm.slane %v3991_v46, 3 }
 0x22d   :  { %1452 = vst [vmem:[#allocation1 + $0x5] ss:$9 sm:$0xff] %v913_v1  ;;  %v930_v1 = vperm.slane %v3936_v59, 6  ;;  %v933_v59 = vperm.slane %v3964_v23, 1  ;;  %v944_v53 = vperm.slane %v3991_v46, 4  ;;  %v947_v24 = vperm.slane %v3991_v46, 7 }
 0x22e   :  { %1453 = vst [vmem:[#allocation1 + $0x6] ss:$9 sm:$0xff] %v914_v8  ;;  %v2971_v8 = vsel %vm2229_vm12, 1.0, %v3112_v55 }
 0x22f   :  { %1454 = vst [vmem:[#allocation1 + $0x7] ss:$9 sm:$0xff] %v915_v9  ;;  %3035 = vmatmul.msk.f32.gmra.mxu1 %vm555_vm1, %v2971_v8  ;;  %v2633_v9 = vpop.f32.mrf.mxu1 }
 0x230   :  { %2807 = vst.msk [vmem:[%s5018_s3 + $0x48] sm:$0xff] %vm82_vm0, %v2633_v9 }
 0x233   :  { %v4013_v61 = vpop.xlane.xlu0 %656 }
 0x234   :  { %vm2238_vm14 = vcmp.eq.s32.totalorder %v3413_v44, %v4013_v61 }
 0x236   :  { %v3960_v20 = vld [vmem:[#allocation1] sm:$0xff] }
 0x237   :  { %1456 = vst [vmem:[#allocation1] ss:$9 sm:$0xff] %v916_v35  ;;  %v937_v35 = vperm.slane %v3964_v23, 5  ;;  %v2636_v28 = vpop.f32.mrf.mxu1 }
 0x238   :  { %1457 = vst [vmem:[#allocation1 + $0x1] ss:$9 sm:$0xff] %v917_v3  ;;  %v938_v3 = vperm.slane %v3964_v23, 6 }
 0x239   :  { %1458 = vst [vmem:[#allocation1 + $0x2] ss:$9 sm:$0xff] %v918_v37  ;;  %v939_v37 = vperm.slane %v3964_v23, 7  ;;  %v4028_v23 = vpop.xlane.xlu2 %653 }
 0x23a   :  { %1459 = vst [vmem:[#allocation1 + $0x3] ss:$9 sm:$0xff] %v919_v10  ;;  %v2972_v10 = vsel %vm2230_vm13, 1.0, %v3112_v55  ;;  %vm2237_vm13 = vcmp.eq.s32.totalorder %v3413_v44, %v4028_v23 }
 0x23b   :  { %1460 = vst [vmem:[#allocation1 + $0x4] ss:$9 sm:$0xff] %v920_v13  ;;  %v2980_v13 = vsel %vm2238_vm14, 1.0, %v3112_v55  ;;  %3036 = vmatmul.msk.f32.gmra.mxu1 %vm555_vm1, %v2972_v10 }
 0x23c   :  { %1461 = vst [vmem:[#allocation1 + $0x5] ss:$9 sm:$0xff] %v921_v15  ;;  %3044 = vmatmul.msk.f32.vlgmr.msra.gmra.mxu3 %vm555_vm1, %v2980_v13  ;;  %v3113_v15 = vmov 0  }
 0x23d   :  { %1462 = vst [vmem:[#allocation1 + $0x6] ss:$9 sm:$0xff] %v922_v29  ;;  %3082 = vset.pattern.permute.xlu0 %v3113_v15  ;;  %3081 = vset.pattern.permute.xlu2 %v3113_v15  ;;  %v940_v29 = vperm.slane %v3991_v46, 0 }
 0x23e   :  { %1463 = vst [vmem:[#allocation1 + $0x7] ss:$9 sm:$0xff] %v923_v33  ;;  %1850 = vperm.xlu0 %3082, %v3475_v48   ;;  %1847 = vperm.xlu2 %3081, %v3456_v27   ;;  %v942_v33 = vperm.slane %v3991_v46, 2  ;;  %v945_v48 = vperm.slane %v3991_v46, 5  ;;  %v946_v27 = vperm.slane %v3991_v46, 6  ;;  %v4077_v46 = vpop.xlane.xlu0 %638 }
 0x23f   :  { %2808 = vst.msk [vmem:[%s5018_s3 + $0x50] sm:$0xff] %vm82_vm0, %v2636_v28  ;;  %3080 = vset.pattern.permute.xlu1 %v3113_v15  ;;  %vm2232_vm3 = vcmp.eq.s32.totalorder %v3413_v44, %v4077_v46  ;;  %v967_v10 = vperm.slane %v4077_v46, 3  ;;  %v969_v28 = vperm.slane %v4077_v46, 5 }
 0x241   :  { %v4045_v63 = vpop.xlane.xlu2 %635  ;;  %1844 = vperm.xlu1 %3080, %v3435_v7   ;;  %v2639_v7 = vpop.f32.mrf.mxu1 }
 0x242   :  { %vm2231_vm15 = vcmp.eq.s32.totalorder %v3413_v44, %v4045_v63  ;;  %2809 = vst.msk [vmem:[%s5018_s3 + $0x58] sm:$0xff] %vm82_vm0, %v2639_v7  ;;  %v956_v8 = vperm.slane %v4045_v63, 0  ;;  %v958_v5 = vperm.slane %v4045_v63, 2 }
 0x243   :  { %v2973_v50 = vsel %vm2231_vm15, 1.0, %v3112_v55 }
 0x244   :  { %3037 = vmatmul.msk.f32.gmra.mxu1 %vm555_vm1, %v2973_v50 }
 0x245   :  { %v3987_v52 = vld [vmem:[#allocation1] sm:$0xff] }
 0x246   :  { %1465 = vst [vmem:[#allocation1] ss:$9 sm:$0xff] %v924_v16  ;;  %v2981_v16 = vsel %vm2239_vm2, 1.0, %v3112_v55  ;;  %1871 = vperm.xlu0 %3082, %v3638_v4   ;;  %1853 = vperm.xlu2 %3081, %v3499_v2   ;;  %v949_v4 = vperm.slane %v4015_v49, 1  ;;  %v950_v2 = vperm.slane %v4015_v49, 2 }
 0x247   :  { %1466 = vst [vmem:[#allocation1 + $0x1] ss:$9 sm:$0xff] %v925_v54  ;;  %3045 = vmatmul.msk.f32.gmra.mxu3 %vm555_vm1, %v2981_v16  ;;  %v948_v54 = vperm.slane %v4015_v49, 0 }
 0x248   :  { %1467 = vst [vmem:[#allocation1 + $0x2] ss:$9 sm:$0xff] %v926_v25 }
 0x249   :  { %1468 = vst [vmem:[#allocation1 + $0x3] ss:$9 sm:$0xff] %v927_v30  ;;  %1856 = vperm.xlu1 %3080, %v3523_v19   ;;  %v951_v30 = vperm.slane %v4015_v49, 3  ;;  %v952_v19 = vperm.slane %v4015_v49, 4 }
 0x24a   :  { %1469 = vst [vmem:[#allocation1 + $0x4] ss:$9 sm:$0xff] %v928_v42  ;;  %v4075_v42 = vpop.xlane.xlu2 %662 }
 0x24b   :  { %1470 = vst [vmem:[#allocation1 + $0x5] ss:$9 sm:$0xff] %v929_v56  ;;  %v953_v56 = vperm.slane %v4015_v49, 5  ;;  %vm2240_vm4 = vcmp.eq.s32.totalorder %v3413_v44, %v4075_v42 }
 0x24c   :  { %1471 = vst [vmem:[#allocation1 + $0x6] ss:$9 sm:$0xff] %v930_v1  ;;  %v2974_v1 = vsel %vm2232_vm3, 1.0, %v3112_v55  ;;  %v2982_v32 = vsel %vm2240_vm4, 1.0, %v3112_v55 }
 0x24d   :  { %1472 = vst [vmem:[#allocation1 + $0x7] ss:$9 sm:$0xff] %v931_v6  ;;  %3038 = vmatmul.msk.f32.gmra.mxu1 %vm555_vm1, %v2974_v1  ;;  %v2642_v6 = vpop.f32.mrf.mxu1 }
 0x24e   :  { %1880 = vperm.xlu0 %3082, %v3709_v17   ;;  %1859 = vperm.xlu2 %3081, %v3543_v38   ;;  %v954_v17 = vperm.slane %v4015_v49, 6  ;;  %v955_v38 = vperm.slane %v4015_v49, 7  ;;  %2810 = vst.msk [vmem:[%s5018_s3 + $0x60] sm:$0xff] %vm82_vm0, %v2642_v6 }
 0x24f   :  { %3046 = vmatmul.msk.f32.gmra.mxu3 %vm555_vm1, %v2982_v32 }
 0x251   :  { %1862 = vperm.xlu1 %3080, %v3565_v60   ;;  %v957_v60 = vperm.slane %v4045_v63, 1 }
 0x252   :  { %v4137_v15 = vpop.xlane.xlu2 %644 }
 0x253   :  { %vm2234_vm7 = vcmp.eq.s32.totalorder %v3413_v44, %v4137_v15 }
 0x254   :  { %v4009_v58 = vld [vmem:[#allocation1] sm:$0xff] }
 0x255   :  { %1474 = vst [vmem:[#allocation1] ss:$9 sm:$0xff] %v932_v31  ;;  %v4106_v31 = vpop.xlane.xlu0 %665  ;;  %v2645_v49 = vpop.f32.mrf.mxu1 }
 0x256   :  { %1475 = vst [vmem:[#allocation1 + $0x1] ss:$9 sm:$0xff] %v933_v59  ;;  %1889 = vperm.xlu0 %3082, %v3808_v36   ;;  %1865 = vperm.xlu2 %3081, %v3590_v18   ;;  %v959_v36 = vperm.slane %v4045_v63, 3  ;;  %v960_v18 = vperm.slane %v4045_v63, 4  ;;  %v4108_v59 = vpop.xlane.xlu1 %641  ;;  %vm2241_vm6 = vcmp.eq.s32.totalorder %v3413_v44, %v4106_v31 }
 0x257   :  { %1476 = vst [vmem:[#allocation1 + $0x2] ss:$9 sm:$0xff] %v934_v34  ;;  %v961_v34 = vperm.slane %v4045_v63, 5  ;;  %vm2233_vm5 = vcmp.eq.s32.totalorder %v3413_v44, %v4108_v59  ;;  %v977_v50 = vperm.slane %v4108_v59, 5  ;;  %v978_v16 = vperm.slane %v4108_v59, 6 }
 0x258   :  { %1477 = vst [vmem:[#allocation1 + $0x3] ss:$9 sm:$0xff] %v935_v47  ;;  %v963_v47 = vperm.slane %v4045_v63, 7  ;;  %v979_v7 = vperm.slane %v4108_v59, 7 }
 0x259   :  { %1478 = vst [vmem:[#allocation1 + $0x4] ss:$9 sm:$0xff] %v936_v11  ;;  %1868 = vperm.xlu1 %3080, %v3613_v45   ;;  %v962_v45 = vperm.slane %v4045_v63, 6  ;;  %v2983_v11 = vsel %vm2241_vm6, 1.0, %v3112_v55  ;;  %v974_v63 = vperm.slane %v4108_v59, 2 }
 0x25a   :  { %1479 = vst [vmem:[#allocation1 + $0x5] ss:$9 sm:$0xff] %v937_v35  ;;  %3047 = vmatmul.msk.f32.gmra.mxu3 %vm555_vm1, %v2983_v11  ;;  %v964_v35 = vperm.slane %v4077_v46, 0 }
 0x25b   :  { %1480 = vst [vmem:[#allocation1 + $0x6] ss:$9 sm:$0xff] %v938_v3  ;;  %v965_v3 = vperm.slane %v4077_v46, 1 }
 0x25c   :  { %1481 = vst [vmem:[#allocation1 + $0x7] ss:$9 sm:$0xff] %v939_v37 }
 0x25d   :  { %2811 = vst.msk [vmem:[%s5018_s3 + $0x68] sm:$0xff] %vm82_vm0, %v2645_v49 }
 0x25e   :  { %1874 = vperm.xlu2 %3081, %v3661_v26   ;;  %v2975_v26 = vsel %vm2233_vm5, 1.0, %v3112_v55  ;;  %v4135_v13 = vpop.xlane.xlu1 %668 }
 0x25f   :  { %3039 = vmatmul.msk.f32.gmra.mxu1 %vm555_vm1, %v2975_v26  ;;  %vm2242_vm8 = vcmp.eq.s32.totalorder %v3413_v44, %v4135_v13 }
 0x261   :  { %1877 = vperm.xlu1 %3080, %v3686_v57   ;;  %v966_v57 = vperm.slane %v4077_v46, 2 }
 0x263   :  { %v4039_v39 = vld [vmem:[#allocation1] sm:$0xff] }
 0x264   :  { %1483 = vst [vmem:[#allocation1] ss:$9 sm:$0xff] %v940_v29  ;;  %v971_v29 = vperm.slane %v4077_v46, 7 }
 0x265   :  { %1484 = vst [vmem:[#allocation1 + $0x1] ss:$9 sm:$0xff] %v941_v43  ;;  %v2976_v43 = vsel %vm2234_vm7, 1.0, %v3112_v55 }
 0x266   :  { %1485 = vst [vmem:[#allocation1 + $0x2] ss:$9 sm:$0xff] %v942_v33  ;;  %1883 = vperm.xlu2 %3081, %v3743_v0   ;;  %v968_v0 = vperm.slane %v4077_v46, 4  ;;  %v2648_v33 = vpop.f32.mrf.mxu1 }
 0x267   :  { %1486 = vst [vmem:[#allocation1 + $0x3] ss:$9 sm:$0xff] %v943_v22  ;;  %3040 = vmatmul.msk.f32.gmra.mxu1 %vm555_vm1, %v2976_v43  ;;  %v972_v22 = vperm.slane %v4108_v59, 0 }
 0x268   :  { %1487 = vst [vmem:[#allocation1 + $0x4] ss:$9 sm:$0xff] %v944_v53  ;;  %v973_v53 = vperm.slane %v4108_v59, 1 }
 0x269   :  { %1488 = vst [vmem:[#allocation1 + $0x5] ss:$9 sm:$0xff] %v945_v48  ;;  %1886 = vperm.xlu1 %3080, %v3773_v21   ;;  %v970_v21 = vperm.slane %v4077_v46, 6  ;;  %v983_v46 = vperm.slane %v4137_v15, 3 }
 0x26a   :  { %1489 = vst [vmem:[#allocation1 + $0x6] ss:$9 sm:$0xff] %v946_v27  ;;  %v975_v27 = vperm.slane %v4108_v59, 3 }
 0x26b   :  { %1490 = vst [vmem:[#allocation1 + $0x7] ss:$9 sm:$0xff] %v947_v24  ;;  %v648_v24 = vpop.xlane.xlu0 %647 }
 0x26c   :  { %2812 = vst.msk [vmem:[%s5018_s3 + $0x70] sm:$0xff] %vm82_vm0, %v2648_v33  ;;  %vm2235_vm9 = vcmp.eq.s32.totalorder %v3413_v44, %v648_v24  ;;  %v988_v1 = vperm.slane %v648_v24, 0  ;;  %v989_v32 = vperm.slane %v648_v24, 1  ;;  %v990_v6 = vperm.slane %v648_v24, 2 }
 0x26d   :  { %v1009_v33 = vperm.slane %v4028_v23, 5 }
 0x26e   :  { %1892 = vperm.xlu2 %3081, %v3839_v14   ;;  %v2984_v14 = vsel %vm2242_vm8, 1.0, %v3112_v55 }
 0x26f   :  { %3048 = vmatmul.msk.f32.gmra.mxu3 %vm555_vm1, %v2984_v14  ;;  %v1008_v14 = vperm.slane %v4028_v23, 4 }
 0x271   :  { %1895 = vperm.xlu1 %3080, %v3872_v51   ;;  %v976_v51 = vperm.slane %v4108_v59, 4  ;;  %v651_v59 = vpop.xlane.xlu1 %650 }
 0x272   :  { %v4071_v25 = vld [vmem:[#allocation1] sm:$0xff]  ;;  %v999_v11 = vperm.slane %v651_v59, 3  ;;  %v1000_v49 = vperm.slane %v651_v59, 4  ;;  %vm2236_vm11 = vcmp.eq.s32.totalorder %v3413_v44, %v651_v59 }
 0x273   :  { %1492 = vst [vmem:[#allocation1] ss:$9 sm:$0xff] %v948_v54 }
 0x274   :  { %1493 = vst [vmem:[#allocation1 + $0x1] ss:$9 sm:$0xff] %v949_v4  ;;  %v980_v4 = vperm.slane %v4137_v15, 0 }
 0x275   :  { %1494 = vst [vmem:[#allocation1 + $0x2] ss:$9 sm:$0xff] %v950_v2  ;;  %v981_v2 = vperm.slane %v4137_v15, 1 }
 0x276   :  { %1495 = vst [vmem:[#allocation1 + $0x3] ss:$9 sm:$0xff] %v951_v30  ;;  %1901 = vperm.xlu2 %3081, %v3932_v41   ;;  %v4165_v41 = vpop.xlane.xlu2 %671  ;;  %v982_v30 = vperm.slane %v4137_v15, 2 }
 0x277   :  { %1496 = vst [vmem:[#allocation1 + $0x4] ss:$9 sm:$0xff] %v952_v19  ;;  %vm2243_vm10 = vcmp.eq.s32.totalorder %v3413_v44, %v4165_v41 }
 0x278   :  { %1497 = vst [vmem:[#allocation1 + $0x5] ss:$9 sm:$0xff] %v953_v56  ;;  %v2985_v54 = vsel %vm2243_vm10, 1.0, %v3112_v55  ;;  %v984_v56 = vperm.slane %v4137_v15, 4 }
 0x279   :  { %1498 = vst [vmem:[#allocation1 + $0x6] ss:$9 sm:$0xff] %v954_v17  ;;  %1904 = vperm.xlu1 %3080, %v3960_v20   ;;  %v2977_v20 = vsel %vm2235_vm9, 1.0, %v3112_v55  ;;  %3049 = vmatmul.msk.f32.gmra.mxu3 %vm555_vm1, %v2985_v54  ;;  %v986_v17 = vperm.slane %v4137_v15, 6  ;;  %v1018_v54 = vperm.slane %v4013_v61, 6 }
 0x27a   :  { %1499 = vst [vmem:[#allocation1 + $0x7] ss:$9 sm:$0xff] %v955_v38  ;;  %3041 = vmatmul.msk.f32.gmra.mxu1 %vm555_vm1, %v2977_v20  ;;  %v987_v38 = vperm.slane %v4137_v15, 7  ;;  %v1017_v20 = vperm.slane %v4013_v61, 5 }
 0x27e   :  { %1910 = vperm.xlu2 %3081, %v4009_v58   ;;  %v2651_v58 = vpop.f32.mrf.mxu1 }
 0x27f   :  { %2813 = vst.msk [vmem:[%s5018_s3 + $0x78] sm:$0xff] %vm82_vm0, %v2651_v58  ;;  %v1019_v58 = vperm.slane %v4013_v61, 7 }
 0x281   :  { %v4101_v9 = vld [vmem:[#allocation1] sm:$0xff]  ;;  %1913 = vperm.xlu1 %3080, %v4039_v39   ;;  %v985_v39 = vperm.slane %v4137_v15, 5 }
 0x282   :  { %1501 = vst [vmem:[#allocation1] ss:$9 sm:$0xff] %v956_v8 }
 0x283   :  { %1502 = vst [vmem:[#allocation1 + $0x1] ss:$9 sm:$0xff] %v957_v60  ;;  %v991_v60 = vperm.slane %v648_v24, 3 }
 0x284   :  { %1503 = vst [vmem:[#allocation1 + $0x2] ss:$9 sm:$0xff] %v958_v5  ;;  %v992_v5 = vperm.slane %v648_v24, 4 }
 0x285   :  { %1504 = vst [vmem:[#allocation1 + $0x3] ss:$9 sm:$0xff] %v959_v36  ;;  %v994_v36 = vperm.slane %v648_v24, 6 }
 0x286   :  { %1505 = vst [vmem:[#allocation1 + $0x4] ss:$9 sm:$0xff] %v960_v18  ;;  %1919 = vperm.xlu2 %3081, %v4101_v9   ;;  %v993_v9 = vperm.slane %v648_v24, 5  ;;  %v995_v18 = vperm.slane %v648_v24, 7  ;;  %v1013_v24 = vperm.slane %v4013_v61, 1 }
 0x287   :  { %1506 = vst [vmem:[#allocation1 + $0x5] ss:$9 sm:$0xff] %v961_v34  ;;  %v996_v34 = vperm.slane %v651_v59, 0 }
 0x288   :  { %1507 = vst [vmem:[#allocation1 + $0x6] ss:$9 sm:$0xff] %v962_v45  ;;  %v997_v45 = vperm.slane %v651_v59, 1 }
 0x289   :  { %1508 = vst [vmem:[#allocation1 + $0x7] ss:$9 sm:$0xff] %v963_v47  ;;  %v998_v47 = vperm.slane %v651_v59, 2 }
 0x290   :  { %v4131_v37 = vld [vmem:[#allocation1] sm:$0xff] }
 0x291   :  { %1510 = vst [vmem:[#allocation1] ss:$9 sm:$0xff] %v964_v35  ;;  %1922 = vperm.xlu1 %3080, %v4131_v37   ;;  %v1001_v35 = vperm.slane %v651_v59, 5  ;;  %v4195_v37 = vpop.xlane.xlu0 %674 }
 0x292   :  { %1511 = vst [vmem:[#allocation1 + $0x1] ss:$9 sm:$0xff] %v965_v3  ;;  %v1002_v3 = vperm.slane %v651_v59, 6  ;;  %vm2244_vm12 = vcmp.eq.s32.totalorder %v3413_v44, %v4195_v37 }
 0x293   :  { %1512 = vst [vmem:[#allocation1 + $0x2] ss:$9 sm:$0xff] %v966_v57  ;;  %v1003_v57 = vperm.slane %v651_v59, 7  ;;  %v2986_v43 = vsel %vm2244_vm12, 1.0, %v3112_v55  ;;  %v1034_v59 = vperm.slane %v4075_v42, 6  ;;  %vm5022_vm12 = vcmask 130112  }
 0x294   :  { %1513 = vst [vmem:[#allocation1 + $0x3] ss:$9 sm:$0xff] %v967_v10  ;;  %v1004_v10 = vperm.slane %v4028_v23, 0  ;;  %3050 = vmatmul.msk.f32.gmra.mxu3 %vm555_vm1, %v2986_v43 }
 0x295   :  { %1514 = vst [vmem:[#allocation1 + $0x4] ss:$9 sm:$0xff] %v968_v0  ;;  %v1005_v0 = vperm.slane %v4028_v23, 1 }
 0x296   :  { %1515 = vst [vmem:[#allocation1 + $0x5] ss:$9 sm:$0xff] %v969_v28  ;;  %v1006_v28 = vperm.slane %v4028_v23, 2 }
 0x297   :  { %1516 = vst [vmem:[#allocation1 + $0x6] ss:$9 sm:$0xff] %v970_v21  ;;  %v1007_v21 = vperm.slane %v4028_v23, 3 }
 0x298   :  { %1517 = vst [vmem:[#allocation1 + $0x7] ss:$9 sm:$0xff] %v971_v29  ;;  %v2978_v29 = vsel %vm2236_vm11, 1.0, %v3112_v55 }
 0x299   :  { %3042 = vmatmul.msk.f32.gmra.mxu1 %vm555_vm1, %v2978_v29  ;;  %v3085_v29 = vld [vmem:[%s5017_s2] ss:$0 sm:$0xff] }
 0x29f   :  { %v4160_v48 = vld [vmem:[#allocation1] sm:$0xff] }
 0x2a0   :  { %1519 = vst [vmem:[#allocation1] ss:$9 sm:$0xff] %v972_v22  ;;  %v1010_v22 = vperm.slane %v4028_v23, 6 }
 0x2a1   :  { %1520 = vst [vmem:[#allocation1 + $0x1] ss:$9 sm:$0xff] %v973_v53  ;;  %v1011_v53 = vperm.slane %v4028_v23, 7  ;;  %v1015_v23 = vperm.slane %v4013_v61, 3 }
 0x2a2   :  { %1521 = vst [vmem:[#allocation1 + $0x2] ss:$9 sm:$0xff] %v974_v63  ;;  %v2654_v63 = vpop.f32.mrf.mxu1 }
 0x2a3   :  { %1522 = vst [vmem:[#allocation1 + $0x3] ss:$9 sm:$0xff] %v975_v27  ;;  %v2979_v27 = vsel %vm2237_vm13, 1.0, %v3112_v55  ;;  %vm2044_vm13 = vcmask 195712  }
 0x2a4   :  { %1523 = vst [vmem:[#allocation1 + $0x4] ss:$9 sm:$0xff] %v976_v51  ;;  %3043 = vmatmul.msk.f32.gmra.mxu1 %vm555_vm1, %v2979_v27  ;;  %v1012_v51 = vperm.slane %v4013_v61, 0  ;;  %v1046_v27 = vperm.slane %v4135_v13, 2 }
 0x2a5   :  { %1524 = vst [vmem:[#allocation1 + $0x5] ss:$9 sm:$0xff] %v977_v50 }
 0x2a6   :  { %1525 = vst [vmem:[#allocation1 + $0x6] ss:$9 sm:$0xff] %v978_v16  ;;  %v1014_v16 = vperm.slane %v4013_v61, 2 }
 0x2a7   :  { %1526 = vst [vmem:[#allocation1 + $0x7] ss:$9 sm:$0xff] %v979_v7  ;;  %v1016_v7 = vperm.slane %v4013_v61, 4  ;;  %v1025_v61 = vperm.slane %v4043_v62, 5 }
 0x2a8   :  { %2814 = vst.msk [vmem:[%s5018_s3 + $0x80] sm:$0xff] %vm82_vm0, %v2654_v63 }
 0x2ae   :  { %v1527_v19 = vld [vmem:[#allocation1] sm:$0xff] }
 0x2af   :  { %1528 = vst [vmem:[#allocation1] ss:$9 sm:$0xff] %v980_v4  ;;  %1928 = vperm.xlu2 %3081, %v1527_v19   ;;  %v1020_v4 = vperm.slane %v4043_v62, 0  ;;  %v1022_v19 = vperm.slane %v4043_v62, 2 }
 0x2b0   :  { %1529 = vst [vmem:[#allocation1 + $0x1] ss:$9 sm:$0xff] %v981_v2  ;;  %v1021_v2 = vperm.slane %v4043_v62, 1 }
 0x2b1   :  { %1530 = vst [vmem:[#allocation1 + $0x2] ss:$9 sm:$0xff] %v982_v30 }
 0x2b2   :  { %1531 = vst [vmem:[#allocation1 + $0x3] ss:$9 sm:$0xff] %v983_v46  ;;  %v1023_v46 = vperm.slane %v4043_v62, 3 }
 0x2b3   :  { %1532 = vst [vmem:[#allocation1 + $0x4] ss:$9 sm:$0xff] %v984_v56  ;;  %v1024_v56 = vperm.slane %v4043_v62, 4 }
 0x2b4   :  { %1533 = vst [vmem:[#allocation1 + $0x5] ss:$9 sm:$0xff] %v985_v39  ;;  %v4236_v39 = vpop.xlane.xlu1 %677 }
 0x2b5   :  { %1534 = vst [vmem:[#allocation1 + $0x6] ss:$9 sm:$0xff] %v986_v17  ;;  %v1026_v17 = vperm.slane %v4043_v62, 6  ;;  %vm2245_vm14 = vcmp.eq.s32.totalorder %v3413_v44, %v4236_v39 }
 0x2b6   :  { %1535 = vst [vmem:[#allocation1 + $0x7] ss:$9 sm:$0xff] %v987_v38  ;;  %v1027_v38 = vperm.slane %v4043_v62, 7 }
 0x2bd   :  { %v1536_v8 = vld [vmem:[#allocation1] sm:$0xff] }
 0x2be   :  { %1537 = vst [vmem:[#allocation1] ss:$9 sm:$0xff] %v988_v1  ;;  %1931 = vperm.xlu1 %3080, %v1536_v8   ;;  %v2987_v1 = vsel %vm2245_vm14, 1.0, %v3112_v55  ;;  %v1029_v8 = vperm.slane %v4075_v42, 1  ;;  %vm2048_vm14 = vcmask 261312  }
 0x2bf   :  { %1538 = vst [vmem:[#allocation1 + $0x1] ss:$9 sm:$0xff] %v989_v32  ;;  %3051 = vmatmul.msk.f32.gmra.mxu3 %vm555_vm1, %v2987_v1  ;;  %v4244_v32 = vpop.xlane.xlu2 %680  ;;  %v1061_v1 = vperm.slane %v4195_v37, 1 }
 0x2c0   :  { %1539 = vst [vmem:[#allocation1 + $0x2] ss:$9 sm:$0xff] %v990_v6  ;;  %vm2246_vm15 = vcmp.eq.s32.totalorder %v3413_v44, %v4244_v32  ;;  %v1028_v6 = vperm.slane %v4075_v42, 0 }
 0x2c1   :  { %1540 = vst [vmem:[#allocation1 + $0x3] ss:$9 sm:$0xff] %v991_v60  ;;  %v1030_v60 = vperm.slane %v4075_v42, 2 }
 0x2c2   :  { %1541 = vst [vmem:[#allocation1 + $0x4] ss:$9 sm:$0xff] %v992_v5  ;;  %v2988_v5 = vsel %vm2246_vm15, 1.0, %v3112_v55 }
 0x2c3   :  { %1542 = vst [vmem:[#allocation1 + $0x5] ss:$9 sm:$0xff] %v993_v9  ;;  %v1031_v9 = vperm.slane %v4075_v42, 3 }
 0x2c4   :  { %1543 = vst [vmem:[#allocation1 + $0x6] ss:$9 sm:$0xff] %v994_v36  ;;  %v1032_v36 = vperm.slane %v4075_v42, 4 }
 0x2c5   :  { %1544 = vst [vmem:[#allocation1 + $0x7] ss:$9 sm:$0xff] %v995_v18  ;;  %v1033_v18 = vperm.slane %v4075_v42, 5 }
 0x2c7   :  { %3052 = vmatmul.msk.f32.gmra.mxu3 %vm555_vm1, %v2988_v5  ;;  %v1066_v5 = vperm.slane %v4195_v37, 6 }
 0x2cc   :  { %v4193_v26 = vld [vmem:[#allocation1] sm:$0xff] }
 0x2cd   :  { %1546 = vst [vmem:[#allocation1] ss:$9 sm:$0xff] %v996_v34  ;;  %v1035_v34 = vperm.slane %v4075_v42, 7  ;;  %v1039_v42 = vperm.slane %v4106_v31, 3 }
 0x2ce   :  { %1547 = vst [vmem:[#allocation1 + $0x1] ss:$9 sm:$0xff] %v997_v45  ;;  %v2657_v45 = vpop.f32.mrf.mxu1 }
 0x2cf   :  { %1548 = vst [vmem:[#allocation1 + $0x2] ss:$9 sm:$0xff] %v998_v47  ;;  %v1036_v47 = vperm.slane %v4106_v31, 0 }
 0x2d0   :  { %1549 = vst [vmem:[#allocation1 + $0x3] ss:$9 sm:$0xff] %v999_v11  ;;  %v1037_v11 = vperm.slane %v4106_v31, 1 }
 0x2d1   :  { %1550 = vst [vmem:[#allocation1 + $0x4] ss:$9 sm:$0xff] %v1000_v49 }
 0x2d2   :  { %1551 = vst [vmem:[#allocation1 + $0x5] ss:$9 sm:$0xff] %v1001_v35  ;;  %v1038_v35 = vperm.slane %v4106_v31, 2 }
 0x2d3   :  { %1552 = vst [vmem:[#allocation1 + $0x6] ss:$9 sm:$0xff] %v1002_v3  ;;  %v1040_v3 = vperm.slane %v4106_v31, 4 }
 0x2d4   :  { %1553 = vst [vmem:[#allocation1 + $0x7] ss:$9 sm:$0xff] %v1003_v57  ;;  %v1041_v57 = vperm.slane %v4106_v31, 5 }
 0x2d5   :  { %2815 = vst.msk [vmem:[%s5018_s3 + $0x88] sm:$0xff] %vm82_vm0, %v2657_v45  ;;  %v1071_v45 = vperm.slane %v4236_v39, 3 }
 0x2db   :  { %v1554_v15 = vld [vmem:[#allocation1] sm:$0xff] }
 0x2dc   :  { %1555 = vst [vmem:[#allocation1] ss:$9 sm:$0xff] %v1004_v10  ;;  %1937 = vperm.xlu2 %3081, %v1554_v15   ;;  %v1042_v10 = vperm.slane %v4106_v31, 6  ;;  %v4270_v15 = vpop.xlane.xlu0 %683 }
 0x2dd   :  { %1556 = vst [vmem:[#allocation1 + $0x1] ss:$9 sm:$0xff] %v1005_v0  ;;  %v1043_v0 = vperm.slane %v4106_v31, 7  ;;  %vm2247_vm2 = vcmp.eq.s32.totalorder %v3413_v44, %v4270_v15  ;;  %v1044_v31 = vperm.slane %v4135_v13, 0 }
 0x2de   :  { %1557 = vst [vmem:[#allocation1 + $0x2] ss:$9 sm:$0xff] %v1006_v28  ;;  %v2989_v28 = vsel %vm2247_vm2, 1.0, %v3112_v55  ;;  %vm2052_vm2 = vcmask 326912  }
 0x2df   :  { %1558 = vst [vmem:[#allocation1 + $0x3] ss:$9 sm:$0xff] %v1007_v21  ;;  %3053 = vmatmul.msk.f32.gmra.mxu3 %vm555_vm1, %v2989_v28  ;;  %v484_v21 = vpop.f32.mrf.mxu2  ;;  %v1080_v28 = vperm.slane %v4244_v32, 4 }
 0x2e0   :  { %1559 = vst [vmem:[#allocation1 + $0x4] ss:$9 sm:$0xff] %v1008_v14  ;;  %v554_v43 = vsub.f32 %v3085_v29, %v484_v21  ;;  %v2660_v14 = vpop.f32.mrf.mxu1  ;;  %v1081_v21 = vperm.slane %v4244_v32, 5  ;;  %v1082_v29 = vperm.slane %v4244_v32, 6 }
 0x2e1   :  { %1560 = vst [vmem:[#allocation1 + $0x5] ss:$9 sm:$0xff] %v1009_v33  ;;  %v4280_v33 = vpop.xlane.xlu1 %686 }
 0x2e2   :  { %1561 = vst [vmem:[#allocation1 + $0x6] ss:$9 sm:$0xff] %v1010_v22  ;;  %v1045_v22 = vperm.slane %v4135_v13, 1  ;;  %v745_v63 = vsel %vm555_vm1, %v554_v43, inf  ;;  %vm2248_vm3 = vcmp.eq.s32.totalorder %v3413_v44, %v4280_v33  ;;  %v1083_v43 = vperm.slane %v4244_v32, 7 }
 0x2e3   :  { %1562 = vst [vmem:[#allocation1 + $0x7] ss:$9 sm:$0xff] %v1011_v53  ;;  %746 = vmin.index.xlane.f32.xlu0 %v745_v63  ;;  %v1085_v63 = vperm.slane %v4270_v15, 1 }
 0x2e4   :  { %2816 = vst.msk [vmem:[%s5018_s3 + $0x90] sm:$0xff] %vm82_vm0, %v2660_v14 }
 0x2e9   :  { %v4369_v14 = vpop.xlane.xlu1 %695 }
 0x2ea   :  { %v1563_v50 = vld [vmem:[#allocation1] sm:$0xff]  ;;  %vm2251_vm6 = vcmp.eq.s32.totalorder %v3413_v44, %v4369_v14 }
 0x2eb   :  { %1564 = vst [vmem:[#allocation1] ss:$9 sm:$0xff] %v1012_v51  ;;  %1940 = vperm.xlu1 %3080, %v1563_v50   ;;  %v1047_v51 = vperm.slane %v4135_v13, 3  ;;  %v2990_v50 = vsel %vm2248_vm3, 1.0, %v3112_v55  ;;  %vm2056_vm3 = vcmask 392512  }
 0x2ec   :  { %1565 = vst [vmem:[#allocation1 + $0x1] ss:$9 sm:$0xff] %v1013_v24  ;;  %v1048_v24 = vperm.slane %v4135_v13, 4  ;;  %3054 = vmatmul.msk.f32.gmra.mxu3 %vm555_vm1, %v2990_v50  ;;  %v1089_v50 = vperm.slane %v4270_v15, 5 }
 0x2ed   :  { %1566 = vst [vmem:[#allocation1 + $0x2] ss:$9 sm:$0xff] %v1014_v16  ;;  %v1049_v16 = vperm.slane %v4135_v13, 5 }
 0x2ee   :  { %1567 = vst [vmem:[#allocation1 + $0x3] ss:$9 sm:$0xff] %v1015_v23  ;;  %v1050_v23 = vperm.slane %v4135_v13, 6 }
 0x2ef   :  { %1568 = vst [vmem:[#allocation1 + $0x4] ss:$9 sm:$0xff] %v1016_v7  ;;  %v1051_v7 = vperm.slane %v4135_v13, 7  ;;  %v1055_v13 = vperm.slane %v4165_v41, 3 }
 0x2f0   :  { %1569 = vst [vmem:[#allocation1 + $0x5] ss:$9 sm:$0xff] %v1017_v20  ;;  %v2663_v20 = vpop.f32.mrf.mxu1 }
 0x2f1   :  { %1570 = vst [vmem:[#allocation1 + $0x6] ss:$9 sm:$0xff] %v1018_v54  ;;  %v1052_v54 = vperm.slane %v4165_v41, 0 }
 0x2f2   :  { %1571 = vst [vmem:[#allocation1 + $0x7] ss:$9 sm:$0xff] %v1019_v58  ;;  %v1053_v58 = vperm.slane %v4165_v41, 1 }
 0x2f3   :  { %2817 = vst.msk [vmem:[%s5018_s3 + $0x98] sm:$0xff] %vm82_vm0, %v2663_v20  ;;  %v4383_v20 = vpop.xlane.xlu1 %704 }
 0x2f4   :  { %vm2254_vm9 = vcmp.eq.s32.totalorder %v3413_v44, %v4383_v20 }
 0x2f7   :  { %1898 = vperm.xlu0 %3082, %v3903_v12   ;;  %v1063_v12 = vperm.slane %v4195_v37, 3 }
 0x2f9   :  { %v4230_v30 = vld [vmem:[#allocation1] sm:$0xff] }
 0x2fa   :  { %1573 = vst [vmem:[#allocation1] ss:$9 sm:$0xff] %v1020_v4 }
 0x2fb   :  { %1574 = vst [vmem:[#allocation1 + $0x1] ss:$9 sm:$0xff] %v1021_v2  ;;  %v1054_v2 = vperm.slane %v4165_v41, 2 }
 0x2fc   :  { %1575 = vst [vmem:[#allocation1 + $0x2] ss:$9 sm:$0xff] %v1022_v19  ;;  %v1056_v19 = vperm.slane %v4165_v41, 4 }
 0x2fd   :  { %1576 = vst [vmem:[#allocation1 + $0x3] ss:$9 sm:$0xff] %v1023_v46  ;;  %v1057_v46 = vperm.slane %v4165_v41, 5 }
 0x2fe   :  { %1577 = vst [vmem:[#allocation1 + $0x4] ss:$9 sm:$0xff] %v1024_v56  ;;  %v1058_v56 = vperm.slane %v4165_v41, 6 }
 0x2ff   :  { %1578 = vst [vmem:[#allocation1 + $0x5] ss:$9 sm:$0xff] %v1025_v61  ;;  %v1059_v61 = vperm.slane %v4165_v41, 7  ;;  %1907 = vperm.xlu0 %3082, %v3987_v52   ;;  %v1065_v52 = vperm.slane %v4195_v37, 5 }
 0x300   :  { %1579 = vst [vmem:[#allocation1 + $0x6] ss:$9 sm:$0xff] %v1026_v17  ;;  %v2666_v17 = vpop.f32.mrf.mxu1 }
 0x301   :  { %1580 = vst [vmem:[#allocation1 + $0x7] ss:$9 sm:$0xff] %v1027_v38  ;;  %v1060_v38 = vperm.slane %v4195_v37, 0 }
 0x302   :  { %2818 = vst.msk [vmem:[%s5018_s3 + $0xa0] sm:$0xff] %vm82_vm0, %v2666_v17 }
 0x307   :  { %1916 = vperm.xlu0 %3082, %v4071_v25   ;;  %v1073_v25 = vperm.slane %v4236_v39, 5 }
 0x308   :  { %v1581_v62 = vld [vmem:[#allocation1] sm:$0xff] }
 0x309   :  { %1582 = vst [vmem:[#allocation1] ss:$9 sm:$0xff] %v1028_v6  ;;  %1946 = vperm.xlu2 %3081, %v1581_v62   ;;  %v4320_v6 = vpop.xlane.xlu2 %689 }
 0x30a   :  { %1583 = vst [vmem:[#allocation1 + $0x1] ss:$9 sm:$0xff] %v1029_v8  ;;  %v1062_v8 = vperm.slane %v4195_v37, 2  ;;  %vm2249_vm4 = vcmp.eq.s32.totalorder %v3413_v44, %v4320_v6 }
 0x30b   :  { %1584 = vst [vmem:[#allocation1 + $0x2] ss:$9 sm:$0xff] %v1030_v60  ;;  %v2991_v62 = vsel %vm2249_vm4, 1.0, %v3112_v55  ;;  %v1064_v60 = vperm.slane %v4195_v37, 4 }
 0x30c   :  { %1585 = vst [vmem:[#allocation1 + $0x3] ss:$9 sm:$0xff] %v1031_v9  ;;  %3055 = vmatmul.msk.f32.gmra.mxu3 %vm555_vm1, %v2991_v62  ;;  %v1067_v9 = vperm.slane %v4195_v37, 7  ;;  %v1072_v37 = vperm.slane %v4236_v39, 4 }
 0x30d   :  { %1586 = vst [vmem:[#allocation1 + $0x4] ss:$9 sm:$0xff] %v1032_v36  ;;  %v1068_v36 = vperm.slane %v4236_v39, 0 }
 0x30e   :  { %1587 = vst [vmem:[#allocation1 + $0x5] ss:$9 sm:$0xff] %v1033_v18 }
 0x30f   :  { %1588 = vst [vmem:[#allocation1 + $0x6] ss:$9 sm:$0xff] %v1034_v59  ;;  %v1069_v59 = vperm.slane %v4236_v39, 1  ;;  %1925 = vperm.xlu0 %3082, %v4160_v48   ;;  %v2669_v48 = vpop.f32.mrf.mxu1 }
 0x310   :  { %1589 = vst [vmem:[#allocation1 + $0x7] ss:$9 sm:$0xff] %v1035_v34  ;;  %v1070_v34 = vperm.slane %v4236_v39, 2 }
 0x311   :  { %2819 = vst.msk [vmem:[%s5018_s3 + $0xa8] sm:$0xff] %vm82_vm0, %v2669_v48 }
 0x317   :  { %v1590_v49 = vld [vmem:[#allocation1] sm:$0xff]  ;;  %1934 = vperm.xlu0 %3082, %v4193_v26  }
 0x318   :  { %1591 = vst [vmem:[#allocation1] ss:$9 sm:$0xff] %v1036_v47  ;;  %1949 = vperm.xlu1 %3080, %v1590_v49   ;;  %v4339_v47 = vpop.xlane.xlu2 %698  ;;  %v1075_v49 = vperm.slane %v4236_v39, 7 }
 0x319   :  { %1592 = vst [vmem:[#allocation1 + $0x1] ss:$9 sm:$0xff] %v1037_v11  ;;  %v1074_v11 = vperm.slane %v4236_v39, 6  ;;  %vm2252_vm7 = vcmp.eq.s32.totalorder %v3413_v44, %v4339_v47 }
 0x31a   :  { %1593 = vst [vmem:[#allocation1 + $0x2] ss:$9 sm:$0xff] %v1038_v35  ;;  %v2994_v17 = vsel %vm2252_vm7, 1.0, %v3112_v55 }
 0x31b   :  { %1594 = vst [vmem:[#allocation1 + $0x3] ss:$9 sm:$0xff] %v1039_v42  ;;  %v1076_v42 = vperm.slane %v4244_v32, 0 }
 0x31c   :  { %1595 = vst [vmem:[#allocation1 + $0x4] ss:$9 sm:$0xff] %v1040_v3  ;;  %v4352_v3 = vpop.xlane.xlu0 %692 }
 0x31d   :  { %1596 = vst [vmem:[#allocation1 + $0x5] ss:$9 sm:$0xff] %v1041_v57  ;;  %v1077_v57 = vperm.slane %v4244_v32, 1  ;;  %vm2250_vm5 = vcmp.eq.s32.totalorder %v3413_v44, %v4352_v3 }
 0x31e   :  { %1597 = vst [vmem:[#allocation1 + $0x6] ss:$9 sm:$0xff] %v1042_v10  ;;  %v1078_v10 = vperm.slane %v4244_v32, 2  ;;  %v2992_v26 = vsel %vm2250_vm5, 1.0, %v3112_v55  ;;  %vm2060_vm5 = vcmask 458112  }
 0x31f   :  { %1598 = vst [vmem:[#allocation1 + $0x7] ss:$9 sm:$0xff] %v1043_v0  ;;  %1943 = vperm.xlu0 %3082, %v4230_v30   ;;  %v1079_v0 = vperm.slane %v4244_v32, 3  ;;  %3056 = vmatmul.msk.f32.gmra.mxu3 %vm555_vm1, %v2992_v26  ;;  %v1087_v32 = vperm.slane %v4270_v15, 3 }
 0x320   :  { %v4349_v35 = vpop.xlane.xlu2 %707 }
 0x321   :  { %vm2255_vm10 = vcmp.eq.s32.totalorder %v3413_v44, %v4349_v35 }
 0x326   :  { %v4287_v53 = vld [vmem:[#allocation1] sm:$0xff] }
 0x327   :  { %1600 = vst [vmem:[#allocation1] ss:$9 sm:$0xff] %v1044_v31  ;;  %1952 = vperm.xlu0 %3082, %v4287_v53   ;;  %v1084_v31 = vperm.slane %v4270_v15, 0 }
 0x328   :  { %1601 = vst [vmem:[#allocation1 + $0x1] ss:$9 sm:$0xff] %v1045_v22  ;;  %v4366_v30 = vpop.xlane.xlu2 %716 }
 0x329   :  { %1602 = vst [vmem:[#allocation1 + $0x2] ss:$9 sm:$0xff] %v1046_v27  ;;  %v4373_v27 = vpop.xlane.xlu0 %701  ;;  %vm2258_vm4 = vcmp.eq.s32.totalorder %v3413_v44, %v4366_v30 }
 0x32a   :  { %1603 = vst [vmem:[#allocation1 + $0x3] ss:$9 sm:$0xff] %v1047_v51  ;;  %v1086_v51 = vperm.slane %v4270_v15, 2  ;;  %vm2253_vm8 = vcmp.eq.s32.totalorder %v3413_v44, %v4373_v27 }
 0x32b   :  { %1604 = vst [vmem:[#allocation1 + $0x4] ss:$9 sm:$0xff] %v1048_v24  ;;  %v1088_v24 = vperm.slane %v4270_v15, 4 }
 0x32c   :  { %1605 = vst [vmem:[#allocation1 + $0x5] ss:$9 sm:$0xff] %v1049_v16  ;;  %v1090_v16 = vperm.slane %v4270_v15, 6 }
 0x32d   :  { %1606 = vst [vmem:[#allocation1 + $0x6] ss:$9 sm:$0xff] %v1050_v23  ;;  %v1091_v23 = vperm.slane %v4270_v15, 7 }
 0x32e   :  { %1607 = vst [vmem:[#allocation1 + $0x7] ss:$9 sm:$0xff] %v1051_v7  ;;  %v2672_v7 = vpop.f32.mrf.mxu1 }
 0x32f   :  { %2820 = vst.msk [vmem:[%s5018_s3 + $0xb0] sm:$0xff] %vm82_vm0, %v2672_v7 }
 0x330   :  { %v4378_v53 = vpop.xlane.xlu2 %725 }
 0x335   :  { %v1608_v4 = vld [vmem:[#allocation1] sm:$0xff] }
 0x336   :  { %1609 = vst [vmem:[#allocation1] ss:$9 sm:$0xff] %v1052_v54  ;;  %1955 = vperm.xlu2 %3081, %v1608_v4   ;;  %v4391_v54 = vpop.xlane.xlu0 %710  ;;  %v1092_v4 = vperm.slane %v4280_v33, 0  ;;  %v2675_v62 = vpop.f32.mrf.mxu1 }
 0x337   :  { %1610 = vst [vmem:[#allocation1 + $0x1] ss:$9 sm:$0xff] %v1053_v58  ;;  %v2993_v58 = vsel %vm2251_vm6, 1.0, %v3112_v55  ;;  %vm2256_vm11 = vcmp.eq.s32.totalorder %v3413_v44, %v4391_v54  ;;  %vm2064_vm6 = vcmask 523712  }
 0x338   :  { %1611 = vst [vmem:[#allocation1 + $0x2] ss:$9 sm:$0xff] %v1054_v2  ;;  %3057 = vmatmul.msk.f32.gmra.mxu3 %vm555_vm1, %v2993_v58  ;;  %v4395_v15 = vpop.xlane.xlu2 %734  ;;  %v2998_v7 = vsel %vm2256_vm11, 1.0, %v3112_v55  ;;  %v1115_v58 = vperm.slane %v4352_v3, 7 }
 0x339   :  { %1612 = vst [vmem:[#allocation1 + $0x3] ss:$9 sm:$0xff] %v1055_v13  ;;  %v1093_v13 = vperm.slane %v4280_v33, 1 }
 0x33a   :  { %1613 = vst [vmem:[#allocation1 + $0x4] ss:$9 sm:$0xff] %v1056_v19  ;;  %v1094_v19 = vperm.slane %v4280_v33, 2 }
 0x33b   :  { %1614 = vst [vmem:[#allocation1 + $0x5] ss:$9 sm:$0xff] %v1057_v46  ;;  %v1095_v46 = vperm.slane %v4280_v33, 3 }
 0x33c   :  { %1615 = vst [vmem:[#allocation1 + $0x6] ss:$9 sm:$0xff] %v1058_v56  ;;  %v4403_v56 = vpop.xlane.xlu1 %713 }
 0x33d   :  { %1616 = vst [vmem:[#allocation1 + $0x7] ss:$9 sm:$0xff] %v1059_v61  ;;  %v1096_v61 = vperm.slane %v4280_v33, 4  ;;  %vm2257_vm15 = vcmp.eq.s32.totalorder %v3413_v44, %v4403_v56 }
 0x33e   :  { %2821 = vst.msk [vmem:[%s5018_s3 + $0xb8] sm:$0xff] %vm82_vm0, %v2675_v62 }
 0x340   :  { %3058 = vmatmul.msk.f32.gmra.mxu3 %vm555_vm1, %v2994_v17 }
 0x344   :  { %v1617_v41 = vld [vmem:[#allocation1] sm:$0xff] }
 0x345   :  { %1618 = vst [vmem:[#allocation1] ss:$9 sm:$0xff] %v1060_v38  ;;  %1958 = vperm.xlu1 %3080, %v1617_v41   ;;  %v1097_v38 = vperm.slane %v4280_v33, 5  ;;  %v4410_v41 = vpop.xlane.xlu0 %719 }
 0x346   :  { %1619 = vst [vmem:[#allocation1 + $0x1] ss:$9 sm:$0xff] %v1061_v1  ;;  %v1098_v1 = vperm.slane %v4280_v33, 6  ;;  %vm2259_vm7 = vcmp.eq.s32.totalorder %v3413_v44, %v4410_v41 }
 0x347   :  { %1620 = vst [vmem:[#allocation1 + $0x2] ss:$9 sm:$0xff] %v1062_v8  ;;  %v1099_v8 = vperm.slane %v4280_v33, 7  ;;  %v1100_v33 = vperm.slane %v4320_v6, 0 }
 0x348   :  { %1621 = vst [vmem:[#allocation1 + $0x3] ss:$9 sm:$0xff] %v1063_v12  ;;  %v4413_v12 = vpop.xlane.xlu2 %743 }
 0x349   :  { %1622 = vst [vmem:[#allocation1 + $0x4] ss:$9 sm:$0xff] %v1064_v60  ;;  %v2995_v60 = vsel %vm2253_vm8, 1.0, %v3112_v55  ;;  %vm2068_vm8 = vcmask 589312  }
 0x34a   :  { %1623 = vst [vmem:[#allocation1 + $0x5] ss:$9 sm:$0xff] %v1065_v52  ;;  %v4422_v52 = vpop.xlane.xlu1 %722  ;;  %3059 = vmatmul.msk.f32.gmra.mxu3 %vm555_vm1, %v2995_v60  ;;  %v2999_v60 = vsel %vm2257_vm15, 1.0, %v3112_v55  ;;  %vm2080_vm15 = vcmask 786112  }
 0x34b   :  { %1624 = vst [vmem:[#allocation1 + $0x6] ss:$9 sm:$0xff] %v1066_v5  ;;  %v1101_v5 = vperm.slane %v4320_v6, 1  ;;  %vm2260_vm11 = vcmp.eq.s32.totalorder %v3413_v44, %v4422_v52 }
 0x34c   :  { %1625 = vst [vmem:[#allocation1 + $0x7] ss:$9 sm:$0xff] %v1067_v9 }
 0x352   :  { %v4437_v48 = vpop.xlane.xlu1 %731 }
 0x353   :  { %v1626_v18 = vld [vmem:[#allocation1] sm:$0xff] }
 0x354   :  { %1627 = vst [vmem:[#allocation1] ss:$9 sm:$0xff] %v1068_v36  ;;  %1961 = vperm.xlu0 %3082, %v1626_v18   ;;  %v4427_v36 = vpop.xlane.xlu0 %728  ;;  %v1102_v18 = vperm.slane %v4320_v6, 2 }
 0x355   :  { %1628 = vst [vmem:[#allocation1 + $0x1] ss:$9 sm:$0xff] %v1069_v59  ;;  %v1103_v59 = vperm.slane %v4320_v6, 3 }
 0x356   :  { %1629 = vst [vmem:[#allocation1 + $0x2] ss:$9 sm:$0xff] %v1070_v34  ;;  %v1104_v34 = vperm.slane %v4320_v6, 4 }
 0x357   :  { %1630 = vst [vmem:[#allocation1 + $0x3] ss:$9 sm:$0xff] %v1071_v45  ;;  %v1848_v45 = vpop.permute.xlu2 %1847 }
 0x358   :  { %1631 = vst [vmem:[#allocation1 + $0x4] ss:$9 sm:$0xff] %v1072_v37  ;;  %v1105_v37 = vperm.slane %v4320_v6, 5 }
 0x359   :  { %1632 = vst [vmem:[#allocation1 + $0x5] ss:$9 sm:$0xff] %v1073_v25  ;;  %v2678_v25 = vpop.f32.mrf.mxu1 }
 0x35a   :  { %1633 = vst [vmem:[#allocation1 + $0x6] ss:$9 sm:$0xff] %v1074_v11  ;;  %v2996_v11 = vsel %vm2254_vm9, 1.0, %v3112_v55  ;;  %vm2072_vm9 = vcmask 654912  }
 0x35b   :  { %1634 = vst [vmem:[#allocation1 + $0x7] ss:$9 sm:$0xff] %v1075_v49  ;;  %v1106_v49 = vperm.slane %v4320_v6, 6  ;;  %3060 = vmatmul.msk.f32.gmra.mxu3 %vm555_vm1, %v2996_v11  ;;  %v1120_v11 = vperm.slane %v4369_v14, 4 }
 0x35c   :  { %2822 = vst.msk [vmem:[%s5018_s3 + $0xc0] sm:$0xff] %vm82_vm0, %v2678_v25 }
 0x35f   :  { %v1854_v26 = vpop.permute.xlu2 %1853 }
 0x362   :  { %v1635_v39 = vld [vmem:[#allocation1] sm:$0xff] }
 0x363   :  { %1636 = vst [vmem:[#allocation1] ss:$9 sm:$0xff] %v1076_v42  ;;  %1964 = vperm.xlu2 %3081, %v1635_v39   ;;  %v1107_v42 = vperm.slane %v4320_v6, 7  ;;  %v2681_v39 = vpop.f32.mrf.mxu1  ;;  %v4454_v6 = vpop.xlane.xlu1 %740 }
 0x364   :  { %1637 = vst [vmem:[#allocation1 + $0x1] ss:$9 sm:$0xff] %v1077_v57  ;;  %v4447_v57 = vpop.xlane.xlu0 %737 }
 0x365   :  { %1638 = vst [vmem:[#allocation1 + $0x2] ss:$9 sm:$0xff] %v1078_v10  ;;  %v2997_v10 = vsel %vm2255_vm10, 1.0, %v3112_v55  ;;  %vm2076_vm10 = vcmask 720512  }
 0x366   :  { %1639 = vst [vmem:[#allocation1 + $0x3] ss:$9 sm:$0xff] %v1079_v0  ;;  %3061 = vmatmul.msk.f32.gmra.mxu3 %vm555_vm1, %v2997_v10  ;;  %v1108_v0 = vperm.slane %v4352_v3, 0 }
 0x367   :  { %1640 = vst [vmem:[#allocation1 + $0x4] ss:$9 sm:$0xff] %v1080_v28 }
 0x368   :  { %1641 = vst [vmem:[#allocation1 + $0x5] ss:$9 sm:$0xff] %v1081_v21  ;;  %v1109_v21 = vperm.slane %v4352_v3, 1 }
 0x369   :  { %1642 = vst [vmem:[#allocation1 + $0x6] ss:$9 sm:$0xff] %v1082_v29  ;;  %v1110_v29 = vperm.slane %v4352_v3, 2 }
 0x36a   :  { %1643 = vst [vmem:[#allocation1 + $0x7] ss:$9 sm:$0xff] %v1083_v43  ;;  %v1111_v43 = vperm.slane %v4352_v3, 3 }
 0x36b   :  { %2823 = vst.msk [vmem:[%s5018_s3 + $0xc8] sm:$0xff] %vm82_vm0, %v2681_v39  ;;  %v1121_v39 = vperm.slane %v4369_v14, 5 }
 0x36e   :  { %3062 = vmatmul.msk.f32.gmra.mxu3 %vm555_vm1, %v2998_v7 }
 0x371   :  { %v1644_v22 = vld [vmem:[#allocation1] sm:$0xff] }
 0x372   :  { %1645 = vst [vmem:[#allocation1] ss:$9 sm:$0xff] %v1084_v31  ;;  %1967 = vperm.xlu1 %3080, %v1644_v22   ;;  %v1112_v31 = vperm.slane %v4352_v3, 4  ;;  %v4465_v22 = vadd.s32 4294967288, %v3413_v44 }
 0x373   :  { %1646 = vst [vmem:[#allocation1 + $0x1] ss:$9 sm:$0xff] %v1085_v63  ;;  %v2705_v63 = vpop.f32.mrf.mxu3 }
 0x374   :  { %1647 = vst [vmem:[#allocation1 + $0x2] ss:$9 sm:$0xff] %v1086_v51  ;;  %v1113_v51 = vperm.slane %v4352_v3, 5 }
 0x375   :  { %1648 = vst [vmem:[#allocation1 + $0x3] ss:$9 sm:$0xff] %v1087_v32  ;;  %v4469_v32 = vadd.s32 4294967280, %v3413_v44 }
 0x376   :  { %1649 = vst [vmem:[#allocation1 + $0x4] ss:$9 sm:$0xff] %v1088_v24  ;;  %v1114_v24 = vperm.slane %v4352_v3, 6  ;;  %3063 = vmatmul.msk.f32.gmra.mxu3 %vm555_vm1, %v2999_v60  ;;  %v1127_v60 = vperm.slane %v4339_v47, 3 }
 0x377   :  { %1650 = vst [vmem:[#allocation1 + $0x5] ss:$9 sm:$0xff] %v1089_v50  ;;  %v4473_v50 = vadd.s32 4294967272, %v3413_v44 }
 0x378   :  { %1651 = vst [vmem:[#allocation1 + $0x6] ss:$9 sm:$0xff] %v1090_v16  ;;  %v1851_v16 = vpop.permute.xlu0 %1850 }
 0x379   :  { %1652 = vst [vmem:[#allocation1 + $0x7] ss:$9 sm:$0xff] %v1091_v23  ;;  %v2684_v23 = vpop.f32.mrf.mxu1 }
 0x37a   :  { %2831 = vst.msk [vmem:[%s5018_s3 + $0x108] sm:$0xff] %vm82_vm0, %v2705_v63 }
 0x37b   :  { %2824 = vst.msk [vmem:[%s5018_s3 + $0xd0] sm:$0xff] %vm82_vm0, %v2684_v23 }
 0x380   :  { %v1653_v2 = vld [vmem:[#allocation1] sm:$0xff]  ;;  %v1872_v23 = vpop.permute.xlu0 %1871 }
 0x381   :  { %1654 = vst [vmem:[#allocation1] ss:$9 sm:$0xff] %v1092_v4  ;;  %1970 = vperm.xlu0 %3082, %v1653_v2   ;;  %v1845_v4 = vpop.permute.xlu1 %1844  ;;  %v2039_v2 = vperm.slane %v1848_v45, %v4465_v22  ;;  %v2687_v62 = vpop.f32.mrf.mxu1 }
 0x382   :  { %1655 = vst [vmem:[#allocation1 + $0x1] ss:$9 sm:$0xff] %v1093_v13  ;;  %v2037_v13 = vperm.slane %v1845_v4, %v3413_v44  ;;  %v4552_v4 = vadd.s32 4294967232, %v3413_v44 }
 0x383   :  { %1656 = vst [vmem:[#allocation1 + $0x2] ss:$9 sm:$0xff] %v1094_v19  ;;  %v2043_v19 = vperm.slane %v1851_v16, %v4469_v32 }
 0x384   :  { %1657 = vst [vmem:[#allocation1 + $0x3] ss:$9 sm:$0xff] %v1095_v46  ;;  %v1860_v46 = vpop.permute.xlu2 %1859  ;;  %v2041_v3 = vsel %vm5022_vm12, %v2039_v2, %v2037_v13  ;;  %v1124_v2 = vperm.slane %v4339_v47, 0 }
 0x385   :  { %1658 = vst [vmem:[#allocation1 + $0x4] ss:$9 sm:$0xff] %v1096_v61  ;;  %v2047_v61 = vperm.slane %v1854_v26, %v4473_v50  ;;  %v2045_v17 = vsel %vm2044_vm13, %v2043_v19, %v2041_v3  ;;  %v3001_v19 = vsel %vm2259_vm7, 1.0, %v3112_v55  ;;  %v4558_v3 = vadd.s32 4294967224, %v3413_v44 }
 0x386   :  { %1659 = vst [vmem:[#allocation1 + $0x5] ss:$9 sm:$0xff] %v1097_v38  ;;  %v2708_v38 = vpop.f32.mrf.mxu3  ;;  %vm5020_vm7 = vcmask 917312  }
 0x387   :  { %1660 = vst [vmem:[#allocation1 + $0x6] ss:$9 sm:$0xff] %v1098_v1  ;;  %v2049_v1 = vsel %vm2048_vm14, %v2047_v61, %v2045_v17 }
 0x388   :  { %1661 = vst [vmem:[#allocation1 + $0x7] ss:$9 sm:$0xff] %v1099_v8  ;;  %v4500_v8 = vadd.s32 4294967256, %v3413_v44 }
 0x389   :  { %2832 = vst.msk [vmem:[%s5018_s3 + $0x110] sm:$0xff] %vm82_vm0, %v2708_v38  ;;  %v1126_v38 = vperm.slane %v4339_v47, 2 }
 0x38a   :  { %2825 = vst.msk [vmem:[%s5018_s3 + $0xd8] sm:$0xff] %vm82_vm0, %v2687_v62  ;;  %v2055_v25 = vperm.slane %v1860_v46, %v4500_v8  ;;  %v1125_v46 = vperm.slane %v4339_v47, 1 }
 0x38e   :  { %v2711_v10 = vpop.f32.mrf.mxu3 }
 0x38f   :  { %v1662_v9 = vld [vmem:[#allocation1] sm:$0xff]  ;;  %2833 = vst.msk [vmem:[%s5018_s3 + $0x118] sm:$0xff] %vm82_vm0, %v2711_v10 }
 0x390   :  { %1663 = vst [vmem:[#allocation1] ss:$9 sm:$0xff] %v1100_v33  ;;  %1973 = vperm.xlu2 %3081, %v1662_v9   ;;  %v1116_v33 = vperm.slane %v4369_v14, 0  ;;  %v1857_v9 = vpop.permute.xlu1 %1856 }
 0x391   :  { %1664 = vst [vmem:[#allocation1 + $0x1] ss:$9 sm:$0xff] %v1101_v5  ;;  %v4509_v5 = vadd.s32 4294967264, %v3413_v44 }
 0x392   :  { %1665 = vst [vmem:[#allocation1 + $0x2] ss:$9 sm:$0xff] %v1102_v18 }
 0x393   :  { %1666 = vst [vmem:[#allocation1 + $0x3] ss:$9 sm:$0xff] %v1103_v59  ;;  %v1117_v59 = vperm.slane %v4369_v14, 1  ;;  %v2051_v45 = vperm.slane %v1857_v9, %v4509_v5 }
 0x394   :  { %1667 = vst [vmem:[#allocation1 + $0x4] ss:$9 sm:$0xff] %v1104_v34  ;;  %v1118_v34 = vperm.slane %v4369_v14, 2 }
 0x395   :  { %1668 = vst [vmem:[#allocation1 + $0x5] ss:$9 sm:$0xff] %v1105_v37  ;;  %v1119_v37 = vperm.slane %v4369_v14, 3 }
 0x396   :  { %1669 = vst [vmem:[#allocation1 + $0x6] ss:$9 sm:$0xff] %v1106_v49  ;;  %v1866_v49 = vpop.permute.xlu2 %1865  ;;  %v2714_v7 = vpop.f32.mrf.mxu3 }
 0x397   :  { %1670 = vst [vmem:[#allocation1 + $0x7] ss:$9 sm:$0xff] %v1107_v42  ;;  %v2053_v42 = vsel %vm2052_vm2, %v2051_v45, %v2049_v1  ;;  %v4567_v1 = vadd.s32 4294967216, %v3413_v44  ;;  %v1131_v45 = vperm.slane %v4339_v47, 7 }
 0x398   :  { %v2057_v26 = vsel %vm2056_vm3, %v2055_v25, %v2053_v42  ;;  %v1863_v63 = vpop.permute.xlu1 %1862  ;;  %2834 = vst.msk [vmem:[%s5018_s3 + $0x120] sm:$0xff] %vm82_vm0, %v2714_v7  ;;  %v4583_v42 = vadd.s32 4294967208, %v3413_v44  ;;  %v1132_v7 = vperm.slane %v4373_v27, 0 }
 0x39e   :  { %v1671_v28 = vld [vmem:[#allocation1] sm:$0xff]  ;;  %v2717_v25 = vpop.f32.mrf.mxu3 }
 0x39f   :  { %1672 = vst [vmem:[#allocation1] ss:$9 sm:$0xff] %v1108_v0  ;;  %1976 = vperm.xlu1 %3080, %v1671_v28   ;;  %v1122_v0 = vperm.slane %v4369_v14, 6  ;;  %v4525_v28 = vadd.s32 4294967240, %v3413_v44 }
 0x3a0   :  { %1673 = vst [vmem:[#allocation1 + $0x1] ss:$9 sm:$0xff] %v1109_v21  ;;  %v4528_v21 = vadd.s32 4294967248, %v3413_v44  ;;  %v1869_v17 = vpop.permute.xlu1 %1868 }
 0x3a1   :  { %1674 = vst [vmem:[#allocation1 + $0x2] ss:$9 sm:$0xff] %v1110_v29  ;;  %v1123_v29 = vperm.slane %v4369_v14, 7  ;;  %v2067_v62 = vperm.slane %v1869_v17, %v4552_v4  ;;  %v4621_v17 = vadd.s32 4294967176, %v3413_v44 }
 0x3a2   :  { %1675 = vst [vmem:[#allocation1 + $0x3] ss:$9 sm:$0xff] %v1111_v43  ;;  %v2690_v43 = vpop.f32.mrf.mxu1 }
 0x3a3   :  { %1676 = vst [vmem:[#allocation1 + $0x4] ss:$9 sm:$0xff] %v1112_v31  ;;  %v3000_v31 = vsel %vm2258_vm4, 1.0, %v3112_v55  ;;  %vm5021_vm4 = vcmask 851712  }
 0x3a4   :  { %1677 = vst [vmem:[#allocation1 + $0x5] ss:$9 sm:$0xff] %v1113_v51  ;;  %3064 = vmatmul.msk.f32.gmra.mxu3 %vm555_vm1, %v3000_v31  ;;  %v2059_v51 = vperm.slane %v1863_v63, %v4528_v21 }
 0x3a5   :  { %1678 = vst [vmem:[#allocation1 + $0x6] ss:$9 sm:$0xff] %v1114_v24  ;;  %v2063_v24 = vperm.slane %v1866_v49, %v4525_v28 }
 0x3a6   :  { %1679 = vst [vmem:[#allocation1 + $0x7] ss:$9 sm:$0xff] %v1115_v58  ;;  %v2061_v14 = vsel %vm2060_vm5, %v2059_v51, %v2057_v26  ;;  %v1875_v58 = vpop.permute.xlu2 %1874 }
 0x3a7   :  { %2826 = vst.msk [vmem:[%s5018_s3 + $0xe0] sm:$0xff] %vm82_vm0, %v2690_v43  ;;  %v2065_v16 = vsel %vm2064_vm6, %v2063_v24, %v2061_v14 }
 0x3a8   :  { %v2069_v9 = vsel %vm2068_vm8, %v2067_v62, %v2065_v16  ;;  %v1878_v43 = vpop.permute.xlu1 %1877  ;;  %2835 = vst.msk [vmem:[%s5018_s3 + $0x128] sm:$0xff] %vm82_vm0, %v2717_v25  ;;  %v2720_v16 = vpop.f32.mrf.mxu3  ;;  %v1135_v62 = vperm.slane %v4373_v27, 3 }
 0x3a9   :  { %v2079_v31 = vperm.slane %v1878_v43, %v4583_v42  ;;  %2836 = vst.msk [vmem:[%s5018_s3 + $0x130] sm:$0xff] %vm82_vm0, %v2720_v16 }
 0x3aa   :  { %v2693_v13 = vpop.f32.mrf.mxu1 }
 0x3ab   :  { %2827 = vst.msk [vmem:[%s5018_s3 + $0xe8] sm:$0xff] %vm82_vm0, %v2693_v13 }
 0x3ac   :  { %3065 = vmatmul.msk.f32.gmra.mxu3 %vm555_vm1, %v3001_v19 }
 0x3ad   :  { %v1680_v18 = vld [vmem:[#allocation1] sm:$0xff] }
 0x3ae   :  { %1681 = vst [vmem:[#allocation1] ss:$9 sm:$0xff] %v1116_v33  ;;  %1979 = vperm.xlu0 %3082, %v1680_v18   ;;  %v1128_v33 = vperm.slane %v4339_v47, 4  ;;  %v1129_v18 = vperm.slane %v4339_v47, 5 }
 0x3af   :  { %1682 = vst [vmem:[#allocation1 + $0x1] ss:$9 sm:$0xff] %v1117_v59  ;;  %v2071_v59 = vperm.slane %v1872_v23, %v4558_v3 }
 0x3b0   :  { %1683 = vst [vmem:[#allocation1 + $0x2] ss:$9 sm:$0xff] %v1118_v34  ;;  %v1130_v34 = vperm.slane %v4339_v47, 6  ;;  %v4588_v47 = vadd.s32 4294967192, %v3413_v44  ;;  %v2723_v25 = vpop.f32.mrf.mxu3 }
 0x3b1   :  { %1684 = vst [vmem:[#allocation1 + $0x3] ss:$9 sm:$0xff] %v1119_v37  ;;  %v2075_v37 = vperm.slane %v1875_v58, %v4567_v1  ;;  %v2073_v49 = vsel %vm2072_vm9, %v2071_v59, %v2069_v9  ;;  %v4615_v58 = vadd.s32 4294967184, %v3413_v44  ;;  %v1136_v9 = vperm.slane %v4373_v27, 4 }
 0x3b2   :  { %1685 = vst [vmem:[#allocation1 + $0x4] ss:$9 sm:$0xff] %v1120_v11  ;;  %v4579_v11 = vadd.s32 4294967200, %v3413_v44  ;;  %v2696_v10 = vpop.f32.mrf.mxu1 }
 0x3b3   :  { %1686 = vst [vmem:[#allocation1 + $0x5] ss:$9 sm:$0xff] %v1121_v39  ;;  %v1881_v39 = vpop.permute.xlu0 %1880  ;;  %v2077_v26 = vsel %vm2076_vm10, %v2075_v37, %v2073_v49  ;;  %v1139_v37 = vperm.slane %v4373_v27, 7 }
 0x3b4   :  { %1687 = vst [vmem:[#allocation1 + $0x6] ss:$9 sm:$0xff] %v1122_v0  ;;  %v3002_v0 = vsel %vm2260_vm11, 1.0, %v3112_v55  ;;  %v2083_v63 = vperm.slane %v1881_v39, %v4579_v11  ;;  %v2081_v24 = vsel %vm2080_vm15, %v2079_v31, %v2077_v26  ;;  %vm2261_vm11 = vcmp.eq.s32.totalorder %v3413_v44, %v4378_v53 }
 0x3b5   :  { %1688 = vst [vmem:[#allocation1 + $0x7] ss:$9 sm:$0xff] %v1123_v29  ;;  %v1884_v29 = vpop.permute.xlu2 %1883  ;;  %3066 = vmatmul.msk.f32.gmra.mxu3 %vm555_vm1, %v3002_v0  ;;  %v1140_v31 = vperm.slane %v4383_v20, 0 }
 0x3b6   :  { %2828 = vst.msk [vmem:[%s5018_s3 + $0xf0] sm:$0xff] %vm82_vm0, %v2696_v10  ;;  %v2087_v51 = vperm.slane %v1884_v29, %v4588_v47  ;;  %v2085_v14 = vsel %vm5021_vm4, %v2083_v63, %v2081_v24  ;;  %vm2262_vm4 = vcmp.eq.s32.totalorder %v3413_v44, %v4427_v36  ;;  %v1141_v24 = vperm.slane %v4383_v20, 1 }
 0x3b7   :  { %v3004_v26 = vsel %vm2262_vm4, 1.0, %v3112_v55  ;;  %2837 = vst.msk [vmem:[%s5018_s3 + $0x138] sm:$0xff] %vm82_vm0, %v2723_v25  ;;  %vm2263_vm4 = vcmp.eq.s32.totalorder %v3413_v44, %v4437_v48 }
 0x3b8   :  { %v2089_v23 = vsel %vm5020_vm7, %v2087_v51, %v2085_v14  ;;  %vm2092_vm7 = vcmask 982912   ;;  %v2726_v63 = vpop.f32.mrf.mxu3  ;;  %v1142_v14 = vperm.slane %v4383_v20, 2  ;;  %v3005_v16 = vsel %vm2263_vm4, 1.0, %v3112_v55 }
 0x3b9   :  { %2838 = vst.msk [vmem:[%s5018_s3 + $0x140] sm:$0xff] %vm82_vm0, %v2726_v63  ;;  %vm2264_vm4 = vcmp.eq.s32.totalorder %v3413_v44, %v4395_v15 }
 0x3ba   :  { %v2699_v19 = vpop.f32.mrf.mxu1 }
 0x3bb   :  { %2829 = vst.msk [vmem:[%s5018_s3 + $0xf8] sm:$0xff] %vm82_vm0, %v2699_v19  ;;  %v1147_v19 = vperm.slane %v4383_v20, 7 }
 0x3bc   :  { %v1689_v61 = vld [vmem:[#allocation1] sm:$0xff] }
 0x3bd   :  { %1690 = vst [vmem:[#allocation1] ss:$9 sm:$0xff] %v1124_v2  ;;  %1982 = vperm.xlu2 %3081, %v1689_v61   ;;  %v1133_v2 = vperm.slane %v4373_v27, 1  ;;  %v1134_v61 = vperm.slane %v4373_v27, 2  ;;  %v1893_v49 = vpop.permute.xlu2 %1892 }
 0x3be   :  { %1691 = vst [vmem:[#allocation1 + $0x1] ss:$9 sm:$0xff] %v1125_v46  ;;  %v3003_v46 = vsel %vm2261_vm11, 1.0, %v3112_v55  ;;  %vm2096_vm11 = vcmask 1048512   ;;  %v2098_v0 = vperm.slane %v1893_v49, %v3413_v44  ;;  %v1153_v49 = vperm.slane %v4349_v35, 5 }
 0x3bf   :  { %1692 = vst [vmem:[#allocation1 + $0x2] ss:$9 sm:$0xff] %v1126_v38  ;;  %v1887_v38 = vpop.permute.xlu1 %1886  ;;  %3067 = vmatmul.msk.f32.gmra.mxu3 %vm555_vm1, %v3003_v46 }
 0x3c0   :  { %1693 = vst [vmem:[#allocation1 + $0x3] ss:$9 sm:$0xff] %v1127_v60  ;;  %v1890_v60 = vpop.permute.xlu0 %1889  ;;  %v2729_v46 = vpop.f32.mrf.mxu3 }
 0x3c1   :  { %1694 = vst [vmem:[#allocation1 + $0x4] ss:$9 sm:$0xff] %v1128_v33  ;;  %v2091_v33 = vperm.slane %v1887_v38, %v4615_v58 }
 0x3c2   :  { %1695 = vst [vmem:[#allocation1 + $0x5] ss:$9 sm:$0xff] %v1129_v18  ;;  %v1137_v18 = vperm.slane %v4373_v27, 5  ;;  %v2702_v10 = vpop.f32.mrf.mxu1 }
 0x3c3   :  { %1696 = vst [vmem:[#allocation1 + $0x6] ss:$9 sm:$0xff] %v1130_v34  ;;  %v2093_v59 = vsel %vm2092_vm7, %v2091_v33, %v2089_v23  ;;  %v1138_v34 = vperm.slane %v4373_v27, 6  ;;  %v1143_v23 = vperm.slane %v4383_v20, 3 }
 0x3c4   :  { %1697 = vst [vmem:[#allocation1 + $0x7] ss:$9 sm:$0xff] %v1131_v45  ;;  %v2095_v45 = vperm.slane %v1890_v60, %v4621_v17  ;;  %v1149_v60 = vperm.slane %v4349_v35, 1 }
 0x3c5   :  { %2830 = vst.msk [vmem:[%s5018_s3 + $0x100] sm:$0xff] %vm82_vm0, %v2702_v10 }
 0x3c6   :  { %v4633_v39 = vsel %vm2096_vm11, %v2095_v45, %v2093_v59  ;;  %2839 = vst.msk [vmem:[%s5018_s3 + $0x148] sm:$0xff] %vm82_vm0, %v2729_v46 }
 0x3c7   :  { %v1896_v27 = vpop.permute.xlu1 %1895  ;;  %3068 = vmatmul.msk.f32.gmra.mxu3 %vm555_vm1, %v3004_v26  ;;  %v1154_v26 = vperm.slane %v4349_v35, 6 }
 0x3c8   :  { %v2099_v29 = vperm.slane %v1896_v27, %v4465_v22  ;;  %v4677_v38 = vpop.xlane.xlu0 %746 }
 0x3ca   :  { %v2100_v43 = vsel %vm5022_vm12, %v2099_v29, %v2098_v0  ;;  %vm2265_vm12 = vcmp.eq.s32.totalorder %v3413_v44, %v4447_v57  ;;  %v1155_v0 = vperm.slane %v4349_v35, 7 }
 0x3cb   :  { %v1698_v13 = vld [vmem:[#allocation1] sm:$0xff]  ;;  %v3007_v45 = vsel %vm2265_vm12, 1.0, %v3112_v55  ;;  %vm5023_vm12 = vcmask 851712  }
 0x3cc   :  { %1699 = vst [vmem:[#allocation1] ss:$9 sm:$0xff] %v1132_v7  ;;  %1985 = vperm.xlu1 %3080, %v1698_v13   ;;  %v1144_v7 = vperm.slane %v4383_v20, 4  ;;  %v1146_v13 = vperm.slane %v4383_v20, 6 }
 0x3cd   :  { %1700 = vst [vmem:[#allocation1 + $0x1] ss:$9 sm:$0xff] %v1133_v2  ;;  %v1145_v2 = vperm.slane %v4383_v20, 5  ;;  %v1148_v20 = vperm.slane %v4349_v35, 0 }
 0x3ce   :  { %1701 = vst [vmem:[#allocation1 + $0x2] ss:$9 sm:$0xff] %v1134_v61  ;;  %v3006_v61 = vsel %vm2264_vm4, 1.0, %v3112_v55  ;;  %vm2266_vm4 = vcmp.eq.s32.totalorder %v3413_v44, %v4454_v6 }
 0x3cf   :  { %1702 = vst [vmem:[#allocation1 + $0x3] ss:$9 sm:$0xff] %v1135_v62  ;;  %3069 = vmatmul.msk.f32.gmra.mxu3 %vm555_vm1, %v3005_v16  ;;  %v1902_v62 = vpop.permute.xlu2 %1901  ;;  %v1905_v59 = vpop.permute.xlu1 %1904 }
 0x3d0   :  { %1703 = vst [vmem:[#allocation1 + $0x4] ss:$9 sm:$0xff] %v1136_v9  ;;  %v2732_v9 = vpop.f32.mrf.mxu3  ;;  %v1899_v25 = vpop.permute.xlu0 %1898  ;;  %v2103_v27 = vperm.slane %v1902_v62, %v4473_v50  ;;  %v1158_v62 = vperm.slane %v4391_v54, 2 }
 0x3d1   :  { %1704 = vst [vmem:[#allocation1 + $0x5] ss:$9 sm:$0xff] %v1137_v18  ;;  %v1150_v18 = vperm.slane %v4349_v35, 2  ;;  %v2101_v10 = vperm.slane %v1899_v25, %v4469_v32 }
 0x3d2   :  { %1705 = vst [vmem:[#allocation1 + $0x6] ss:$9 sm:$0xff] %v1138_v34  ;;  %v1151_v34 = vperm.slane %v4349_v35, 3 }
 0x3d3   :  { %1706 = vst [vmem:[#allocation1 + $0x7] ss:$9 sm:$0xff] %v1139_v37  ;;  %v1152_v37 = vperm.slane %v4349_v35, 4  ;;  %v2102_v63 = vsel %vm2044_vm13, %v2101_v10, %v2100_v43 }
 0x3d4   :  { %2840 = vst.msk [vmem:[%s5018_s3 + $0x150] sm:$0xff] %vm82_vm0, %v2732_v9  ;;  %v1159_v9 = vperm.slane %v4391_v54, 3 }
 0x3d7   :  { %3070 = vmatmul.msk.f32.gmra.mxu3 %vm555_vm1, %v3006_v61  ;;  %v1911_v29 = vpop.permute.xlu2 %1910  ;;  %v1914_v35 = vpop.permute.xlu1 %1913 }
 0x3d8   :  { %v1908_v16 = vpop.permute.xlu0 %1907 }
 0x3d9   :  { %v2107_v43 = vperm.slane %v1908_v16, %v4500_v8  ;;  %v1165_v16 = vperm.slane %v4403_v56, 1 }
 0x3da   :  { %v1707_v51 = vld [vmem:[#allocation1] sm:$0xff] }
 0x3db   :  { %1708 = vst [vmem:[#allocation1] ss:$9 sm:$0xff] %v1140_v31  ;;  %1988 = vperm.xlu0 %3082, %v1707_v51   ;;  %v2105_v31 = vperm.slane %v1905_v59, %v4509_v5  ;;  %v2104_v51 = vsel %vm2048_vm14, %v2103_v27, %v2102_v63  ;;  %v1161_v59 = vperm.slane %v4391_v54, 5 }
 0x3dc   :  { %1709 = vst [vmem:[#allocation1 + $0x1] ss:$9 sm:$0xff] %v1141_v24  ;;  %v2735_v24 = vpop.f32.mrf.mxu3 }
 0x3dd   :  { %1710 = vst [vmem:[#allocation1 + $0x2] ss:$9 sm:$0xff] %v1142_v14  ;;  %v2106_v14 = vsel %vm2052_vm2, %v2105_v31, %v2104_v51 }
 0x3de   :  { %1711 = vst [vmem:[#allocation1 + $0x3] ss:$9 sm:$0xff] %v1143_v23  ;;  %v2109_v23 = vperm.slane %v1911_v29, %v4528_v21 }
 0x3df   :  { %1712 = vst [vmem:[#allocation1 + $0x4] ss:$9 sm:$0xff] %v1144_v7  ;;  %3071 = vmatmul.msk.f32.gmra.mxu3 %vm555_vm1, %v3007_v45  ;;  %v1156_v7 = vperm.slane %v4391_v54, 0  ;;  %v1162_v45 = vperm.slane %v4391_v54, 6  ;;  %v1923_v25 = vpop.permute.xlu1 %1922 }
 0x3e0   :  { %1713 = vst [vmem:[#allocation1 + $0x5] ss:$9 sm:$0xff] %v1145_v2  ;;  %v2111_v2 = vperm.slane %v1914_v35, %v4525_v28  ;;  %v2117_v27 = vperm.slane %v1923_v25, %v4567_v1  ;;  %v1172_v25 = vperm.slane %v4366_v30, 0 }
 0x3e1   :  { %1714 = vst [vmem:[#allocation1 + $0x6] ss:$9 sm:$0xff] %v1146_v13  ;;  %v2108_v13 = vsel %vm2056_vm3, %v2107_v43, %v2106_v14 }
 0x3e2   :  { %1715 = vst [vmem:[#allocation1 + $0x7] ss:$9 sm:$0xff] %v1147_v19  ;;  %v1157_v19 = vperm.slane %v4391_v54, 1  ;;  %v2110_v61 = vsel %vm2060_vm5, %v2109_v23, %v2108_v13  ;;  %v1166_v23 = vperm.slane %v4403_v56, 2  ;;  %v1167_v13 = vperm.slane %v4403_v56, 3 }
 0x3e3   :  { %2841 = vst.msk [vmem:[%s5018_s3 + $0x158] sm:$0xff] %vm82_vm0, %v2735_v24  ;;  %v1164_v24 = vperm.slane %v4403_v56, 0 }
 0x3e9   :  { %v1716_v33 = vld [vmem:[#allocation1] sm:$0xff] }
 0x3ea   :  { %1717 = vst [vmem:[#allocation1] ss:$9 sm:$0xff] %v1148_v20  ;;  %1991 = vperm.xlu2 %3081, %v1716_v33   ;;  %v1920_v20 = vpop.permute.xlu2 %1919  ;;  %v2112_v33 = vsel %vm2064_vm6, %v2111_v2, %v2110_v61 }
 0x3eb   :  { %1718 = vst [vmem:[#allocation1 + $0x1] ss:$9 sm:$0xff] %v1149_v60  ;;  %v2738_v60 = vpop.f32.mrf.mxu3  ;;  %v2115_v10 = vperm.slane %v1920_v20, %v4558_v3  ;;  %v1171_v20 = vperm.slane %v4403_v56, 7 }
 0x3ec   :  { %1719 = vst [vmem:[#allocation1 + $0x2] ss:$9 sm:$0xff] %v1150_v18  ;;  %v1160_v18 = vperm.slane %v4391_v54, 4 }
 0x3ed   :  { %1720 = vst [vmem:[#allocation1 + $0x3] ss:$9 sm:$0xff] %v1151_v34  ;;  %v1917_v34 = vpop.permute.xlu0 %1916 }
 0x3ee   :  { %1721 = vst [vmem:[#allocation1 + $0x4] ss:$9 sm:$0xff] %v1152_v37  ;;  %v1163_v37 = vperm.slane %v4391_v54, 7 }
 0x3ef   :  { %1722 = vst [vmem:[#allocation1 + $0x5] ss:$9 sm:$0xff] %v1153_v49  ;;  %v2113_v49 = vperm.slane %v1917_v34, %v4552_v4 }
 0x3f0   :  { %1723 = vst [vmem:[#allocation1 + $0x6] ss:$9 sm:$0xff] %v1154_v26 }
 0x3f1   :  { %1724 = vst [vmem:[#allocation1 + $0x7] ss:$9 sm:$0xff] %v1155_v0  ;;  %v2114_v0 = vsel %vm2068_vm8, %v2113_v49, %v2112_v33  ;;  %v1173_v49 = vperm.slane %v4366_v30, 1 }
 0x3f2   :  { %2842 = vst.msk [vmem:[%s5018_s3 + $0x160] sm:$0xff] %vm82_vm0, %v2738_v60  ;;  %v1929_v54 = vpop.permute.xlu2 %1928  ;;  %v2116_v29 = vsel %vm2072_vm9, %v2115_v10, %v2114_v0  ;;  %v1176_v0 = vperm.slane %v4366_v30, 4 }
 0x3f3   :  { %v2741_v26 = vpop.f32.mrf.mxu3  ;;  %v2118_v63 = vsel %vm2076_vm10, %v2117_v27, %v2116_v29  ;;  %v2121_v14 = vperm.slane %v1929_v54, %v4579_v11  ;;  %v1175_v27 = vperm.slane %v4366_v30, 3  ;;  %v1177_v54 = vperm.slane %v4366_v30, 5 }
 0x3f4   :  { %2843 = vst.msk [vmem:[%s5018_s3 + $0x168] sm:$0xff] %vm82_vm0, %v2741_v26  ;;  %v1174_v26 = vperm.slane %v4366_v30, 2  ;;  %v1178_v29 = vperm.slane %v4366_v30, 6 }
 0x3f5   :  { %v1926_v31 = vpop.permute.xlu0 %1925 }
 0x3f6   :  { %v2119_v51 = vperm.slane %v1926_v31, %v4583_v42 }
 0x3f8   :  { %v1725_v46 = vld [vmem:[#allocation1] sm:$0xff]  ;;  %v2120_v43 = vsel %vm2080_vm15, %v2119_v51, %v2118_v63  ;;  %v1179_v63 = vperm.slane %v4366_v30, 7  ;;  %v1181_v30 = vperm.slane %v4410_v41, 1 }
 0x3f9   :  { %1726 = vst [vmem:[#allocation1] ss:$9 sm:$0xff] %v1156_v7  ;;  %1994 = vperm.xlu1 %3080, %v1725_v46   ;;  %v1932_v7 = vpop.permute.xlu1 %1931  ;;  %v2122_v2 = vsel %vm5023_vm12, %v2121_v14, %v2120_v43  ;;  %v1169_v46 = vperm.slane %v4403_v56, 5  ;;  %vm5024_vm12 = vcmask 917312   ;;  %v1180_v43 = vperm.slane %v4410_v41, 0 }
 0x3fa   :  { %1727 = vst [vmem:[#allocation1 + $0x1] ss:$9 sm:$0xff] %v1157_v19  ;;  %v1168_v19 = vperm.slane %v4403_v56, 4  ;;  %v2123_v61 = vperm.slane %v1932_v7, %v4588_v47  ;;  %v1938_v60 = vpop.permute.xlu2 %1937  ;;  %v1182_v7 = vperm.slane %v4410_v41, 2 }
 0x3fb   :  { %1728 = vst [vmem:[#allocation1 + $0x2] ss:$9 sm:$0xff] %v1158_v62  ;;  %v1170_v62 = vperm.slane %v4403_v56, 6  ;;  %v2744_v33 = vpop.f32.mrf.mxu3 }
 0x3fc   :  { %1729 = vst [vmem:[#allocation1 + $0x3] ss:$9 sm:$0xff] %v1159_v9  ;;  %v2124_v9 = vsel %vm5024_vm12, %v2123_v61, %v2122_v2  ;;  %v1183_v2 = vperm.slane %v4410_v41, 3  ;;  %v1187_v61 = vperm.slane %v4410_v41, 7  ;;  %vm2267_vm12 = vcmp.eq.s32.totalorder %v3413_v44, %v4413_v12 }
 0x3fd   :  { %1730 = vst [vmem:[#allocation1 + $0x4] ss:$9 sm:$0xff] %v1160_v18  ;;  %v3008_v18 = vsel %vm2266_vm4, 1.0, %v3112_v55  ;;  %vm5025_vm4 = vcmask 130112  }
 0x3fe   :  { %1731 = vst [vmem:[#allocation1 + $0x5] ss:$9 sm:$0xff] %v1161_v59  ;;  %v1935_v59 = vpop.permute.xlu0 %1934  ;;  %3072 = vmatmul.msk.f32.gmra.mxu3 %vm555_vm1, %v3008_v18  ;;  %v1191_v18 = vperm.slane %v4422_v52, 3 }
 0x3ff   :  { %1732 = vst [vmem:[#allocation1 + $0x6] ss:$9 sm:$0xff] %v1162_v45  ;;  %v2125_v34 = vperm.slane %v1935_v59, %v4615_v58  ;;  %v2127_v45 = vperm.slane %v1938_v60, %v4621_v17  ;;  %v1188_v60 = vperm.slane %v4422_v52, 0  ;;  %v1192_v59 = vperm.slane %v4422_v52, 4 }
 0x400   :  { %1733 = vst [vmem:[#allocation1 + $0x7] ss:$9 sm:$0xff] %v1163_v37 }
 0x401   :  { %2844 = vst.msk [vmem:[%s5018_s3 + $0x170] sm:$0xff] %vm82_vm0, %v2744_v33  ;;  %v2126_v56 = vsel %vm2092_vm7, %v2125_v34, %v2124_v9  ;;  %v1941_v31 = vpop.permute.xlu1 %1940  ;;  %v1190_v9 = vperm.slane %v4422_v52, 2  ;;  %v1193_v34 = vperm.slane %v4422_v52, 5 }
 0x402   :  { %v4760_v37 = vsel %vm2096_vm11, %v2127_v45, %v2126_v56  ;;  %v2129_v14 = vperm.slane %v1941_v31, %v3413_v44  ;;  %v1194_v45 = vperm.slane %v4422_v52, 6  ;;  %v1195_v56 = vperm.slane %v4422_v52, 7 }
 0x403   :  { %v2747_v51 = vpop.f32.mrf.mxu3  ;;  %v1203_v31 = vperm.slane %v4378_v53, 7 }
 0x404   :  { %2845 = vst.msk [vmem:[%s5018_s3 + $0x178] sm:$0xff] %vm82_vm0, %v2747_v51  ;;  %v1204_v51 = vperm.slane %v4427_v36, 0 }
 0x407   :  { %v1734_v35 = vld [vmem:[#allocation1] sm:$0xff] }
 0x408   :  { %1735 = vst [vmem:[#allocation1] ss:$9 sm:$0xff] %v1164_v24  ;;  %1997 = vperm.xlu0 %3082, %v1734_v35   ;;  %v1944_v24 = vpop.permute.xlu0 %1943 }
 0x409   :  { %1736 = vst [vmem:[#allocation1 + $0x1] ss:$9 sm:$0xff] %v1165_v16  ;;  %v2130_v35 = vperm.slane %v1944_v24, %v4465_v22  ;;  %v1205_v24 = vperm.slane %v4427_v36, 1 }
 0x40a   :  { %1737 = vst [vmem:[#allocation1 + $0x2] ss:$9 sm:$0xff] %v1166_v23 }
 0x40b   :  { %1738 = vst [vmem:[#allocation1 + $0x3] ss:$9 sm:$0xff] %v1167_v13  ;;  %v4777_v16 = vsel %vm5025_vm4, %v2130_v35, %v2129_v14  ;;  %v1184_v13 = vperm.slane %v4410_v41, 4  ;;  %v1206_v35 = vperm.slane %v4427_v36, 2  ;;  %vm2194_vm4 = vcmask 1040384  }
 0x40c   :  { %1739 = vst [vmem:[#allocation1 + $0x4] ss:$9 sm:$0xff] %v1168_v19  ;;  %v1185_v19 = vperm.slane %v4410_v41, 5 }
 0x40d   :  { %1740 = vst [vmem:[#allocation1 + $0x5] ss:$9 sm:$0xff] %v1169_v46  ;;  %v1186_v46 = vperm.slane %v4410_v41, 6  ;;  %v1189_v41 = vperm.slane %v4422_v52, 1  ;;  %v1199_v52 = vperm.slane %v4378_v53, 3 }
 0x40e   :  { %1741 = vst [vmem:[#allocation1 + $0x6] ss:$9 sm:$0xff] %v1170_v62  ;;  %v2750_v62 = vpop.f32.mrf.mxu3 }
 0x40f   :  { %1742 = vst [vmem:[#allocation1 + $0x7] ss:$9 sm:$0xff] %v1171_v20  ;;  %v3009_v20 = vsel %vm2267_vm12, 1.0, %v3112_v55  ;;  %vm2268_vm12 = vcmp.eq.s32.totalorder %v3413_v44, %v4677_v38 }
 0x410   :  { %3073 = vmatmul.msk.f32.gmra.mxu3 %vm555_vm1, %v3009_v20  ;;  %2846 = vst.msk [vmem:[%s5018_s3 + $0x180] sm:$0xff] %vm82_vm0, %v2750_v62  ;;  %v1215_v62 = vperm.slane %v4437_v48, 3  ;;  %v1217_v20 = vperm.slane %v4437_v48, 5 }
 0x416   :  { %v1743_v10 = vld [vmem:[#allocation1] sm:$0xff] }
 0x417   :  { %1744 = vst [vmem:[#allocation1] ss:$9 sm:$0xff] %v1172_v25  ;;  %2000 = vperm.xlu2 %3081, %v1743_v10   ;;  %v2753_v25 = vpop.f32.mrf.mxu3  ;;  %v1197_v10 = vperm.slane %v4378_v53, 1 }
 0x418   :  { %1745 = vst [vmem:[#allocation1 + $0x1] ss:$9 sm:$0xff] %v1173_v49  ;;  %v1196_v49 = vperm.slane %v4378_v53, 0 }
 0x419   :  { %1746 = vst [vmem:[#allocation1 + $0x2] ss:$9 sm:$0xff] %v1174_v26 }
 0x41a   :  { %1747 = vst [vmem:[#allocation1 + $0x3] ss:$9 sm:$0xff] %v1175_v27  ;;  %v1198_v27 = vperm.slane %v4378_v53, 2 }
 0x41b   :  { %1748 = vst [vmem:[#allocation1 + $0x4] ss:$9 sm:$0xff] %v1176_v0  ;;  %v1200_v0 = vperm.slane %v4378_v53, 4 }
 0x41c   :  { %1749 = vst [vmem:[#allocation1 + $0x5] ss:$9 sm:$0xff] %v1177_v54  ;;  %v1201_v54 = vperm.slane %v4378_v53, 5 }
 0x41d   :  { %1750 = vst [vmem:[#allocation1 + $0x6] ss:$9 sm:$0xff] %v1178_v29  ;;  %v1202_v29 = vperm.slane %v4378_v53, 6  ;;  %v1207_v53 = vperm.slane %v4427_v36, 3 }
 0x41e   :  { %1751 = vst [vmem:[#allocation1 + $0x7] ss:$9 sm:$0xff] %v1179_v63 }
 0x41f   :  { %2847 = vst.msk [vmem:[%s5018_s3 + $0x188] sm:$0xff] %vm82_vm0, %v2753_v25  ;;  %v2756_v63 = vpop.f32.mrf.mxu3  ;;  %v1226_v25 = vperm.slane %v4395_v15, 6 }
 0x420   :  { %2848 = vst.msk [vmem:[%s5018_s3 + $0x190] sm:$0xff] %vm82_vm0, %v2756_v63  ;;  %v1235_v63 = vperm.slane %v4447_v57, 7 }
 0x425   :  { %v1752_v23 = vld [vmem:[#allocation1] sm:$0xff] }
 0x426   :  { %2003 = vperm.xlu1 %3080, %v1752_v23   ;;  %1753 = vst [vmem:[#allocation1] ss:$9 sm:$0xff] %v1180_v43  ;;  %v1208_v43 = vperm.slane %v4427_v36, 4  ;;  %v1209_v23 = vperm.slane %v4427_v36, 5 }
 0x427   :  { %1754 = vst [vmem:[#allocation1 + $0x1] ss:$9 sm:$0xff] %v1181_v30  ;;  %v2191_v30 = vrot.slane %v4760_v37, 7  ;;  %v1212_v37 = vperm.slane %v4437_v48, 0 }
 0x428   :  { %1755 = vst [vmem:[#allocation1 + $0x2] ss:$9 sm:$0xff] %v1182_v7  ;;  %v1210_v7 = vperm.slane %v4427_v36, 6 }
 0x429   :  { %1756 = vst [vmem:[#allocation1 + $0x3] ss:$9 sm:$0xff] %v1183_v2  ;;  %v1211_v2 = vperm.slane %v4427_v36, 7  ;;  %v1214_v36 = vperm.slane %v4437_v48, 2 }
 0x42a   :  { %1757 = vst [vmem:[#allocation1 + $0x4] ss:$9 sm:$0xff] %v1184_v13  ;;  %v2759_v13 = vpop.f32.mrf.mxu3 }
 0x42b   :  { %1758 = vst [vmem:[#allocation1 + $0x5] ss:$9 sm:$0xff] %v1185_v19  ;;  %v4829_v19 = vsel %vm2194_vm4, %v4633_v39, %v2191_v30  ;;  %v1216_v39 = vperm.slane %v4437_v48, 4  ;;  %v1241_v30 = vperm.slane %v4454_v6, 5 }
 0x42c   :  { %1759 = vst [vmem:[#allocation1 + $0x6] ss:$9 sm:$0xff] %v1186_v46  ;;  %v1213_v46 = vperm.slane %v4437_v48, 1 }
 0x42d   :  { %1760 = vst [vmem:[#allocation1 + $0x7] ss:$9 sm:$0xff] %v1187_v61 }
 0x42e   :  { %2849 = vst.msk [vmem:[%s5018_s3 + $0x198] sm:$0xff] %vm82_vm0, %v2759_v13  ;;  %v1244_v13 = vperm.slane %v4413_v12, 0 }
 0x434   :  { %v1761_v33 = vld [vmem:[#allocation1] sm:$0xff] }
 0x435   :  { %2006 = vperm.xlu0 %3082, %v1761_v33   ;;  %1762 = vst [vmem:[#allocation1] ss:$9 sm:$0xff] %v1188_v60  ;;  %v1218_v60 = vperm.slane %v4437_v48, 6  ;;  %v2762_v33 = vpop.f32.mrf.mxu3 }
 0x436   :  { %1763 = vst [vmem:[#allocation1 + $0x1] ss:$9 sm:$0xff] %v1189_v41  ;;  %v1219_v41 = vperm.slane %v4437_v48, 7  ;;  %v1223_v48 = vperm.slane %v4395_v15, 3 }
 0x437   :  { %1764 = vst [vmem:[#allocation1 + $0x2] ss:$9 sm:$0xff] %v1190_v9  ;;  %v1220_v9 = vperm.slane %v4395_v15, 0 }
 0x438   :  { %1765 = vst [vmem:[#allocation1 + $0x3] ss:$9 sm:$0xff] %v1191_v18  ;;  %v1221_v18 = vperm.slane %v4395_v15, 1 }
 0x439   :  { %1766 = vst [vmem:[#allocation1 + $0x4] ss:$9 sm:$0xff] %v1192_v59 }
 0x43a   :  { %1767 = vst [vmem:[#allocation1 + $0x5] ss:$9 sm:$0xff] %v1193_v34  ;;  %v1222_v34 = vperm.slane %v4395_v15, 2 }
 0x43b   :  { %1768 = vst [vmem:[#allocation1 + $0x6] ss:$9 sm:$0xff] %v1194_v45  ;;  %v1224_v45 = vperm.slane %v4395_v15, 4 }
 0x43c   :  { %1769 = vst [vmem:[#allocation1 + $0x7] ss:$9 sm:$0xff] %v1195_v56  ;;  %v1225_v56 = vperm.slane %v4395_v15, 5 }
 0x43d   :  { %2850 = vst.msk [vmem:[%s5018_s3 + $0x1a0] sm:$0xff] %vm82_vm0, %v2762_v33  ;;  %v1252_v33 = vperm.slane %v4677_v38, 0 }
 0x443   :  { %v1770_v26 = vld [vmem:[#allocation1] sm:$0xff] }
 0x444   :  { %2009 = vperm.xlu2 %3081, %v1770_v26   ;;  %1771 = vst [vmem:[#allocation1] ss:$9 sm:$0xff] %v1196_v49  ;;  %v1227_v49 = vperm.slane %v4395_v15, 7  ;;  %v3010_v26 = vsel %vm2268_vm12, 1.0, %v3112_v55  ;;  %v1229_v15 = vperm.slane %v4447_v57, 1  ;;  %v1232_v55 = vperm.slane %v4447_v57, 4 }
 0x445   :  { %1772 = vst [vmem:[#allocation1 + $0x1] ss:$9 sm:$0xff] %v1197_v10  ;;  %v2765_v10 = vpop.f32.mrf.mxu3  ;;  %3074 = vmatmul.msk.f32.gmra.mxu3 %vm555_vm1, %v3010_v26  ;;  %vm5027_vm1 = vcmask 851712  }
 0x446   :  { %1773 = vst [vmem:[#allocation1 + $0x2] ss:$9 sm:$0xff] %v1198_v27  ;;  %v1228_v27 = vperm.slane %v4447_v57, 0 }
 0x447   :  { %1774 = vst [vmem:[#allocation1 + $0x3] ss:$9 sm:$0xff] %v1199_v52 }
 0x448   :  { %1775 = vst [vmem:[#allocation1 + $0x4] ss:$9 sm:$0xff] %v1200_v0  ;;  %v1230_v0 = vperm.slane %v4447_v57, 2 }
 0x449   :  { %1776 = vst [vmem:[#allocation1 + $0x5] ss:$9 sm:$0xff] %v1201_v54  ;;  %v1231_v54 = vperm.slane %v4447_v57, 3 }
 0x44a   :  { %1777 = vst [vmem:[#allocation1 + $0x6] ss:$9 sm:$0xff] %v1202_v29  ;;  %v1233_v29 = vperm.slane %v4447_v57, 5 }
 0x44b   :  { %1778 = vst [vmem:[#allocation1 + $0x7] ss:$9 sm:$0xff] %v1203_v31  ;;  %v1234_v31 = vperm.slane %v4447_v57, 6  ;;  %v1239_v57 = vperm.slane %v4454_v6, 3 }
 0x44c   :  { %2851 = vst.msk [vmem:[%s5018_s3 + $0x1a8] sm:$0xff] %vm82_vm0, %v2765_v10 }
 0x452   :  { %v1779_v14 = vld [vmem:[#allocation1] sm:$0xff] }
 0x453   :  { %2012 = vperm.xlu1 %3080, %v1779_v14   ;;  %1780 = vst [vmem:[#allocation1] ss:$9 sm:$0xff] %v1204_v51  ;;  %v2768_v51 = vpop.f32.mrf.mxu3  ;;  %v1237_v14 = vperm.slane %v4454_v6, 1 }
 0x454   :  { %1781 = vst [vmem:[#allocation1 + $0x1] ss:$9 sm:$0xff] %v1205_v24  ;;  %v1236_v24 = vperm.slane %v4454_v6, 0 }
 0x455   :  { %1782 = vst [vmem:[#allocation1 + $0x2] ss:$9 sm:$0xff] %v1206_v35 }
 0x456   :  { %1783 = vst [vmem:[#allocation1 + $0x3] ss:$9 sm:$0xff] %v1207_v53  ;;  %v1238_v53 = vperm.slane %v4454_v6, 2 }
 0x457   :  { %1784 = vst [vmem:[#allocation1 + $0x4] ss:$9 sm:$0xff] %v1208_v43  ;;  %v1240_v43 = vperm.slane %v4454_v6, 4 }
 0x458   :  { %1785 = vst [vmem:[#allocation1 + $0x5] ss:$9 sm:$0xff] %v1209_v23  ;;  %v1242_v23 = vperm.slane %v4454_v6, 6 }
 0x459   :  { %1786 = vst [vmem:[#allocation1 + $0x6] ss:$9 sm:$0xff] %v1210_v7  ;;  %v1243_v7 = vperm.slane %v4454_v6, 7  ;;  %v1246_v6 = vperm.slane %v4413_v12, 2 }
 0x45a   :  { %1787 = vst [vmem:[#allocation1 + $0x7] ss:$9 sm:$0xff] %v1211_v2 }
 0x45b   :  { %2852 = vst.msk [vmem:[%s5018_s3 + $0x1b0] sm:$0xff] %vm82_vm0, %v2768_v51  ;;  %v2771_v2 = vpop.f32.mrf.mxu3 }
 0x45c   :  { %2853 = vst.msk [vmem:[%s5018_s3 + $0x1b8] sm:$0xff] %vm82_vm0, %v2771_v2 }
 0x461   :  { %v1788_v61 = vld [vmem:[#allocation1] sm:$0xff] }
 0x462   :  { %2015 = vperm.xlu0 %3082, %v1788_v61   ;;  %1789 = vst [vmem:[#allocation1] ss:$9 sm:$0xff] %v1212_v37 }
 0x463   :  { %1790 = vst [vmem:[#allocation1 + $0x1] ss:$9 sm:$0xff] %v1213_v46  ;;  %v2774_v37 = vpop.f32.mrf.mxu3  ;;  %v1245_v46 = vperm.slane %v4413_v12, 1 }
 0x464   :  { %1791 = vst [vmem:[#allocation1 + $0x2] ss:$9 sm:$0xff] %v1214_v36  ;;  %v1247_v36 = vperm.slane %v4413_v12, 3 }
 0x465   :  { %1792 = vst [vmem:[#allocation1 + $0x3] ss:$9 sm:$0xff] %v1215_v62  ;;  %v1248_v62 = vperm.slane %v4413_v12, 4 }
 0x466   :  { %1793 = vst [vmem:[#allocation1 + $0x4] ss:$9 sm:$0xff] %v1216_v39  ;;  %v1249_v39 = vperm.slane %v4413_v12, 5 }
 0x467   :  { %1794 = vst [vmem:[#allocation1 + $0x5] ss:$9 sm:$0xff] %v1217_v20  ;;  %v1250_v20 = vperm.slane %v4413_v12, 6 }
 0x468   :  { %1795 = vst [vmem:[#allocation1 + $0x6] ss:$9 sm:$0xff] %v1218_v60  ;;  %v1251_v60 = vperm.slane %v4413_v12, 7  ;;  %v1255_v12 = vperm.slane %v4677_v38, 3 }
 0x469   :  { %1796 = vst [vmem:[#allocation1 + $0x7] ss:$9 sm:$0xff] %v1219_v41 }
 0x46a   :  { %2854 = vst.msk [vmem:[%s5018_s3 + $0x1c0] sm:$0xff] %vm82_vm0, %v2774_v37 }
 0x46b   :  { %v2777_v41 = vpop.f32.mrf.mxu3 }
 0x46c   :  { %2855 = vst.msk [vmem:[%s5018_s3 + $0x1c8] sm:$0xff] %vm82_vm0, %v2777_v41 }
 0x470   :  { %v1797_v59 = vld [vmem:[#allocation1] sm:$0xff] }
 0x471   :  { %2018 = vperm.xlu2 %3081, %v1797_v59   ;;  %1798 = vst [vmem:[#allocation1] ss:$9 sm:$0xff] %v1220_v9  ;;  %v1253_v9 = vperm.slane %v4677_v38, 1 }
 0x472   :  { %1799 = vst [vmem:[#allocation1 + $0x1] ss:$9 sm:$0xff] %v1221_v18 }
 0x473   :  { %1800 = vst [vmem:[#allocation1 + $0x2] ss:$9 sm:$0xff] %v1222_v34  ;;  %v2780_v59 = vpop.f32.mrf.mxu3  ;;  %v1254_v34 = vperm.slane %v4677_v38, 2 }
 0x474   :  { %1801 = vst [vmem:[#allocation1 + $0x3] ss:$9 sm:$0xff] %v1223_v48  ;;  %v1256_v48 = vperm.slane %v4677_v38, 4 }
 0x475   :  { %1802 = vst [vmem:[#allocation1 + $0x4] ss:$9 sm:$0xff] %v1224_v45  ;;  %v1257_v45 = vperm.slane %v4677_v38, 5 }
 0x476   :  { %1803 = vst [vmem:[#allocation1 + $0x5] ss:$9 sm:$0xff] %v1225_v56  ;;  %v1258_v56 = vperm.slane %v4677_v38, 6 }
 0x477   :  { %1804 = vst [vmem:[#allocation1 + $0x6] ss:$9 sm:$0xff] %v1226_v25  ;;  %v1259_v25 = vperm.slane %v4677_v38, 7 }
 0x478   :  { %1805 = vst [vmem:[#allocation1 + $0x7] ss:$9 sm:$0xff] %v1227_v49 }
 0x479   :  { %2856 = vst.msk [vmem:[%s5018_s3 + $0x1d0] sm:$0xff] %vm82_vm0, %v2780_v59 }
 0x47b   :  { %v2783_v49 = vpop.f32.mrf.mxu3 }
 0x47c   :  { %2857 = vst.msk [vmem:[%s5018_s3 + $0x1d8] sm:$0xff] %vm82_vm0, %v2783_v49 }
 0x47f   :  { %v1806_v52 = vld [vmem:[#allocation1] sm:$0xff] }
 0x480   :  { %2021 = vperm.xlu1 %3080, %v1806_v52   ;;  %1807 = vst [vmem:[#allocation1] ss:$9 sm:$0xff] %v1228_v27  ;;  %v1950_v52 = vpop.permute.xlu1 %1949 }
 0x481   :  { %1808 = vst [vmem:[#allocation1 + $0x1] ss:$9 sm:$0xff] %v1229_v15  ;;  %v1947_v15 = vpop.permute.xlu2 %1946 }
 0x482   :  { %1809 = vst [vmem:[#allocation1 + $0x2] ss:$9 sm:$0xff] %v1230_v0  ;;  %v1953_v0 = vpop.permute.xlu0 %1952  ;;  %v2132_v37 = vperm.slane %v1947_v15, %v4469_v32 }
 0x483   :  { %1810 = vst [vmem:[#allocation1 + $0x3] ss:$9 sm:$0xff] %v1231_v54  ;;  %v2786_v26 = vpop.f32.mrf.mxu3 }
 0x484   :  { %1811 = vst [vmem:[#allocation1 + $0x4] ss:$9 sm:$0xff] %v1232_v55 }
 0x485   :  { %1812 = vst [vmem:[#allocation1 + $0x5] ss:$9 sm:$0xff] %v1233_v29 }
 0x486   :  { %1813 = vst [vmem:[#allocation1 + $0x6] ss:$9 sm:$0xff] %v1234_v31 }
 0x487   :  { %1814 = vst [vmem:[#allocation1 + $0x7] ss:$9 sm:$0xff] %v1235_v63 }
 0x488   :  { %2858 = vst.msk [vmem:[%s5018_s3 + $0x1e0] sm:$0xff] %vm82_vm0, %v2786_v26  ;;  %v1959_v55 = vpop.permute.xlu1 %1958 }
 0x489   :  { %v1956_v54 = vpop.permute.xlu2 %1955 }
 0x48a   :  { %v1962_v29 = vpop.permute.xlu0 %1961 }
 0x48b   :  { %v2789_v38 = vpop.f32.mrf.mxu3 }
 0x48c   :  { %2859 = vst.msk [vmem:[%s5018_s3 + $0x1e8] sm:$0xff] %vm82_vm0, %v2789_v38 }
 0x48e   :  { %v1815_v35 = vld [vmem:[#allocation1] sm:$0xff] }
 0x48f   :  { %2024 = vperm.xlu0 %3082, %v1815_v35   ;;  %1816 = vst [vmem:[#allocation1] ss:$9 sm:$0xff] %v1236_v24 }
 0x490   :  { %1817 = vst [vmem:[#allocation1 + $0x1] ss:$9 sm:$0xff] %v1237_v14  ;;  %v1968_v31 = vpop.permute.xlu1 %1967 }
 0x491   :  { %1818 = vst [vmem:[#allocation1 + $0x2] ss:$9 sm:$0xff] %v1238_v53  ;;  %v1965_v63 = vpop.permute.xlu2 %1964 }
 0x492   :  { %1819 = vst [vmem:[#allocation1 + $0x3] ss:$9 sm:$0xff] %v1239_v57  ;;  %v1971_v51 = vpop.permute.xlu0 %1970  ;;  %v2144_v26 = vperm.slane %v1965_v63, %v4552_v4 }
 0x493   :  { %1820 = vst [vmem:[#allocation1 + $0x4] ss:$9 sm:$0xff] %v1240_v43  ;;  %v2792_v27 = vpop.f32.mrf.mxu3 }
 0x494   :  { %1821 = vst [vmem:[#allocation1 + $0x5] ss:$9 sm:$0xff] %v1241_v30 }
 0x495   :  { %1822 = vst [vmem:[#allocation1 + $0x6] ss:$9 sm:$0xff] %v1242_v23 }
 0x496   :  { %1823 = vst [vmem:[#allocation1 + $0x7] ss:$9 sm:$0xff] %v1243_v7 }
 0x497   :  { %2860 = vst.msk [vmem:[%s5018_s3 + $0x1f0] sm:$0xff] %vm82_vm0, %v2792_v27 }
 0x498   :  { %v4931_v24 = vpop.permute.xlu1 %1976 }
 0x499   :  { %v4933_v14 = vpop.permute.xlu2 %1973 }
 0x49a   :  { %v4935_v35 = vpop.permute.xlu0 %1979 }
 0x49d   :  { %v1824_v61 = vld [vmem:[#allocation1] sm:$0xff] }
 0x49e   :  { %2027 = vperm.xlu2 %3081, %v1824_v61   ;;  %1825 = vst [vmem:[#allocation1] ss:$9 sm:$0xff] %v1244_v13  ;;  %v2133_v61 = vsel %vm2044_vm13, %v2132_v37, %v4777_v16 }
 0x49f   :  { %1826 = vst [vmem:[#allocation1 + $0x1] ss:$9 sm:$0xff] %v1245_v46 }
 0x4a0   :  { %1827 = vst [vmem:[#allocation1 + $0x2] ss:$9 sm:$0xff] %v1246_v6  ;;  %v4937_v53 = vpop.permute.xlu1 %1985  ;;  %v2136_v6 = vperm.slane %v1953_v0, %v4509_v5 }
 0x4a1   :  { %1828 = vst [vmem:[#allocation1 + $0x3] ss:$9 sm:$0xff] %v1247_v36  ;;  %v4939_v57 = vpop.permute.xlu2 %1982  ;;  %v2134_v36 = vperm.slane %v1950_v52, %v4473_v50 }
 0x4a2   :  { %1829 = vst [vmem:[#allocation1 + $0x4] ss:$9 sm:$0xff] %v1248_v62  ;;  %v1989_v30 = vpop.permute.xlu0 %1988 }
 0x4a3   :  { %1830 = vst [vmem:[#allocation1 + $0x5] ss:$9 sm:$0xff] %v1249_v39  ;;  %v2135_v39 = vsel %vm2048_vm14, %v2134_v36, %v2133_v61 }
 0x4a4   :  { %1831 = vst [vmem:[#allocation1 + $0x6] ss:$9 sm:$0xff] %v1250_v20  ;;  %v2160_v20 = vperm.slane %v1989_v30, %v3413_v44  ;;  %v2140_v44 = vperm.slane %v1959_v55, %v4528_v21 }
 0x4a5   :  { %1832 = vst [vmem:[#allocation1 + $0x7] ss:$9 sm:$0xff] %v1251_v60  ;;  %v2137_v60 = vsel %vm2052_vm2, %v2136_v6, %v2135_v39 }
 0x4a8   :  { %v1995_v23 = vpop.permute.xlu1 %1994 }
 0x4a9   :  { %v1992_v7 = vpop.permute.xlu2 %1991  ;;  %v2163_v41 = vperm.slane %v1995_v23, %v4469_v32 }
 0x4aa   :  { %v1998_v2 = vpop.permute.xlu0 %1997 }
 0x4ac   :  { %v1833_v18 = vld [vmem:[#allocation1] sm:$0xff] }
 0x4ad   :  { %2030 = vperm.xlu1 %3080, %v1833_v18   ;;  %1834 = vst [vmem:[#allocation1] ss:$9 sm:$0xff] %v1252_v33  ;;  %v2138_v33 = vperm.slane %v1956_v54, %v4500_v8  ;;  %v2165_v18 = vperm.slane %v1998_v2, %v4473_v50 }
 0x4ae   :  { %1835 = vst [vmem:[#allocation1 + $0x1] ss:$9 sm:$0xff] %v1253_v9  ;;  %v2161_v9 = vperm.slane %v1992_v7, %v4465_v22 }
 0x4af   :  { %1836 = vst [vmem:[#allocation1 + $0x2] ss:$9 sm:$0xff] %v1254_v34  ;;  %v2139_v34 = vsel %vm2056_vm3, %v2138_v33, %v2137_v60 }
 0x4b0   :  { %1837 = vst [vmem:[#allocation1 + $0x3] ss:$9 sm:$0xff] %v1255_v12  ;;  %v2004_v13 = vpop.permute.xlu1 %2003  ;;  %v2142_v12 = vperm.slane %v1962_v29, %v4525_v28  ;;  %v2141_v22 = vsel %vm2060_vm5, %v2140_v44, %v2139_v34 }
 0x4b1   :  { %1838 = vst [vmem:[#allocation1 + $0x4] ss:$9 sm:$0xff] %v1256_v48  ;;  %v2001_v46 = vpop.permute.xlu2 %2000 }
 0x4b2   :  { %1839 = vst [vmem:[#allocation1 + $0x5] ss:$9 sm:$0xff] %v1257_v45  ;;  %v2007_v62 = vpop.permute.xlu0 %2006  ;;  %v2167_v50 = vperm.slane %v2001_v46, %v4509_v5 }
 0x4b3   :  { %1840 = vst [vmem:[#allocation1 + $0x6] ss:$9 sm:$0xff] %v1258_v56  ;;  %v2169_v56 = vperm.slane %v2004_v13, %v4500_v8  ;;  %v2171_v49 = vperm.slane %v2007_v62, %v4528_v21  ;;  %v2148_v8 = vperm.slane %v1971_v51, %v4567_v1  ;;  %v2146_v21 = vperm.slane %v1968_v31, %v4558_v3 }
 0x4b4   :  { %1841 = vst [vmem:[#allocation1 + $0x7] ss:$9 sm:$0xff] %v1259_v25  ;;  %v2152_v51 = vperm.slane %v4931_v24, %v4579_v11 }
 0x4b9   :  { %v2010_v59 = vpop.permute.xlu2 %2009 }
 0x4ba   :  { %v2173_v55 = vperm.slane %v2010_v59, %v4525_v28  ;;  %v2154_v28 = vperm.slane %v4935_v35, %v4588_v47  ;;  %v2158_v35 = vperm.slane %v4937_v53, %v4621_v17 }
 0x4bb   :  { %v1842_v10 = vld [vmem:[#allocation1] sm:$0xff] }
 0x4bc   :  { %2033 = vperm.xlu0 %3082, %v1842_v10   ;;  %v2143_v10 = vsel %vm2064_vm6, %v2142_v12, %v2141_v22 }
 0x4bd   :  { %v2145_v52 = vsel %vm2068_vm8, %v2144_v26, %v2143_v10 }
 0x4be   :  { %v2147_v63 = vsel %vm2072_vm9, %v2146_v21, %v2145_v52 }
 0x4bf   :  { %v2149_v23 = vsel %vm2076_vm10, %v2148_v8, %v2147_v63 }
 0x4c5   :  { %v2013_v16 = vpop.permute.xlu1 %2012 }
 0x4c6   :  { %v2175_v5 = vperm.slane %v2013_v16, %v4552_v4  ;;  %v2150_v4 = vperm.slane %v4933_v14, %v4583_v42 }
 0x4c8   :  { %v2795_v43 = vpop.f32.mrf.mxu3  ;;  %v2151_v37 = vsel %vm2080_vm15, %v2150_v4, %v2149_v23 }
 0x4c9   :  { %2861 = vst.msk [vmem:[%s5018_s3 + $0x1f8] sm:$0xff] %vm82_vm0, %v2795_v43  ;;  %vm5026_vm0 = vcmask 130112   ;;  %v2153_v24 = vsel %vm5027_vm1, %v2152_v51, %v2151_v37  ;;  %s3114_s3 = smov [#allocation2]  }
 0x4ca   :  { %v2162_v48 = vsel %vm5026_vm0, %v2161_v9, %v2160_v20  ;;  %s2869_s26 = sshll.u32 %s3114_s3, 4  ;;  %s2870_s26 = int_to_ptr.vmem [resolvable:$true] %s2869_s26 }
 0x4cb   :  { %v2164_v45 = vsel %vm2044_vm13, %v2163_v41, %v2162_v48  ;;  %v2019_v54 = vpop.permute.xlu2 %2018  ;;  %vm5028_vm13 = vcmask 917312  }
 0x4cc   :  { %v2166_v32 = vsel %vm2048_vm14, %v2165_v18, %v2164_v45  ;;  %v2179_v2 = vperm.slane %v2019_v54, %v4567_v1  ;;  %v2155_v14 = vsel %vm5028_vm13, %v2154_v28, %v2153_v24  ;;  %v2156_v1 = vperm.slane %v4939_v57, %v4615_v58  ;;  %vm5029_vm14 = vmmov %vm5027_vm1 }
 0x4cd   :  { %v2168_v38 = vsel %vm2052_vm2, %v2167_v50, %v2166_v32  ;;  %vm5030_vm2 = vmmov %vm5028_vm13 }
 0x4ce   :  { %v2170_v27 = vsel %vm2056_vm3, %v2169_v56, %v2168_v38  ;;  %v2157_v39 = vsel %vm2092_vm7, %v2156_v1, %v2155_v14  ;;  %vm2196_vm3 = vcmask 1042434  }
 0x4cf   :  { %v2172_v0 = vsel %vm2060_vm5, %v2171_v49, %v2170_v27  ;;  %v2159_v60 = vsel %vm2096_vm11, %v2158_v35, %v2157_v39  ;;  %vm2198_vm5 = vcmask 1041408  }
 0x4d0   :  { %v2174_v43 = vsel %vm2064_vm6, %v2173_v55, %v2172_v0  ;;  %vm2202_vm6 = vcmp.lt.s32.totalorder %v2035_v40, 512 }
 0x4d1   :  { %v2176_v7 = vsel %vm2068_vm8, %v2175_v5, %v2174_v43 }
 0x4d4   :  { %v2016_v25 = vpop.permute.xlu0 %2015 }
 0x4d5   :  { %v2177_v29 = vperm.slane %v2016_v25, %v4558_v3 }
 0x4d7   :  { %v2178_v3 = vsel %vm2072_vm9, %v2177_v29, %v2176_v7 }
 0x4d8   :  { %v2180_v6 = vsel %vm2076_vm10, %v2179_v2, %v2178_v3 }
 0x4f2   :  { %v2022_v15 = vpop.permute.xlu1 %2021 }
 0x4f3   :  { %v2181_v31 = vperm.slane %v2022_v15, %v4583_v42 }
 0x4f5   :  { %v2182_v36 = vsel %vm2080_vm15, %v2181_v31, %v2180_v6 }
 0x4f8   :  { %v2028_v61 = vpop.permute.xlu2 %2027 }
 0x4f9   :  { %v2185_v62 = vperm.slane %v2028_v61, %v4588_v47  ;;  %v2192_v47 = vrot.slane %v2159_v60, 6 }
 0x501   :  { %v2025_v30 = vpop.permute.xlu0 %2024 }
 0x502   :  { %v2183_v13 = vperm.slane %v2025_v30, %v4579_v11 }
 0x504   :  { %v2184_v11 = vsel %vm5029_vm14, %v2183_v13, %v2182_v36 }
 0x505   :  { %v2186_v41 = vsel %vm5030_vm2, %v2185_v62, %v2184_v11 }
 0x51f   :  { %v2031_v46 = vpop.permute.xlu1 %2030 }
 0x520   :  { %v2187_v42 = vperm.slane %v2031_v46, %v4615_v58 }
 0x522   :  { %v2188_v33 = vsel %vm2092_vm7, %v2187_v42, %v2186_v41 }
 0x52e   :  { %v2034_v20 = vpop.permute.xlu0 %2033 }
 0x52f   :  { %v2189_v53 = vperm.slane %v2034_v20, %v4621_v17 }
 0x531   :  { %v2190_v9 = vsel %vm2096_vm11, %v2189_v53, %v2188_v33 }
 0x532   :  { %v2193_v58 = vrot.slane %v2190_v9, 5 }
 0x534   :  { %v2197_v57 = vsel %vm2196_vm3, %v2192_v47, %v2193_v58 }
 0x535   :  { %v2199_v17 = vsel %vm2198_vm5, %v4829_v19, %v2197_v57 }
 0x536   :  { %2204 = vst.msk [vmem:[#allocation2] sm:$0xf] %vm2202_vm6, %v2199_v17 }
 0x537   :  { %2874 = dma.vmem_to_hbm [thread:$0]  %s2870_s26, 64, %s2872_s29, [#allocation3]  }
 0x538   :  { %3110 = dma.done.wait [#allocation3], 64  }
 0x539   :  { %3111 = vsyncadd [#allocation3], 4294967232 }
 0x53a   :  { %2881 = vsyncpa [#allocation3], 1 }

</bundles_post_ra>
